<compile_context>
chip_gen: v7x
topology: tpu7x:2x2x1
jax: 0.10.0
libtpu: 0.0.40
codegen_flags: <defaults>
</compile_context>

<pallas_src>
import math

import jax
import jax.numpy as jnp
from jax import lax
from jax.experimental import pallas as pl
from jax.experimental.pallas import tpu as pltpu

NATTR = 35
C1 = 512                       # channels of input_feature_1 (max-pooled -> shared feat)
D3, D4, D5 = 128, 256, 512     # per-attribute feature widths
DSEG = D3 + D4 + D5            # 896 = concatenated per-attribute segment
FEAT_DIM = DSEG + C1           # 1408, matches nn.Linear(1408, 1)

BN_EPS = 1e-5                  # nn.BatchNorm1d default eps
NORM_EPS = 1e-12               # F.normalize eps
MMA_CLAMP = 0.99999

_DOT_LAST = (((1,), (1,)), ((), ()))   # contract last dim of both operands, no batch


# ----------------------------------------------------------------------------- helpers

def _stack_rows(rows):
    """Stack a list of (1, N) f32 rows into (len(rows), N) using only elementwise
    ops (iota masks + VPU mul/add) — guaranteed Mosaic lowering, no relayout."""
    nb = len(rows)
    b_iota = lax.broadcasted_iota(jnp.int32, (nb, 1), 0)          # (nb, 1)
    out = rows[0] * (b_iota == 0).astype(jnp.float32)
    for b in range(1, nb):
        out = out + rows[b] * (b_iota == b).astype(jnp.float32)
    return out


# ----------------------------------------------------------------------------- kernels

def _classifier_kernel(f1_ref, f345_ref, w_ref, g_ref, bt_ref, fm_ref):
    # f1_ref  : (B, H*W, C1)        input_feature_1 as NHWC-flattened (sublane reduce)
    # f345_ref: (NATTR*B, DSEG)     [f3 | f4 | f5] flattened + concatenated
    # w_ref   : (NATTR, FEAT_DIM)   raw per-attribute classifier weights
    # g_ref   : (1, NATTR)          BatchNorm1d(1) gamma per attribute
    # bt_ref  : (1, NATTR)          BatchNorm1d(1) beta  per attribute
    # fm_ref  : (B, NATTR)          feature map (lane-dense output slab)
    B = fm_ref.shape[0]
    nattr = w_ref.shape[0]

    # ---- AdaptiveMaxPool2d(1) + squeeze: reduce over the SUBLANE (H*W) axis --
    feat = _stack_rows(
        [jnp.max(f1_ref[b], axis=0, keepdims=True) for b in range(B)])   # (B, C1)

    # ---- classifier weight split (static, lane-aligned: 0..896 / 896..1408) --
    w345 = w_ref[:, 0:DSEG]                                              # (NATTR, 896)
    w1 = w_ref[:, DSEG:FEAT_DIM]                                         # (NATTR, C1)

    # ---- per-attribute segment dot products: ONE accumulated MXU matmul ------
    f345 = f345_ref[...]                                                 # (NATTR*B, 896)
    S = lax.dot_general(f345, w345, _DOT_LAST,
                        precision=lax.Precision.HIGHEST,
                        preferred_element_type=jnp.float32)              # (NATTR*B, NATTR)
    # Squared norms stay on the exact f32 VPU/XLU path (BN(B=2) is very sensitive
    # to relative errors in the normalizer).
    sq70 = jnp.sum(f345 * f345, axis=1, keepdims=True)                   # (NATTR*B, 1)

    # ---- extract S[a*B+b, a] via masked sublane reduces -> (B, NATTR) directly
    r_idx = lax.broadcasted_iota(jnp.int32, (nattr * B, nattr), 0)
    a_idx = lax.broadcasted_iota(jnp.int32, (nattr * B, nattr), 1)
    dot_rows, sq_rows = [], []
    for b in range(B):                                 # B is tiny & static (unrolled)
        sel = (r_idx == a_idx * B + b).astype(jnp.float32)               # (NATTR*B, NATTR)
        dot_rows.append(jnp.sum(sel * S, axis=0, keepdims=True))         # (1, NATTR)
        sq_rows.append(jnp.sum(sel * sq70, axis=0, keepdims=True))       # (1, NATTR)
    dot_attr = _stack_rows(dot_rows)                                     # (B, NATTR)
    sq_attr = _stack_rows(sq_rows)                                       # (B, NATTR)

    # ---- shared-feature term: ONE MXU matmul serves all 35 attributes --------
    dot_sh = lax.dot_general(feat, w1, _DOT_LAST,
                             precision=lax.Precision.HIGHEST,
                             preferred_element_type=jnp.float32)         # (B, NATTR)
    sq_sh = jnp.sum(feat * feat, axis=1, keepdims=True)                  # (B, 1)

    dot = dot_attr + dot_sh                                              # (B, NATTR)
    sq = sq_attr + sq_sh                                                 # (B, NATTR)

    # F.normalize(x, p=2, dim=1, eps=1e-12) folded into the scalar logit:
    #   (x / max(||x||, eps)) . w  ==  (x . w) * rsqrt(max(||x||^2, eps^2))
    logits = dot * lax.rsqrt(jnp.maximum(sq, NORM_EPS * NORM_EPS))
    # Linear bias dropped: BatchNorm's mean subtraction cancels any per-attribute
    # constant exactly (training-mode BN), so it has zero effect on the output.

    # ---- BatchNorm1d(1) per attribute, training-mode (biased) batch stats -----
    mean = jnp.mean(logits, axis=0, keepdims=True)                       # (1, NATTR)
    cent = logits - mean
    var = jnp.mean(cent * cent, axis=0, keepdims=True)                   # (1, NATTR)
    y = cent * lax.rsqrt(var + BN_EPS)
    fm_ref[...] = g_ref[...] * y + bt_ref[...]                           # (B, NATTR)


def _mma_rowmax_kernel(w_ref, rowmax_ref):
    # Weight-only MMA branch (depends only on the classifier weights).
    w = w_ref[...]                                                       # (NATTR, FEAT_DIM)
    wn = w * lax.rsqrt(jnp.maximum(jnp.sum(w * w, axis=1, keepdims=True),
                                   NORM_EPS * NORM_EPS))
    # HIGHEST precision: the result feeds arccos near the +/-0.99999 clamp where
    # the derivative is huge.
    cos = lax.dot_general(wn, wn, _DOT_LAST,
                          precision=lax.Precision.HIGHEST,
                          preferred_element_type=jnp.float32)            # (NATTR, NATTR)
    rr = lax.broadcasted_iota(jnp.int32, cos.shape, 0)
    cc = lax.broadcasted_iota(jnp.int32, cos.shape, 1)
    cos = jnp.where(rr == cc, -cos, cos)      # == cos - 2 * diag(diag(cos))
    # cos is symmetric, so the column max equals the row max and yields a
    # lane-dense (1, NATTR) result.
    rowmax_ref[...] = jnp.clip(jnp.max(cos, axis=0, keepdims=True),
                               -MMA_CLAMP, MMA_CLAMP)


# ----------------------------------------------------------------------------- wrappers

def mma_rowmax(Wc):
    """Clipped off-diagonal row-max of the weight cosine matrix.  Depends only on
    Wc — callers that reuse the classifier weights across microbatches can hoist
    and cache this call once per weight update."""
    return pl.pallas_call(
        _mma_rowmax_kernel,
        out_shape=jax.ShapeDtypeStruct((1, NATTR), jnp.float32),
        grid=(1,),
        in_specs=[pl.BlockSpec((NATTR, FEAT_DIM), lambda i: (0, 0))],
        out_specs=pl.BlockSpec((1, NATTR), lambda i: (0, 0)),
        compiler_params=pltpu.CompilerParams(dimension_semantics=("arbitrary",)),
        cost_estimate=pl.CostEstimate(
            flops=2 * NATTR * FEAT_DIM * NATTR,
            transcendentals=NATTR,
            bytes_accessed=(NATTR * FEAT_DIM + NATTR) * 4),
    )(Wc)


@jax.jit
def base_classifier_forward(f1, f2, f3, f4, f5, img_mask, Wc, bc, gamma, beta):
    """Mirrors BaseClassifier.forward.  f2 and img_mask are unused (as in the
    source).  The Linear bias bc is mathematically cancelled by BatchNorm's mean
    subtraction, so it is accepted but not used."""
    del f2, img_mask, bc
    B, c1, H, W = f1.shape

    # Layout plumbing in the wrapper (tiny, sub-microsecond XLA ops):
    #   * f1 NCHW -> (B, H*W, C1) so the maxpool reduces over sublanes (lane-dense 512)
    #   * f3/f4/f5 (NATTR, B, D) -> one dense (NATTR*B, 896) slab for the MXU matmul
    f1t = jnp.transpose(f1, (0, 2, 3, 1)).reshape(B, H * W, c1)
    f345 = jnp.concatenate([f3.reshape(NATTR * B, D3),
                            f4.reshape(NATTR * B, D4),
                            f5.reshape(NATTR * B, D5)], axis=1)

    fm = pl.pallas_call(
        _classifier_kernel,
        out_shape=jax.ShapeDtypeStruct((B, NATTR), jnp.float32),
        grid=(1,),
        in_specs=[
            pl.BlockSpec((B, H * W, c1), lambda i: (0, 0, 0)),       # input_feature_1
            pl.BlockSpec((NATTR * B, DSEG), lambda i: (0, 0)),       # [f3|f4|f5] packed
            pl.BlockSpec((NATTR, FEAT_DIM), lambda i: (0, 0)),       # classifier weights
            pl.BlockSpec((1, NATTR), lambda i: (0, 0)),              # bn gamma
            pl.BlockSpec((1, NATTR), lambda i: (0, 0)),              # bn beta
        ],
        out_specs=pl.BlockSpec((B, NATTR), lambda i: (0, 0)),
        compiler_params=pltpu.CompilerParams(dimension_semantics=("arbitrary",)),
        cost_estimate=pl.CostEstimate(
            flops=2 * (NATTR * B * DSEG * NATTR + B * c1 * NATTR),
            transcendentals=4 * B * NATTR,
            bytes_accessed=(B * H * W * c1 + NATTR * B * DSEG
                            + NATTR * FEAT_DIM + 4 * NATTR + B * NATTR) * 4),
    )(f1t, f345, Wc, gamma.reshape(1, NATTR), beta.reshape(1, NATTR))

    # Weight-only MMA branch, hoisted into its own tiny kernel (cacheable per
    # weight update by callers).  Tiny epilogue: acos has no Mosaic lowering, so
    # the 35-element clip/acos/mean stays in XLA.
    rowmax = mma_rowmax(Wc)
    loss = -jnp.mean(jnp.arccos(rowmax[0]))
    return fm, loss


# ----------------------------------------------------------------------------- reference

def reference(f1, f3, f4, f5, Wc, bc, gamma, beta):
    feat = jnp.max(f1, axis=(2, 3))
    outs = []
    for i in range(NATTR):
        ft = jnp.concatenate([f3[i], f4[i], f5[i], feat], axis=1)
        ftn = ft / jnp.maximum(jnp.linalg.norm(ft, axis=1, keepdims=True), NORM_EPS)
        logit = ftn @ Wc[i] + bc[i]
        m = jnp.mean(logit)
        v = jnp.mean((logit - m) ** 2)
        outs.append((gamma[i] * (logit - m) / jnp.sqrt(v + BN_EPS) + beta[i])[:, None])
    fm = jnp.concatenate(outs, axis=1)
    Wn = Wc / jnp.maximum(jnp.linalg.norm(Wc, axis=1, keepdims=True), NORM_EPS)
    cos = jnp.matmul(Wn, Wn.T, precision=lax.Precision.HIGHEST)
    cos = cos - 2.0 * jnp.diag(jnp.diag(cos))
    loss = -jnp.mean(jnp.arccos(jnp.clip(jnp.max(cos, axis=1), -MMA_CLAMP, MMA_CLAMP)))
    return fm, loss


# ----------------------------------------------------------------------------- main

if __name__ == "__main__":
    key = jax.random.PRNGKey(0)
    ks = jax.random.split(key, 8)
    B, H, W = 2, 8, 8

    f1 = jax.random.normal(ks[0], (B, C1, H, W), jnp.float32)
    f2 = jax.random.normal(ks[1], (B, 128, H, W), jnp.float32)        # unused by forward
    f3 = jax.random.normal(ks[2], (NATTR, B, D3), jnp.float32)
    f4 = jax.random.normal(ks[3], (NATTR, B, D4), jnp.float32)
    f5 = jax.random.normal(ks[4], (NATTR, B, D5), jnp.float32)
    img_mask = jnp.ones((B, 1, H, W), jnp.float32)                    # unused by forward

    # Deterministic parameter init mirroring 35 x nn.Sequential(Linear(1408,1), BatchNorm1d(1)).
    bound = 1.0 / math.sqrt(FEAT_DIM)
    Wc = jax.random.uniform(ks[5], (NATTR, FEAT_DIM), jnp.float32, -bound, bound)
    bc = jax.random.uniform(ks[6], (NATTR,), jnp.float32, -bound, bound)
    gamma = jnp.ones((NATTR,), jnp.float32)      # BatchNorm1d default weight init
    beta = jnp.zeros((NATTR,), jnp.float32)      # BatchNorm1d default bias init

    feature_map, loss = base_classifier_forward(f1, f2, f3, f4, f5, img_mask,
                                                Wc, bc, gamma, beta)
    jax.block_until_ready((feature_map, loss))

    fm_ref, loss_ref = reference(f1, f3, f4, f5, Wc, bc, gamma, beta)
    assert feature_map.shape == (B, NATTR)
    assert jnp.allclose(feature_map, fm_ref, atol=1e-4, rtol=1e-4), "feature_map mismatch"
    assert jnp.allclose(loss, loss_ref, atol=1e-5, rtol=1e-5), "loss mismatch"

    print("KERNEL_OK")
</pallas_src>

<mosaic_0001>
module attributes {stable_mosaic.version = 11 : i64} {
  func.func @_mma_rowmax_kernel(%arg0: i32, %arg1: memref<35x1408xf32, #tpu.memory_space<vmem>>, %arg2: memref<1x35xf32, #tpu.memory_space<vmem>>) attributes {dimension_semantics = [#tpu.dimension_semantics<arbitrary>], iteration_bounds = array<i64: 1>, scalar_prefetch = 0 : i64, scratch_operands = 0 : i64, tpu.core_type = #tpu.core_type<tc>, window_params = [{pipeline_mode = #tpu.pipeline_mode<synchronous>, transform_indices = @transform_0, window_bounds = array<i64: 35, 1408>}, {pipeline_mode = #tpu.pipeline_mode<synchronous>, transform_indices = @transform_1, window_bounds = array<i64: 1, 35>}]} {
    %c0 = arith.constant 0 : index
    %c0_0 = arith.constant 0 : index
    %0 = vector.load %arg1[%c0, %c0_0] : memref<35x1408xf32, #tpu.memory_space<vmem>>, vector<35x1408xf32>
    %1 = arith.mulf %0, %0 : vector<35x1408xf32>
    %cst = arith.constant dense<0.000000e+00> : vector<35xf32>
    %2 = vector.multi_reduction <add>, %1, %cst [1] : vector<35x1408xf32> to vector<35xf32>
    %3 = vector.shape_cast %2 : vector<35xf32> to vector<35x1xf32>
    %cst_1 = arith.constant 1.000000e-24 : f32
    %4 = vector.broadcast %cst_1 : f32 to vector<35x1xf32>
    %5 = arith.maximumf %3, %4 : vector<35x1xf32>
    %6 = math.rsqrt %5 : vector<35x1xf32>
    %7 = vector.broadcast %6 : vector<35x1xf32> to vector<35x1408xf32>
    %8 = arith.mulf %0, %7 : vector<35x1408xf32>
    %cst_2 = arith.constant dense<0.000000e+00> : vector<35x35xf32>
    %9 = tpu.matmul %8, %8, %cst_2 {dimension_numbers = #tpu.dot_dimension_numbers<[1], [1], [0], [0], [0, 0, 1, 0], [], []>, precision = #tpu.contract_precision<fp32>} : vector<35x1408xf32>, vector<35x1408xf32>, vector<35x35xf32> -> vector<35x35xf32>
    %10 = tpu.iota {dimensions = array<i32: 0>} : vector<35x35xi32>
    %11 = tpu.iota {dimensions = array<i32: 1>} : vector<35x35xi32>
    %12 = arith.cmpi eq, %10, %11 : vector<35x35xi32>
    %cst_3 = arith.constant 0.000000e+00 : f32
    %13 = vector.broadcast %cst_3 : f32 to vector<35x35xf32>
    %14 = arith.subf %13, %9 : vector<35x35xf32>
    %15 = arith.select %12, %14, %9 : vector<35x35xi1>, vector<35x35xf32>
    %cst_4 = arith.constant dense<0xFF800000> : vector<35xf32>
    %16 = vector.multi_reduction <maximumf>, %15, %cst_4 [0] : vector<35x35xf32> to vector<35xf32>
    %17 = vector.shape_cast %16 : vector<35xf32> to vector<1x35xf32>
    %cst_5 = arith.constant -0.999989986 : f32
    %cst_6 = arith.constant 0.999989986 : f32
    %18 = vector.broadcast %cst_5 : f32 to vector<1x35xf32>
    %19 = arith.maximumf %18, %17 : vector<1x35xf32>
    %20 = vector.broadcast %cst_6 : f32 to vector<1x35xf32>
    %21 = arith.minimumf %20, %19 : vector<1x35xf32>
    %c0_7 = arith.constant 0 : index
    %c0_8 = arith.constant 0 : index
    %22 = vector.load %arg2[%c0_7, %c0_8] : memref<1x35xf32, #tpu.memory_space<vmem>>, vector<1x35xf32>
    tpu.vector_store %arg2[%c0_7, %c0_8], %21 {strides = array<i32>} : memref<1x35xf32, #tpu.memory_space<vmem>>, vector<1x35xf32>,
    return
  }
  func.func @transform_0(%arg0: i32) -> (i32, i32) {
    %c0_i32 = arith.constant 0 : i32
    %c0_i32_0 = arith.constant 0 : i32
    %c0_i32_1 = arith.constant 0 : i32
    return %c0_i32, %c0_i32_0 : i32, i32
  }
  func.func @transform_1(%arg0: i32) -> (i32, i32) {
    %c0_i32 = arith.constant 0 : i32
    %c0_i32_0 = arith.constant 0 : i32
    %c0_i32_1 = arith.constant 0 : i32
    return %c0_i32, %c0_i32_0 : i32, i32
  }
}

module attributes {stable_mosaic.version = 11 : i64} {
  func.func @_classifier_kernel(%arg0: i32, %arg1: memref<2x64x512xf32, #tpu.memory_space<vmem>>, %arg2: memref<70x896xf32, #tpu.memory_space<vmem>>, %arg3: memref<35x1408xf32, #tpu.memory_space<vmem>>, %arg4: memref<1x35xf32, #tpu.memory_space<vmem>>, %arg5: memref<1x35xf32, #tpu.memory_space<vmem>>, %arg6: memref<2x35xf32, #tpu.memory_space<vmem>>) attributes {dimension_semantics = [#tpu.dimension_semantics<arbitrary>], iteration_bounds = array<i64: 1>, scalar_prefetch = 0 : i64, scratch_operands = 0 : i64, tpu.core_type = #tpu.core_type<tc>, window_params = [{pipeline_mode = #tpu.pipeline_mode<synchronous>, transform_indices = @transform_0, window_bounds = array<i64: 2, 64, 512>}, {pipeline_mode = #tpu.pipeline_mode<synchronous>, transform_indices = @transform_1, window_bounds = array<i64: 70, 896>}, {pipeline_mode = #tpu.pipeline_mode<synchronous>, transform_indices = @transform_2, window_bounds = array<i64: 35, 1408>}, {pipeline_mode = #tpu.pipeline_mode<synchronous>, transform_indices = @transform_3, window_bounds = array<i64: 1, 35>}, {pipeline_mode = #tpu.pipeline_mode<synchronous>, transform_indices = @transform_4, window_bounds = array<i64: 1, 35>}, {pipeline_mode = #tpu.pipeline_mode<synchronous>, transform_indices = @transform_5, window_bounds = array<i64: 2, 35>}]} {
    %c0 = arith.constant 0 : index
    %c0_0 = arith.constant 0 : index
    %c0_1 = arith.constant 0 : index
    %0 = vector.load %arg1[%c0, %c0_0, %c0_1] : memref<2x64x512xf32, #tpu.memory_space<vmem>>, vector<1x64x512xf32>
    %1 = vector.shape_cast %0 : vector<1x64x512xf32> to vector<64x512xf32>
    %cst = arith.constant dense<0xFF800000> : vector<512xf32>
    %2 = vector.multi_reduction <maximumf>, %1, %cst [0] : vector<64x512xf32> to vector<512xf32>
    %3 = vector.shape_cast %2 : vector<512xf32> to vector<1x512xf32>
    %c1 = arith.constant 1 : index
    %c0_2 = arith.constant 0 : index
    %c0_3 = arith.constant 0 : index
    %4 = vector.load %arg1[%c1, %c0_2, %c0_3] : memref<2x64x512xf32, #tpu.memory_space<vmem>>, vector<1x64x512xf32>
    %5 = vector.shape_cast %4 : vector<1x64x512xf32> to vector<64x512xf32>
    %cst_4 = arith.constant dense<0xFF800000> : vector<512xf32>
    %6 = vector.multi_reduction <maximumf>, %5, %cst_4 [0] : vector<64x512xf32> to vector<512xf32>
    %7 = vector.shape_cast %6 : vector<512xf32> to vector<1x512xf32>
    %8 = tpu.iota {dimensions = array<i32: 0>} : vector<2x1xi32>
    %c0_i32 = arith.constant 0 : i32
    %9 = vector.broadcast %c0_i32 : i32 to vector<2x1xi32>
    %10 = arith.cmpi eq, %8, %9 : vector<2x1xi32>
    %11 = arith.extui %10 : vector<2x1xi1> to vector<2x1xi32>
    %12 = arith.sitofp %11 : vector<2x1xi32> to vector<2x1xf32>
    %13 = vector.broadcast %3 : vector<1x512xf32> to vector<2x512xf32>
    %14 = vector.broadcast %12 : vector<2x1xf32> to vector<2x512xf32>
    %15 = arith.mulf %13, %14 : vector<2x512xf32>
    %c1_i32 = arith.constant 1 : i32
    %16 = vector.broadcast %c1_i32 : i32 to vector<2x1xi32>
    %17 = arith.cmpi eq, %8, %16 : vector<2x1xi32>
    %18 = arith.extui %17 : vector<2x1xi1> to vector<2x1xi32>
    %19 = arith.sitofp %18 : vector<2x1xi32> to vector<2x1xf32>
    %20 = vector.broadcast %7 : vector<1x512xf32> to vector<2x512xf32>
    %21 = vector.broadcast %19 : vector<2x1xf32> to vector<2x512xf32>
    %22 = arith.mulf %20, %21 : vector<2x512xf32>
    %23 = arith.addf %15, %22 : vector<2x512xf32>
    %c0_5 = arith.constant 0 : index
    %c0_6 = arith.constant 0 : index
    %24 = vector.load %arg3[%c0_5, %c0_6] : memref<35x1408xf32, #tpu.memory_space<vmem>>, vector<35x896xf32>
    %c0_7 = arith.constant 0 : index
    %c896 = arith.constant 896 : index
    %25 = vector.load %arg3[%c0_7, %c896] : memref<35x1408xf32, #tpu.memory_space<vmem>>, vector<35x512xf32>
    %c0_8 = arith.constant 0 : index
    %c0_9 = arith.constant 0 : index
    %26 = vector.load %arg2[%c0_8, %c0_9] : memref<70x896xf32, #tpu.memory_space<vmem>>, vector<70x896xf32>
    %cst_10 = arith.constant dense<0.000000e+00> : vector<70x35xf32>
    %27 = tpu.matmul %26, %24, %cst_10 {dimension_numbers = #tpu.dot_dimension_numbers<[1], [1], [0], [0], [0, 0, 1, 0], [], []>, precision = #tpu.contract_precision<fp32>} : vector<70x896xf32>, vector<35x896xf32>, vector<70x35xf32> -> vector<70x35xf32>
    %28 = arith.mulf %26, %26 : vector<70x896xf32>
    %cst_11 = arith.constant dense<0.000000e+00> : vector<70xf32>
    %29 = vector.multi_reduction <add>, %28, %cst_11 [1] : vector<70x896xf32> to vector<70xf32>
    %30 = vector.shape_cast %29 : vector<70xf32> to vector<70x1xf32>
    %31 = tpu.iota {dimensions = array<i32: 0>} : vector<70x35xi32>
    %32 = tpu.iota {dimensions = array<i32: 1>} : vector<70x35xi32>
    %c2_i32 = arith.constant 2 : i32
    %33 = vector.broadcast %c2_i32 : i32 to vector<70x35xi32>
    %34 = arith.muli %32, %33 : vector<70x35xi32>
    %c0_i32_12 = arith.constant 0 : i32
    %35 = vector.broadcast %c0_i32_12 : i32 to vector<70x35xi32>
    %36 = arith.addi %34, %35 : vector<70x35xi32>
    %37 = arith.cmpi eq, %31, %36 : vector<70x35xi32>
    %38 = arith.extui %37 : vector<70x35xi1> to vector<70x35xi32>
    %39 = arith.sitofp %38 : vector<70x35xi32> to vector<70x35xf32>
    %40 = arith.mulf %39, %27 : vector<70x35xf32>
    %cst_13 = arith.constant dense<0.000000e+00> : vector<35xf32>
    %41 = vector.multi_reduction <add>, %40, %cst_13 [0] : vector<70x35xf32> to vector<35xf32>
    %42 = vector.shape_cast %41 : vector<35xf32> to vector<1x35xf32>
    %43 = vector.broadcast %30 : vector<70x1xf32> to vector<70x35xf32>
    %44 = arith.mulf %39, %43 : vector<70x35xf32>
    %cst_14 = arith.constant dense<0.000000e+00> : vector<35xf32>
    %45 = vector.multi_reduction <add>, %44, %cst_14 [0] : vector<70x35xf32> to vector<35xf32>
    %46 = vector.shape_cast %45 : vector<35xf32> to vector<1x35xf32>
    %c2_i32_15 = arith.constant 2 : i32
    %47 = vector.broadcast %c2_i32_15 : i32 to vector<70x35xi32>
    %48 = arith.muli %32, %47 : vector<70x35xi32>
    %c1_i32_16 = arith.constant 1 : i32
    %49 = vector.broadcast %c1_i32_16 : i32 to vector<70x35xi32>
    %50 = arith.addi %48, %49 : vector<70x35xi32>
    %51 = arith.cmpi eq, %31, %50 : vector<70x35xi32>
    %52 = arith.extui %51 : vector<70x35xi1> to vector<70x35xi32>
    %53 = arith.sitofp %52 : vector<70x35xi32> to vector<70x35xf32>
    %54 = arith.mulf %53, %27 : vector<70x35xf32>
    %cst_17 = arith.constant dense<0.000000e+00> : vector<35xf32>
    %55 = vector.multi_reduction <add>, %54, %cst_17 [0] : vector<70x35xf32> to vector<35xf32>
    %56 = vector.shape_cast %55 : vector<35xf32> to vector<1x35xf32>
    %57 = vector.broadcast %30 : vector<70x1xf32> to vector<70x35xf32>
    %58 = arith.mulf %53, %57 : vector<70x35xf32>
    %cst_18 = arith.constant dense<0.000000e+00> : vector<35xf32>
    %59 = vector.multi_reduction <add>, %58, %cst_18 [0] : vector<70x35xf32> to vector<35xf32>
    %60 = vector.shape_cast %59 : vector<35xf32> to vector<1x35xf32>
    %61 = tpu.iota {dimensions = array<i32: 0>} : vector<2x1xi32>
    %c0_i32_19 = arith.constant 0 : i32
    %62 = vector.broadcast %c0_i32_19 : i32 to vector<2x1xi32>
    %63 = arith.cmpi eq, %61, %62 : vector<2x1xi32>
    %64 = arith.extui %63 : vector<2x1xi1> to vector<2x1xi32>
    %65 = arith.sitofp %64 : vector<2x1xi32> to vector<2x1xf32>
    %66 = vector.broadcast %42 : vector<1x35xf32> to vector<2x35xf32>
    %67 = vector.broadcast %65 : vector<2x1xf32> to vector<2x35xf32>
    %68 = arith.mulf %66, %67 : vector<2x35xf32>
    %c1_i32_20 = arith.constant 1 : i32
    %69 = vector.broadcast %c1_i32_20 : i32 to vector<2x1xi32>
    %70 = arith.cmpi eq, %61, %69 : vector<2x1xi32>
    %71 = arith.extui %70 : vector<2x1xi1> to vector<2x1xi32>
    %72 = arith.sitofp %71 : vector<2x1xi32> to vector<2x1xf32>
    %73 = vector.broadcast %56 : vector<1x35xf32> to vector<2x35xf32>
    %74 = vector.broadcast %72 : vector<2x1xf32> to vector<2x35xf32>
    %75 = arith.mulf %73, %74 : vector<2x35xf32>
    %76 = arith.addf %68, %75 : vector<2x35xf32>
    %77 = tpu.iota {dimensions = array<i32: 0>} : vector<2x1xi32>
    %c0_i32_21 = arith.constant 0 : i32
    %78 = vector.broadcast %c0_i32_21 : i32 to vector<2x1xi32>
    %79 = arith.cmpi eq, %77, %78 : vector<2x1xi32>
    %80 = arith.extui %79 : vector<2x1xi1> to vector<2x1xi32>
    %81 = arith.sitofp %80 : vector<2x1xi32> to vector<2x1xf32>
    %82 = vector.broadcast %46 : vector<1x35xf32> to vector<2x35xf32>
    %83 = vector.broadcast %81 : vector<2x1xf32> to vector<2x35xf32>
    %84 = arith.mulf %82, %83 : vector<2x35xf32>
    %c1_i32_22 = arith.constant 1 : i32
    %85 = vector.broadcast %c1_i32_22 : i32 to vector<2x1xi32>
    %86 = arith.cmpi eq, %77, %85 : vector<2x1xi32>
    %87 = arith.extui %86 : vector<2x1xi1> to vector<2x1xi32>
    %88 = arith.sitofp %87 : vector<2x1xi32> to vector<2x1xf32>
    %89 = vector.broadcast %60 : vector<1x35xf32> to vector<2x35xf32>
    %90 = vector.broadcast %88 : vector<2x1xf32> to vector<2x35xf32>
    %91 = arith.mulf %89, %90 : vector<2x35xf32>
    %92 = arith.addf %84, %91 : vector<2x35xf32>
    %cst_23 = arith.constant dense<0.000000e+00> : vector<2x35xf32>
    %93 = tpu.matmul %23, %25, %cst_23 {dimension_numbers = #tpu.dot_dimension_numbers<[1], [1], [0], [0], [0, 0, 1, 0], [], []>, precision = #tpu.contract_precision<fp32>} : vector<2x512xf32>, vector<35x512xf32>, vector<2x35xf32> -> vector<2x35xf32>
    %94 = arith.mulf %23, %23 : vector<2x512xf32>
    %cst_24 = arith.constant dense<0.000000e+00> : vector<2xf32>
    %95 = vector.multi_reduction <add>, %94, %cst_24 [1] : vector<2x512xf32> to vector<2xf32>
    %96 = vector.shape_cast %95 : vector<2xf32> to vector<2x1xf32>
    %97 = arith.addf %76, %93 : vector<2x35xf32>
    %98 = vector.broadcast %96 : vector<2x1xf32> to vector<2x35xf32>
    %99 = arith.addf %92, %98 : vector<2x35xf32>
    %cst_25 = arith.constant 1.000000e-24 : f32
    %100 = vector.broadcast %cst_25 : f32 to vector<2x35xf32>
    %101 = arith.maximumf %99, %100 : vector<2x35xf32>
    %102 = math.rsqrt %101 : vector<2x35xf32>
    %103 = arith.mulf %97, %102 : vector<2x35xf32>
    %cst_26 = arith.constant dense<0.000000e+00> : vector<35xf32>
    %104 = vector.multi_reduction <add>, %103, %cst_26 [0] : vector<2x35xf32> to vector<35xf32>
    %105 = vector.shape_cast %104 : vector<35xf32> to vector<1x35xf32>
    %cst_27 = arith.constant 2.000000e+00 : f32
    %106 = vector.broadcast %cst_27 : f32 to vector<1x35xf32>
    %107 = arith.divf %105, %106 : vector<1x35xf32>
    %108 = vector.broadcast %107 : vector<1x35xf32> to vector<2x35xf32>
    %109 = arith.subf %103, %108 : vector<2x35xf32>
    %110 = arith.mulf %109, %109 : vector<2x35xf32>
    %cst_28 = arith.constant dense<0.000000e+00> : vector<35xf32>
    %111 = vector.multi_reduction <add>, %110, %cst_28 [0] : vector<2x35xf32> to vector<35xf32>
    %112 = vector.shape_cast %111 : vector<35xf32> to vector<1x35xf32>
    %cst_29 = arith.constant 2.000000e+00 : f32
    %113 = vector.broadcast %cst_29 : f32 to vector<1x35xf32>
    %114 = arith.divf %112, %113 : vector<1x35xf32>
    %cst_30 = arith.constant 9.99999974E-6 : f32
    %115 = vector.broadcast %cst_30 : f32 to vector<1x35xf32>
    %116 = arith.addf %114, %115 : vector<1x35xf32>
    %117 = math.rsqrt %116 : vector<1x35xf32>
    %118 = vector.broadcast %117 : vector<1x35xf32> to vector<2x35xf32>
    %119 = arith.mulf %109, %118 : vector<2x35xf32>
    %c0_31 = arith.constant 0 : index
    %c0_32 = arith.constant 0 : index
    %120 = vector.load %arg4[%c0_31, %c0_32] : memref<1x35xf32, #tpu.memory_space<vmem>>, vector<1x35xf32>
    %121 = vector.broadcast %120 : vector<1x35xf32> to vector<2x35xf32>
    %122 = arith.mulf %121, %119 : vector<2x35xf32>
    %c0_33 = arith.constant 0 : index
    %c0_34 = arith.constant 0 : index
    %123 = vector.load %arg5[%c0_33, %c0_34] : memref<1x35xf32, #tpu.memory_space<vmem>>, vector<1x35xf32>
    %124 = vector.broadcast %123 : vector<1x35xf32> to vector<2x35xf32>
    %125 = arith.addf %122, %124 : vector<2x35xf32>
    %c0_35 = arith.constant 0 : index
    %c0_36 = arith.constant 0 : index
    %126 = vector.load %arg6[%c0_35, %c0_36] : memref<2x35xf32, #tpu.memory_space<vmem>>, vector<2x35xf32>
    tpu.vector_store %arg6[%c0_35, %c0_36], %125 {strides = array<i32>} : memref<2x35xf32, #tpu.memory_space<vmem>>, vector<2x35xf32>,
    return
  }
  func.func @transform_0(%arg0: i32) -> (i32, i32, i32) {
    %c0_i32 = arith.constant 0 : i32
    %c0_i32_0 = arith.constant 0 : i32
    %c0_i32_1 = arith.constant 0 : i32
    %c0_i32_2 = arith.constant 0 : i32
    return %c0_i32, %c0_i32_0, %c0_i32_1 : i32, i32, i32
  }
  func.func @transform_1(%arg0: i32) -> (i32, i32) {
    %c0_i32 = arith.constant 0 : i32
    %c0_i32_0 = arith.constant 0 : i32
    %c0_i32_1 = arith.constant 0 : i32
    return %c0_i32, %c0_i32_0 : i32, i32
  }
  func.func @transform_2(%arg0: i32) -> (i32, i32) {
    %c0_i32 = arith.constant 0 : i32
    %c0_i32_0 = arith.constant 0 : i32
    %c0_i32_1 = arith.constant 0 : i32
    return %c0_i32, %c0_i32_0 : i32, i32
  }
  func.func @transform_3(%arg0: i32) -> (i32, i32) {
    %c0_i32 = arith.constant 0 : i32
    %c0_i32_0 = arith.constant 0 : i32
    %c0_i32_1 = arith.constant 0 : i32
    return %c0_i32, %c0_i32_0 : i32, i32
  }
  func.func @transform_4(%arg0: i32) -> (i32, i32) {
    %c0_i32 = arith.constant 0 : i32
    %c0_i32_0 = arith.constant 0 : i32
    %c0_i32_1 = arith.constant 0 : i32
    return %c0_i32, %c0_i32_0 : i32, i32
  }
  func.func @transform_5(%arg0: i32) -> (i32, i32) {
    %c0_i32 = arith.constant 0 : i32
    %c0_i32_0 = arith.constant 0 : i32
    %c0_i32_1 = arith.constant 0 : i32
    return %c0_i32, %c0_i32_0 : i32, i32
  }
}

</mosaic_0001>

<bundles_post_ra>
// kernel: base_classifier_forward.3
= control target key start
LH: loop header
LB: loop body
LE: loop exit
PB: predicated region body
PF: predicated region fallthrough
CT: control target
= control target key end

     0   :  { %vm166_vm0 = vcmask 1042432   ;;  %vm5839_vm1 = vmmov 0   ;;  %vm4948_vm5 = vcmask 285696   ;;  %vm4953_vm8 = vcmask 280576   ;;  %s7603_s0 = inlined_call_operand.vmem [shape: f32[35,1408], index: 0, kind: input, shape index: {}]   ;;  %s7604_s1 = inlined_call_operand.vmem [shape: f32[1,35], index: 1, kind: output, shape index: {}]  }
   0x1   :  { %v5853_v0 = vld [vmem:[%s7603_s0 + $0xb0] sm:$0xff]  ;;  %v5858_v1 = vld [vmem:[%s7603_s0 + $0xb8] sm:$0xff]  ;;  %v32_v2 = vld [vmem:[%s7603_s0 + $0xc0] sm:$0xff]  ;;  %vm4967_vm9 = vcmask 278528  }
   0x2   :  { %v33_v3 = vld [vmem:[%s7603_s0 + $0xc8] sm:$0xff]  ;;  %v85_v4 = vmul.f32 %v5853_v0, %v5853_v0  ;;  %v86_v5 = vmul.f32 %v5858_v1, %v5858_v1  ;;  %v87_v6 = vmul.f32 %v32_v2, %v32_v2  ;;  %v34_v7 = vld [vmem:[%s7603_s0 + $0xd0] sm:$0xff]  ;;  %v5876_v10 = vld [vmem:[%s7603_s0] sm:$0xff] }
   0x3   :  { %v88_v8 = vmul.f32 %v33_v3, %v33_v3  ;;  %v35_v11 = vld [vmem:[%s7603_s0 + $0xd8] sm:$0xff]  ;;  %v5884_v12 = vld [vmem:[%s7603_s0 + $0x8] sm:$0xff]  ;;  %v5889_v13 = vld [vmem:[%s7603_s0 + $0x10] sm:$0xff]  ;;  %v63_v14 = vmul.f32 %v5876_v10, %v5876_v10  ;;  %v89_v17 = vmul.f32 %v34_v7, %v34_v7 }
   0x4   :  { %v142_v9 = vadd.f32 %v86_v5, %v85_v4  ;;  %7734 = vst [vmem:[#allocation2_spill] sm:$0xff] %v5889_v13  ;;  %v5896_v15 = vld [vmem:[%s7603_s0 + $0xe0] sm:$0xff]  ;;  %v5901_v16 = vld [vmem:[%s7603_s0 + $0xe8] sm:$0xff]  ;;  %v5906_v19 = vld [vmem:[%s7603_s0 + $0x18] sm:$0xff]  ;;  %v64_v20 = vmul.f32 %v5884_v12, %v5884_v12  ;;  %v65_v24 = vmul.f32 %v5889_v13, %v5889_v13  ;;  %v90_v25 = vmul.f32 %v35_v11, %v35_v11 }
   0x5   :  { %7735 = vst [vmem:[#allocation3_spill] sm:$0xff] %v5906_v19  ;;  %v38_v21 = vld [vmem:[%s7603_s0 + $0xf0] sm:$0xff]  ;;  %v5916_v22 = vld [vmem:[%s7603_s0 + $0xf8] sm:$0xff]  ;;  %v40_v23 = vld [vmem:[%s7603_s0 + $0x100] sm:$0xff]  ;;  %v66_v31 = vmul.f32 %v5906_v19, %v5906_v19  ;;  %v91_v37 = vmul.f32 %v5896_v15, %v5896_v15  ;;  %v92_v38 = vmul.f32 %v5901_v16, %v5901_v16 }
   0x6   :  { %v143_v18 = vadd.f32 %v142_v9, %v87_v6  ;;  %7736 = vst [vmem:[#allocation4_spill] sm:$0xff] %v5916_v22  ;;  %v12_v27 = vld [vmem:[%s7603_s0 + $0x20] sm:$0xff]  ;;  %v5929_v28 = vld [vmem:[%s7603_s0 + $0x108] sm:$0xff]  ;;  %v5934_v29 = vld [vmem:[%s7603_s0 + $0x110] sm:$0xff]  ;;  %v118_v32 = vadd.f32 %v64_v20, %v63_v14  ;;  %v93_v39 = vmul.f32 %v38_v21, %v38_v21  ;;  %v94_v42 = vmul.f32 %v5916_v22, %v5916_v22 }
   0x7   :  { %v13_v30 = vld [vmem:[%s7603_s0 + $0x28] sm:$0xff]  ;;  %v43_v33 = vld [vmem:[%s7603_s0 + $0x118] sm:$0xff]  ;;  %v5947_v34 = vld [vmem:[%s7603_s0 + $0x120] sm:$0xff]  ;;  %v96_v35 = vmul.f32 %v5929_v28, %v5929_v28  ;;  %v97_v36 = vmul.f32 %v5934_v29, %v5934_v29  ;;  %v67_v45 = vmul.f32 %v12_v27, %v12_v27  ;;  %v95_v49 = vmul.f32 %v40_v23, %v40_v23 }
   0x8   :  { %v144_v26 = vadd.f32 %v143_v18, %v88_v8  ;;  %7737 = vst [vmem:[#allocation5_spill] sm:$0xff] %v5947_v34  ;;  %v5960_v41 = vld [vmem:[%s7603_s0 + $0x30] sm:$0xff]  ;;  %v5967_v43 = vld [vmem:[%s7603_s0 + $0x38] sm:$0xff]  ;;  %v5972_v44 = vld [vmem:[%s7603_s0 + $0x40] sm:$0xff]  ;;  %v119_v46 = vadd.f32 %v118_v32, %v65_v24  ;;  %v98_v48 = vmul.f32 %v43_v33, %v43_v33  ;;  %v68_v51 = vmul.f32 %v13_v30, %v13_v30 }
   0x9   :  { %7738 = vst [vmem:[#allocation6_spill] sm:$0xff] %v5972_v44  ;;  %v45_v47 = vld [vmem:[%s7603_s0 + $0x128] sm:$0xff]  ;;  %v99_v52 = vmul.f32 %v5947_v34, %v5947_v34  ;;  %v5982_v53 = vld [vmem:[%s7603_s0 + $0x58] sm:$0xff]  ;;  %v5987_v54 = vld [vmem:[%s7603_s0 + $0x60] sm:$0xff]  ;;  %v154_v60 = vadd.f32 %v97_v36, %v96_v35  ;;  %v69_v2 = vmul.f32 %v5960_v41, %v5960_v41  ;;  %v70_v3 = vmul.f32 %v5967_v43, %v5967_v43 }
   0xa   :  { %v145_v40 = vadd.f32 %v144_v26, %v89_v17  ;;  %v5992_v55 = vld [vmem:[%s7603_s0 + $0x68] sm:$0xff]  ;;  %v18_v57 = vld [vmem:[%s7603_s0 + $0x50] sm:$0xff]  ;;  %v120_v58 = vadd.f32 %v119_v46, %v66_v31  ;;  %v74_v61 = vmul.f32 %v5982_v53, %v5982_v53  ;;  %v75_v62 = vmul.f32 %v5987_v54, %v5987_v54  ;;  %v6023_v7 = vld [vmem:[%s7603_s0 + $0x138] sm:$0xff] }
   0xb   :  { %7739 = vst [vmem:[#allocation7_spill] sm:$0xff] %v5992_v55  ;;  %v5997_v56 = vld [vmem:[%s7603_s0 + $0x48] sm:$0xff]  ;;  %v46_v59 = vld [vmem:[%s7603_s0 + $0x130] sm:$0xff]  ;;  %v71_v4 = vmul.f32 %v5972_v44, %v5972_v44  ;;  %v6028_v8 = vld [vmem:[%s7603_s0 + $0x140] sm:$0xff]  ;;  %v100_v9 = vmul.f32 %v45_v47, %v45_v47  ;;  %v155_v11 = vadd.f32 %v154_v60, %v98_v48  ;;  %v76_v17 = vmul.f32 %v5992_v55, %v5992_v55 }
   0xc   :  { %v146_v50 = vadd.f32 %v145_v40, %v90_v25  ;;  %7740 = vst [vmem:[#allocation8_spill] sm:$0xff] %v5997_v56  ;;  %v6018_v5 = vld [vmem:[%s7603_s0 + $0x70] sm:$0xff]  ;;  %v121_v6 = vadd.f32 %v120_v58, %v67_v45  ;;  %v23_v14 = vld [vmem:[%s7603_s0 + $0x78] sm:$0xff]  ;;  %v72_v20 = vmul.f32 %v5997_v56, %v5997_v56  ;;  %v73_v21 = vmul.f32 %v18_v57, %v18_v57  ;;  %v6040_v24 = vld [vmem:[%s7603_s0 + $0x160] sm:$0x7] }
   0xd   :  { %7741 = vst [vmem:[#allocation9_spill] sm:$0xff] %v6018_v5  ;;  %v101_v23 = vmul.f32 %v46_v59, %v46_v59  ;;  %v6045_v26 = vld [vmem:[%s7603_s0 + $0x148] sm:$0xff]  ;;  %v156_v27 = vadd.f32 %v155_v11, %v99_v52  ;;  %v77_v30 = vmul.f32 %v6018_v5, %v6018_v5  ;;  %v130_v31 = vadd.f32 %v75_v62, %v74_v61  ;;  %v6057_v33 = vld [vmem:[%s7603_s0 + $0x170] sm:$0x7] }
   0xe   :  { %v147_v63 = vadd.f32 %v146_v50, %v91_v37  ;;  %v122_v25 = vadd.f32 %v121_v6, %v68_v51  ;;  %7742 = vst [vmem:[#allocation10_spill] sm:$0xff] %v6045_v26  ;;  %v6052_v32 = vld [vmem:[%s7603_s0 + $0x168] sm:$0x7]  ;;  %7743 = vst [vmem:[#allocation11_spill] sm:$0xff] %v6057_v33  ;;  %v102_v36 = vmul.f32 %v6023_v7, %v6023_v7  ;;  %v6069_v46 = vld [vmem:[%s7603_s0 + $0x150] sm:$0xff] }
   0xf   :  { %v103_v37 = vmul.f32 %v6028_v8, %v6028_v8  ;;  %v78_v40 = vmul.f32 %v23_v14, %v23_v14  ;;  %7744 = vst [vmem:[#allocation12_spill] sm:$0xff] %v6069_v46  ;;  %v157_v47 = vadd.f32 %v156_v27, %v100_v9  ;;  %v131_v48 = vadd.f32 %v130_v31, %v76_v17  ;;  %v6079_v50 = vld [vmem:[%s7603_s0 + $0x178] sm:$0x7]  ;;  %v6092_v62 = vld [vmem:[%s7603_s0 + $0x90] sm:$0xff] }
  0x10   :  { %v148_v18 = vadd.f32 %v147_v63, %v92_v38  ;;  %v24_v38 = vld [vmem:[%s7603_s0 + $0x80] sm:$0xff]  ;;  %v123_v45 = vadd.f32 %v122_v25, %v69_v2  ;;  %7745 = vst [vmem:[#allocation13_spill] sm:$0xff] %v6079_v50  ;;  %v107_v51 = vmul.f32 %v6040_v24, %v6040_v24  ;;  %v104_v57 = vmul.f32 %v6045_v26, %v6045_v26  ;;  %v51_v17 = vld [vmem:[%s7603_s0 + $0x158] sm:$0xff]  ;;  %v57_v25 = vld [vmem:[%s7603_s0 + $0x188] sm:$0x7] }
  0x11   :  { %v108_v58 = vmul.f32 %v6052_v32, %v6052_v32  ;;  %v109_v59 = vmul.f32 %v6057_v33, %v6057_v33  ;;  %v158_v61 = vadd.f32 %v157_v47, %v101_v23  ;;  %v79_v63 = vmul.f32 %v24_v38, %v24_v38  ;;  %v6109_v23 = vld [vmem:[%s7603_s0 + $0x98] sm:$0xff] }
  0x12   :  { %v149_v35 = vadd.f32 %v148_v18, %v93_v39  ;;  %v6074_v39 = vld [vmem:[%s7603_s0 + $0x88] sm:$0xff]  ;;  %v124_v60 = vadd.f32 %v123_v45, %v70_v3  ;;  %v132_v2 = vadd.f32 %v131_v48, %v77_v30  ;;  %v105_v9 = vmul.f32 %v6069_v46, %v6069_v46  ;;  %7746 = vst [vmem:[#allocation14_spill] sm:$0xff] %v6109_v23 }
  0x13   :  { %v80_v11 = vmul.f32 %v6074_v39, %v6074_v39  ;;  %v110_v3 = vmul.f32 %v6079_v50, %v6079_v50  ;;  %v159_v18 = vadd.f32 %v158_v61, %v102_v36  ;;  %v167_v27 = vsel %vm166_vm0, %v107_v51, 0.0  ;;  %v6127_v51 = vld [vmem:[%s7603_s0 + $0xa0] sm:$0xff]  ;;  %v6135_v61 = vld [vmem:[%s7603_s0 + $0x198] sm:$0x7] }
  0x14   :  { %v150_v52 = vadd.f32 %v149_v35, %v94_v42  ;;  %v56_v42 = vld [vmem:[%s7603_s0 + $0x180] sm:$0x7]  ;;  %v125_v14 = vadd.f32 %v124_v60, %v71_v4  ;;  %v81_v4 = vmul.f32 %v6092_v62, %v6092_v62  ;;  %v168_v31 = vsel %vm166_vm0, %v108_v58, 0.0  ;;  %7747 = vst [vmem:[#allocation15_spill] sm:$0xff] %v6127_v51 }
  0x15   :  { %v111_v30 = vmul.f32 %v56_v42, %v56_v42  ;;  %v170_v35 = vsel %vm166_vm0, %v109_v59, 0.0  ;;  %v160_v38 = vadd.f32 %v159_v18, %v103_v37  ;;  %v169_v47 = vadd.f32 %v168_v31, %v167_v27 }
  0x16   :  { %v151_v6 = vadd.f32 %v150_v52, %v95_v49  ;;  %v133_v49 = vadd.f32 %v132_v2, %v78_v40  ;;  %v126_v36 = vadd.f32 %v125_v14, %v72_v20  ;;  %v6122_v40 = vld [vmem:[%s7603_s0 + $0x190] sm:$0x7]  ;;  %v106_v48 = vmul.f32 %v51_v17, %v51_v17  ;;  %v29_v2 = vld [vmem:[%s7603_s0 + $0xa8] sm:$0xff] }
  0x17   :  { %v82_v52 = vmul.f32 %v6109_v23, %v6109_v23  ;;  %v112_v58 = vmul.f32 %v57_v25, %v57_v25  ;;  %v172_v20 = vsel %vm166_vm0, %v110_v3, 0.0  ;;  %v161_v59 = vadd.f32 %v160_v38, %v104_v57 }
  0x18   :  { %152 = vadd.xlane.f32.xlu1 %v151_v6  ;;  %v134_v45 = vadd.f32 %v133_v49, %v79_v63  ;;  %v127_v37 = vadd.f32 %v126_v36, %v73_v21  ;;  %v171_v63 = vadd.f32 %v170_v35, %v169_v47  ;;  %v113_v42 = vmul.f32 %v6122_v40, %v6122_v40  ;;  %v62_v36 = vld [vmem:[%s7603_s0 + $0x1b0] sm:$0x7] }
  0x19   :  { %v174_v6 = vsel %vm166_vm0, %v111_v30, 0.0  ;;  %v162_v3 = vadd.f32 %v161_v59, %v105_v9  ;;  %v83_v21 = vmul.f32 %v6127_v51, %v6127_v51  ;;  %v114_v17 = vmul.f32 %v6135_v61, %v6135_v61  ;;  %v6156_v9 = vld [vmem:[%s7603_s0 + $0x1a8] sm:$0x7] }
  0x1a   :  { %v135_v60 = vadd.f32 %v134_v45, %v80_v11  ;;  %128 = vadd.xlane.f32.xlu0 %v127_v37  ;;  %v6148_v11 = vld [vmem:[%s7603_s0 + $0x1a0] sm:$0x7]  ;;  %v173_v14 = vadd.f32 %v172_v20, %v171_v63  ;;  %v176_v18 = vsel %vm166_vm0, %v112_v58, 0.0  ;;  %v84_v25 = vmul.f32 %v29_v2, %v29_v2  ;;  %7749 = vst [vmem:[#allocation17_spill] sm:$0xff] %v6156_v9 }
  0x1b   :  { %7748 = vst [vmem:[#allocation16_spill] sm:$0xff] %v6148_v11  ;;  %v163_v49 = vadd.f32 %v162_v3, %v106_v48  ;;  %v115_v30 = vmul.f32 %v6148_v11, %v6148_v11  ;;  %v178_v31 = vsel %vm166_vm0, %v113_v42, 0.0  ;;  %v116_v45 = vmul.f32 %v6156_v9, %v6156_v9 }
  0x1c   :  { %v136_v57 = vadd.f32 %v135_v60, %v81_v4  ;;  %v175_v4 = vadd.f32 %v174_v6, %v173_v14  ;;  %v180_v47 = vsel %vm166_vm0, %v114_v17, 0.0  ;;  %v117_v58 = vmul.f32 %v62_v36, %v62_v36 }
  0x1d   :  { %164 = vadd.xlane.f32.xlu1 %v163_v49  ;;  %v182_v20 = vsel %vm166_vm0, %v115_v30, 0.0  ;;  %v184_v59 = vsel %vm166_vm0, %v116_v45, 0.0 }
  0x1e   :  { %v137_v27 = vadd.f32 %v136_v57, %v82_v52  ;;  %v177_v38 = vadd.f32 %v176_v18, %v175_v4  ;;  %v186_v63 = vsel %vm166_vm0, %v117_v58, 0.0 }
  0x20   :  { %v138_v35 = vadd.f32 %v137_v27, %v83_v21  ;;  %v179_v52 = vadd.f32 %v178_v31, %v177_v38 }
  0x22   :  { %v139_v48 = vadd.f32 %v138_v35, %v84_v25  ;;  %v181_v37 = vadd.f32 %v180_v47, %v179_v52 }
  0x24   :  { %140 = vadd.xlane.f32.xlu0 %v139_v48  ;;  %v183_v60 = vadd.f32 %v182_v20, %v181_v37 }
  0x26   :  { %v185_v2 = vadd.f32 %v184_v59, %v183_v60 }
  0x28   :  { %v187_v42 = vadd.f32 %v186_v63, %v185_v2 }
  0x2a   :  { %188 = vadd.xlane.f32.xlu0 %v187_v42 }
  0xa5   :  { %v153_v6 = vpop.xlane.xlu1 %152 }
  0xa6   :  { %v192_v3 = vmax.f32 %v153_v6, 1e-24 }
  0xa7   :  { %v129_v21 = vpop.xlane.xlu0 %128 }
  0xa8   :  { %v190_v57 = vmax.f32 %v129_v21, 1e-24  ;;  %5808 = vrsqrt.f32 %v192_v3 }
  0xaa   :  { %5810 = vrsqrt.f32 %v190_v57  ;;  %v165_v14 = vpop.xlane.xlu1 %164 }
  0xab   :  { %v193_v17 = vmax.f32 %v165_v14, 1e-24 }
  0xad   :  { %5812 = vrsqrt.f32 %v193_v17 }
  0xb1   :  { %v141_v18 = vpop.xlane.xlu0 %140 }
  0xb2   :  { %v191_v49 = vmax.f32 %v141_v18, 1e-24  ;;  %v6170_v25 = vpop.eup %5808 }
  0xb3   :  { %7750 = vst [vmem:[#allocation18_spill] sm:$0xff] %v6170_v25  ;;  %v223_v38 = vmul.f32 %v6170_v25, %v5858_v1  ;;  %v228_v11 = vmul.f32 %v6170_v25, %v5896_v15 }
  0xb4   :  { %5814 = vrsqrt.f32 %v191_v49  ;;  %v6172_v27 = vpop.eup %5810 }
  0xb5   :  { %7751 = vst [vmem:[#allocation19_spill] sm:$0xff] %v6172_v27  ;;  %v201_v4 = vmul.f32 %v6172_v27, %v5884_v12  ;;  %v207_v30 = vmul.f32 %v6172_v27, %v5967_v43  ;;  %v200_v48 = vmul.f32 %v6172_v27, %v5876_v10  ;;  %v6190_v12 = vmul.f32 %v6172_v27, %v5960_v41 }
  0xb6   :  { %v229_v43 = vmul.f32 %v6170_v25, %v5901_v16  ;;  %v6217_v60 = vand.u32 4294901760, %v223_v38  ;;  %v6311_v46 = vand.u32 4294901760, %v228_v11 }
  0xb7   :  { %v189_v31 = vpop.xlane.xlu0 %188  ;;  %v6178_v35 = vand.u32 4294901760, %v201_v4  ;;  %v6180_v36 = vand.u32 4294901760, %v207_v30  ;;  %v6184_v45 = vpop.eup %5812  ;;  %v6212_v37 = vand.u32 4294901760, %v200_v48  ;;  %v6215_v59 = vand.u32 4294901760, %v6190_v12 }
  0xb8   :  { %7752 = vst [vmem:[#allocation20_spill] sm:$0xff] %v6184_v45  ;;  %v194_v47 = vmax.f32 %v189_v31, 1e-24  ;;  %v234_v1 = vmul.f32 %v6184_v45, %v5934_v29  ;;  %v240_v10 = vmul.f32 %v6184_v45, %v6028_v8  ;;  %v6219_v63 = vand.u32 4294901760, %v229_v43 }
  0xb9   :  { %v6195_v52 = vsub.f32 %v201_v4, %v6178_v35  ;;  %v6198_v58 = vsub.f32 %v207_v30, %v6180_v36  ;;  %v6296_v15 = vsub.f32 %v223_v38, %v6217_v60 }
  0xba   :  { %5816 = vrsqrt.f32 %v194_v47  ;;  %v6233_v21 = vand.u32 4294901760, %v234_v1  ;;  %v6235_v57 = vand.u32 4294901760, %v240_v10  ;;  %v6304_v50 = vsub.f32 %v229_v43, %v6219_v63 }
  0xbb   :  { %v6205_v20 = vand.u32 4294901760, %v6195_v52  ;;  %v6208_v41 = vand.u32 4294901760, %v6198_v58  ;;  %v6331_v22 = vand.u32 4294901760, %v6296_v15 }
  0xbc   :  { %v6251_v18 = vpack.c.bf16 %v6233_v21, %v6217_v60  ;;  %v6255_v49 = vpack.c.bf16 %v6235_v57, %v6219_v63 }
  0xbd   :  { %7753 = vst [vmem:[#allocation21_spill] sm:$0xff] %v6205_v20  ;;  %7754 = vst [vmem:[#allocation22_spill] sm:$0xff] %v6208_v41  ;;  %v332_v6 = vsub.f32 %v6195_v52, %v6205_v20  ;;  %v2732_v3 = vsub.f32 %v6198_v58, %v6208_v41  ;;  %v362_v19 = vsub.f32 %v6296_v15, %v6331_v22 }
  0xbe   :  { %v6210_v16 = vpop.eup %5814  ;;  %7756 = vst [vmem:[#allocation24_spill] sm:$0xff] %v6251_v18  ;;  %7757 = vst [vmem:[#allocation25_spill] sm:$0xff] %v6255_v49 }
  0xbf   :  { %7755 = vst [vmem:[#allocation23_spill] sm:$0xff] %v6210_v16  ;;  %v212_v29 = vmul.f32 %v6210_v16, %v5987_v54  ;;  %v218_v8 = vmul.f32 %v6210_v16, %v6092_v62  ;;  %v211_v2 = vmul.f32 %v6210_v16, %v5982_v53  ;;  %v217_v42 = vmul.f32 %v6210_v16, %v6074_v39 }
  0xc0   :  { %v6245_v17 = vand.u32 4294901760, %v332_v6  ;;  %v6247_v39 = vand.u32 4294901760, %v2732_v3  ;;  %v222_v3 = vmul.f32 %v6170_v25, %v5853_v0  ;;  %v239_v0 = vmul.f32 %v6184_v45, %v6023_v7  ;;  %7765 = vst [vmem:[#allocation33_spill] sm:$0xff] %v6331_v22 }
  0xc1   :  { %v6237_v54 = vand.u32 4294901760, %v212_v29  ;;  %v6239_v14 = vand.u32 4294901760, %v218_v8  ;;  %v6241_v62 = vand.u32 4294901760, %v211_v2  ;;  %v6243_v53 = vand.u32 4294901760, %v217_v42 }
  0xc2   :  { %334 = vmatprep.mubr.f32.mxu1 %v6245_v17  ;;  %2734 = vmatprep.mubr.f32.mxu0 %v6247_v39  ;;  %v6328_v44 = vand.u32 4294901760, %v239_v0 }
  0xc3   :  { %v6259_v4 = vpack.c.bf16 %v6237_v54, %v6178_v35  ;;  %v6263_v30 = vpack.c.bf16 %v6239_v14, %v6180_v36  ;;  %v6267_v31 = vpack.c.bf16 %v6241_v62, %v6212_v37  ;;  %v6271_v47 = vpack.c.bf16 %v6243_v53, %v6215_v59 }
  0xc4   :  { %v6275_v6 = vsub.f32 %v212_v29, %v6237_v54  ;;  %v6285_v33 = vsub.f32 %v218_v8, %v6239_v14  ;;  %v6287_v9 = vpop.eup %5816  ;;  %v233_v29 = vmul.f32 %v6184_v45, %v5929_v28  ;;  %v6301_v8 = vsub.f32 %v200_v48, %v6212_v37 }
  0xc5   :  { %7758 = vst [vmem:[#allocation26_spill] sm:$0xff] %v6259_v4  ;;  %7759 = vst [vmem:[#allocation27_spill] sm:$0xff] %v6263_v30  ;;  %5185 = vmatprep.subr.bf16.mxu1 %v6259_v4  ;;  %5329 = vmatprep.subr.bf16.mxu0 %v6263_v30  ;;  %v6309_v28 = vand.u32 4294901760, %v222_v3  ;;  %v6314_v7 = vsub.f32 %v211_v2, %v6241_v62  ;;  %v245_v48 = vmul.f32 %v6287_v9, %v6052_v32 }
  0xc6   :  { %7760 = vst [vmem:[#allocation28_spill] sm:$0xff] %v6267_v31  ;;  %7761 = vst [vmem:[#allocation29_spill] sm:$0xff] %v6271_v47  ;;  %5187 = vmatpush1.bf16.xpose.msra.mxu1 %v6267_v31  ;;  %5331 = vmatpush1.bf16.xpose.msra.mxu0 %v6271_v47  ;;  %v6307_v26 = vand.u32 4294901760, %v6275_v6  ;;  %v6317_v38 = vand.u32 4294901760, %v6285_v33  ;;  %v251_v43 = vmul.f32 %v6287_v9, %v6135_v61  ;;  %v6326_v34 = vand.u32 4294901760, %v233_v29 }
  0xc7   :  { %7762 = vst [vmem:[#allocation30_spill] sm:$0xff] %v6287_v9  ;;  %5189 = vmatprep.subr.bf16.mxu1 %v6251_v18  ;;  %5333 = vmatprep.subr.bf16.mxu0 %v6255_v49  ;;  %v6324_v45 = vsub.f32 %v217_v42, %v6243_v53  ;;  %v6334_v2 = vsub.f32 %v234_v1, %v6233_v21  ;;  %v6337_v25 = vand.u32 4294901760, %v6301_v8  ;;  %v6344_v61 = vand.u32 4294901760, %v6304_v50 }
  0xc8   :  { %7763 = vst [vmem:[#allocation31_spill] sm:$0xff] %v6307_v26  ;;  %7764 = vst [vmem:[#allocation32_spill] sm:$0xff] %v6317_v38  ;;  %v6341_v32 = vsub.f32 %v6190_v12, %v6215_v59  ;;  %v6347_v42 = vsub.f32 %v240_v10, %v6235_v57  ;;  %v347_v23 = vsub.f32 %v6275_v6, %v6307_v26  ;;  %v6360_v12 = vand.u32 4294901760, %v6314_v7 }
  0xc9   :  { %7766 = vst [vmem:[#allocation34_spill] sm:$0xff] %v6337_v25  ;;  %7767 = vst [vmem:[#allocation35_spill] sm:$0xff] %v6344_v61  ;;  %v6353_v1 = vpack.c.bf16 %v6326_v34, %v6309_v28  ;;  %v6357_v13 = vpack.c.bf16 %v6328_v44, %v6311_v46  ;;  %v2747_v55 = vsub.f32 %v6285_v33, %v6317_v38  ;;  %v6364_v56 = vand.u32 4294901760, %v245_v48 }
  0xca   :  { %7770 = vst [vmem:[#allocation38_spill] sm:$0xff] %v6360_v12  ;;  %v6366_v10 = vand.u32 4294901760, %v251_v43  ;;  %v6369_v27 = vand.u32 4294901760, %v6324_v45  ;;  %v6376_v51 = vand.u32 4294901760, %v6334_v2  ;;  %v6379_v16 = vand.u32 4294901760, %v6347_v42 }
  0xcb   :  { %7768 = vst [vmem:[#allocation36_spill] sm:$0xff] %v6353_v1  ;;  %7769 = vst [vmem:[#allocation37_spill] sm:$0xff] %v6357_v13  ;;  %v6382_v5 = vsub.f32 %v222_v3, %v6309_v28  ;;  %v244_v38 = vmul.f32 %v6287_v9, %v6040_v24  ;;  %v250_v41 = vmul.f32 %v6287_v9, %v6122_v40  ;;  %v6393_v26 = vand.u32 4294901760, %v6341_v32 }
  0xcc   :  { %7771 = vst [vmem:[#allocation39_spill] sm:$0xff] %v6369_v27  ;;  %7772 = vst [vmem:[#allocation40_spill] sm:$0xff] %v6376_v51  ;;  %v338_v22 = vsub.f32 %v6301_v8, %v6337_v25  ;;  %v348_v20 = vand.u32 4294901760, %v347_v23  ;;  %v353_v3 = vsub.f32 %v6314_v7, %v6360_v12  ;;  %v2748_v24 = vand.u32 4294901760, %v2747_v55 }
  0xcd   :  { %7773 = vst [vmem:[#allocation41_spill] sm:$0xff] %v6379_v16  ;;  %7774 = vst [vmem:[#allocation42_spill] sm:$0xff] %v6393_v26  ;;  %v2753_v40 = vsub.f32 %v6324_v45, %v6369_v27  ;;  %v6405_v9 = vsub.f32 %v228_v11, %v6311_v46  ;;  %v6408_v25 = vsub.f32 %v239_v0, %v6328_v44  ;;  %v363_v23 = vand.u32 4294901760, %v362_v19 }
  0xce   :  { %5191 = vmatpush1.bf16.xpose.msra.mxu1 %v6353_v1  ;;  %5335 = vmatpush1.bf16.xpose.msra.mxu0 %v6357_v13  ;;  %v2762_v13 = vsub.f32 %v6304_v50, %v6344_v61  ;;  %v6400_v1 = vsub.f32 %v233_v29, %v6326_v34  ;;  %v377_v12 = vsub.f32 %v6334_v2, %v6376_v51  ;;  %v6415_v29 = vand.u32 4294901760, %v6382_v5 }
  0xcf   :  { %272 = vmatprep.subr.mxu1 %v6364_v56  ;;  %2672 = vmatprep.subr.mxu0 %v6366_v10  ;;  %v2777_v61 = vsub.f32 %v6347_v42, %v6379_v16  ;;  %v6417_v55 = vand.u32 4294901760, %v244_v38  ;;  %v6419_v49 = vand.u32 4294901760, %v250_v41  ;;  %v339_v27 = vand.u32 4294901760, %v338_v22 }
  0xd0   :  { %v2738_v11 = vsub.f32 %v6341_v32, %v6393_v26  ;;  %v5192_v0 = vpack.c.bf16 %v348_v20, %v6245_v17  ;;  %v354_v19 = vand.u32 4294901760, %v353_v3  ;;  %v2763_v18 = vand.u32 4294901760, %v2762_v13 }
  0xd1   :  { %v6425_v51 = vand.u32 4294901760, %v6400_v1  ;;  %v5336_v16 = vpack.c.bf16 %v2748_v24, %v6247_v39  ;;  %v2754_v47 = vand.u32 4294901760, %v2753_v40  ;;  %v6429_v31 = vand.u32 4294901760, %v6405_v9 }
  0xd2   :  { %v6432_v30 = vand.u32 4294901760, %v6408_v25  ;;  %v378_v22 = vand.u32 4294901760, %v377_v12  ;;  %v2778_v17 = vand.u32 4294901760, %v2777_v61  ;;  %v6437_v13 = vsub.f32 %v245_v48, %v6364_v56 }
  0xd3   :  { %7775 = vst [vmem:[#allocation43_spill] sm:$0xff] %v6429_v31  ;;  %v6440_v3 = vsub.f32 %v251_v43, %v6366_v10  ;;  %v2739_v39 = vand.u32 4294901760, %v2738_v11  ;;  %v5194_v40 = vpack.c.bf16 %v354_v19, %v339_v27  ;;  %v368_v26 = vsub.f32 %v6382_v5, %v6415_v29 }
  0xd4   :  { %7776 = vst [vmem:[#allocation44_spill] sm:$0xff] %v6432_v30  ;;  %v383_v4 = vsub.f32 %v6400_v1, %v6425_v51  ;;  %v2768_v48 = vsub.f32 %v6405_v9, %v6429_v31  ;;  %v2783_v43 = vsub.f32 %v6408_v25, %v6432_v30  ;;  %v5340_v61 = vpack.c.bf16 %v2778_v17, %v2763_v18 }
  0xd5   :  { %v5338_v12 = vpack.c.bf16 %v2754_v47, %v2739_v39  ;;  %v6451_v11 = vand.u32 4294901760, %v6437_v13 }
  0xd6   :  { %274 = vmatpush1.xpose.msra.mxu1 %v6417_v55  ;;  %2674 = vmatpush1.xpose.msra.mxu0 %v6419_v49  ;;  %v2769_v30 = vand.u32 4294901760, %v2768_v48  ;;  %v2784_v31 = vand.u32 4294901760, %v2783_v43  ;;  %v5346_v43 = vpack.c.bf16 %v6324_v45, %v6341_v32 }
  0xd7   :  { %5193 = vmatprep.subr.bf16.mxu1 %v5192_v0  ;;  %5337 = vmatprep.subr.bf16.mxu0 %v5336_v16  ;;  %v5196_v16 = vpack.c.bf16 %v378_v22, %v363_v23  ;;  %v6454_v0 = vand.u32 4294901760, %v6440_v3 }
  0xd9   :  { %340 = vmatmul.mubr.f32.vlgmr.msra.gmra.mrb[0].mxu1 %v339_v27  ;;  %2740 = vmatmul.mubr.f32.vlgmr.msra.gmra.mrb[0].mxu0 %v2739_v39  ;;  %v6457_v27 = vsub.f32 %v244_v38, %v6417_v55  ;;  %v6460_v39 = vsub.f32 %v250_v41, %v6419_v49  ;;  %v2792_v38 = vsub.f32 %v6440_v3, %v6454_v0 }
  0xda   :  { %349 = vmatprep.mubr.f32.mxu1 %v348_v20  ;;  %5195 = vmatpush1.bf16.xpose.msra.mxu1 %v5194_v40  ;;  %v369_v20 = vand.u32 4294901760, %v368_v26  ;;  %v384_v40 = vand.u32 4294901760, %v383_v4  ;;  %v5342_v4 = vpack.c.bf16 %v2784_v31, %v2769_v30 }
  0xdb   :  { %2749 = vmatprep.mubr.f32.mxu0 %v2748_v24  ;;  %5339 = vmatpush1.bf16.xpose.msra.mxu0 %v5338_v12  ;;  %v392_v24 = vsub.f32 %v6437_v13, %v6451_v11  ;;  %v6467_v12 = vand.u32 4294901760, %v6457_v27  ;;  %v6470_v41 = vand.u32 4294901760, %v6460_v39 }
  0xdc   :  { %5197 = vmatprep.subr.bf16.mxu1 %v5196_v16  ;;  %5341 = vmatprep.subr.bf16.mxu0 %v5340_v61  ;;  %v5198_v26 = vpack.c.bf16 %v384_v40, %v369_v20  ;;  %v5204_v16 = vpack.c.bf16 %v6334_v2, %v6296_v15  ;;  %v5348_v61 = vpack.c.bf16 %v6347_v42, %v6304_v50 }
  0xdd   :  { %355 = vmatmul.mubr.f32.gmra.mrb[2].mxu1 %v354_v19  ;;  %2755 = vmatmul.mubr.f32.gmra.mrb[2].mxu0 %v2754_v47  ;;  %v393_v47 = vand.u32 4294901760, %v392_v24  ;;  %v2798_v19 = vsub.f32 %v6460_v39, %v6470_v41  ;;  %v7777_v24 = vld [vmem:[#allocation26_spill] sm:$0xff] }
  0xde   :  { %364 = vmatprep.mubr.f32.mxu1 %v363_v23  ;;  %2764 = vmatprep.mubr.f32.mxu0 %v2763_v18  ;;  %v2793_v18 = vand.u32 4294901760, %v2792_v38  ;;  %v398_v23 = vsub.f32 %v6457_v27, %v6467_v12  ;;  %v7778_v38 = vld [vmem:[#allocation27_spill] sm:$0xff] }
  0xe0   :  { %v399_v48 = vand.u32 4294901760, %v398_v23  ;;  %v5222_v23 = vpack.c.bf16 %v6425_v51, %v6415_v29 }
  0xe1   :  { %370 = vmatmul.mubr.f32.gmra.mrb[4].mxu1 %v369_v20  ;;  %2770 = vmatmul.mubr.f32.gmra.mrb[4].mxu0 %v2769_v30  ;;  %v2799_v30 = vand.u32 4294901760, %v2798_v19  ;;  %v5206_v20 = vpack.c.bf16 %v6400_v1, %v6382_v5  ;;  %v7797_v19 = vld [vmem:[#allocation43_spill] sm:$0xff] }
  0xe2   :  { %379 = vmatprep.mubr.f32.mxu1 %v378_v22  ;;  %5199 = vmatpush1.bf16.xpose.msra.mxu1 %v5198_v26  ;;  %v5200_v22 = vpack.c.bf16 %v6275_v6, %v6195_v52  ;;  %v7779_v26 = vld [vmem:[#allocation28_spill] sm:$0xff] }
  0xe3   :  { %2779 = vmatprep.mubr.f32.mxu0 %v2778_v17  ;;  %5343 = vmatpush1.bf16.xpose.msra.mxu0 %v5342_v4  ;;  %v5344_v17 = vpack.c.bf16 %v6285_v33, %v6198_v58  ;;  %v7781_v4 = vld [vmem:[#allocation24_spill] sm:$0xff] }
  0xe4   :  { %458 = vmatprep.subr.mxu1 %v393_v47  ;;  %2858 = vmatprep.subr.mxu0 %v2793_v18 }
  0xe5   :  { %385 = vmatmul.mubr.f32.gmra.mrb[6].mxu1 %v384_v40  ;;  %2785 = vmatmul.mubr.f32.gmra.mrb[6].mxu0 %v2784_v31  ;;  %v5202_v31 = vpack.c.bf16 %v6314_v7, %v6301_v8  ;;  %v5350_v40 = vpack.c.bf16 %v6408_v25, %v6405_v9 }
  0xe6   :  { %394 = vmatprep.mubr.f32.mxu1 %v393_v47  ;;  %2794 = vmatprep.mubr.f32.mxu0 %v2793_v18  ;;  %v7796_v47 = vld [vmem:[#allocation41_spill] sm:$0xff] }
  0xe9   :  { %400 = vmatmul.mubr.f32.gmra.mrb[8].mxu1 %v399_v48  ;;  %2800 = vmatmul.mubr.f32.gmra.mrb[8].mxu0 %v2799_v30 }
  0xea   :  { %464 = vmatpush1.xpose.msra.mxu1 %v399_v48  ;;  %520 = vmatprep.mubr.f32.mxu1 %v6178_v35  ;;  %v7798_v48 = vld [vmem:[#allocation44_spill] sm:$0xff] }
  0xeb   :  { %2864 = vmatpush1.xpose.msra.mxu0 %v2799_v30  ;;  %2920 = vmatprep.mubr.f32.mxu0 %v6180_v36  ;;  %v5366_v30 = vpack.c.bf16 %v7798_v48, %v7797_v19 }
  0xec   :  { %5201 = vmatprep.subr.bf16.mxu1 %v5200_v22  ;;  %5345 = vmatprep.subr.bf16.mxu0 %v5344_v17  ;;  %v7803_v22 = vld [vmem:[#allocation19_spill] sm:$0xff] }
  0xed   :  { %522 = vmatmul.mubr.f32.vlgmr.msra.gmra.mrb[0].mxu1 %v6212_v37 }
  0xee   :  { %2922 = vmatmul.mubr.f32.vlgmr.msra.gmra.mrb[0].mxu0 %v6215_v59  ;;  %527 = vmatprep.mubr.f32.mxu1 %v6237_v54 }
  0xef   :  { %5203 = vmatpush1.bf16.xpose.msra.mxu1 %v5202_v31  ;;  %2927 = vmatprep.mubr.f32.mxu0 %v6239_v14  ;;  %v7804_v31 = vld [vmem:[#allocation8_spill] sm:$0xff] }
  0xf0   :  { %5347 = vmatpush1.bf16.xpose.msra.mxu0 %v5346_v43  ;;  %5205 = vmatprep.subr.bf16.mxu1 %v5204_v16  ;;  %v209_v43 = vmul.f32 %v7803_v22, %v7804_v31  ;;  %v7805_v16 = vld [vmem:[#allocation7_spill] sm:$0xff]  ;;  %v7817_v31 = vld [vmem:[#allocation10_spill] sm:$0xff] }
  0xf1   :  { %5349 = vmatprep.subr.bf16.mxu0 %v5348_v61  ;;  %529 = vmatmul.mubr.f32.gmra.mrb[2].mxu1 %v6241_v62 }
  0xf2   :  { %2929 = vmatmul.mubr.f32.gmra.mrb[2].mxu0 %v6243_v53  ;;  %534 = vmatprep.mubr.f32.mxu1 %v6217_v60 }
  0xf3   :  { %2934 = vmatprep.mubr.f32.mxu0 %v6219_v63 }
  0xf5   :  { %536 = vmatmul.mubr.f32.gmra.mrb[4].mxu1 %v6309_v28 }
  0xf6   :  { %2936 = vmatmul.mubr.f32.gmra.mrb[4].mxu0 %v6311_v46  ;;  %541 = vmatprep.mubr.f32.mxu1 %v6233_v21 }
  0xf7   :  { %5207 = vmatpush1.bf16.xpose.msra.mxu1 %v5206_v20  ;;  %2941 = vmatprep.mubr.f32.mxu0 %v6235_v57 }
  0xf8   :  { %5351 = vmatpush1.bf16.xpose.msra.mxu0 %v5350_v40  ;;  %581 = vmatprep.subr.mxu1 %v6437_v13 }
  0xf9   :  { %2981 = vmatprep.subr.mxu0 %v6440_v3  ;;  %543 = vmatmul.mubr.f32.gmra.mrb[6].mxu1 %v6326_v34 }
  0xfa   :  { %2943 = vmatmul.mubr.f32.gmra.mrb[6].mxu0 %v6328_v44  ;;  %548 = vmatprep.mubr.f32.mxu1 %v6364_v56 }
  0xfb   :  { %2948 = vmatprep.mubr.f32.mxu0 %v6366_v10 }
  0xfd   :  { %550 = vmatmul.mubr.f32.gmra.mrb[8].mxu1 %v6417_v55 }
  0xfe   :  { %2950 = vmatmul.mubr.f32.gmra.mrb[8].mxu0 %v6419_v49  ;;  %641 = vmatprep.mubr.f32.mxu1 %v6195_v52  ;;  %v7780_v52 = vld [vmem:[#allocation29_spill] sm:$0xff] }
  0xff   :  { %584 = vmatpush1.xpose.msra.mxu1 %v6457_v27  ;;  %3041 = vmatprep.mubr.f32.mxu0 %v6198_v58  ;;  %v7782_v58 = vld [vmem:[#allocation25_spill] sm:$0xff] }
 0x100   :  { %2984 = vmatpush1.xpose.msra.mxu0 %v6460_v39  ;;  %5209 = vmatprep.subr.bf16.mxu1 %v7777_v24 }
 0x101   :  { %5353 = vmatprep.subr.bf16.mxu0 %v7778_v38 }
 0x102   :  { %644 = vmatmul.mubr.f32.vlgmr.msra.gmra.mrb[0].mxu1 %v6301_v8  ;;  %v7789_v8 = vld [vmem:[#allocation34_spill] sm:$0xff] }
 0x103   :  { %3044 = vmatmul.mubr.f32.vlgmr.msra.gmra.mrb[0].mxu0 %v6341_v32  ;;  %650 = vmatprep.mubr.f32.mxu1 %v6275_v6  ;;  %v7784_v6 = vld [vmem:[#allocation37_spill] sm:$0xff]  ;;  %v7791_v32 = vld [vmem:[#allocation42_spill] sm:$0xff] }
 0x104   :  { %5211 = vmatpush1.bf16.xpose.msra.mxu1 %v7779_v26  ;;  %3050 = vmatprep.mubr.f32.mxu0 %v6285_v33  ;;  %v7783_v33 = vld [vmem:[#allocation36_spill] sm:$0xff] }
 0x105   :  { %5355 = vmatpush1.bf16.xpose.msra.mxu0 %v7780_v52  ;;  %5213 = vmatprep.subr.bf16.mxu1 %v7781_v4 }
 0x106   :  { %5357 = vmatprep.subr.bf16.mxu0 %v7782_v58  ;;  %653 = vmatmul.mubr.f32.gmra.mrb[2].mxu1 %v6314_v7  ;;  %v7790_v7 = vld [vmem:[#allocation38_spill] sm:$0xff] }
 0x107   :  { %3053 = vmatmul.mubr.f32.gmra.mrb[2].mxu0 %v6324_v45  ;;  %659 = vmatprep.mubr.f32.mxu1 %v6296_v15  ;;  %v7787_v45 = vld [vmem:[#allocation22_spill] sm:$0xff]  ;;  %v7788_v15 = vld [vmem:[#allocation32_spill] sm:$0xff] }
 0x108   :  { %3059 = vmatprep.mubr.f32.mxu0 %v6304_v50  ;;  %v7786_v50 = vld [vmem:[#allocation31_spill] sm:$0xff] }
 0x10a   :  { %662 = vmatmul.mubr.f32.gmra.mrb[4].mxu1 %v6382_v5  ;;  %v7785_v5 = vld [vmem:[#allocation21_spill] sm:$0xff] }
 0x10b   :  { %3062 = vmatmul.mubr.f32.gmra.mrb[4].mxu0 %v6405_v9  ;;  %668 = vmatprep.mubr.f32.mxu1 %v6334_v2  ;;  %v5216_v9 = vpack.c.bf16 %v7786_v50, %v7785_v5  ;;  %v5218_v2 = vpack.c.bf16 %v7790_v7, %v7789_v8 }
 0x10c   :  { %5215 = vmatpush1.bf16.xpose.msra.mxu1 %v7783_v33  ;;  %3068 = vmatprep.mubr.f32.mxu0 %v6347_v42  ;;  %v7792_v42 = vld [vmem:[#allocation39_spill] sm:$0xff] }
 0x10d   :  { %5359 = vmatpush1.bf16.xpose.msra.mxu0 %v7784_v6  ;;  %702 = vmatprep.subr.mxu1 %v6364_v56 }
 0x10e   :  { %3102 = vmatprep.subr.mxu0 %v6366_v10  ;;  %671 = vmatmul.mubr.f32.gmra.mrb[6].mxu1 %v6400_v1  ;;  %v5362_v1 = vpack.c.bf16 %v7792_v42, %v7791_v32 }
 0x10f   :  { %3071 = vmatmul.mubr.f32.gmra.mrb[6].mxu0 %v6408_v25  ;;  %677 = vmatprep.mubr.f32.mxu1 %v6437_v13  ;;  %v5360_v25 = vpack.c.bf16 %v7788_v15, %v7787_v45  ;;  %v7793_v13 = vld [vmem:[#allocation33_spill] sm:$0xff] }
 0x110   :  { %3077 = vmatprep.mubr.f32.mxu0 %v6440_v3  ;;  %v7794_v3 = vld [vmem:[#allocation40_spill] sm:$0xff] }
 0x112   :  { %680 = vmatmul.mubr.f32.gmra.mrb[8].mxu1 %v6457_v27  ;;  %v5220_v27 = vpack.c.bf16 %v7794_v3, %v7793_v13 }
 0x113   :  { %3080 = vmatmul.mubr.f32.gmra.mrb[8].mxu0 %v6460_v39  ;;  %762 = vmatprep.mubr.f32.mxu1 %v7785_v5  ;;  %v7795_v39 = vld [vmem:[#allocation35_spill] sm:$0xff]  ;;  %v7809_v5 = vld [vmem:[#allocation4_spill] sm:$0xff] }
 0x114   :  { %704 = vmatpush1.xpose.msra.mxu1 %v6417_v55  ;;  %3162 = vmatprep.mubr.f32.mxu0 %v7787_v45  ;;  %v5364_v18 = vpack.c.bf16 %v7796_v47, %v7795_v39 }
 0x115   :  { %3104 = vmatpush1.xpose.msra.mxu0 %v6419_v49  ;;  %5217 = vmatprep.subr.bf16.mxu1 %v5216_v9  ;;  %v6649_v9 = vand.u32 4294901760, %v209_v43 }
 0x116   :  { %5361 = vmatprep.subr.bf16.mxu0 %v5360_v25 }
 0x117   :  { %766 = vmatmul.mubr.f32.vlgmr.msra.gmra.mrb[0].mxu1 %v7789_v8  ;;  %v7811_v8 = vld [vmem:[#allocation5_spill] sm:$0xff] }
 0x118   :  { %3166 = vmatmul.mubr.f32.vlgmr.msra.gmra.mrb[0].mxu0 %v7791_v32  ;;  %773 = vmatprep.mubr.f32.mxu1 %v7786_v50 }
 0x119   :  { %5219 = vmatpush1.bf16.xpose.msra.mxu1 %v5218_v2  ;;  %3173 = vmatprep.mubr.f32.mxu0 %v7788_v15  ;;  %v7810_v15 = vld [vmem:[#allocation6_spill] sm:$0xff] }
 0x11a   :  { %5363 = vmatpush1.bf16.xpose.msra.mxu0 %v5362_v1  ;;  %5221 = vmatprep.subr.bf16.mxu1 %v5220_v27  ;;  %v6656_v25 = vmul.f32 %v7803_v22, %v7810_v15 }
 0x11b   :  { %5365 = vmatprep.subr.bf16.mxu0 %v5364_v18  ;;  %777 = vmatmul.mubr.f32.gmra.mrb[2].mxu1 %v7790_v7  ;;  %v7812_v7 = vld [vmem:[#allocation20_spill] sm:$0xff] }
 0x11c   :  { %3177 = vmatmul.mubr.f32.gmra.mrb[2].mxu0 %v7792_v42  ;;  %784 = vmatprep.mubr.f32.mxu1 %v7793_v13  ;;  %v236_v2 = vmul.f32 %v7812_v7, %v7811_v8  ;;  %v7814_v42 = vld [vmem:[#allocation12_spill] sm:$0xff]  ;;  %v6754_v8 = vsub.f32 %v209_v43, %v6649_v9 }
 0x11d   :  { %3184 = vmatprep.mubr.f32.mxu0 %v7795_v39  ;;  %v242_v1 = vmul.f32 %v7812_v7, %v7814_v42  ;;  %v5820_v18 = vld [vmem:[%s7603_s0 + $0xf0] sm:$0xff]  ;;  %v7823_v42 = vld [vmem:[#allocation17_spill] sm:$0xff] }
 0x11f   :  { %788 = vmatmul.mubr.f32.gmra.mrb[4].mxu1 %v6415_v29  ;;  %v7800_v29 = vld [vmem:[#allocation23_spill] sm:$0xff] }
 0x120   :  { %3188 = vmatmul.mubr.f32.gmra.mrb[4].mxu0 %v7797_v19  ;;  %795 = vmatprep.mubr.f32.mxu1 %v7794_v3  ;;  %v6623_v61 = vmul.f32 %v7800_v29, %v7805_v16  ;;  %v6719_v16 = vmul.f32 %v7812_v7, %v7817_v31 }
 0x121   :  { %5223 = vmatpush1.bf16.xpose.msra.mxu1 %v5222_v23  ;;  %3195 = vmatprep.mubr.f32.mxu0 %v7796_v47 }
 0x122   :  { %5367 = vmatpush1.bf16.xpose.msra.mxu0 %v5366_v30  ;;  %850 = vmatprep.subr.mxu1 %v6451_v11  ;;  %v6652_v45 = vand.u32 4294901760, %v6623_v61  ;;  %v6706_v30 = vand.u32 4294901760, %v236_v2 }
 0x123   :  { %3250 = vmatprep.subr.mxu0 %v6454_v0  ;;  %799 = vmatmul.mubr.f32.gmra.mrb[6].mxu1 %v6425_v51  ;;  %v7799_v51 = vld [vmem:[#allocation9_spill] sm:$0xff] }
 0x124   :  { %3199 = vmatmul.mubr.f32.gmra.mrb[6].mxu0 %v7798_v48  ;;  %806 = vmatprep.mubr.f32.mxu1 %v6451_v11  ;;  %v214_v11 = vmul.f32 %v7800_v29, %v7799_v51  ;;  %v6704_v48 = vand.u32 4294901760, %v6656_v25  ;;  %v5821_v51 = vld [vmem:[%s7603_s0 + $0x118] sm:$0xff]  ;;  %v6781_v31 = vsub.f32 %v6623_v61, %v6652_v45 }
 0x125   :  { %3206 = vmatprep.mubr.f32.mxu0 %v6454_v0  ;;  %v7801_v0 = vld [vmem:[#allocation15_spill] sm:$0xff] }
 0x126   :  { %v6627_v20 = vand.u32 4294901760, %v214_v11 }
 0x127   :  { %810 = vmatmul.mubr.f32.gmra.mrb[8].mxu1 %v6467_v12 }
 0x128   :  { %3210 = vmatmul.mubr.f32.gmra.mrb[8].mxu0 %v6470_v41  ;;  %910 = vmatprep.mubr.f32.mxu1 %v6178_v35 }
 0x129   :  { %854 = vmatpush1.xpose.msra.mxu1 %v6467_v12  ;;  %3310 = vmatprep.mubr.f32.mxu0 %v6180_v36  ;;  %v220_v12 = vmul.f32 %v7800_v29, %v7801_v0  ;;  %v6712_v0 = vmul.f32 %v5821_v51, %v7812_v7 }
 0x12a   :  { %3254 = vmatpush1.xpose.msra.mxu0 %v6470_v41  ;;  %5225 = vmatprep.subr.bf16.mxu1 %v7777_v24  ;;  %v7802_v41 = vld [vmem:[#allocation3_spill] sm:$0xff]  ;;  %v7806_v24 = vld [vmem:[#allocation2_spill] sm:$0xff] }
 0x12b   :  { %5369 = vmatprep.subr.bf16.mxu0 %v7778_v38  ;;  %v203_v17 = vmul.f32 %v7803_v22, %v7802_v41  ;;  %v6630_v40 = vand.u32 4294901760, %v220_v12  ;;  %v202_v38 = vmul.f32 %v7803_v22, %v7806_v24  ;;  %v6715_v41 = vand.u32 4294901760, %v242_v1 }
 0x12c   :  { %912 = vmatmul.mubr.f32.vlgmr.msra.gmra.mrb[0].mxu1 %v6212_v37  ;;  %v6722_v24 = vsub.f32 %v214_v11, %v6627_v20  ;;  %v7821_v11 = vld [vmem:[#allocation13_spill] sm:$0xff] }
 0x12d   :  { %3312 = vmatmul.mubr.f32.vlgmr.msra.gmra.mrb[0].mxu0 %v6215_v59  ;;  %917 = vmatprep.mubr.f32.mxu1 %v6237_v54  ;;  %v6672_v13 = vpack.c.bf16 %v6630_v40, %v6649_v9  ;;  %v6674_v3 = vand.u32 4294901760, %v202_v38  ;;  %v6828_v22 = vsub.f32 %v242_v1, %v6715_v41 }
 0x12e   :  { %5227 = vmatpush1.bf16.xpose.msra.mxu1 %v7779_v26  ;;  %3317 = vmatprep.mubr.f32.mxu0 %v6239_v14  ;;  %v7807_v26 = vld [vmem:[#allocation14_spill] sm:$0xff]  ;;  %v6774_v43 = vand.u32 4294901760, %v6722_v24 }
 0x12f   :  { %5371 = vmatpush1.bf16.xpose.msra.mxu0 %v7780_v52  ;;  %5229 = vmatprep.subr.bf16.mxu1 %v7781_v4  ;;  %v219_v52 = vmul.f32 %v7800_v29, %v7807_v26  ;;  %v6636_v4 = vand.u32 4294901760, %v203_v17  ;;  %7815 = vst [vmem:[#allocation27_spill] sm:$0xff] %v6672_v13  ;;  %v6701_v19 = vpack.c.bf16 %v6652_v45, %v6674_v3 }
 0x130   :  { %5373 = vmatprep.subr.bf16.mxu0 %v7782_v58  ;;  %919 = vmatmul.mubr.f32.gmra.mrb[2].mxu1 %v6241_v62  ;;  %v5818_v58 = vld [vmem:[%s7603_s0 + $0xc8] sm:$0xff]  ;;  %v6725_v26 = vsub.f32 %v220_v12, %v6630_v40  ;;  %v7822_v12 = vld [vmem:[#allocation30_spill] sm:$0xff]  ;;  %7824 = vst [vmem:[#allocation36_spill] sm:$0xff] %v6774_v43 }
 0x131   :  { %3319 = vmatmul.mubr.f32.gmra.mrb[2].mxu0 %v6243_v53  ;;  %924 = vmatprep.mubr.f32.mxu1 %v6217_v60  ;;  %v6664_v32 = vpack.c.bf16 %v6627_v20, %v6636_v4  ;;  %v6676_v27 = vand.u32 4294901760, %v219_v52  ;;  %7816 = vst [vmem:[#allocation28_spill] sm:$0xff] %v6701_v19  ;;  %v6751_v15 = vmul.f32 %v7822_v12, %v7821_v11 }
 0x132   :  { %3324 = vmatprep.mubr.f32.mxu0 %v6219_v63  ;;  %v6777_v51 = vand.u32 4294901760, %v6725_v26 }
 0x133   :  { %7813 = vst [vmem:[#allocation26_spill] sm:$0xff] %v6664_v32  ;;  %v6784_v11 = vsub.f32 %v219_v52, %v6676_v27  ;;  %v6811_v52 = vand.u32 4294901760, %v6754_v8 }
 0x134   :  { %926 = vmatmul.mubr.f32.gmra.mrb[4].mxu1 %v6309_v28  ;;  %7825 = vst [vmem:[#allocation37_spill] sm:$0xff] %v6777_v51  ;;  %v3547_v29 = vsub.f32 %v6725_v26, %v6777_v51 }
 0x135   :  { %3326 = vmatmul.mubr.f32.gmra.mrb[4].mxu0 %v6311_v46  ;;  %931 = vmatprep.mubr.f32.mxu1 %v6233_v21  ;;  %7829 = vst [vmem:[#allocation22_spill] sm:$0xff] %v6811_v52 }
 0x136   :  { %5231 = vmatpush1.bf16.xpose.msra.mxu1 %v7783_v33  ;;  %3331 = vmatprep.mubr.f32.mxu0 %v6235_v57  ;;  %v7808_v33 = vld [vmem:[#allocation18_spill] sm:$0xff] }
 0x137   :  { %5375 = vmatpush1.bf16.xpose.msra.mxu0 %v7784_v6  ;;  %962 = vmatprep.subr.mxu1 %v6364_v56  ;;  %v6642_v6 = vmul.f32 %v5818_v58, %v7808_v33  ;;  %v6646_v50 = vmul.f32 %v7808_v33, %v7809_v5  ;;  %v6696_v23 = vmul.f32 %v5820_v18, %v7808_v33 }
 0x138   :  { %3362 = vmatprep.subr.mxu0 %v6366_v10  ;;  %933 = vmatmul.mubr.f32.gmra.mrb[6].mxu1 %v6326_v34  ;;  %v6731_v58 = vpack.c.bf16 %v6676_v27, %v6704_v48  ;;  %v6738_v5 = vsub.f32 %v203_v17, %v6636_v4  ;;  %v6769_v18 = vsub.f32 %v202_v38, %v6674_v3  ;;  %v6789_v38 = vand.u32 4294901760, %v6719_v16 }
 0x139   :  { %3333 = vmatmul.mubr.f32.gmra.mrb[6].mxu0 %v6328_v44  ;;  %938 = vmatprep.mubr.f32.mxu1 %v6364_v56  ;;  %v6684_v39 = vand.u32 4294901760, %v6646_v50  ;;  %v6762_v17 = vand.u32 4294901760, %v6696_v23 }
 0x13a   :  { %3338 = vmatprep.mubr.f32.mxu0 %v6366_v10  ;;  %7818 = vst [vmem:[#allocation29_spill] sm:$0xff] %v6731_v58  ;;  %v6796_v7 = vand.u32 4294901760, %v6738_v5 }
 0x13c   :  { %940 = vmatmul.mubr.f32.gmra.mrb[8].mxu1 %v6417_v55  ;;  %7827 = vst [vmem:[#allocation21_spill] sm:$0xff] %v6796_v7  ;;  %v1132_v1 = vsub.f32 %v6738_v5, %v6796_v7 }
 0x13d   :  { %3340 = vmatmul.mubr.f32.gmra.mrb[8].mxu0 %v6419_v49  ;;  %1020 = vmatprep.mubr.f32.mxu1 %v6178_v35  ;;  %v6681_v35 = vand.u32 4294901760, %v6642_v6 }
 0x13e   :  { %964 = vmatpush1.xpose.msra.mxu1 %v6417_v55  ;;  %3420 = vmatprep.mubr.f32.mxu0 %v6180_v36  ;;  %v5819_v36 = vld [vmem:[%s7603_s0 + $0xc0] sm:$0xff] }
 0x13f   :  { %3364 = vmatpush1.xpose.msra.mxu0 %v6419_v49  ;;  %5233 = vmatprep.subr.bf16.mxu1 %v6664_v32  ;;  %v6690_v47 = vmul.f32 %v5819_v36, %v7808_v33  ;;  %v6766_v36 = vmul.f32 %v7822_v12, %v7823_v42  ;;  %v6800_v61 = vsub.f32 %v6642_v6, %v6681_v35  ;;  %v6817_v33 = vand.u32 4294901760, %v6769_v18 }
 0x140   :  { %5377 = vmatprep.subr.bf16.mxu0 %v6672_v13  ;;  %v6821_v6 = vsub.f32 %v6656_v25, %v6704_v48  ;;  %v6839_v25 = vand.u32 4294901760, %v6784_v11 }
 0x141   :  { %1022 = vmatmul.mubr.f32.vlgmr.msra.gmra.mrb[0].mxu1 %v6212_v37  ;;  %v6735_v37 = vpack.c.bf16 %v6706_v30, %v6681_v35  ;;  %7830 = vst [vmem:[#allocation32_spill] sm:$0xff] %v6817_v33  ;;  %v6853_v51 = vand.u32 4294901760, %v6800_v61 }
 0x142   :  { %3422 = vmatmul.mubr.f32.vlgmr.msra.gmra.mrb[0].mxu0 %v6215_v59  ;;  %1027 = vmatprep.mubr.f32.mxu1 %v6237_v54  ;;  %v6744_v59 = vpack.c.bf16 %v6715_v41, %v6684_v39  ;;  %v6747_v54 = vand.u32 4294901760, %v6690_v47  ;;  %7832 = vst [vmem:[#allocation38_spill] sm:$0xff] %v6839_v25  ;;  %v6874_v7 = vand.u32 4294901760, %v6821_v6 }
 0x143   :  { %7819 = vst [vmem:[#allocation24_spill] sm:$0xff] %v6735_v37  ;;  %5235 = vmatpush1.bf16.xpose.msra.mxu1 %v6701_v19  ;;  %3427 = vmatprep.mubr.f32.mxu0 %v6239_v14  ;;  %v6759_v14 = vand.u32 4294901760, %v6712_v0  ;;  %7834 = vst [vmem:[#allocation39_spill] sm:$0xff] %v6853_v51  ;;  %v1133_v19 = vand.u32 4294901760, %v1132_v1  ;;  %v1162_v13 = vsub.f32 %v6800_v61, %v6853_v51 }
 0x144   :  { %7820 = vst [vmem:[#allocation25_spill] sm:$0xff] %v6744_v59  ;;  %5379 = vmatpush1.bf16.xpose.msra.mxu0 %v6731_v58  ;;  %5237 = vmatprep.subr.bf16.mxu1 %v6735_v37  ;;  %v3532_v37 = vsub.f32 %v6754_v8, %v6811_v52  ;;  %7837 = vst [vmem:[#allocation40_spill] sm:$0xff] %v6874_v7  ;;  %v3548_v52 = vand.u32 4294901760, %v3547_v29  ;;  %v6894_v32 = vsub.f32 %v6690_v47, %v6747_v54 }
 0x145   :  { %5381 = vmatprep.subr.bf16.mxu0 %v6744_v59  ;;  %1029 = vmatmul.mubr.f32.gmra.mrb[2].mxu1 %v6241_v62  ;;  %v7826_v62 = vld [vmem:[#allocation11_spill] sm:$0xff]  ;;  %v6836_v59 = vand.u32 4294901760, %v6781_v31 }
 0x146   :  { %3429 = vmatmul.mubr.f32.gmra.mrb[2].mxu0 %v6243_v53  ;;  %1034 = vmatprep.mubr.f32.mxu1 %v6217_v60  ;;  %v6793_v42 = vmul.f32 %v7822_v12, %v7826_v62  ;;  %v6805_v53 = vpack.c.bf16 %v6759_v14, %v6747_v54  ;;  %v6808_v60 = vand.u32 4294901760, %v6751_v15  ;;  %v6814_v62 = vsub.f32 %v236_v2, %v6706_v30 }
 0x147   :  { %3434 = vmatprep.mubr.f32.mxu0 %v6219_v63  ;;  %v6825_v63 = vsub.f32 %v6646_v50, %v6684_v39  ;;  %v1147_v2 = vsub.f32 %v6722_v24, %v6774_v43  ;;  %7831 = vst [vmem:[#allocation34_spill] sm:$0xff] %v6836_v59  ;;  %v6845_v50 = vpack.c.bf16 %v6789_v38, %v6762_v17  ;;  %v3533_v29 = vand.u32 4294901760, %v3532_v37 }
 0x148   :  { %7828 = vst [vmem:[#allocation31_spill] sm:$0xff] %v6805_v53  ;;  %v6867_v58 = vand.u32 4294901760, %v6814_v62 }
 0x149   :  { %1036 = vmatmul.mubr.f32.gmra.mrb[4].mxu1 %v6309_v28  ;;  %7833 = vst [vmem:[#allocation42_spill] sm:$0xff] %v6845_v50  ;;  %v6848_v28 = vand.u32 4294901760, %v6766_v36  ;;  %v5384_v1 = vpack.c.bf16 %v3548_v52, %v3533_v29 }
 0x14a   :  { %3436 = vmatmul.mubr.f32.gmra.mrb[4].mxu0 %v6311_v46  ;;  %1041 = vmatprep.mubr.f32.mxu1 %v6233_v21  ;;  %v6858_v46 = vand.u32 4294901760, %v6793_v42  ;;  %v7835_v21 = vld [vmem:[#allocation16_spill] sm:$0xff]  ;;  %7836 = vst [vmem:[#allocation33_spill] sm:$0xff] %v6867_v58 }
 0x14b   :  { %5239 = vmatpush1.bf16.xpose.msra.mxu1 %v6805_v53  ;;  %3441 = vmatprep.mubr.f32.mxu0 %v6235_v57  ;;  %v6862_v43 = vmul.f32 %v7822_v12, %v7835_v21  ;;  %v1138_v57 = vsub.f32 %v6769_v18, %v6817_v33  ;;  %v6877_v53 = vand.u32 4294901760, %v6825_v63  ;;  %v6880_v21 = vand.u32 4294901760, %v6828_v22 }
 0x14c   :  { %5383 = vmatpush1.bf16.xpose.msra.mxu0 %v6845_v50  ;;  %1072 = vmatprep.subr.mxu1 %v6808_v60  ;;  %v1148_v12 = vand.u32 4294901760, %v1147_v2  ;;  %v1153_v50 = vsub.f32 %v6781_v31, %v6836_v59  ;;  %v3553_v33 = vsub.f32 %v6784_v11, %v6839_v25  ;;  %v6909_v2 = vsub.f32 %v6719_v16, %v6789_v38 }
 0x14d   :  { %7838 = vst [vmem:[#allocation35_spill] sm:$0xff] %v6877_v53  ;;  %7839 = vst [vmem:[#allocation41_spill] sm:$0xff] %v6880_v21  ;;  %3472 = vmatprep.subr.mxu0 %v6848_v28  ;;  %1043 = vmatmul.mubr.f32.gmra.mrb[6].mxu1 %v6326_v34  ;;  %v6898_v34 = vsub.f32 %v6712_v0, %v6759_v14  ;;  %v6912_v47 = vand.u32 4294901760, %v6862_v43  ;;  %v3538_v0 = vsub.f32 %v6821_v6, %v6874_v7 }
 0x14e   :  { %3443 = vmatmul.mubr.f32.gmra.mrb[6].mxu0 %v6328_v44  ;;  %1048 = vmatprep.mubr.f32.mxu1 %v6364_v56  ;;  %v1177_v44 = vsub.f32 %v6814_v62, %v6867_v58  ;;  %v6905_v56 = vsub.f32 %v6696_v23, %v6762_v17  ;;  %v3577_v37 = vsub.f32 %v6828_v22, %v6880_v21  ;;  %v1139_v58 = vand.u32 4294901760, %v1138_v57 }
 0x14f   :  { %3448 = vmatprep.mubr.f32.mxu0 %v6366_v10  ;;  %v3562_v10 = vsub.f32 %v6825_v63, %v6877_v53  ;;  %v5240_v23 = vpack.c.bf16 %v1148_v12, %v1133_v19  ;;  %v1154_v51 = vand.u32 4294901760, %v1153_v50  ;;  %v3554_v16 = vand.u32 4294901760, %v3553_v33 }
 0x150   :  { %v1163_v25 = vand.u32 4294901760, %v1162_v13  ;;  %v6923_v59 = vand.u32 4294901760, %v6894_v32  ;;  %v6926_v7 = vand.u32 4294901760, %v6898_v34  ;;  %v1178_v21 = vand.u32 4294901760, %v1177_v44 }
 0x151   :  { %1050 = vmatmul.mubr.f32.gmra.mrb[8].mxu1 %v6417_v55  ;;  %v6930_v55 = vand.u32 4294901760, %v6905_v56  ;;  %v6933_v50 = vand.u32 4294901760, %v6909_v2  ;;  %v3539_v33 = vand.u32 4294901760, %v3538_v0  ;;  %v3563_v13 = vand.u32 4294901760, %v3562_v10 }
 0x152   :  { %3450 = vmatmul.mubr.f32.gmra.mrb[8].mxu0 %v6419_v49  ;;  %1134 = vmatprep.mubr.f32.mxu1 %v1133_v19  ;;  %v6937_v49 = vsub.f32 %v6751_v15, %v6808_v60  ;;  %v3578_v19 = vand.u32 4294901760, %v3577_v37  ;;  %v6942_v57 = vsub.f32 %v6766_v36, %v6848_v28  ;;  %v1168_v53 = vsub.f32 %v6894_v32, %v6923_v59 }
 0x153   :  { %1074 = vmatpush1.xpose.msra.mxu1 %v6858_v46  ;;  %3534 = vmatprep.mubr.f32.mxu0 %v3533_v29  ;;  %7840 = vst [vmem:[#allocation43_spill] sm:$0xff] %v6930_v55  ;;  %7841 = vst [vmem:[#allocation44_spill] sm:$0xff] %v6933_v50  ;;  %v5242_v29 = vpack.c.bf16 %v1154_v51, %v1139_v58  ;;  %v5386_v44 = vpack.c.bf16 %v3554_v16, %v3539_v33 }
 0x154   :  { %3474 = vmatpush1.xpose.msra.mxu0 %v6912_v47  ;;  %5241 = vmatprep.subr.bf16.mxu1 %v5240_v23  ;;  %v1183_v15 = vsub.f32 %v6898_v34, %v6926_v7  ;;  %v5244_v23 = vpack.c.bf16 %v1178_v21, %v1163_v25  ;;  %v3568_v0 = vsub.f32 %v6905_v56, %v6930_v55  ;;  %v6953_v10 = vand.u32 4294901760, %v6937_v49 }
 0x155   :  { %5385 = vmatprep.subr.bf16.mxu0 %v5384_v1  ;;  %v3583_v36 = vsub.f32 %v6909_v2, %v6933_v50  ;;  %v6956_v37 = vand.u32 4294901760, %v6942_v57  ;;  %v6960_v1 = vsub.f32 %v6793_v42, %v6858_v46 }
 0x156   :  { %1140 = vmatmul.mubr.f32.vlgmr.msra.gmra.mrb[0].mxu1 %v1139_v58  ;;  %v5388_v58 = vpack.c.bf16 %v3578_v19, %v3563_v13  ;;  %v1184_v50 = vand.u32 4294901760, %v1183_v15  ;;  %v1192_v55 = vsub.f32 %v6937_v49, %v6953_v10 }
 0x157   :  { %3540 = vmatmul.mubr.f32.vlgmr.msra.gmra.mrb[0].mxu0 %v3539_v33  ;;  %1149 = vmatprep.mubr.f32.mxu1 %v1148_v12  ;;  %v6964_v12 = vsub.f32 %v6862_v43, %v6912_v47  ;;  %v1169_v33 = vand.u32 4294901760, %v1168_v53  ;;  %v3592_v42 = vsub.f32 %v6942_v57, %v6956_v37 }
 0x158   :  { %5243 = vmatpush1.bf16.xpose.msra.mxu1 %v5242_v29  ;;  %3549 = vmatprep.mubr.f32.mxu0 %v3548_v52  ;;  %v3569_v52 = vand.u32 4294901760, %v3568_v0  ;;  %v3584_v29 = vand.u32 4294901760, %v3583_v36  ;;  %v5252_v36 = vpack.c.bf16 %v6814_v62, %v6800_v61 }
 0x159   :  { %5387 = vmatpush1.bf16.xpose.msra.mxu0 %v5386_v44  ;;  %5245 = vmatprep.subr.bf16.mxu1 %v5244_v23  ;;  %v6971_v44 = vand.u32 4294901760, %v6960_v1  ;;  %v6974_v43 = vand.u32 4294901760, %v6964_v12 }
 0x15a   :  { %5389 = vmatprep.subr.bf16.mxu0 %v5388_v58  ;;  %1155 = vmatmul.mubr.f32.gmra.mrb[2].mxu1 %v1154_v51  ;;  %v5246_v51 = vpack.c.bf16 %v1184_v50, %v1169_v33  ;;  %v5390_v53 = vpack.c.bf16 %v3584_v29, %v3569_v52  ;;  %v5396_v58 = vpack.c.bf16 %v6828_v22, %v6825_v63 }
 0x15b   :  { %3555 = vmatmul.mubr.f32.gmra.mrb[2].mxu0 %v3554_v16  ;;  %1164 = vmatprep.mubr.f32.mxu1 %v1163_v25  ;;  %v1193_v25 = vand.u32 4294901760, %v1192_v55  ;;  %v3593_v16 = vand.u32 4294901760, %v3592_v42  ;;  %v3598_v15 = vsub.f32 %v6964_v12, %v6974_v43  ;;  %v5392_v55 = vpack.c.bf16 %v6725_v26, %v6754_v8  ;;  %v7843_v42 = vld [vmem:[#allocation27_spill] sm:$0xff] }
 0x15c   :  { %3564 = vmatprep.mubr.f32.mxu0 %v3563_v13  ;;  %v1198_v13 = vsub.f32 %v6960_v1, %v6971_v44 }
 0x15d   :  { %v3599_v0 = vand.u32 4294901760, %v3598_v15  ;;  %v7862_v15 = vld [vmem:[#allocation43_spill] sm:$0xff] }
 0x15e   :  { %1170 = vmatmul.mubr.f32.gmra.mrb[4].mxu1 %v1169_v33  ;;  %v1199_v23 = vand.u32 4294901760, %v1198_v13  ;;  %v5254_v33 = vpack.c.bf16 %v6898_v34, %v6894_v32  ;;  %v5270_v13 = vpack.c.bf16 %v6926_v7, %v6923_v59 }
 0x15f   :  { %3570 = vmatmul.mubr.f32.gmra.mrb[4].mxu0 %v3569_v52  ;;  %1179 = vmatprep.mubr.f32.mxu1 %v1178_v21  ;;  %v5248_v21 = vpack.c.bf16 %v6722_v24, %v6738_v5  ;;  %v5398_v52 = vpack.c.bf16 %v6909_v2, %v6905_v56 }
 0x160   :  { %5247 = vmatpush1.bf16.xpose.msra.mxu1 %v5246_v51  ;;  %3579 = vmatprep.mubr.f32.mxu0 %v3578_v19  ;;  %v5394_v19 = vpack.c.bf16 %v6784_v11, %v6821_v6  ;;  %v7844_v51 = vld [vmem:[#allocation28_spill] sm:$0xff] }
 0x161   :  { %5391 = vmatpush1.bf16.xpose.msra.mxu0 %v5390_v53  ;;  %1258 = vmatprep.subr.mxu1 %v1193_v25  ;;  %v7846_v53 = vld [vmem:[#allocation24_spill] sm:$0xff] }
 0x162   :  { %3658 = vmatprep.subr.mxu0 %v3593_v16  ;;  %1185 = vmatmul.mubr.f32.gmra.mrb[6].mxu1 %v1184_v50  ;;  %v5250_v50 = vpack.c.bf16 %v6781_v31, %v6769_v18 }
 0x163   :  { %3585 = vmatmul.mubr.f32.gmra.mrb[6].mxu0 %v3584_v29  ;;  %1194 = vmatprep.mubr.f32.mxu1 %v1193_v25  ;;  %v7842_v29 = vld [vmem:[#allocation26_spill] sm:$0xff]  ;;  %v7861_v25 = vld [vmem:[#allocation41_spill] sm:$0xff] }
 0x164   :  { %3594 = vmatprep.mubr.f32.mxu0 %v3593_v16 }
 0x166   :  { %1200 = vmatmul.mubr.f32.gmra.mrb[8].mxu1 %v1199_v23 }
 0x167   :  { %3600 = vmatmul.mubr.f32.gmra.mrb[8].mxu0 %v3599_v0  ;;  %1320 = vmatprep.mubr.f32.mxu1 %v6636_v4 }
 0x168   :  { %1264 = vmatpush1.xpose.msra.mxu1 %v1199_v23  ;;  %3720 = vmatprep.mubr.f32.mxu0 %v6649_v9  ;;  %v7863_v23 = vld [vmem:[#allocation44_spill] sm:$0xff] }
 0x169   :  { %3664 = vmatpush1.xpose.msra.mxu0 %v3599_v0  ;;  %5249 = vmatprep.subr.bf16.mxu1 %v5248_v21  ;;  %v5414_v0 = vpack.c.bf16 %v7863_v23, %v7862_v15 }
 0x16a   :  { %5393 = vmatprep.subr.bf16.mxu0 %v5392_v55  ;;  %v5824_v55 = vld [vmem:[%s7603_s0 + $0x78] sm:$0xff] }
 0x16b   :  { %1322 = vmatmul.mubr.f32.vlgmr.msra.gmra.mrb[0].mxu1 %v6674_v3 }
 0x16c   :  { %3722 = vmatmul.mubr.f32.vlgmr.msra.gmra.mrb[0].mxu0 %v6704_v48  ;;  %1327 = vmatprep.mubr.f32.mxu1 %v6627_v20 }
 0x16d   :  { %5251 = vmatpush1.bf16.xpose.msra.mxu1 %v5250_v50  ;;  %3727 = vmatprep.mubr.f32.mxu0 %v6630_v40 }
 0x16e   :  { %5395 = vmatpush1.bf16.xpose.msra.mxu0 %v5394_v19  ;;  %5253 = vmatprep.subr.bf16.mxu1 %v5252_v36  ;;  %v5825_v19 = vld [vmem:[%s7603_s0 + $0xa8] sm:$0xff] }
 0x16f   :  { %5397 = vmatprep.subr.bf16.mxu0 %v5396_v58  ;;  %1329 = vmatmul.mubr.f32.gmra.mrb[2].mxu1 %v6652_v45 }
 0x170   :  { %3729 = vmatmul.mubr.f32.gmra.mrb[2].mxu0 %v6676_v27  ;;  %1334 = vmatprep.mubr.f32.mxu1 %v6681_v35 }
 0x171   :  { %3734 = vmatprep.mubr.f32.mxu0 %v6684_v39 }
 0x173   :  { %1336 = vmatmul.mubr.f32.gmra.mrb[4].mxu1 %v6747_v54 }
 0x174   :  { %3736 = vmatmul.mubr.f32.gmra.mrb[4].mxu0 %v6762_v17  ;;  %1341 = vmatprep.mubr.f32.mxu1 %v6706_v30 }
 0x175   :  { %5255 = vmatpush1.bf16.xpose.msra.mxu1 %v5254_v33  ;;  %3741 = vmatprep.mubr.f32.mxu0 %v6715_v41  ;;  %v5826_v33 = vld [vmem:[%s7603_s0 + $0x20] sm:$0xff] }
 0x176   :  { %5399 = vmatpush1.bf16.xpose.msra.mxu0 %v5398_v52  ;;  %1381 = vmatprep.subr.mxu1 %v6937_v49 }
 0x177   :  { %3781 = vmatprep.subr.mxu0 %v6942_v57  ;;  %1343 = vmatmul.mubr.f32.gmra.mrb[6].mxu1 %v6759_v14 }
 0x178   :  { %3743 = vmatmul.mubr.f32.gmra.mrb[6].mxu0 %v6789_v38  ;;  %1348 = vmatprep.mubr.f32.mxu1 %v6808_v60 }
 0x179   :  { %3748 = vmatprep.mubr.f32.mxu0 %v6848_v28 }
 0x17b   :  { %1350 = vmatmul.mubr.f32.gmra.mrb[8].mxu1 %v6858_v46 }
 0x17c   :  { %3750 = vmatmul.mubr.f32.gmra.mrb[8].mxu0 %v6912_v47  ;;  %1441 = vmatprep.mubr.f32.mxu1 %v6738_v5  ;;  %v7845_v5 = vld [vmem:[#allocation29_spill] sm:$0xff] }
 0x17d   :  { %1384 = vmatpush1.xpose.msra.mxu1 %v6960_v1  ;;  %3841 = vmatprep.mubr.f32.mxu0 %v6754_v8  ;;  %v7847_v8 = vld [vmem:[#allocation25_spill] sm:$0xff] }
 0x17e   :  { %3784 = vmatpush1.xpose.msra.mxu0 %v6964_v12  ;;  %5257 = vmatprep.subr.bf16.mxu1 %v7842_v29 }
 0x17f   :  { %5401 = vmatprep.subr.bf16.mxu0 %v7843_v42 }
 0x180   :  { %1444 = vmatmul.mubr.f32.vlgmr.msra.gmra.mrb[0].mxu1 %v6769_v18 }
 0x181   :  { %3844 = vmatmul.mubr.f32.vlgmr.msra.gmra.mrb[0].mxu0 %v6821_v6  ;;  %1450 = vmatprep.mubr.f32.mxu1 %v6722_v24  ;;  %v7848_v24 = vld [vmem:[#allocation31_spill] sm:$0xff]  ;;  %v7855_v6 = vld [vmem:[#allocation34_spill] sm:$0xff] }
 0x182   :  { %5259 = vmatpush1.bf16.xpose.msra.mxu1 %v7844_v51  ;;  %3850 = vmatprep.mubr.f32.mxu0 %v6725_v26  ;;  %v7849_v26 = vld [vmem:[#allocation42_spill] sm:$0xff] }
 0x183   :  { %5403 = vmatpush1.bf16.xpose.msra.mxu0 %v7845_v5  ;;  %5261 = vmatprep.subr.bf16.mxu1 %v7846_v53 }
 0x184   :  { %5405 = vmatprep.subr.bf16.mxu0 %v7847_v8  ;;  %1453 = vmatmul.mubr.f32.gmra.mrb[2].mxu1 %v6781_v31  ;;  %v7852_v31 = vld [vmem:[#allocation22_spill] sm:$0xff] }
 0x185   :  { %3853 = vmatmul.mubr.f32.gmra.mrb[2].mxu0 %v6784_v11  ;;  %1459 = vmatprep.mubr.f32.mxu1 %v6800_v61  ;;  %v7853_v11 = vld [vmem:[#allocation37_spill] sm:$0xff] }
 0x186   :  { %3859 = vmatprep.mubr.f32.mxu0 %v6825_v63  ;;  %v5408_v61 = vpack.c.bf16 %v7853_v11, %v7852_v31 }
 0x188   :  { %1462 = vmatmul.mubr.f32.gmra.mrb[4].mxu1 %v6894_v32  ;;  %v7850_v32 = vld [vmem:[#allocation21_spill] sm:$0xff] }
 0x189   :  { %3862 = vmatmul.mubr.f32.gmra.mrb[4].mxu0 %v6905_v56  ;;  %1468 = vmatprep.mubr.f32.mxu1 %v6814_v62  ;;  %v7854_v62 = vld [vmem:[#allocation32_spill] sm:$0xff]  ;;  %v7857_v56 = vld [vmem:[#allocation38_spill] sm:$0xff] }
 0x18a   :  { %5263 = vmatpush1.bf16.xpose.msra.mxu1 %v7848_v24  ;;  %3868 = vmatprep.mubr.f32.mxu0 %v6828_v22  ;;  %v7851_v22 = vld [vmem:[#allocation36_spill] sm:$0xff]  ;;  %v5266_v63 = vpack.c.bf16 %v7855_v6, %v7854_v62 }
 0x18b   :  { %5407 = vmatpush1.bf16.xpose.msra.mxu0 %v7849_v26  ;;  %1502 = vmatprep.subr.mxu1 %v6808_v60  ;;  %v5264_v18 = vpack.c.bf16 %v7851_v22, %v7850_v32 }
 0x18c   :  { %3902 = vmatprep.subr.mxu0 %v6848_v28  ;;  %1471 = vmatmul.mubr.f32.gmra.mrb[6].mxu1 %v6898_v34  ;;  %v7856_v34 = vld [vmem:[#allocation40_spill] sm:$0xff] }
 0x18d   :  { %3871 = vmatmul.mubr.f32.gmra.mrb[6].mxu0 %v6909_v2  ;;  %1477 = vmatprep.mubr.f32.mxu1 %v6937_v49  ;;  %v5410_v2 = vpack.c.bf16 %v7857_v56, %v7856_v34  ;;  %v7858_v49 = vld [vmem:[#allocation39_spill] sm:$0xff] }
 0x18e   :  { %3877 = vmatprep.mubr.f32.mxu0 %v6942_v57  ;;  %v7859_v57 = vld [vmem:[#allocation33_spill] sm:$0xff] }
 0x190   :  { %1480 = vmatmul.mubr.f32.gmra.mrb[8].mxu1 %v6960_v1  ;;  %v5268_v1 = vpack.c.bf16 %v7859_v57, %v7858_v49 }
 0x191   :  { %3880 = vmatmul.mubr.f32.gmra.mrb[8].mxu0 %v6964_v12  ;;  %1562 = vmatprep.mubr.f32.mxu1 %v7850_v32  ;;  %v7860_v12 = vld [vmem:[#allocation35_spill] sm:$0xff] }
 0x192   :  { %1504 = vmatpush1.xpose.msra.mxu1 %v6858_v46  ;;  %3962 = vmatprep.mubr.f32.mxu0 %v7852_v31  ;;  %v5412_v16 = vpack.c.bf16 %v7861_v25, %v7860_v12 }
 0x193   :  { %3904 = vmatpush1.xpose.msra.mxu0 %v6912_v47  ;;  %5265 = vmatprep.subr.bf16.mxu1 %v5264_v18 }
 0x194   :  { %5409 = vmatprep.subr.bf16.mxu0 %v5408_v61 }
 0x195   :  { %1566 = vmatmul.mubr.f32.vlgmr.msra.gmra.mrb[0].mxu1 %v7854_v62 }
 0x196   :  { %3966 = vmatmul.mubr.f32.vlgmr.msra.gmra.mrb[0].mxu0 %v7856_v34  ;;  %1573 = vmatprep.mubr.f32.mxu1 %v7851_v22 }
 0x197   :  { %5267 = vmatpush1.bf16.xpose.msra.mxu1 %v5266_v63  ;;  %3973 = vmatprep.mubr.f32.mxu0 %v7853_v11  ;;  %v7728_v11 = vmov 0.0|0.0  }
 0x198   :  { %5411 = vmatpush1.bf16.xpose.msra.mxu0 %v5410_v2  ;;  %5269 = vmatprep.subr.bf16.mxu1 %v5268_v1  ;;  %v5831_v2 = vld [vmem:[%s7603_s0 + $0x128] sm:$0xff]  ;;  %v5833_v1 = vld [vmem:[%s7603_s0 + $0x158] sm:$0xff] }
 0x199   :  { %5413 = vmatprep.subr.bf16.mxu0 %v5412_v16  ;;  %1577 = vmatmul.mubr.f32.gmra.mrb[2].mxu1 %v7855_v6  ;;  %v5830_v6 = vld [vmem:[%s7603_s0 + $0xd0] sm:$0xff] }
 0x19a   :  { %3977 = vmatmul.mubr.f32.gmra.mrb[2].mxu0 %v7857_v56  ;;  %1584 = vmatprep.mubr.f32.mxu1 %v7858_v49 }
 0x19b   :  { %3984 = vmatprep.mubr.f32.mxu0 %v7860_v12 }
 0x19d   :  { %1588 = vmatmul.mubr.f32.gmra.mrb[4].mxu1 %v6923_v59  ;;  %v7864_v59 = vld [vmem:[#allocation23_spill] sm:$0xff] }
 0x19e   :  { %3988 = vmatmul.mubr.f32.gmra.mrb[4].mxu0 %v7862_v15  ;;  %1595 = vmatprep.mubr.f32.mxu1 %v7859_v57  ;;  %v215_v50 = vmul.f32 %v5824_v55, %v7864_v59  ;;  %v221_v36 = vmul.f32 %v5825_v19, %v7864_v59 }
 0x19f   :  { %5271 = vmatpush1.bf16.xpose.msra.mxu1 %v5270_v13  ;;  %3995 = vmatprep.mubr.f32.mxu0 %v7861_v25 }
 0x1a0   :  { %5415 = vmatpush1.bf16.xpose.msra.mxu0 %v5414_v0  ;;  %1650 = vmatprep.subr.mxu1 %v6953_v10  ;;  %v7163_v22 = vand.u32 4294901760, %v215_v50  ;;  %v7167_v18 = vand.u32 4294901760, %v221_v36 }
 0x1a1   :  { %4050 = vmatprep.subr.mxu0 %v6956_v37  ;;  %1599 = vmatmul.mubr.f32.gmra.mrb[6].mxu1 %v6926_v7  ;;  %v5822_v7 = vld [vmem:[%s7603_s0 + $0x80] sm:$0xff] }
 0x1a2   :  { %3999 = vmatmul.mubr.f32.gmra.mrb[6].mxu0 %v7863_v23  ;;  %1606 = vmatprep.mubr.f32.mxu1 %v6953_v10  ;;  %v216_v10 = vmul.f32 %v5822_v7, %v7864_v59  ;;  %v7229_v25 = vsub.f32 %v215_v50, %v7163_v22  ;;  %v7232_v16 = vsub.f32 %v221_v36, %v7167_v18  ;;  %v7868_v23 = vld [vmem:[#allocation30_spill] sm:$0xff] }
 0x1a3   :  { %4006 = vmatprep.mubr.f32.mxu0 %v6956_v37  ;;  %v5823_v37 = vld [vmem:[%s7603_s0 + $0x28] sm:$0xff] }
 0x1a4   :  { %v7127_v21 = vand.u32 4294901760, %v216_v10  ;;  %v7275_v55 = vand.u32 4294901760, %v7229_v25  ;;  %v7278_v50 = vand.u32 4294901760, %v7232_v16 }
 0x1a5   :  { %1610 = vmatmul.mubr.f32.gmra.mrb[8].mxu1 %v6971_v44 }
 0x1a6   :  { %4010 = vmatmul.mubr.f32.gmra.mrb[8].mxu0 %v6974_v43  ;;  %1710 = vmatprep.mubr.f32.mxu1 %v6636_v4  ;;  %v7192_v34 = vsub.f32 %v216_v10, %v7127_v21 }
 0x1a7   :  { %1654 = vmatpush1.xpose.msra.mxu1 %v6971_v44  ;;  %4110 = vmatprep.mubr.f32.mxu0 %v6649_v9  ;;  %v7865_v44 = vld [vmem:[#allocation19_spill] sm:$0xff] }
 0x1a8   :  { %4054 = vmatpush1.xpose.msra.mxu0 %v6974_v43  ;;  %5273 = vmatprep.subr.bf16.mxu1 %v7842_v29  ;;  %v205_v43 = vmul.f32 %v5823_v37, %v7865_v44  ;;  %v204_v52 = vmul.f32 %v5826_v33, %v7865_v44  ;;  %v5827_v29 = vld [vmem:[%s7603_s0 + $0x50] sm:$0xff] }
 0x1a9   :  { %5417 = vmatprep.subr.bf16.mxu0 %v7843_v42  ;;  %v210_v42 = vmul.f32 %v5827_v29, %v7865_v44  ;;  %v5836_v29 = vld [vmem:[%s7603_s0 + $0x1b0] sm:$0x7] }
 0x1aa   :  { %1712 = vmatmul.mubr.f32.vlgmr.msra.gmra.mrb[0].mxu1 %v6674_v3  ;;  %v7138_v58 = vand.u32 4294901760, %v205_v43  ;;  %v7171_v31 = vand.u32 4294901760, %v204_v52 }
 0x1ab   :  { %4112 = vmatmul.mubr.f32.vlgmr.msra.gmra.mrb[0].mxu0 %v6704_v48  ;;  %1717 = vmatprep.mubr.f32.mxu1 %v6627_v20 }
 0x1ac   :  { %5275 = vmatpush1.bf16.xpose.msra.mxu1 %v7844_v51  ;;  %4117 = vmatprep.mubr.f32.mxu0 %v6630_v40  ;;  %v5828_v51 = vld [vmem:[%s7603_s0 + $0xd8] sm:$0xff]  ;;  %v7161_v32 = vpack.c.bf16 %v7127_v21, %v7138_v58 }
 0x1ad   :  { %5419 = vmatpush1.bf16.xpose.msra.mxu0 %v7845_v5  ;;  %5277 = vmatprep.subr.bf16.mxu1 %v7846_v53  ;;  %v7866_v5 = vld [vmem:[#allocation18_spill] sm:$0xff] }
 0x1ae   :  { %5421 = vmatprep.subr.bf16.mxu0 %v7847_v8  ;;  %1719 = vmatmul.mubr.f32.gmra.mrb[2].mxu1 %v6652_v45  ;;  %v227_v53 = vmul.f32 %v5828_v51, %v7866_v5  ;;  %v5829_v8 = vld [vmem:[%s7603_s0 + $0x130] sm:$0xff]  ;;  %v7189_v63 = vmul.f32 %v5830_v6, %v7866_v5 }
 0x1af   :  { %4119 = vmatmul.mubr.f32.gmra.mrb[2].mxu0 %v6676_v27  ;;  %1724 = vmatprep.mubr.f32.mxu1 %v6681_v35 }
 0x1b0   :  { %4124 = vmatprep.mubr.f32.mxu0 %v6684_v39  ;;  %v7176_v61 = vand.u32 4294901760, %v227_v53  ;;  %v7237_v13 = vand.u32 4294901760, %v7189_v63 }
 0x1b2   :  { %1726 = vmatmul.mubr.f32.gmra.mrb[4].mxu1 %v6747_v54 }
 0x1b3   :  { %4126 = vmatmul.mubr.f32.gmra.mrb[4].mxu0 %v6762_v17  ;;  %1731 = vmatprep.mubr.f32.mxu1 %v6706_v30 }
 0x1b4   :  { %5279 = vmatpush1.bf16.xpose.msra.mxu1 %v7848_v24  ;;  %4131 = vmatprep.mubr.f32.mxu0 %v6715_v41  ;;  %v7867_v24 = vld [vmem:[#allocation20_spill] sm:$0xff] }
 0x1b5   :  { %5423 = vmatpush1.bf16.xpose.msra.mxu0 %v7849_v26  ;;  %1762 = vmatprep.subr.mxu1 %v6808_v60  ;;  %v238_v26 = vmul.f32 %v5829_v8, %v7867_v24  ;;  %v237_v49 = vmul.f32 %v5831_v2, %v7867_v24  ;;  %v243_v12 = vmul.f32 %v5833_v1, %v7867_v24 }
 0x1b6   :  { %4162 = vmatprep.subr.mxu0 %v6848_v28  ;;  %1733 = vmatmul.mubr.f32.gmra.mrb[6].mxu1 %v6759_v14  ;;  %v1953_v8 = vsub.f32 %v7229_v25, %v7275_v55  ;;  %v4338_v24 = vsub.f32 %v7232_v16, %v7278_v50 }
 0x1b7   :  { %4133 = vmatmul.mubr.f32.gmra.mrb[6].mxu0 %v6789_v38  ;;  %1738 = vmatprep.mubr.f32.mxu1 %v6808_v60  ;;  %v7178_v62 = vand.u32 4294901760, %v238_v26  ;;  %v7239_v15 = vand.u32 4294901760, %v237_v49  ;;  %v7262_v37 = vand.u32 4294901760, %v243_v12 }
 0x1b8   :  { %4138 = vmatprep.mubr.f32.mxu0 %v6848_v28 }
 0x1b9   :  { %v7202_v56 = vpack.c.bf16 %v7178_v62, %v7176_v61  ;;  %v7258_v59 = vsub.f32 %v238_v26, %v7178_v62  ;;  %v7323_v26 = vsub.f32 %v7189_v63, %v7237_v13  ;;  %v7334_v2 = vsub.f32 %v243_v12, %v7262_v37 }
 0x1ba   :  { %1740 = vmatmul.mubr.f32.gmra.mrb[8].mxu1 %v6858_v46  ;;  %v1954_v12 = vand.u32 4294901760, %v1953_v8 }
 0x1bb   :  { %4140 = vmatmul.mubr.f32.gmra.mrb[8].mxu0 %v6912_v47  ;;  %1820 = vmatprep.mubr.f32.mxu1 %v6636_v4  ;;  %v7174_v4 = vand.u32 4294901760, %v210_v42 }
 0x1bc   :  { %1764 = vmatpush1.xpose.msra.mxu1 %v6858_v46  ;;  %4220 = vmatprep.mubr.f32.mxu0 %v6649_v9  ;;  %v7183_v9 = vpack.c.bf16 %v7163_v22, %v7171_v31 }
 0x1bd   :  { %4164 = vmatpush1.xpose.msra.mxu0 %v6912_v47  ;;  %5281 = vmatprep.subr.bf16.mxu1 %v7161_v32  ;;  %v7265_v44 = vsub.f32 %v210_v42, %v7174_v4  ;;  %v254_v42 = vmul.f32 %v5836_v29, %v7868_v23 }
 0x1be   :  { %5424 = vmatprep.subr.bf16.mxu0 %v7728_v11 }
 0x1bf   :  { %1822 = vmatmul.mubr.f32.vlgmr.msra.gmra.mrb[0].mxu1 %v6674_v3  ;;  %v7198_v3 = vpack.c.bf16 %v7167_v18, %v7174_v4  ;;  %v7313_v51 = vand.u32 4294901760, %v7265_v44  ;;  %v7348_v1 = vand.u32 4294901760, %v254_v42 }
 0x1c0   :  { %4222 = vmatmul.mubr.f32.vlgmr.msra.gmra.mrb[0].mxu0 %v6704_v48  ;;  %1827 = vmatprep.mubr.f32.mxu1 %v6627_v20  ;;  %v7211_v20 = vsub.f32 %v205_v43, %v7138_v58  ;;  %v5832_v48 = vld [vmem:[%s7603_s0 + $0x100] sm:$0xff] }
 0x1c1   :  { %5283 = vmatpush1.bf16.xpose.msra.mxu1 %v7183_v9  ;;  %4227 = vmatprep.mubr.f32.mxu0 %v6630_v40  ;;  %v232_v57 = vmul.f32 %v5832_v48, %v7866_v5  ;;  %v7226_v40 = vand.u32 4294901760, %v7192_v34  ;;  %v5838_v5 = vmov 0.0  }
 0x1c2   :  { %5426 = vmatpush3.bf16.xpose.msra.mxu0 %v7198_v3  ;;  %5285 = vmatprep.subr.bf16.mxu1 %v7202_v56  ;;  %v7249_v7 = vand.u32 4294901760, %v7211_v20 }
 0x1c3   :  { %1829 = vmatmul.mubr.f32.gmra.mrb[2].mxu1 %v6652_v45  ;;  %5427 = vmatprep.subr.bf16.mxu0 %v7728_v11  ;;  %v5834_v45 = vld [vmem:[%s7603_s0 + $0x188] sm:$0x7]  ;;  %v7260_v10 = vand.u32 4294901760, %v232_v57  ;;  %v1947_v43 = vsub.f32 %v7192_v34, %v7226_v40 }
 0x1c4   :  { %4229 = vmatmul.mubr.f32.gmra.mrb[2].mxu0 %v6676_v27  ;;  %1834 = vmatprep.mubr.f32.mxu1 %v6681_v35  ;;  %v7245_v0 = vmul.f32 %v5834_v45, %v7868_v23  ;;  %v7252_v27 = vsub.f32 %v204_v52, %v7171_v31  ;;  %v7255_v35 = vsub.f32 %v227_v53, %v7176_v61  ;;  %v7351_v45 = vand.u32 4294901760, %v7323_v26 }
 0x1c5   :  { %4234 = vmatprep.mubr.f32.mxu0 %v6684_v39  ;;  %v7270_v39 = vpack.c.bf16 %v7239_v15, %v7237_v13  ;;  %v1932_v36 = vsub.f32 %v7211_v20, %v7249_v7  ;;  %v1948_v53 = vand.u32 4294901760, %v1947_v43  ;;  %v7331_v6 = vsub.f32 %v232_v57, %v7260_v10 }
 0x1c6   :  { %v7287_v19 = vand.u32 4294901760, %v7245_v0  ;;  %v7294_v33 = vand.u32 4294901760, %v7252_v27  ;;  %v4328_v57 = vsub.f32 %v7265_v44, %v7313_v51 }
 0x1c7   :  { %1836 = vmatmul.mubr.f32.gmra.mrb[4].mxu1 %v6747_v54  ;;  %v7284_v54 = vpack.c.bf16 %v7262_v37, %v7260_v10  ;;  %v1933_v48 = vand.u32 4294901760, %v1932_v36  ;;  %v7358_v36 = vand.u32 4294901760, %v7331_v6 }
 0x1c8   :  { %4236 = vmatmul.mubr.f32.gmra.mrb[4].mxu0 %v6762_v17  ;;  %1841 = vmatprep.mubr.f32.mxu1 %v6706_v30  ;;  %v7297_v17 = vand.u32 4294901760, %v7255_v35  ;;  %v7300_v30 = vand.u32 4294901760, %v7258_v59  ;;  %v1938_v63 = vsub.f32 %v7252_v27, %v7294_v33  ;;  %v7368_v8 = vsub.f32 %v7245_v0, %v7287_v19 }
 0x1c9   :  { %5287 = vmatpush1.bf16.xpose.msra.mxu1 %v7270_v39  ;;  %4241 = vmatprep.mubr.f32.mxu0 %v6715_v41  ;;  %v5835_v41 = vld [vmem:[%s7603_s0 + $0x180] sm:$0x7]  ;;  %7871 = vst [vmem:[#allocation3_spill] sm:$0xff] %v7358_v36 }
 0x1ca   :  { %7869 = vst [vmem:[#allocation9_spill] sm:$0xff] %v7297_v17  ;;  %7870 = vst [vmem:[#allocation15_spill] sm:$0xff] %v7300_v30  ;;  %5429 = vmatpush3.bf16.xpose.msra.mxu0 %v7284_v54  ;;  %1872 = vmatprep.subr.mxu1 %v7287_v19  ;;  %v248_v52 = vmul.f32 %v5835_v41, %v7868_v23  ;;  %v4339_v23 = vand.u32 4294901760, %v4338_v24  ;;  %v7361_v41 = vand.u32 4294901760, %v7334_v2  ;;  %v4329_v24 = vand.u32 4294901760, %v4328_v57 }
 0x1cb   :  { %1843 = vmatmul.mubr.f32.gmra.mrb[6].mxu1 %v6759_v14  ;;  %5042 = vmatprep.subr.mxu0 %v5838_v5  ;;  %v7328_v14 = vsub.f32 %v237_v49, %v7239_v15  ;;  %v7381_v57 = vand.u32 4294901760, %v7368_v8 }
 0x1cc   :  { %4243 = vmatmul.mubr.f32.gmra.mrb[6].mxu0 %v6789_v38  ;;  %1848 = vmatprep.mubr.f32.mxu1 %v6808_v60  ;;  %v1962_v38 = vsub.f32 %v7255_v35, %v7297_v17  ;;  %v1977_v60 = vsub.f32 %v7258_v59, %v7300_v30  ;;  %v7343_v49 = vand.u32 4294901760, %v248_v52  ;;  %7872 = vst [vmem:[#allocation8_spill] sm:$0xff] %v7361_v41 }
 0x1cd   :  { %4248 = vmatprep.mubr.f32.mxu0 %v6848_v28  ;;  %v5288_v28 = vpack.c.bf16 %v1948_v53, %v1933_v48  ;;  %v7355_v43 = vand.u32 4294901760, %v7328_v14  ;;  %v1968_v30 = vsub.f32 %v7323_v26, %v7351_v45  ;;  %v5431_v17 = vpack.c.bf16 %v4339_v23, %v4329_v24 }
 0x1ce   :  { %v1963_v29 = vand.u32 4294901760, %v1962_v38  ;;  %v4348_v38 = vsub.f32 %v7331_v6, %v7358_v36  ;;  %v4358_v0 = vsub.f32 %v7334_v2, %v7361_v41  ;;  %v7873_v36 = vmov 0.0|0.0  }
 0x1cf   :  { %1850 = vmatmul.mubr.f32.gmra.mrb[8].mxu1 %v6858_v46  ;;  %v1939_v46 = vand.u32 4294901760, %v1938_v63  ;;  %v1983_v63 = vsub.f32 %v7328_v14, %v7355_v43 }
 0x1d0   :  { %4250 = vmatmul.mubr.f32.gmra.mrb[8].mxu0 %v6912_v47  ;;  %1934 = vmatprep.mubr.f32.mxu1 %v1933_v48  ;;  %v1978_v47 = vand.u32 4294901760, %v1977_v60  ;;  %v4359_v41 = vand.u32 4294901760, %v4358_v0  ;;  %v5300_v0 = vpack.c.bf16 %v7258_v59, %v7255_v35 }
 0x1d1   :  { %1874 = vmatpush1.xpose.msra.mxu1 %v7343_v49  ;;  %5044 = vmatprep.mubr.msk.f32.mxu0 %vm5839_vm1, %v5838_v5  ;;  %v5290_v48 = vpack.c.bf16 %v1954_v12, %v1939_v46 }
 0x1d2   :  { %5043 = vmatpush3.xpose.msra.mxu0 %v7348_v1  ;;  %5289 = vmatprep.subr.bf16.mxu1 %v5288_v28  ;;  %v5292_v60 = vpack.c.bf16 %v1978_v47, %v1963_v29  ;;  %v7384_v28 = vsub.f32 %v248_v52, %v7343_v49 }
 0x1d3   :  { %5430 = vmatprep.subr.bf16.mxu0 %v7728_v11  ;;  %v1969_v11 = vand.u32 4294901760, %v1968_v30 }
 0x1d4   :  { %1940 = vmatmul.mubr.f32.vlgmr.msra.gmra.mrb[0].mxu1 %v1939_v46  ;;  %v7389_v46 = vsub.f32 %v254_v42, %v7348_v1  ;;  %v7397_v52 = vand.u32 4294901760, %v7384_v28 }
 0x1d5   :  { %5045 = vmatmul.mubr.f32.vlgmr.msra.gmra.mrb[0].mxu0 %v4329_v24  ;;  %1949 = vmatprep.mubr.f32.mxu1 %v1948_v53  ;;  %v1984_v24 = vand.u32 4294901760, %v1983_v63  ;;  %v4349_v53 = vand.u32 4294901760, %v4348_v38  ;;  %v5296_v63 = vpack.c.bf16 %v7192_v34, %v7211_v20  ;;  %v5437_v38 = vpack.c.bf16 %v7232_v16, %v7265_v44 }
 0x1d6   :  { %5291 = vmatpush1.bf16.xpose.msra.mxu1 %v5290_v48  ;;  %5432 = vmatpush3.bf16.xpose.msra.mxu0 %v5431_v17  ;;  %v1992_v17 = vsub.f32 %v7368_v8, %v7381_v57  ;;  %v7400_v42 = vand.u32 4294901760, %v7389_v46 }
 0x1d7   :  { %5293 = vmatprep.subr.bf16.mxu1 %v5292_v60  ;;  %5047 = vmatprep.mubr.msk.f32.mxu0 %vm5839_vm1, %v5838_v5  ;;  %v5294_v30 = vpack.c.bf16 %v1984_v24, %v1969_v11  ;;  %v5302_v60 = vpack.c.bf16 %v7328_v14, %v7323_v26 }
 0x1d8   :  { %1955 = vmatmul.mubr.f32.gmra.mrb[2].mxu1 %v1954_v12  ;;  %5433 = vmatprep.subr.bf16.mxu0 %v7873_v36  ;;  %v5434_v12 = vpack.c.bf16 %v4359_v41, %v4349_v53  ;;  %v1993_v48 = vand.u32 4294901760, %v1992_v17 }
 0x1d9   :  { %5048 = vmatmul.mubr.f32.gmra.mrb[2].mxu0 %v4339_v23  ;;  %1964 = vmatprep.mubr.f32.mxu1 %v1963_v29  ;;  %v1998_v23 = vsub.f32 %v7384_v28, %v7397_v52  ;;  %v4368_v29 = vsub.f32 %v7389_v46, %v7400_v42 }
 0x1da   :  { %5050 = vmatprep.mubr.msk.f32.mxu0 %vm5839_vm1, %v5838_v5 }
 0x1dc   :  { %1970 = vmatmul.mubr.f32.gmra.mrb[4].mxu1 %v1969_v11  ;;  %v1999_v11 = vand.u32 4294901760, %v1998_v23 }
 0x1dd   :  { %5051 = vmatmul.mubr.f32.gmra.mrb[4].mxu0 %v4349_v53  ;;  %1979 = vmatprep.mubr.f32.mxu1 %v1978_v47  ;;  %v4369_v47 = vand.u32 4294901760, %v4368_v29 }
 0x1de   :  { %5295 = vmatpush1.bf16.xpose.msra.mxu1 %v5294_v30  ;;  %5435 = vmatpush3.bf16.xpose.msra.mxu0 %v5434_v12 }
 0x1df   :  { %2058 = vmatprep.subr.mxu1 %v1993_v48  ;;  %5053 = vmatprep.mubr.msk.f32.mxu0 %vm5839_vm1, %v5838_v5 }
 0x1e0   :  { %1985 = vmatmul.mubr.f32.gmra.mrb[6].mxu1 %v1984_v24  ;;  %5067 = vmatprep.subr.mxu0 %v5838_v5  ;;  %v5440_v24 = vpack.c.bf16 %v7334_v2, %v7331_v6 }
 0x1e1   :  { %5054 = vmatmul.mubr.f32.gmra.mrb[6].mxu0 %v4359_v41  ;;  %1994 = vmatprep.mubr.f32.mxu1 %v1993_v48  ;;  %v5298_v41 = vpack.c.bf16 %v7229_v25, %v7252_v27 }
 0x1e2   :  { %5056 = vmatprep.mubr.msk.f32.mxu0 %vm5839_vm1, %v5838_v5 }
 0x1e4   :  { %2000 = vmatmul.mubr.f32.gmra.mrb[8].mxu1 %v1999_v11 }
 0x1e5   :  { %5057 = vmatmul.mubr.f32.gmra.mrb[8].mxu0 %v4369_v47  ;;  %2120 = vmatprep.mubr.f32.mxu1 %v7138_v58 }
 0x1e6   :  { %2064 = vmatpush1.xpose.msra.mxu1 %v1999_v11  ;;  %5068 = vmatpush3.xpose.msra.mxu0 %v4369_v47 }
 0x1e7   :  { %5297 = vmatprep.subr.bf16.mxu1 %v5296_v63  ;;  %5069 = vmatprep.mubr.msk.f32.mxu0 %vm5839_vm1, %v5838_v5 }
 0x1e8   :  { %5436 = vmatprep.subr.bf16.mxu0 %v7873_v36 }
 0x1e9   :  { %2122 = vmatmul.mubr.f32.vlgmr.msra.gmra.mrb[0].mxu1 %v7171_v31  ;;  %5070 = vmatmul.mubr.f32.vlgmr.msra.gmra.mrb[0].mxu0 %v7174_v4 }
 0x1ea   :  { %2127 = vmatprep.mubr.f32.mxu1 %v7127_v21  ;;  %5299 = vmatpush1.bf16.xpose.msra.mxu1 %v5298_v41 }
 0x1eb   :  { %5438 = vmatpush3.bf16.xpose.msra.mxu0 %v5437_v38  ;;  %5301 = vmatprep.subr.bf16.mxu1 %v5300_v0 }
 0x1ec   :  { %5072 = vmatprep.mubr.msk.f32.mxu0 %vm5839_vm1, %v5838_v5  ;;  %5439 = vmatprep.subr.bf16.mxu0 %v7873_v36 }
 0x1ed   :  { %2129 = vmatmul.mubr.f32.gmra.mrb[2].mxu1 %v7163_v22  ;;  %5073 = vmatmul.mubr.f32.gmra.mrb[2].mxu0 %v7167_v18 }
 0x1ee   :  { %2134 = vmatprep.mubr.f32.mxu1 %v7176_v61  ;;  %5075 = vmatprep.mubr.msk.f32.mxu0 %vm5839_vm1, %v5838_v5 }
 0x1f1   :  { %2136 = vmatmul.mubr.f32.gmra.mrb[4].mxu1 %v7237_v13  ;;  %5076 = vmatmul.mubr.f32.gmra.mrb[4].mxu0 %v7260_v10 }
 0x1f2   :  { %2141 = vmatprep.mubr.f32.mxu1 %v7178_v62  ;;  %5303 = vmatpush1.bf16.xpose.msra.mxu1 %v5302_v60 }
 0x1f3   :  { %5441 = vmatpush3.bf16.xpose.msra.mxu0 %v5440_v24  ;;  %2181 = vmatprep.subr.mxu1 %v7368_v8 }
 0x1f4   :  { %5078 = vmatprep.mubr.msk.f32.mxu0 %vm5839_vm1, %v5838_v5  ;;  %5092 = vmatprep.subr.mxu0 %v5838_v5 }
 0x1f5   :  { %2143 = vmatmul.mubr.f32.gmra.mrb[6].mxu1 %v7239_v15  ;;  %5079 = vmatmul.mubr.f32.gmra.mrb[6].mxu0 %v7262_v37 }
 0x1f6   :  { %2148 = vmatprep.mubr.f32.mxu1 %v7287_v19  ;;  %5081 = vmatprep.mubr.msk.f32.mxu0 %vm5839_vm1, %v5838_v5 }
 0x1f9   :  { %2150 = vmatmul.mubr.f32.gmra.mrb[8].mxu1 %v7343_v49  ;;  %5082 = vmatmul.mubr.f32.gmra.mrb[8].mxu0 %v7348_v1 }
 0x1fa   :  { %2184 = vmatpush1.xpose.msra.mxu1 %v7384_v28  ;;  %2241 = vmatprep.mubr.f32.mxu1 %v7211_v20  ;;  %v5314_v20 = vpack.c.bf16 %v7275_v55, %v7294_v33 }
 0x1fb   :  { %5093 = vmatpush3.xpose.msra.mxu0 %v7389_v46  ;;  %5305 = vmatprep.subr.bf16.mxu1 %v7161_v32 }
 0x1fc   :  { %5094 = vmatprep.mubr.msk.f32.mxu0 %vm5839_vm1, %v5838_v5  ;;  %5442 = vmatprep.subr.bf16.mxu0 %v7873_v36 }
 0x1fd   :  { %2244 = vmatmul.mubr.f32.vlgmr.msra.gmra.mrb[0].mxu1 %v7252_v27 }
 0x1fe   :  { %5095 = vmatmul.mubr.f32.vlgmr.msra.gmra.mrb[0].mxu0 %v7265_v44  ;;  %2250 = vmatprep.mubr.f32.mxu1 %v7192_v34  ;;  %v5312_v34 = vpack.c.bf16 %v7226_v40, %v7249_v7 }
 0x1ff   :  { %5307 = vmatpush1.bf16.xpose.msra.mxu1 %v7183_v9  ;;  %5444 = vmatpush3.bf16.xpose.msra.mxu0 %v7198_v3 }
 0x200   :  { %5309 = vmatprep.subr.bf16.mxu1 %v7202_v56  ;;  %5097 = vmatprep.mubr.msk.f32.mxu0 %vm5839_vm1, %v5838_v5 }
 0x201   :  { %2253 = vmatmul.mubr.f32.gmra.mrb[2].mxu1 %v7229_v25  ;;  %5445 = vmatprep.subr.bf16.mxu0 %v7873_v36  ;;  %v5449_v25 = vpack.c.bf16 %v7278_v50, %v7313_v51 }
 0x202   :  { %5098 = vmatmul.mubr.f32.gmra.mrb[2].mxu0 %v7232_v16  ;;  %2259 = vmatprep.mubr.f32.mxu1 %v7255_v35  ;;  %v7874_v16 = vld [vmem:[#allocation9_spill] sm:$0xff]  ;;  %v7876_v35 = vld [vmem:[#allocation3_spill] sm:$0xff] }
 0x203   :  { %5100 = vmatprep.mubr.msk.f32.mxu0 %vm5839_vm1, %v5838_v5 }
 0x205   :  { %2262 = vmatmul.mubr.f32.gmra.mrb[4].mxu1 %v7323_v26 }
 0x206   :  { %5101 = vmatmul.mubr.f32.gmra.mrb[4].mxu0 %v7331_v6  ;;  %2268 = vmatprep.mubr.f32.mxu1 %v7258_v59  ;;  %v7877_v59 = vld [vmem:[#allocation8_spill] sm:$0xff] }
 0x207   :  { %5311 = vmatpush1.bf16.xpose.msra.mxu1 %v7270_v39  ;;  %5447 = vmatpush3.bf16.xpose.msra.mxu0 %v7284_v54  ;;  %v5452_v44 = vpack.c.bf16 %v7877_v59, %v7876_v35 }
 0x208   :  { %2302 = vmatprep.subr.mxu1 %v7287_v19  ;;  %5103 = vmatprep.mubr.msk.f32.mxu0 %vm5839_vm1, %v5838_v5 }
 0x209   :  { %2271 = vmatmul.mubr.f32.gmra.mrb[6].mxu1 %v7328_v14  ;;  %5117 = vmatprep.subr.mxu0 %v5838_v5 }
 0x20a   :  { %5104 = vmatmul.mubr.f32.gmra.mrb[6].mxu0 %v7334_v2  ;;  %2277 = vmatprep.mubr.f32.mxu1 %v7368_v8 }
 0x20b   :  { %5106 = vmatprep.mubr.msk.f32.mxu0 %vm5839_vm1, %v5838_v5 }
 0x20d   :  { %2280 = vmatmul.mubr.f32.gmra.mrb[8].mxu1 %v7384_v28 }
 0x20e   :  { %5107 = vmatmul.mubr.f32.gmra.mrb[8].mxu0 %v7389_v46  ;;  %2362 = vmatprep.mubr.f32.mxu1 %v7249_v7  ;;  %v7875_v7 = vld [vmem:[#allocation15_spill] sm:$0xff] }
 0x20f   :  { %2304 = vmatpush1.xpose.msra.mxu1 %v7343_v49  ;;  %5118 = vmatpush3.xpose.msra.mxu0 %v7348_v1  ;;  %v5316_v27 = vpack.c.bf16 %v7875_v7, %v7874_v16 }
 0x210   :  { %5313 = vmatprep.subr.bf16.mxu1 %v5312_v34  ;;  %5119 = vmatprep.mubr.msk.f32.mxu0 %vm5839_vm1, %v5838_v5 }
 0x211   :  { %5448 = vmatprep.subr.bf16.mxu0 %v7873_v36 }
 0x212   :  { %2366 = vmatmul.mubr.f32.vlgmr.msra.gmra.mrb[0].mxu1 %v7294_v33  ;;  %5120 = vmatmul.mubr.f32.vlgmr.msra.gmra.mrb[0].mxu0 %v7313_v51 }
 0x213   :  { %2373 = vmatprep.mubr.f32.mxu1 %v7226_v40  ;;  %5315 = vmatpush1.bf16.xpose.msra.mxu1 %v5314_v20  ;;  %v5318_v40 = vpack.c.bf16 %v7355_v43, %v7351_v45 }
 0x214   :  { %5450 = vmatpush3.bf16.xpose.msra.mxu0 %v5449_v25  ;;  %5317 = vmatprep.subr.bf16.mxu1 %v5316_v27 }
 0x215   :  { %5122 = vmatprep.mubr.msk.f32.mxu0 %vm5839_vm1, %v5838_v5  ;;  %5451 = vmatprep.subr.bf16.mxu0 %v7873_v36 }
 0x216   :  { %2377 = vmatmul.mubr.f32.gmra.mrb[2].mxu1 %v7275_v55  ;;  %5123 = vmatmul.mubr.f32.gmra.mrb[2].mxu0 %v7278_v50 }
 0x217   :  { %2384 = vmatprep.mubr.f32.mxu1 %v7874_v16  ;;  %5125 = vmatprep.mubr.msk.f32.mxu0 %vm5839_vm1, %v5838_v5 }
 0x21a   :  { %2388 = vmatmul.mubr.f32.gmra.mrb[4].mxu1 %v7351_v45  ;;  %5126 = vmatmul.mubr.f32.gmra.mrb[4].mxu0 %v7876_v35 }
 0x21b   :  { %2395 = vmatprep.mubr.f32.mxu1 %v7875_v7  ;;  %5319 = vmatpush1.bf16.xpose.msra.mxu1 %v5318_v40 }
 0x21c   :  { %5453 = vmatpush3.bf16.xpose.msra.mxu0 %v5452_v44  ;;  %2450 = vmatprep.subr.mxu1 %v7381_v57 }
 0x21d   :  { %5128 = vmatprep.mubr.msk.f32.mxu0 %vm5839_vm1, %v5838_v5  ;;  %5142 = vmatprep.subr.mxu0 %v5838_v5 }
 0x21e   :  { %2399 = vmatmul.mubr.f32.gmra.mrb[6].mxu1 %v7355_v43  ;;  %5129 = vmatmul.mubr.f32.gmra.mrb[6].mxu0 %v7877_v59 }
 0x21f   :  { %2406 = vmatprep.mubr.f32.mxu1 %v7381_v57  ;;  %5131 = vmatprep.mubr.msk.f32.mxu0 %vm5839_vm1, %v5838_v5 }
 0x222   :  { %2410 = vmatmul.mubr.f32.gmra.mrb[8].mxu1 %v7397_v52  ;;  %5132 = vmatmul.mubr.f32.gmra.mrb[8].mxu0 %v7400_v42 }
 0x223   :  { %2454 = vmatpush1.xpose.msra.mxu1 %v7397_v52  ;;  %2510 = vmatprep.mubr.f32.mxu1 %v7138_v58 }
 0x224   :  { %5143 = vmatpush3.xpose.msra.mxu0 %v7400_v42  ;;  %5321 = vmatprep.subr.bf16.mxu1 %v7161_v32 }
 0x225   :  { %5144 = vmatprep.mubr.msk.f32.mxu0 %vm5839_vm1, %v5838_v5  ;;  %5454 = vmatprep.subr.bf16.mxu0 %v7873_v36 }
 0x226   :  { %2512 = vmatmul.mubr.f32.vlgmr.msra.gmra.mrb[0].mxu1 %v7171_v31 }
 0x227   :  { %5145 = vmatmul.mubr.f32.vlgmr.msra.gmra.mrb[0].mxu0 %v7174_v4  ;;  %2517 = vmatprep.mubr.f32.mxu1 %v7127_v21 }
 0x228   :  { %5323 = vmatpush1.bf16.xpose.msra.mxu1 %v7183_v9  ;;  %5456 = vmatpush3.bf16.xpose.msra.mxu0 %v7198_v3 }
 0x229   :  { %5325 = vmatprep.subr.bf16.mxu1 %v7202_v56  ;;  %5147 = vmatprep.mubr.msk.f32.mxu0 %vm5839_vm1, %v5838_v5 }
 0x22a   :  { %2519 = vmatmul.mubr.f32.gmra.mrb[2].mxu1 %v7163_v22  ;;  %5457 = vmatprep.subr.bf16.mxu0 %v7873_v36 }
 0x22b   :  { %5148 = vmatmul.mubr.f32.gmra.mrb[2].mxu0 %v7167_v18  ;;  %2524 = vmatprep.mubr.f32.mxu1 %v7176_v61 }
 0x22c   :  { %5150 = vmatprep.mubr.msk.f32.mxu0 %vm5839_vm1, %v5838_v5 }
 0x22e   :  { %2526 = vmatmul.mubr.f32.gmra.mrb[4].mxu1 %v7237_v13 }
 0x22f   :  { %5151 = vmatmul.mubr.f32.gmra.mrb[4].mxu0 %v7260_v10  ;;  %2531 = vmatprep.mubr.f32.mxu1 %v7178_v62 }
 0x230   :  { %5327 = vmatpush1.bf16.xpose.msra.mxu1 %v7270_v39  ;;  %5459 = vmatpush3.bf16.xpose.msra.mxu0 %v7284_v54 }
 0x231   :  { %2562 = vmatprep.subr.mxu1 %v7287_v19  ;;  %5153 = vmatprep.mubr.msk.f32.mxu0 %vm5839_vm1, %v5838_v5 }
 0x232   :  { %2533 = vmatmul.mubr.f32.gmra.mrb[6].mxu1 %v7239_v15  ;;  %5167 = vmatprep.subr.mxu0 %v5838_v5 }
 0x233   :  { %5154 = vmatmul.mubr.f32.gmra.mrb[6].mxu0 %v7262_v37  ;;  %2538 = vmatprep.mubr.f32.mxu1 %v7287_v19 }
 0x234   :  { %5156 = vmatprep.mubr.msk.f32.mxu0 %vm5839_vm1, %v5838_v5 }
 0x236   :  { %2540 = vmatmul.mubr.f32.gmra.mrb[8].mxu1 %v7343_v49 }
 0x237   :  { %5157 = vmatmul.mubr.f32.gmra.mrb[8].mxu0 %v7348_v1  ;;  %2620 = vmatprep.mubr.f32.mxu1 %v7138_v58 }
 0x238   :  { %2564 = vmatpush1.xpose.msra.mxu1 %v7343_v49  ;;  %5168 = vmatpush3.xpose.msra.mxu0 %v7348_v1 }
 0x239   :  { %5169 = vmatprep.mubr.msk.f32.mxu0 %vm5839_vm1, %v5838_v5 }
 0x23b   :  { %2622 = vmatmul.mubr.f32.vlgmr.msra.gmra.mrb[0].mxu1 %v7171_v31  ;;  %5170 = vmatmul.mubr.f32.vlgmr.msra.gmra.mrb[0].mxu0 %v7174_v4  ;;  %v4925_v31 = vlaneseq }
 0x23c   :  { %2627 = vmatprep.mubr.f32.mxu1 %v7127_v21  ;;  %5172 = vmatprep.mubr.msk.f32.mxu0 %vm5839_vm1, %v5838_v5 }
 0x23d   :  { %v4926_v56 = vshrl.u32 %v4925_v31, 7  ;;  %v4932_v50 = vand.u32 127, %v4925_v31 }
 0x23f   :  { %2629 = vmatmul.mubr.f32.gmra.mrb[2].mxu1 %v7163_v22  ;;  %5173 = vmatmul.mubr.f32.gmra.mrb[2].mxu0 %v7167_v18  ;;  %v4929_v54 = vadd.s32 24, %v4926_v56  ;;  %v4927_v6 = vadd.s32 8, %v4926_v56  ;;  %v4930_v2 = vadd.s32 32, %v4926_v56  ;;  %vm4933_vm4 = vcmp.eq.s32.totalorder %v4926_v56, %v4932_v50 }
 0x240   :  { %2634 = vmatprep.mubr.f32.mxu1 %v7176_v61  ;;  %5175 = vmatprep.mubr.msk.f32.mxu0 %vm5839_vm1, %v5838_v5 }
 0x241   :  { %vm4936_vm3 = vcmp.eq.s32.totalorder %v4929_v54, %v4932_v50  ;;  %vm4934_vm6 = vcmp.eq.s32.totalorder %v4927_v6, %v4932_v50  ;;  %vm4937_vm7 = vcmp.eq.s32.totalorder %v4930_v2, %v4932_v50 }
 0x243   :  { %2636 = vmatmul.mubr.f32.gmra.mrb[4].mxu1 %v7237_v13  ;;  %5176 = vmatmul.mubr.f32.gmra.mrb[4].mxu0 %v7260_v10  ;;  %v4928_v10 = vadd.s32 16, %v4926_v56 }
 0x244   :  { %2641 = vmatprep.mubr.f32.mxu1 %v7178_v62  ;;  %5178 = vmatprep.mubr.msk.f32.mxu0 %vm5839_vm1, %v5838_v5 }
 0x245   :  { %vm4935_vm2 = vcmp.eq.s32.totalorder %v4928_v10, %v4932_v50 }
 0x247   :  { %2643 = vmatmul.mubr.f32.gmra.mrb[6].mxu1 %v7239_v15  ;;  %5179 = vmatmul.mubr.f32.gmra.mrb[6].mxu0 %v7262_v37 }
 0x248   :  { %2648 = vmatprep.mubr.f32.mxu1 %v7287_v19  ;;  %5181 = vmatprep.mubr.msk.f32.mxu0 %vm5839_vm1, %v5838_v5 }
 0x24b   :  { %2650 = vmatmul.mubr.f32.gmra.mrb[8].mxu1 %v7343_v49  ;;  %5182 = vmatmul.mubr.f32.gmra.mrb[8].mxu0 %v7348_v1 }
 0x30e   :  { %v2623_v21 = vpop.f32.mrb[0].mxu1  ;;  %v4897_v58 = vpop.f32.mrb[0].mxu0 }
 0x30f   :  { %v5460_v32 = vadd.f32 %v4897_v58, %v2623_v21  ;;  %v2625_v22 = vpop.f32.mrb[1].mxu1  ;;  %v5171_v18 = vpop.f32.mrb[1].mxu0 }
 0x311   :  { %v4938_v49 = vsub.f32 0.0, %v5460_v32 }
 0x312   :  { %v2630_v4 = vpop.f32.mrb[2].mxu1  ;;  %v4903_v61 = vpop.f32.mrb[2].mxu0 }
 0x313   :  { %v5461_v62 = vadd.f32 %v4903_v61, %v2630_v4  ;;  %v2632_v9 = vpop.f32.mrb[3].mxu1  ;;  %v5174_v3 = vpop.f32.mrb[3].mxu0  ;;  %v4943_v42 = vsel %vm4933_vm4, %v4938_v49, %v5460_v32 }
 0x314   :  { %v4949_v29 = vsel %vm4948_vm5, %v4943_v42, -inf }
 0x315   :  { %v4939_v8 = vsub.f32 0.0, %v5461_v62 }
 0x316   :  { %v2637_v13 = vpop.f32.mrb[4].mxu1  ;;  %v4909_v15 = vpop.f32.mrb[4].mxu0 }
 0x317   :  { %v5462_v37 = vadd.f32 %v4909_v15, %v2637_v13  ;;  %v2639_v39 = vpop.f32.mrb[5].mxu1  ;;  %v5177_v55 = vpop.f32.mrb[5].mxu0  ;;  %v4944_v48 = vsel %vm4934_vm6, %v4939_v8, %v5461_v62 }
 0x318   :  { %v4950_v63 = vsel %vm4948_vm5, %v4944_v48, -inf }
 0x319   :  { %v4940_v19 = vsub.f32 0.0, %v5462_v37 }
 0x31a   :  { %v2644_v33 = vpop.f32.mrb[6].mxu1  ;;  %v4915_v51 = vpop.f32.mrb[6].mxu0 }
 0x31b   :  { %v5463_v5 = vadd.f32 %v4915_v51, %v2644_v33  ;;  %v2646_v26 = vpop.f32.mrb[7].mxu1  ;;  %v5180_v14 = vpop.f32.mrb[7].mxu0  ;;  %v4945_v1 = vsel %vm4935_vm2, %v4940_v19, %v5462_v37 }
 0x31c   :  { %v4951_v17 = vsel %vm4948_vm5, %v4945_v1, -inf }
 0x31d   :  { %v4941_v45 = vsub.f32 0.0, %v5463_v5 }
 0x31e   :  { %v2651_v43 = vpop.f32.mrb[8].mxu1  ;;  %v4921_v36 = vpop.f32.mrb[8].mxu0 }
 0x31f   :  { %v4946_v57 = vsel %vm4936_vm3, %v4941_v45, %v5463_v5  ;;  %v5464_v28 = vadd.f32 %v4921_v36, %v2651_v43  ;;  %v2653_v46 = vpop.f32.mrb[9].mxu1  ;;  %v5183_v53 = vpop.f32.mrb[9].mxu0 }
 0x320   :  { %v4952_v52 = vsel %vm4948_vm5, %v4946_v57, -inf }
 0x321   :  { %v4957_v30 = vmax.f32 %v4951_v17, %v4952_v52  ;;  %v4942_v12 = vsub.f32 0.0, %v5464_v28 }
 0x323   :  { %v4947_v23 = vsel %vm4937_vm7, %v4942_v12, %v5464_v28 }
 0x324   :  { %v4954_v11 = vsel %vm4953_vm8, %v4947_v23, -inf }
 0x325   :  { %v4955_v47 = vmax.f32 %v4949_v29, %v4954_v11 }
 0x327   :  { %v4956_v41 = vmax.f32 %v4955_v47, %v4950_v63 }
 0x329   :  { %v4958_v38 = vmax.f32 %v4956_v41, %v4957_v30 }
 0x32b   :  { %v4959_v0 = vrot.slane %v4958_v38, 4 }
 0x32d   :  { %v4960_v60 = vmax.f32 %v4958_v38, %v4959_v0 }
 0x32f   :  { %v4961_v24 = vrot.slane %v4960_v60, 2 }
 0x331   :  { %v4962_v34 = vmax.f32 %v4960_v60, %v4961_v24 }
 0x333   :  { %v4963_v20 = vrot.slane %v4962_v34, 1 }
 0x335   :  { %v4964_v25 = vmax.f32 %v4962_v34, %v4963_v20 }
 0x337   :  { %v4973_v16 = vclamps-f32 %v4964_v25, 0.99999 }
 0x339   :  { %4968 = vst.msk [vmem:[%s7604_s1] sm:$0x1] %vm4967_vm9, %v4973_v16 }

// kernel: base_classifier_forward.2
= control target key start
LH: loop header
LB: loop body
LE: loop exit
PB: predicated region body
PF: predicated region fallthrough
CT: control target
= control target key end

     0   :  { %s10319_s0 = inlined_call_operand.vmem [shape: f32[2,64,512], index: 0, kind: input, shape index: {}]   ;;  %s10320_s1 = inlined_call_operand.vmem [shape: f32[70,896], index: 1, kind: input, shape index: {}]   ;;  %s10321_s2 = inlined_call_operand.vmem [shape: f32[35,1408], index: 2, kind: input, shape index: {}]   ;;  %s10322_s3 = inlined_call_operand.vmem [shape: f32[1,35], index: 3, kind: input, shape index: {}]   ;;  %s10323_s4 = inlined_call_operand.vmem [shape: f32[1,35], index: 4, kind: input, shape index: {}]   ;;  %s10324_s5 = inlined_call_operand.hbm [shape: f32[2,35], index: 5, kind: output, shape index: {}]  }
   0x1   :  { %v6982_v0 = vld [vmem:[%s10321_s2 + $0x8] sm:$0xff]  ;;  %v6987_v1 = vld [vmem:[%s10321_s2 + $0x60] sm:$0xff]  ;;  %v6999_v5 = vld [vmem:[%s10321_s2 + $0x58] sm:$0xff] }
   0x2   :  { %v6992_v2 = vld [vmem:[%s10321_s2] sm:$0xff]  ;;  %v328_v3 = vand.u32 4294901760, %v6982_v0  ;;  %v332_v4 = vand.u32 4294901760, %v6987_v1  ;;  %v7005_v7 = vld [vmem:[%s10321_s2 + $0x18] sm:$0xff]  ;;  %v7010_v8 = vld [vmem:[%s10321_s2 + $0x70] sm:$0xff]  ;;  %v334_v9 = vand.u32 4294901760, %v6999_v5 }
   0x3   :  { %v330_v6 = vand.u32 4294901760, %v6992_v2  ;;  %v10336_v10 = vand.u32 4294901760, %v7005_v7  ;;  %v10335_v11 = vand.u32 4294901760, %v7010_v8  ;;  %v7018_v12 = vld [vmem:[%s10321_s2 + $0x10] sm:$0xff]  ;;  %v7023_v13 = vld [vmem:[%s10321_s2 + $0x68] sm:$0xff]  ;;  %v7028_v14 = vld [vmem:[%s10321_s2 + $0xb8] sm:$0xff] }
   0x4   :  { %v7034_v15 = vpack.c.bf16 %v332_v4, %v328_v3  ;;  %v7039_v16 = vld [vmem:[%s10321_s2 + $0x110] sm:$0xff]  ;;  %v7049_v18 = vld [vmem:[%s10321_s2 + $0x108] sm:$0xff]  ;;  %v10333_v23 = vand.u32 4294901760, %v7018_v12  ;;  %v10332_v24 = vand.u32 4294901760, %v7023_v13  ;;  %v336_v25 = vand.u32 4294901760, %v7028_v14  ;;  %v7085_v30 = vld [vmem:[%s10321_s2 + $0x120] sm:$0xff] }
   0x5   :  { %v7044_v17 = vld [vmem:[%s10321_s2 + $0xb0] sm:$0xff]  ;;  %v7055_v19 = vpack.c.bf16 %v334_v9, %v330_v6  ;;  %v7060_v20 = vsub.f32 %v7005_v7, %v10336_v10  ;;  %v7065_v21 = vsub.f32 %v7010_v8, %v10335_v11  ;;  %v7070_v22 = vld [vmem:[%s10321_s2 + $0xc8] sm:$0xff]  ;;  %v340_v26 = vand.u32 4294901760, %v7039_v16  ;;  %v7091_v32 = vld [vmem:[%s10321_s2 + $0xc0] sm:$0xff] }
   0x6   :  { %10770 = vst [vmem:[#allocation5_spill] sm:$0xff] %v7034_v15  ;;  %6173 = vmatprep.subr.bf16.mxu1 %v7034_v15  ;;  %v10326_v28 = vand.u32 4294901760, %v7044_v17  ;;  %v10325_v29 = vand.u32 4294901760, %v7049_v18  ;;  %v10331_v31 = vand.u32 4294901760, %v7070_v22  ;;  %v7096_v33 = vsub.f32 %v7018_v12, %v10333_v23  ;;  %v7112_v36 = vld [vmem:[%s10321_s2 + $0x118] sm:$0xff]  ;;  %v266_v39 = vld [vmem:[%s10320_s1 + $0x8] sm:$0xff] }
   0x7   :  { %10771 = vst [vmem:[#allocation6_spill] sm:$0xff] %v7055_v19  ;;  %10772 = vst [vmem:[#allocation7_spill] sm:$0xff] %v7060_v20  ;;  %6175 = vmatpush1.bf16.xpose.msra.mxu1 %v7055_v19  ;;  %v6236_v27 = vpack.c.bf16 %v7065_v21, %v7060_v20  ;;  %v7101_v34 = vsub.f32 %v7023_v13, %v10332_v24  ;;  %v7107_v35 = vpack.c.bf16 %v340_v26, %v336_v25  ;;  %v241_v37 = vld [vmem:[%s10321_s2 + $0x178] sm:$0x7]  ;;  %v7120_v38 = vld [vmem:[%s10321_s2 + $0x168] sm:$0x7] }
   0x8   :  { %10773 = vst [vmem:[#allocation8_spill] sm:$0xff] %v7065_v21  ;;  %10774 = vst [vmem:[#allocation9_spill] sm:$0xff] %v7096_v33  ;;  %v10329_v41 = vand.u32 4294901760, %v7085_v30  ;;  %v7132_v42 = vsub.f32 %v7070_v22, %v10331_v31  ;;  %v10328_v43 = vand.u32 4294901760, %v7091_v32  ;;  %v7139_v44 = vpack.c.bf16 %v10325_v29, %v10326_v28  ;;  %v265_v47 = vld [vmem:[%s10320_s1] sm:$0xff]  ;;  %v268_v48 = vld [vmem:[%s10320_s1 + $0x18] sm:$0xff] }
   0x9   :  { %10775 = vst [vmem:[#allocation10_spill] sm:$0xff] %v7101_v34  ;;  %10776 = vst [vmem:[#allocation11_spill] sm:$0xff] %v7107_v35  ;;  %6237 = vmatprep.subr.bf16.mxu0 %v6236_v27  ;;  %v6238_v40 = vpack.c.bf16 %v7101_v34, %v7096_v33  ;;  %6177 = vmatprep.subr.bf16.mxu1 %v7107_v35  ;;  %v10327_v45 = vand.u32 4294901760, %v7112_v36  ;;  %v7142_v46 = vand.u32 4294901760, %v241_v37  ;;  %v7161_v51 = vand.u32 4294901760, %v7120_v38  ;;  %v267_v53 = vld [vmem:[%s10320_s1 + $0x10] sm:$0xff] }
   0xa   :  { %10777 = vst [vmem:[#allocation12_spill] sm:$0xff] %v7132_v42  ;;  %10778 = vst [vmem:[#allocation13_spill] sm:$0xff] %v7139_v44  ;;  %v7153_v49 = vsub.f32 %v7085_v30, %v10329_v41  ;;  %v7158_v50 = vsub.f32 %v7091_v32, %v10328_v43  ;;  %v7163_v52 = vand.u32 4294901760, %v266_v39  ;;  %v240_v57 = vld [vmem:[%s10321_s2 + $0x170] sm:$0x7]  ;;  %v7181_v58 = vand.u32 4294901760, %v265_v47 }
   0xb   :  { %10779 = vst [vmem:[#allocation14_spill] sm:$0xff] %v7142_v46  ;;  %6239 = vmatpush1.bf16.xpose.msra.mxu0 %v6238_v40  ;;  %10782 = vst [vmem:[#allocation17_spill] sm:$0xff] %v7161_v51  ;;  %v7171_v54 = vsub.f32 %v7112_v36, %v10327_v45  ;;  %v7183_v59 = vand.u32 4294901760, %v268_v48  ;;  %v273_v60 = vld [vmem:[%s10320_s1 + $0x40] sm:$0xff]  ;;  %v272_v61 = vld [vmem:[%s10320_s1 + $0x38] sm:$0xff]  ;;  %v7194_v62 = vsub.f32 %v6982_v0, %v328_v3 }
   0xc   :  { %10780 = vst [vmem:[#allocation15_spill] sm:$0xff] %v7153_v49  ;;  %10781 = vst [vmem:[#allocation16_spill] sm:$0xff] %v7158_v50  ;;  %v6240_v55 = vpack.c.bf16 %v7153_v49, %v7132_v42  ;;  %v7176_v56 = vsub.f32 %v266_v39, %v7163_v52  ;;  %v7199_v63 = vsub.f32 %v6987_v1, %v332_v4  ;;  %v7205_v39 = vand.u32 4294901760, %v267_v53  ;;  %v7213_v0 = vld [vmem:[%s10321_s2 + $0x160] sm:$0x7]  ;;  %v274_v23 = vld [vmem:[%s10320_s1 + $0x48] sm:$0xff] }
   0xd   :  { %10783 = vst [vmem:[#allocation18_spill] sm:$0xff] %v7171_v54  ;;  %10785 = vst [vmem:[#allocation20_spill] sm:$0xff] %v7183_v59  ;;  %v7203_v27 = vsub.f32 %v241_v37, %v7142_v46  ;;  %v6242_v40 = vpack.c.bf16 %v7171_v54, %v7158_v50  ;;  %v7217_v3 = vsub.f32 %v265_v47, %v7181_v58  ;;  %v7222_v37 = vand.u32 4294901760, %v240_v57 }
   0xe   :  { %10784 = vst [vmem:[#allocation19_spill] sm:$0xff] %v7176_v56  ;;  %10787 = vst [vmem:[#allocation22_spill] sm:$0xff] %v7205_v39  ;;  %6241 = vmatprep.subr.bf16.mxu0 %v6240_v55  ;;  %v10330_v1 = vand.u32 4294901760, %v7176_v56  ;;  %v7220_v4 = vsub.f32 %v268_v48, %v7183_v59  ;;  %v7225_v55 = vsub.f32 %v267_v53, %v7205_v39  ;;  %v7227_v29 = vand.u32 4294901760, %v273_v60 }
   0xf   :  { %6179 = vmatpush1.bf16.xpose.msra.mxu1 %v7139_v44  ;;  %10786 = vst [vmem:[#allocation21_spill] sm:$0xff] %v7203_v27  ;;  %10788 = vst [vmem:[#allocation23_spill] sm:$0xff] %v7217_v3  ;;  %v7229_v28 = vand.u32 4294901760, %v272_v61  ;;  %v7234_v45 = vsub.f32 %v6992_v2, %v330_v6  ;;  %v7239_v47 = vsub.f32 %v6999_v5, %v334_v9  ;;  %v10334_v53 = vand.u32 4294901760, %v7217_v3  ;;  %v275_v5 = vld [vmem:[%s10320_s1 + $0x50] sm:$0xff]  ;;  %v280_v9 = vld [vmem:[%s10320_s1 + $0x78] sm:$0xff] }
  0x10   :  { %345 = vmatprep.subr.mxu1 %v7161_v51  ;;  %10789 = vst [vmem:[#allocation24_spill] sm:$0xff] %v7220_v4  ;;  %10790 = vst [vmem:[#allocation25_spill] sm:$0xff] %v7222_v37  ;;  %v405_v48 = vsub.f32 %v7176_v56, %v10330_v1  ;;  %1826 = vmatprep.mubr.f32.mxu0 %v7220_v4  ;;  %v7247_v43 = vand.u32 4294901760, %v7213_v0  ;;  %v10337_v41 = vand.u32 4294901760, %v7225_v55  ;;  %v279_v1 = vld [vmem:[%s10320_s1 + $0x70] sm:$0xff]  ;;  %v7301_v11 = vand.u32 4294901760, %v275_v5 }
  0x11   :  { %10791 = vst [vmem:[#allocation26_spill] sm:$0xff] %v7229_v28  ;;  %v7251_v2 = vsub.f32 %v273_v60, %v7227_v29  ;;  %v7254_v6 = vsub.f32 %v272_v61, %v7229_v28  ;;  %v7268_v60 = vsub.f32 %v7028_v14, %v336_v25  ;;  %v7273_v61 = vsub.f32 %v7039_v16, %v340_v26  ;;  %v282_v14 = vld [vmem:[%s10320_s1 + $0x88] sm:$0xff] }
  0x12   :  { %10792 = vst [vmem:[#allocation27_spill] sm:$0xff] %v7247_v43  ;;  %v406_v31 = vand.u32 4294901760, %v405_v48  ;;  %v411_v24 = vsub.f32 %v7217_v3, %v10334_v53  ;;  %v7286_v25 = vsub.f32 %v240_v57, %v7222_v37  ;;  %v7291_v16 = vsub.f32 %v7225_v55, %v10337_v41  ;;  %v281_v48 = vld [vmem:[%s10320_s1 + $0x80] sm:$0xff]  ;;  %v287_v53 = vld [vmem:[%s10320_s1 + $0xb0] sm:$0xff]  ;;  %10797 = vst [vmem:[#allocation32_spill] sm:$0xff] %v7301_v11 }
  0x13   :  { %10793 = vst [vmem:[#allocation28_spill] sm:$0xff] %v7251_v2  ;;  %10794 = vst [vmem:[#allocation29_spill] sm:$0xff] %v7254_v6  ;;  %6243 = vmatpush1.bf16.xpose.msra.mxu0 %v6242_v40  ;;  %v10346_v26 = vand.u32 4294901760, %v7251_v2  ;;  %v7303_v10 = vand.u32 4294901760, %v280_v9  ;;  %v7305_v41 = vand.u32 4294901760, %v279_v1 }
  0x14   :  { %1766 = vmatprep.subr.mxu0 %v7203_v27  ;;  %10795 = vst [vmem:[#allocation30_spill] sm:$0xff] %v7286_v25  ;;  %10796 = vst [vmem:[#allocation31_spill] sm:$0xff] %v7291_v16  ;;  %407 = vmatprep.mubr.f32.mxu1 %v406_v31  ;;  %v412_v57 = vand.u32 4294901760, %v411_v24 }
  0x15   :  { %10798 = vst [vmem:[#allocation33_spill] sm:$0xff] %v7303_v10  ;;  %10799 = vst [vmem:[#allocation34_spill] sm:$0xff] %v7305_v41 }
  0x16   :  { %10 = vsyncpa [#allocation3], 0  ;;  %v420_v40 = vsub.f32 %v7251_v2, %v10346_v26  ;;  %v10800_v16 = vand.u32 4294901760, %v7254_v6  ;;  %v7314_v35 = vand.u32 4294901760, %v274_v23  ;;  %v7316_v24 = vand.u32 4294901760, %v282_v14  ;;  %v286_v31 = vld [vmem:[%s10320_s1 + $0xa8] sm:$0xff] }
  0x17   :  { %347 = vmatpush1.xpose.msra.mxu1 %v7247_v43  ;;  %v289_v19 = vld [vmem:[%s10320_s1 + $0xc0] sm:$0xff]  ;;  %v10803_v3 = vand.u32 4294901760, %v7005_v7  ;;  %v10804_v26 = vand.u32 4294901760, %v7010_v8  ;;  %v7336_v39 = vand.u32 4294901760, %v281_v48  ;;  %v10809_v59 = vand.u32 4294901760, %v7018_v12  ;;  %v7355_v12 = vld [vmem:[%s10320_s1 + $0xb8] sm:$0xff] }
  0x18   :  { %v426_v44 = vsub.f32 %v7254_v6, %v10800_v16  ;;  %10801 = vst [vmem:[#allocation35_spill] sm:$0xff] %v7314_v35  ;;  %10802 = vst [vmem:[#allocation36_spill] sm:$0xff] %v7316_v24  ;;  %v7331_v16 = vsub.f32 %v280_v9, %v7303_v10  ;;  %v7334_v6 = vsub.f32 %v279_v1, %v7305_v41  ;;  %v421_v56 = vand.u32 4294901760, %v420_v40  ;;  %s6948_s24 = smov [#allocation2]  }
  0x19   :  { %v7328_v2 = vpack.c.bf16 %v10804_v26, %v10803_v3  ;;  %10808 = vst [vmem:[#allocation40_spill] sm:$0xff] %v7336_v39  ;;  %v10810_v15 = vand.u32 4294901760, %v7023_v13  ;;  %v7344_v28 = vand.u32 4294901760, %v287_v53  ;;  %v7348_v9 = vand.u32 4294901760, %v286_v31  ;;  %v294_v13 = vld [vmem:[%s10320_s1 + $0xe8] sm:$0xff]  ;;  %s5804_s25 = sshll.u32 %s6948_s24, 4  ;;  %s5805_s25 = int_to_ptr.vmem [resolvable:$true] %s5804_s25 }
  0x1a   :  { %10806 = vst [vmem:[#allocation38_spill] sm:$0xff] %v7331_v16  ;;  %10807 = vst [vmem:[#allocation39_spill] sm:$0xff] %v7334_v6  ;;  %v427_v7 = vand.u32 4294901760, %v426_v44  ;;  %413 = vmatmul.mubr.f32.vlgmr.msra.gmra.mrb[0].mxu1 %v412_v57  ;;  %v10363_v8 = vand.u32 4294901760, %v7331_v16  ;;  %v10364_v3 = vand.u32 4294901760, %v7334_v6  ;;  %v7350_v1 = vand.u32 4294901760, %v289_v19  ;;  %p6926_p1 = scmp.lt.s32.totalorder %s5805_s25, %s5805_s25 }
  0x1b   :  { %10805 = vst [vmem:[#allocation37_spill] sm:$0xff] %v7328_v2  ;;  %v7342_v27 = vpack.c.bf16 %v10810_v15, %v10809_v59  ;;  %10812 = vst [vmem:[#allocation42_spill] sm:$0xff] %v7344_v28  ;;  %422 = vmatprep.mubr.f32.mxu1 %v421_v56  ;;  %v7361_v15 = vsub.f32 %v275_v5, %v7301_v11  ;;  %v7364_v44 = vsub.f32 %v274_v23, %v7314_v35  ;;  %vm6947_vm2 = vmmov 0   ;;  %s6921_s26 = scalar_lea.vmem %s5805_s25, 32 }
  0x1c   :  { %10813 = vst [vmem:[#allocation43_spill] sm:$0xff] %v7348_v9  ;;  %10814 = vst [vmem:[#allocation44_spill] sm:$0xff] %v7350_v1  ;;  %v7367_v59 = vsub.f32 %v282_v14, %v7316_v24  ;;  %v7370_v26 = vsub.f32 %v287_v53, %v7344_v28  ;;  %1769 = vmatpush1.xpose.msra.mxu0 %v7286_v25  ;;  %v435_v40 = vsub.f32 %v7331_v16, %v10363_v8  ;;  %v293_v53 = vld [vmem:[%s10320_s1 + $0xe0] sm:$0xff]  ;;  %vm4369_vm3 = vcmask 1045504   ;;  %p6922_p0 = scmp.ne.s32.totalorder %s5805_s25, %s6921_s26  ;;  %p6927_p2 = scmp.lt.s32.totalorder %s6921_s26, %s6921_s26 }
  0x1d   :  { %10811 = vst [vmem:[#allocation41_spill] sm:$0xff] %v7342_v27  ;;  %10815 = vst [vmem:[#allocation45_spill] sm:$0xff] %v7361_v15  ;;  %v441_v56 = vsub.f32 %v7334_v6, %v10364_v3  ;;  %v7380_v5 = vsub.f32 %v281_v48, %v7336_v39  ;;  %v7383_v23 = vsub.f32 %v286_v31, %v7348_v9  ;;  %6245 = vmatprep.subr.bf16.mxu0 %v7328_v2  ;;  %vm5743_vm4 = vcmask 1041408  }
  0x1e   :  { %10816 = vst [vmem:[#allocation46_spill] sm:$0xff] %v7364_v44  ;;  %10817 = vst [vmem:[#allocation47_spill] sm:$0xff] %v7367_v59  ;;  %v10373_v14 = vand.u32 4294901760, %v7370_v26  ;;  %v7391_v57 = vand.u32 4294901760, %v7355_v12  ;;  %v10822_v8 = vand.u32 4294901760, %v7070_v22  ;;  %v10823_v3 = vand.u32 4294901760, %v7085_v30  ;;  %428 = vmatmul.mubr.f32.gmra.mrb[2].mxu1 %v427_v7  ;;  %p6928_p3 = por %p6927_p2, %p6926_p1 }
  0x1f   :  { %10818 = vst [vmem:[#allocation48_spill] sm:$0xff] %v7370_v26  ;;  %10819 = vst [vmem:[#allocation49_spill] sm:$0xff] %v7380_v5  ;;  %v7399_v6 = vand.u32 4294901760, %v294_v13  ;;  %v436_v31 = vand.u32 4294901760, %v435_v40  ;;  %v442_v39 = vand.u32 4294901760, %v441_v56  ;;  %v10378_v16 = vand.u32 4294901760, %v7383_v23  ;;  %1829 = vmatmul.mubr.f32.vlgmr.msra.gmra.mrb[0].mxu0 %v7225_v55 }
  0x20   :  { %10820 = vst [vmem:[#allocation50_spill] sm:$0xff] %v7383_v23  ;;  %10821 = vst [vmem:[#allocation51_spill] sm:$0xff] %v7391_v57  ;;  %v7397_v48 = vpack.c.bf16 %v10823_v3, %v10822_v8  ;;  %v7403_v24 = vsub.f32 %v289_v19, %v7350_v1  ;;  %v450_v22 = vsub.f32 %v7370_v26, %v10373_v14  ;;  %v7412_v8 = vand.u32 4294901760, %v293_v53  ;;  %p6929_p4 = pnand %p6928_p3, %p6922_p0 }
  0x21   :  { %10825 = vst [vmem:[#allocation53_spill] sm:$0xff] %v7399_v6  ;;  %v7410_v30 = vsub.f32 %v294_v13, %v7399_v6  ;;  %6247 = vmatpush1.bf16.xpose.msra.mxu0 %v7342_v27  ;;  %1835 = vmatprep.mubr.f32.mxu0 %v7361_v15  ;;  %v456_v19 = vsub.f32 %v7383_v23, %v10378_v16  ;;  %v10379_v3 = vand.u32 4294901760, %v7199_v63  ;;  %v10384_v56 = vand.u32 4294901760, %v7239_v47  ;;  %v296_v16 = vld [vmem:[%s10320_s1 + $0xf8] sm:$0xff] }
  0x22   :  { %10824 = vst [vmem:[#allocation52_spill] sm:$0xff] %v7397_v48  ;;  %10826 = vst [vmem:[#allocation54_spill] sm:$0xff] %v7403_v24  ;;  %437 = vmatprep.mubr.f32.mxu1 %v436_v31  ;;  %v451_v13 = vand.u32 4294901760, %v450_v22  ;;  %6249 = vmatprep.subr.bf16.mxu0 %v7397_v48  ;;  %v7426_v7 = vsub.f32 %v293_v53, %v7412_v8  ;;  %v10830_v26 = vand.u32 4294901760, %v7194_v62  ;;  %v10831_v22 = vand.u32 4294901760, %v7234_v45  ;;  %v301_v48 = vld [vmem:[%s10320_s1 + $0x120] sm:$0xff] }
  0x23   :  { %10827 = vst [vmem:[#allocation55_spill] sm:$0xff] %v7410_v30  ;;  %10828 = vst [vmem:[#allocation56_spill] sm:$0xff] %v7412_v8  ;;  %443 = vmatmul.mubr.f32.gmra.mrb[4].mxu1 %v442_v39  ;;  %v457_v40 = vand.u32 4294901760, %v456_v19  ;;  %v553_v31 = vsub.f32 %v7199_v63, %v10379_v3  ;;  %v559_v53 = vsub.f32 %v7239_v47, %v10384_v56  ;;  %1838 = vmatmul.mubr.f32.gmra.mrb[2].mxu0 %v7364_v44  ;;  %vm4432_vm11 = vcmask 285696  }
  0x24   :  { %10829 = vst [vmem:[#allocation57_spill] sm:$0xff] %v7426_v7  ;;  %v541_v1 = vsub.f32 %v7194_v62, %v10830_v26  ;;  %v547_v14 = vsub.f32 %v7234_v45, %v10831_v22  ;;  %v295_v26 = vld [vmem:[%s10320_s1 + $0xf0] sm:$0xff]  ;;  %452 = vmatprep.mubr.f32.mxu1 %v451_v13  ;;  %v10832_v39 = vand.u32 4294901760, %v7410_v30  ;;  %v10833_v3 = vand.u32 4294901760, %v7091_v32  ;;  %1844 = vmatprep.mubr.f32.mxu0 %v7367_v59  ;;  %v300_v32 = vld [vmem:[%s10320_s1 + $0x118] sm:$0xff] }
  0x25   :  { %v10834_v23 = vand.u32 4294901760, %v7112_v36  ;;  %v10395_v35 = vand.u32 4294901760, %v7426_v7  ;;  %v554_v13 = vand.u32 4294901760, %v553_v31  ;;  %v560_v27 = vand.u32 4294901760, %v559_v53  ;;  %v303_v36 = vld [vmem:[%s10320_s1 + $0x130] sm:$0xff]  ;;  %v302_v53 = vld [vmem:[%s10320_s1 + $0x128] sm:$0xff] }
  0x26   :  { %v465_v19 = vsub.f32 %v7410_v30, %v10832_v39  ;;  %v542_v56 = vand.u32 4294901760, %v541_v1  ;;  %v548_v11 = vand.u32 4294901760, %v547_v14  ;;  %v7461_v2 = vand.u32 4294901760, %v296_v16 }
  0x27   :  { %v7454_v22 = vpack.c.bf16 %v10834_v23, %v10833_v3  ;;  %v10837_v1 = vand.u32 4294901760, %v7044_v17  ;;  %v471_v14 = vsub.f32 %v7426_v7, %v10395_v35  ;;  %v7477_v31 = vand.u32 4294901760, %v295_v26  ;;  %458 = vmatmul.mubr.f32.gmra.mrb[6].mxu1 %v457_v40  ;;  %v308_v35 = vld [vmem:[%s10320_s1 + $0x158] sm:$0xff]  ;;  %v307_v7 = vld [vmem:[%s10320_s1 + $0x150] sm:$0xff]  ;;  %1847 = vmatmul.mubr.f32.gmra.mrb[4].mxu0 %v7380_v5 }
  0x28   :  { %10836 = vst [vmem:[#allocation59_spill] sm:$0xff] %v7461_v2  ;;  %v466_v3 = vand.u32 4294901760, %v465_v19  ;;  %v10839_v39 = vand.u32 4294901760, %v7049_v18  ;;  %v6180_v19 = vpack.c.bf16 %v554_v13, %v542_v56  ;;  %v6182_v40 = vpack.c.bf16 %v560_v27, %v548_v11  ;;  %1853 = vmatprep.mubr.f32.mxu0 %v7403_v24 }
  0x29   :  { %10835 = vst [vmem:[#allocation58_spill] sm:$0xff] %v7454_v22  ;;  %v7472_v23 = vsub.f32 %v7044_v17, %v10837_v1  ;;  %10838 = vst [vmem:[#allocation60_spill] sm:$0xff] %v7477_v31  ;;  %v7489_v17 = vsub.f32 %v7355_v12, %v7391_v57  ;;  %v7491_v1 = vand.u32 4294901760, %v301_v48  ;;  %v7502_v12 = vand.u32 4294901760, %v303_v36  ;;  %6251 = vmatpush1.bf16.xpose.msra.mxu0 %v7454_v22 }
  0x2a   :  { %v7485_v30 = vsub.f32 %v7049_v18, %v10839_v39  ;;  %467 = vmatprep.mubr.f32.mxu1 %v466_v3  ;;  %v472_v18 = vand.u32 4294901760, %v471_v14  ;;  %v7500_v39 = vand.u32 4294901760, %v300_v32  ;;  %v7507_v56 = vsub.f32 %v296_v16, %v7461_v2  ;;  %6181 = vmatprep.subr.bf16.mxu1 %v6180_v19 }
  0x2b   :  { %10840 = vst [vmem:[#allocation61_spill] sm:$0xff] %v7489_v17  ;;  %10841 = vst [vmem:[#allocation62_spill] sm:$0xff] %v7491_v1  ;;  %v7510_v13 = vsub.f32 %v295_v26, %v7477_v31  ;;  %v7513_v57 = vsub.f32 %v301_v48, %v7491_v1  ;;  %v7515_v3 = vand.u32 4294901760, %v302_v53  ;;  %v7521_v27 = vsub.f32 %v303_v36, %v7502_v12 }
  0x2c   :  { %10842 = vst [vmem:[#allocation63_spill] sm:$0xff] %v7500_v39  ;;  %10843 = vst [vmem:[#allocation64_spill] sm:$0xff] %v7502_v12  ;;  %v7518_v11 = vsub.f32 %v300_v32, %v7500_v39  ;;  %v7523_v14 = vand.u32 4294901760, %v308_v35  ;;  %v7525_v22 = vand.u32 4294901760, %v307_v7  ;;  %1923 = vmatprep.subr.mxu0 %v7142_v46  ;;  %473 = vmatmul.mubr.f32.gmra.mrb[8].mxu1 %v472_v18  ;;  %v10411_v26 = vand.u32 4294901760, %v7268_v60 }
  0x2d   :  { %10844 = vst [vmem:[#allocation65_spill] sm:$0xff] %v7507_v56  ;;  %10845 = vst [vmem:[#allocation66_spill] sm:$0xff] %v7510_v13  ;;  %v10408_v16 = vand.u32 4294901760, %v7513_v57  ;;  %v7530_v48 = vsub.f32 %v302_v53, %v7515_v3  ;;  %v10414_v32 = vand.u32 4294901760, %v7273_v61  ;;  %1856 = vmatmul.mubr.f32.gmra.mrb[6].mxu0 %v7489_v17  ;;  %6183 = vmatpush1.bf16.xpose.msra.mxu1 %v6182_v40  ;;  %v10421_v36 = vand.u32 4294901760, %v7485_v30 }
  0x2e   :  { %10846 = vst [vmem:[#allocation67_spill] sm:$0xff] %v7513_v57  ;;  %10847 = vst [vmem:[#allocation68_spill] sm:$0xff] %v7515_v3  ;;  %v7537_v19 = vsub.f32 %v308_v35, %v7523_v14  ;;  %v7540_v12 = vsub.f32 %v307_v7, %v7525_v22  ;;  %1862 = vmatprep.mubr.f32.mxu0 %v7507_v56  ;;  %v565_v40 = vsub.f32 %v7268_v60, %v10411_v26  ;;  %v310_v26 = vld [vmem:[%s10320_s1 + $0x168] sm:$0xff] }
  0x2f   :  { %10848 = vst [vmem:[#allocation69_spill] sm:$0xff] %v7518_v11  ;;  %10849 = vst [vmem:[#allocation70_spill] sm:$0xff] %v7521_v27  ;;  %v480_v53 = vsub.f32 %v7513_v57, %v10408_v16  ;;  %v577_v35 = vsub.f32 %v7273_v61, %v10414_v32  ;;  %v10855_v7 = vand.u32 4294901760, %v7518_v11  ;;  %v10856_v16 = vand.u32 4294901760, %v7472_v23 }
  0x30   :  { %10850 = vst [vmem:[#allocation71_spill] sm:$0xff] %v7523_v14  ;;  %10851 = vst [vmem:[#allocation72_spill] sm:$0xff] %v7525_v22  ;;  %v10426_v3 = vand.u32 4294901760, %v7537_v19  ;;  %v566_v32 = vand.u32 4294901760, %v565_v40  ;;  %v583_v22 = vsub.f32 %v7485_v30, %v10421_v36  ;;  %v314_v36 = vld [vmem:[%s10320_s1 + $0x188] sm:$0xff]  ;;  %v7585_v39 = vand.u32 4294901760, %v310_v26 }
  0x31   :  { %10852 = vst [vmem:[#allocation73_spill] sm:$0xff] %v7530_v48  ;;  %10853 = vst [vmem:[#allocation74_spill] sm:$0xff] %v7537_v19  ;;  %v486_v18 = vsub.f32 %v7518_v11, %v10855_v7  ;;  %v571_v57 = vsub.f32 %v7472_v23, %v10856_v16  ;;  %v481_v2 = vand.u32 4294901760, %v480_v53  ;;  %v578_v46 = vand.u32 4294901760, %v577_v35  ;;  %v309_v7 = vld [vmem:[%s10320_s1 + $0x160] sm:$0xff]  ;;  %1865 = vmatmul.mubr.f32.gmra.mrb[8].mxu0 %v7510_v13  ;;  %v315_v35 = vld [vmem:[%s10320_s1 + $0x190] sm:$0xff] }
  0x32   :  { %10854 = vst [vmem:[#allocation75_spill] sm:$0xff] %v7540_v12  ;;  %v495_v16 = vsub.f32 %v7537_v19, %v10426_v3  ;;  %v10857_v11 = vand.u32 4294901760, %v7540_v12  ;;  %1871 = vmatprep.mubr.f32.mxu0 %v7521_v27  ;;  %v584_v14 = vand.u32 4294901760, %v583_v22  ;;  %10858 = vst [vmem:[#allocation76_spill] sm:$0xff] %v7585_v39  ;;  %v7593_v19 = vand.u32 4294901760, %v309_v7  ;;  %1925 = vmatpush1.xpose.msra.mxu0 %v7222_v37 }
  0x33   :  { %v487_v31 = vand.u32 4294901760, %v486_v18  ;;  %v572_v40 = vand.u32 4294901760, %v571_v57  ;;  %482 = vmatprep.mubr.f32.mxu1 %v481_v2  ;;  %v6184_v18 = vpack.c.bf16 %v578_v46, %v566_v32  ;;  %v316_v57 = vld [vmem:[%s10320_s1 + $0x198] sm:$0xff]  ;;  %v322_v46 = vld [vmem:[%s10320_s1 + $0x1c8] sm:$0x3f]  ;;  %v7600_v22 = vsub.f32 %v310_v26, %v7585_v39 }
  0x34   :  { %v501_v53 = vsub.f32 %v7540_v12, %v10857_v11  ;;  %v317_v11 = vld [vmem:[%s10320_s1 + $0x1a0] sm:$0xff]  ;;  %v496_v3 = vand.u32 4294901760, %v495_v16  ;;  %10859 = vst [vmem:[#allocation77_spill] sm:$0xff] %v7593_v19  ;;  %v7602_v32 = vand.u32 4294901760, %v315_v35  ;;  %v7604_v1 = vand.u32 4294901760, %v314_v36 }
  0x35   :  { %488 = vmatmul.mubr.f32.gmra.mrb[10].mxu1 %v487_v31  ;;  %6185 = vmatprep.subr.bf16.mxu1 %v6184_v18  ;;  %v6186_v2 = vpack.c.bf16 %v584_v14, %v572_v40  ;;  %10860 = vst [vmem:[#allocation78_spill] sm:$0xff] %v7600_v22  ;;  %v321_v31 = vld [vmem:[%s10320_s1 + $0x1c0] sm:$0x3f]  ;;  %v7611_v16 = vsub.f32 %v7213_v0, %v7247_v43  ;;  %v7617_v26 = vand.u32 4294901760, %v317_v11  ;;  %v7628_v0 = vand.u32 4294901760, %v322_v46 }
  0x36   :  { %v502_v12 = vand.u32 4294901760, %v501_v53  ;;  %10861 = vst [vmem:[#allocation79_spill] sm:$0xff] %v7602_v32  ;;  %10862 = vst [vmem:[#allocation80_spill] sm:$0xff] %v7604_v1  ;;  %1874 = vmatmul.mubr.f32.gmra.mrb[10].mxu0 %v7530_v48  ;;  %497 = vmatprep.mubr.f32.mxu1 %v496_v3  ;;  %v7615_v14 = vsub.f32 %v309_v7, %v7593_v19  ;;  %v7619_v53 = vand.u32 4294901760, %v316_v57  ;;  %v324_v3 = vld [vmem:[%s10320_s1 + $0x1d8] sm:$0x3f] }
  0x37   :  { %10864 = vst [vmem:[#allocation82_spill] sm:$0xff] %v7617_v26  ;;  %6187 = vmatpush1.bf16.xpose.msra.mxu1 %v6186_v2  ;;  %1880 = vmatprep.mubr.f32.mxu0 %v7600_v22  ;;  %v7623_v40 = vsub.f32 %v315_v35, %v7602_v32  ;;  %v7626_v18 = vsub.f32 %v314_v36, %v7604_v1  ;;  %10868 = vst [vmem:[#allocation86_spill] sm:$0xff] %v7628_v0  ;;  %v7636_v19 = vand.u32 4294901760, %v321_v31 }
  0x38   :  { %10863 = vst [vmem:[#allocation81_spill] sm:$0xff] %v7615_v14  ;;  %10865 = vst [vmem:[#allocation83_spill] sm:$0xff] %v7619_v53  ;;  %v7634_v7 = vsub.f32 %v317_v11, %v7617_v26  ;;  %v7641_v39 = vsub.f32 %v316_v57, %v7619_v53  ;;  %v7644_v36 = vsub.f32 %v322_v46, %v7628_v0  ;;  %v7655_v2 = vand.u32 4294901760, %v324_v3  ;;  %v323_v57 = vld [vmem:[%s10320_s1 + $0x1d0] sm:$0x3f] }
  0x39   :  { %10866 = vst [vmem:[#allocation84_spill] sm:$0xff] %v7623_v40  ;;  %10867 = vst [vmem:[#allocation85_spill] sm:$0xff] %v7626_v18  ;;  %503 = vmatmul.mubr.f32.gmra.mrb[12].mxu1 %v502_v12  ;;  %v7648_v43 = vsub.f32 %v321_v31, %v7636_v19  ;;  %v7652_v12 = vsub.f32 %v7120_v38, %v7161_v51  ;;  %v10875_v46 = vand.u32 4294901760, %v7623_v40  ;;  %v10876_v53 = vand.u32 4294901760, %v7626_v18 }
  0x3a   :  { %10869 = vst [vmem:[#allocation87_spill] sm:$0xff] %v7634_v7  ;;  %10870 = vst [vmem:[#allocation88_spill] sm:$0xff] %v7636_v19  ;;  %1883 = vmatmul.mubr.f32.gmra.mrb[12].mxu0 %v7615_v14  ;;  %v10455_v38 = vand.u32 4294901760, %v7644_v36  ;;  %v10877_v37 = vand.u32 4294901760, %v7611_v16  ;;  %v7674_v19 = vsub.f32 %v324_v3, %v7655_v2 }
  0x3b   :  { %10871 = vst [vmem:[#allocation89_spill] sm:$0xff] %v7641_v39  ;;  %10872 = vst [vmem:[#allocation90_spill] sm:$0xff] %v7644_v36  ;;  %v510_v35 = vsub.f32 %v7623_v40, %v10875_v46  ;;  %v516_v31 = vsub.f32 %v7626_v18, %v10876_v53  ;;  %1889 = vmatprep.mubr.f32.mxu0 %v7634_v7  ;;  %v10462_v11 = vand.u32 4294901760, %v7648_v43  ;;  %v7679_v18 = vand.u32 4294901760, %v323_v57 }
  0x3c   :  { %10873 = vst [vmem:[#allocation91_spill] sm:$0xff] %v7648_v43  ;;  %10874 = vst [vmem:[#allocation92_spill] sm:$0xff] %v7655_v2  ;;  %v595_v51 = vsub.f32 %v7611_v16, %v10877_v37  ;;  %v525_v53 = vsub.f32 %v7644_v36, %v10455_v38  ;;  %v10880_v0 = vand.u32 4294901760, %v7652_v12  ;;  %v10474_v38 = vand.u32 4294901760, %v7220_v4  ;;  %v10932_v4 = vld [vmem:[#allocation57_spill] sm:$0xff] }
  0x3d   :  { %10878 = vst [vmem:[#allocation93_spill] sm:$0xff] %v7674_v19  ;;  %v511_v46 = vand.u32 4294901760, %v510_v35  ;;  %v517_v40 = vand.u32 4294901760, %v516_v31  ;;  %10879 = vst [vmem:[#allocation94_spill] sm:$0xff] %v7679_v18  ;;  %v531_v26 = vsub.f32 %v7648_v43, %v10462_v11  ;;  %v7690_v31 = vsub.f32 %v323_v57, %v7679_v18 }
  0x3e   :  { %1892 = vmatmul.mubr.f32.gmra.mrb[14].mxu0 %v7641_v39  ;;  %v589_v37 = vsub.f32 %v7652_v12, %v10880_v0  ;;  %v596_v3 = vand.u32 4294901760, %v595_v51  ;;  %v526_v35 = vand.u32 4294901760, %v525_v53  ;;  %v10490_v36 = vand.u32 4294901760, %v7060_v20  ;;  %v10936_v20 = vld [vmem:[#allocation76_spill] sm:$0xff] }
  0x3f   :  { %512 = vmatprep.mubr.f32.mxu1 %v511_v46  ;;  %1898 = vmatprep.mubr.f32.mxu0 %v7674_v19  ;;  %10881 = vst [vmem:[#allocation95_spill] sm:$0xff] %v7690_v31  ;;  %v532_v2 = vand.u32 4294901760, %v531_v26  ;;  %v10475_v11 = vand.u32 4294901760, %v7065_v21  ;;  %v10473_v43 = vand.u32 4294901760, %v7096_v33  ;;  %v10472_v51 = vand.u32 4294901760, %v7101_v34  ;;  %v10930_v34 = vld [vmem:[#allocation64_spill] sm:$0xff] }
  0x40   :  { %518 = vmatmul.mubr.f32.gmra.mrb[14].mxu1 %v517_v40  ;;  %v590_v1 = vand.u32 4294901760, %v589_v37  ;;  %v10469_v40 = vand.u32 4294901760, %v7361_v15  ;;  %v10465_v57 = vand.u32 4294901760, %v7153_v49  ;;  %v6188_v46 = vpack.c.bf16 %v7199_v63, %v7194_v62  ;;  %v10928_v49 = vld [vmem:[#allocation55_spill] sm:$0xff]  ;;  %v10931_v33 = vld [vmem:[#allocation25_spill] sm:$0xff]  ;;  %v10935_v21 = vld [vmem:[#allocation68_spill] sm:$0xff] }
  0x41   :  { %527 = vmatprep.mubr.f32.mxu1 %v526_v35  ;;  %v6252_v0 = vpack.c.bf16 %v10475_v11, %v10490_v36  ;;  %v6254_v26 = vpack.c.bf16 %v10472_v51, %v10473_v43  ;;  %v6190_v37 = vpack.c.bf16 %v7239_v47, %v7234_v45  ;;  %v10467_v35 = vand.u32 4294901760, %v7364_v44  ;;  %v10910_v36 = vld [vmem:[#allocation6_spill] sm:$0xff] }
  0x42   :  { %591 = vmatprep.subr.mxu1 %v590_v1  ;;  %1901 = vmatmul.mubr.f32.gmra.mrb[16].mxu0 %v7690_v31  ;;  %v10466_v1 = vand.u32 4294901760, %v7132_v42  ;;  %v10888_v51 = vand.u32 4294901760, %v7239_v47  ;;  %v10890_v11 = vand.u32 4294901760, %v7273_v61  ;;  %v10482_v47 = vand.u32 4294901760, %v7510_v13  ;;  %v10919_v13 = vld [vmem:[#allocation39_spill] sm:$0xff]  ;;  %v10926_v44 = vld [vmem:[#allocation50_spill] sm:$0xff] }
  0x43   :  { %597 = vmatpush1.xpose.msra.mxu1 %v596_v3  ;;  %1983 = vmatprep.mubr.f32.mxu0 %v10474_v38  ;;  %v10882_v3 = vand.u32 4294901760, %v7225_v55  ;;  %v10489_v55 = vand.u32 4294901760, %v7380_v5  ;;  %v10889_v38 = vand.u32 4294901760, %v7268_v60  ;;  %v10922_v5 = vld [vmem:[#allocation13_spill] sm:$0xff]  ;;  %v10929_v42 = vld [vmem:[#allocation60_spill] sm:$0xff] }
  0x44   :  { %533 = vmatmul.mubr.f32.gmra.mrb[16].mxu1 %v532_v2  ;;  %6253 = vmatprep.subr.bf16.mxu0 %v6252_v0  ;;  %v6256_v53 = vpack.c.bf16 %v10465_v57, %v10466_v1  ;;  %v6192_v2 = vpack.c.bf16 %v7273_v61, %v7268_v60  ;;  %v10468_v0 = vand.u32 4294901760, %v7367_v59  ;;  %v10471_v57 = vand.u32 4294901760, %v7158_v50  ;;  %v10924_v50 = vld [vmem:[#allocation17_spill] sm:$0xff]  ;;  %v10925_v59 = vld [vmem:[#allocation59_spill] sm:$0xff] }
  0x45   :  { %653 = vmatprep.mubr.f32.mxu1 %v7163_v52  ;;  %6189 = vmatprep.subr.bf16.mxu1 %v6188_v46  ;;  %v10470_v1 = vand.u32 4294901760, %v7171_v54  ;;  %v10480_v60 = vand.u32 4294901760, %v7521_v27  ;;  %v10477_v61 = vand.u32 4294901760, %v7286_v25  ;;  %v10917_v25 = vld [vmem:[#allocation44_spill] sm:$0xff]  ;;  %v10918_v27 = vld [vmem:[#allocation58_spill] sm:$0xff]  ;;  %v10923_v54 = vld [vmem:[#allocation51_spill] sm:$0xff] }
  0x46   :  { %1987 = vmatmul.mubr.f32.vlgmr.msra.gmra.mrb[0].mxu0 %v10882_v3  ;;  %v10884_v3 = vld [vmem:[#allocation21_spill] sm:$0xff] }
  0x47   :  { %6255 = vmatpush1.bf16.xpose.msra.mxu0 %v6254_v26  ;;  %1994 = vmatprep.mubr.f32.mxu0 %v10469_v40  ;;  %v10488_v26 = vand.u32 4294901760, %v7403_v24  ;;  %v6258_v46 = vpack.c.bf16 %v10470_v1, %v10471_v57  ;;  %v10484_v1 = vand.u32 4294901760, %v7489_v17  ;;  %v10887_v57 = vand.u32 4294901760, %v7234_v45  ;;  %v10921_v24 = vld [vmem:[#allocation48_spill] sm:$0xff] }
  0x48   :  { %655 = vmatmul.mubr.f32.vlgmr.msra.gmra.mrb[0].mxu1 %v7181_v58  ;;  %6257 = vmatprep.subr.bf16.mxu0 %v6256_v53  ;;  %v10883_v53 = vld [vmem:[#allocation26_spill] sm:$0xff]  ;;  %v10483_v45 = vand.u32 4294901760, %v7507_v56 }
  0x49   :  { %660 = vmatprep.mubr.f32.mxu1 %v7227_v29  ;;  %6191 = vmatpush1.bf16.xpose.msra.mxu1 %v6190_v37  ;;  %v10486_v37 = vand.u32 4294901760, %v10884_v3  ;;  %v7760_v43 = vpack.c.bf16 %v10888_v51, %v10887_v57  ;;  %v10479_v51 = vand.u32 4294901760, %v7615_v14  ;;  %v10895_v57 = vld [vmem:[#allocation5_spill] sm:$0xff]  ;;  %v10920_v56 = vld [vmem:[#allocation14_spill] sm:$0xff] }
  0x4a   :  { %1998 = vmatmul.mubr.f32.gmra.mrb[2].mxu0 %v10467_v35  ;;  %6193 = vmatprep.subr.bf16.mxu1 %v6192_v2  ;;  %v6194_v35 = vpack.c.bf16 %v7485_v30, %v7472_v23  ;;  %v10885_v2 = vand.u32 4294901760, %v7194_v62  ;;  %v7766_v62 = vpack.c.bf16 %v10890_v11, %v10889_v38  ;;  %v10893_v11 = vld [vmem:[#allocation37_spill] sm:$0xff]  ;;  %v10894_v38 = vld [vmem:[#allocation62_spill] sm:$0xff] }
  0x4b   :  { %2005 = vmatprep.mubr.f32.mxu0 %v10468_v0  ;;  %v10886_v0 = vand.u32 4294901760, %v7199_v63  ;;  %v10891_v63 = vand.u32 4294901760, %v7472_v23  ;;  %v10478_v23 = vand.u32 4294901760, %v7600_v22  ;;  %v215_v14 = vld [vmem:[%s10321_s2 + $0x28] sm:$0xff]  ;;  %v222_v22 = vld [vmem:[%s10321_s2 + $0x80] sm:$0xff] }
  0x4c   :  { %662 = vmatmul.mubr.f32.gmra.mrb[2].mxu1 %v10883_v53  ;;  %v2376_v17 = vand.u32 4294901760, %v215_v14  ;;  %v2380_v3 = vand.u32 4294901760, %v222_v22  ;;  %v7920_v53 = vld [vmem:[%s10321_s2 + $0xd0] sm:$0xff] }
  0x4d   :  { %667 = vmatprep.mubr.f32.mxu1 %v7303_v10  ;;  %v7751_v40 = vpack.c.bf16 %v10886_v0, %v10885_v2  ;;  %v10892_v0 = vand.u32 4294901760, %v7485_v30  ;;  %v10476_v30 = vand.u32 4294901760, %v7530_v48  ;;  %v10916_v48 = vld [vmem:[#allocation40_spill] sm:$0xff] }
  0x4e   :  { %2009 = vmatmul.mubr.f32.gmra.mrb[4].mxu0 %v10489_v55  ;;  %v10909_v55 = vld [vmem:[#allocation28_spill] sm:$0xff]  ;;  %v7861_v15 = vpack.c.bf16 %v2380_v3, %v2376_v17 }
  0x4f   :  { %v7772_v2 = vpack.c.bf16 %v10892_v0, %v10891_v63  ;;  %2016 = vmatprep.mubr.f32.mxu0 %v10488_v26  ;;  %6259 = vmatpush1.bf16.xpose.msra.mxu0 %v6258_v46  ;;  %v10896_v46 = vld [vmem:[#allocation63_spill] sm:$0xff]  ;;  %v10485_v0 = vand.u32 4294901760, %v7641_v39  ;;  %v10908_v26 = vld [vmem:[#allocation52_spill] sm:$0xff]  ;;  %v10914_v39 = vld [vmem:[#allocation29_spill] sm:$0xff] }
  0x50   :  { %669 = vmatmul.mubr.f32.gmra.mrb[4].mxu1 %v7305_v41  ;;  %2115 = vmatprep.subr.mxu0 %v10486_v37  ;;  %v10897_v63 = vld [vmem:[#allocation71_spill] sm:$0xff]  ;;  %v10906_v37 = vld [vmem:[#allocation32_spill] sm:$0xff]  ;;  %10927 = vst [vmem:[#allocation5_spill] sm:$0xff] %v7861_v15  ;;  %v7909_v41 = vsub.f32 %v222_v22, %v2380_v3  ;;  %v10567_v22 = vand.u32 4294901760, %v7920_v53 }
  0x51   :  { %674 = vmatprep.mubr.f32.mxu1 %v7344_v28  ;;  %6195 = vmatpush1.bf16.xpose.msra.mxu1 %v6194_v35  ;;  %v10481_v35 = vand.u32 4294901760, %v7634_v7  ;;  %v10915_v7 = vld [vmem:[#allocation38_spill] sm:$0xff]  ;;  %v7907_v28 = vsub.f32 %v215_v14, %v2376_v17 }
  0x52   :  { %2020 = vmatmul.mubr.f32.gmra.mrb[6].mxu0 %v10484_v1  ;;  %742 = vmatprep.subr.mxu1 %v7652_v12  ;;  %v10904_v1 = vld [vmem:[#allocation22_spill] sm:$0xff] }
  0x53   :  { %2027 = vmatprep.mubr.f32.mxu0 %v10483_v45  ;;  %v10903_v45 = vld [vmem:[#allocation19_spill] sm:$0xff] }
  0x54   :  { %676 = vmatmul.mubr.f32.gmra.mrb[6].mxu1 %v7348_v9  ;;  %v10946_v9 = vld [vmem:[#allocation90_spill] sm:$0xff]  ;;  %10948 = vst [vmem:[#allocation19_spill] sm:$0xff] %v7909_v41  ;;  %v10950_v17 = vand.u32 4294901760, %v10903_v45 }
  0x55   :  { %681 = vmatprep.mubr.f32.mxu1 %v7399_v6 }
  0x56   :  { %2031 = vmatmul.mubr.f32.gmra.mrb[8].mxu0 %v10482_v47  ;;  %v10902_v47 = vld [vmem:[#allocation88_spill] sm:$0xff] }
  0x57   :  { %2038 = vmatprep.mubr.f32.mxu0 %v10480_v60  ;;  %2119 = vmatpush1.xpose.msra.mxu0 %v10477_v61  ;;  %v10898_v61 = vld [vmem:[#allocation72_spill] sm:$0xff]  ;;  %v10900_v60 = vld [vmem:[#allocation86_spill] sm:$0xff] }
  0x58   :  { %683 = vmatmul.mubr.f32.gmra.mrb[8].mxu1 %v7412_v8  ;;  %6261 = vmatprep.subr.bf16.mxu0 %v10893_v11 }
  0x59   :  { %688 = vmatprep.mubr.f32.mxu1 %v10894_v38  ;;  %745 = vmatpush1.xpose.msra.mxu1 %v7611_v16  ;;  %v10945_v38 = vld [vmem:[#allocation85_spill] sm:$0xff] }
  0x5a   :  { %2042 = vmatmul.mubr.f32.gmra.mrb[10].mxu0 %v10476_v30  ;;  %6197 = vmatprep.subr.bf16.mxu1 %v10895_v57  ;;  %v10487_v30 = vand.u32 4294901760, %v7674_v19  ;;  %v10913_v19 = vld [vmem:[#allocation36_spill] sm:$0xff] }
  0x5b   :  { %2049 = vmatprep.mubr.f32.mxu0 %v10478_v23  ;;  %v10491_v23 = vand.u32 4294901760, %v7690_v31  ;;  %v10912_v31 = vld [vmem:[#allocation11_spill] sm:$0xff] }
  0x5c   :  { %690 = vmatmul.mubr.f32.gmra.mrb[10].mxu1 %v10896_v46  ;;  %v10944_v46 = vld [vmem:[#allocation92_spill] sm:$0xff] }
  0x5d   :  { %695 = vmatprep.mubr.f32.mxu1 %v10897_v63  ;;  %v10943_v63 = vld [vmem:[#allocation83_spill] sm:$0xff] }
  0x5e   :  { %2053 = vmatmul.mubr.f32.gmra.mrb[12].mxu0 %v10479_v51  ;;  %v10899_v51 = vld [vmem:[#allocation80_spill] sm:$0xff] }
  0x5f   :  { %2060 = vmatprep.mubr.f32.mxu0 %v10481_v35  ;;  %v10901_v35 = vld [vmem:[#allocation20_spill] sm:$0xff] }
  0x60   :  { %697 = vmatmul.mubr.f32.gmra.mrb[12].mxu1 %v10898_v61  ;;  %v7894_v61 = vld [vmem:[%s10321_s2 + $0x130] sm:$0xff] }
  0x61   :  { %702 = vmatprep.mubr.f32.mxu1 %v7602_v32  ;;  %v7889_v32 = vld [vmem:[%s10321_s2 + $0xd8] sm:$0xff]  ;;  %v10562_v6 = vand.u32 4294901760, %v7894_v61 }
  0x62   :  { %2064 = vmatmul.mubr.f32.gmra.mrb[14].mxu0 %v10485_v0  ;;  %v10905_v0 = vld [vmem:[#allocation41_spill] sm:$0xff]  ;;  %v10563_v8 = vand.u32 4294901760, %v7889_v32 }
  0x63   :  { %2071 = vmatprep.mubr.f32.mxu0 %v10487_v30  ;;  %v10907_v30 = vld [vmem:[#allocation23_spill] sm:$0xff] }
  0x64   :  { %704 = vmatmul.mubr.f32.gmra.mrb[14].mxu1 %v10899_v51  ;;  %v10942_v51 = vld [vmem:[#allocation84_spill] sm:$0xff]  ;;  %v7915_v10 = vpack.c.bf16 %v10562_v6, %v10563_v8  ;;  %v10951_v3 = vand.u32 4294901760, %v10907_v30  ;;  %v10564_v6 = vand.u32 4294901760, %v7907_v28  ;;  %v7945_v8 = vld [vmem:[%s10321_s2 + $0x188] sm:$0x7] }
  0x65   :  { %709 = vmatprep.mubr.f32.mxu1 %v10900_v60  ;;  %v10941_v60 = vld [vmem:[#allocation75_spill] sm:$0xff] }
  0x66   :  { %2075 = vmatmul.mubr.f32.gmra.mrb[16].mxu0 %v10491_v23  ;;  %v10911_v23 = vld [vmem:[#allocation35_spill] sm:$0xff]  ;;  %10949 = vst [vmem:[#allocation23_spill] sm:$0xff] %v7915_v10 }
  0x67   :  { %2175 = vmatprep.mubr.f32.mxu0 %v10901_v35 }
  0x68   :  { %711 = vmatmul.mubr.f32.gmra.mrb[16].mxu1 %v10902_v47  ;;  %v10939_v47 = vld [vmem:[#allocation77_spill] sm:$0xff] }
  0x69   :  { %802 = vmatprep.mubr.f32.mxu1 %v10903_v45  ;;  %v10565_v45 = vand.u32 4294901760, %v7909_v41 }
  0x6a   :  { %2177 = vmatmul.mubr.f32.vlgmr.msra.gmra.mrb[0].mxu0 %v10904_v1 }
  0x6b   :  { %6263 = vmatpush1.bf16.xpose.msra.mxu0 %v10905_v0  ;;  %2182 = vmatprep.mubr.f32.mxu0 %v10906_v37  ;;  %v10938_v0 = vld [vmem:[#allocation74_spill] sm:$0xff] }
  0x6c   :  { %805 = vmatmul.mubr.f32.vlgmr.msra.gmra.mrb[0].mxu1 %v10907_v30  ;;  %6265 = vmatprep.subr.bf16.mxu0 %v10908_v26  ;;  %v10937_v26 = vld [vmem:[#allocation69_spill] sm:$0xff] }
  0x6d   :  { %811 = vmatprep.mubr.f32.mxu1 %v10909_v55  ;;  %6199 = vmatpush1.bf16.xpose.msra.mxu1 %v10910_v36 }
  0x6e   :  { %2184 = vmatmul.mubr.f32.gmra.mrb[2].mxu0 %v10911_v23  ;;  %6201 = vmatprep.subr.bf16.mxu1 %v10912_v31 }
  0x6f   :  { %2189 = vmatprep.mubr.f32.mxu0 %v10913_v19 }
  0x70   :  { %814 = vmatmul.mubr.f32.gmra.mrb[2].mxu1 %v10914_v39 }
  0x71   :  { %820 = vmatprep.mubr.f32.mxu1 %v10915_v7 }
  0x72   :  { %2191 = vmatmul.mubr.f32.gmra.mrb[4].mxu0 %v10916_v48 }
  0x73   :  { %2196 = vmatprep.mubr.f32.mxu0 %v10917_v25  ;;  %6267 = vmatpush1.bf16.xpose.msra.mxu0 %v10918_v27  ;;  %v10934_v27 = vld [vmem:[#allocation27_spill] sm:$0xff] }
  0x74   :  { %823 = vmatmul.mubr.f32.gmra.mrb[4].mxu1 %v10919_v13  ;;  %2255 = vmatprep.subr.mxu0 %v10920_v56  ;;  %v10933_v56 = vld [vmem:[#allocation67_spill] sm:$0xff] }
  0x75   :  { %829 = vmatprep.mubr.f32.mxu1 %v10921_v24  ;;  %6203 = vmatpush1.bf16.xpose.msra.mxu1 %v10922_v5  ;;  %v10947_v5 = vld [vmem:[#allocation91_spill] sm:$0xff] }
  0x76   :  { %2198 = vmatmul.mubr.f32.gmra.mrb[6].mxu0 %v10923_v54  ;;  %899 = vmatprep.subr.mxu1 %v10924_v50 }
  0x77   :  { %2203 = vmatprep.mubr.f32.mxu0 %v10925_v59 }
  0x78   :  { %832 = vmatmul.mubr.f32.gmra.mrb[6].mxu1 %v10926_v44 }
  0x79   :  { %838 = vmatprep.mubr.f32.mxu1 %v10928_v49 }
  0x7a   :  { %2205 = vmatmul.mubr.f32.gmra.mrb[8].mxu0 %v10929_v42 }
  0x7b   :  { %2210 = vmatprep.mubr.f32.mxu0 %v10930_v34  ;;  %2257 = vmatpush1.xpose.msra.mxu0 %v10931_v33  ;;  %v10940_v33 = vld [vmem:[#allocation82_spill] sm:$0xff] }
  0x7c   :  { %841 = vmatmul.mubr.f32.gmra.mrb[8].mxu1 %v10932_v4  ;;  %6269 = vmatprep.subr.bf16.mxu0 %v7861_v15  ;;  %v214_v15 = vld [vmem:[%s10321_s2 + $0x20] sm:$0xff] }
  0x7d   :  { %847 = vmatprep.mubr.f32.mxu1 %v10933_v56  ;;  %901 = vmatpush1.xpose.msra.mxu1 %v10934_v27  ;;  %v2378_v11 = vand.u32 4294901760, %v214_v15 }
  0x7e   :  { %2212 = vmatmul.mubr.f32.gmra.mrb[10].mxu0 %v10935_v21  ;;  %6205 = vmatprep.subr.bf16.mxu1 %v7751_v40  ;;  %v221_v40 = vld [vmem:[%s10321_s2 + $0x78] sm:$0xff] }
  0x7f   :  { %2217 = vmatprep.mubr.f32.mxu0 %v10936_v20  ;;  %v2382_v27 = vand.u32 4294901760, %v221_v40 }
  0x80   :  { %850 = vmatmul.mubr.f32.gmra.mrb[10].mxu1 %v10937_v26 }
  0x81   :  { %856 = vmatprep.mubr.f32.mxu1 %v10938_v0  ;;  %v7904_v50 = vpack.c.bf16 %v2382_v27, %v2378_v11 }
  0x82   :  { %2219 = vmatmul.mubr.f32.gmra.mrb[12].mxu0 %v10939_v47 }
  0x83   :  { %2224 = vmatprep.mubr.f32.mxu0 %v10940_v33 }
  0x84   :  { %859 = vmatmul.mubr.f32.gmra.mrb[12].mxu1 %v10941_v60 }
  0x85   :  { %865 = vmatprep.mubr.f32.mxu1 %v10942_v51 }
  0x86   :  { %2226 = vmatmul.mubr.f32.gmra.mrb[14].mxu0 %v10943_v63 }
  0x87   :  { %2231 = vmatprep.mubr.f32.mxu0 %v10944_v46 }
  0x88   :  { %868 = vmatmul.mubr.f32.gmra.mrb[14].mxu1 %v10945_v38 }
  0x89   :  { %874 = vmatprep.mubr.f32.mxu1 %v10946_v9 }
  0x8a   :  { %2233 = vmatmul.mubr.f32.gmra.mrb[16].mxu0 %v7679_v18 }
  0x8b   :  { %2313 = vmatprep.mubr.f32.mxu0 %v10901_v35  ;;  %v7925_v35 = vld [vmem:[%s10321_s2 + $0x128] sm:$0xff] }
  0x8c   :  { %877 = vmatmul.mubr.f32.gmra.mrb[16].mxu1 %v10947_v5  ;;  %v10566_v14 = vand.u32 4294901760, %v7925_v35 }
  0x8d   :  { %959 = vmatprep.mubr.f32.mxu1 %v10950_v17  ;;  %v10952_v17 = vand.u32 4294901760, %v10909_v55  ;;  %v10954_v55 = vand.u32 4294901760, %v10914_v39  ;;  %v270_v39 = vld [vmem:[%s10320_s1 + $0x28] sm:$0xff] }
  0x8e   :  { %2315 = vmatmul.mubr.f32.vlgmr.msra.gmra.mrb[0].mxu0 %v10904_v1  ;;  %v7954_v30 = vpack.c.bf16 %v10566_v14, %v10567_v22  ;;  %v10958_v14 = vand.u32 4294901760, %v10921_v24  ;;  %v10959_v22 = vand.u32 4294901760, %v7652_v12  ;;  %v10961_v12 = vand.u32 4294901760, %v10926_v44  ;;  %v284_v44 = vld [vmem:[%s10320_s1 + $0x98] sm:$0xff] }
  0x8f   :  { %6271 = vmatpush1.bf16.xpose.msra.mxu0 %v7904_v50  ;;  %2320 = vmatprep.mubr.f32.mxu0 %v10906_v37  ;;  %v312_v37 = vld [vmem:[%s10320_s1 + $0x178] sm:$0xff] }
  0x90   :  { %963 = vmatmul.mubr.f32.vlgmr.msra.gmra.mrb[0].mxu1 %v10951_v3  ;;  %6273 = vmatprep.subr.bf16.mxu0 %v7915_v10  ;;  %10953 = vst [vmem:[#allocation28_spill] sm:$0xff] %v7954_v30  ;;  %v2589_v3 = vsub.f32 %v7907_v28, %v10564_v6  ;;  %v10957_v6 = vand.u32 4294901760, %v10919_v13 }
  0x91   :  { %970 = vmatprep.mubr.f32.mxu1 %v10952_v17  ;;  %6207 = vmatpush1.bf16.xpose.msra.mxu1 %v7760_v43  ;;  %v7959_v43 = vand.u32 4294901760, %v7945_v8  ;;  %v10956_v17 = vand.u32 4294901760, %v10915_v7  ;;  %v7984_v7 = vld [vmem:[%s10321_s2 + $0x180] sm:$0x7] }
  0x92   :  { %2322 = vmatmul.mubr.f32.gmra.mrb[2].mxu0 %v10911_v23  ;;  %6209 = vmatprep.subr.bf16.mxu1 %v7766_v62  ;;  %v2601_v62 = vsub.f32 %v7909_v41, %v10565_v45  ;;  %v8005_v24 = vand.u32 4294901760, %v7984_v7 }
  0x93   :  { %2327 = vmatprep.mubr.f32.mxu0 %v10913_v19  ;;  %10955 = vst [vmem:[#allocation6_spill] sm:$0xff] %v7959_v43 }
  0x94   :  { %974 = vmatmul.mubr.f32.gmra.mrb[2].mxu1 %v10954_v55  ;;  %v269_v55 = vld [vmem:[%s10320_s1 + $0x20] sm:$0xff]  ;;  %v2602_v45 = vand.u32 4294901760, %v2601_v62  ;;  %v8001_v62 = vsub.f32 %v221_v40, %v2382_v27  ;;  %10960 = vst [vmem:[#allocation11_spill] sm:$0xff] %v8005_v24  ;;  %v10967_v40 = vand.u32 4294901760, %v10933_v56  ;;  %v291_v56 = vld [vmem:[%s10320_s1 + $0xd0] sm:$0xff] }
  0x95   :  { %981 = vmatprep.mubr.f32.mxu1 %v10956_v17  ;;  %v2590_v17 = vand.u32 4294901760, %v2589_v3  ;;  %v7994_v13 = vand.u32 4294901760, %v269_v55  ;;  %v7999_v3 = vsub.f32 %v214_v15, %v2378_v11  ;;  %v276_v15 = vld [vmem:[%s10320_s1 + $0x58] sm:$0xff] }
  0x96   :  { %2329 = vmatmul.mubr.f32.gmra.mrb[4].mxu0 %v10916_v48 }
  0x97   :  { %2334 = vmatprep.mubr.f32.mxu0 %v10917_v25  ;;  %6275 = vmatpush1.bf16.xpose.msra.mxu0 %v7954_v30  ;;  %v277_v25 = vld [vmem:[%s10320_s1 + $0x60] sm:$0xff]  ;;  %v8021_v11 = vsub.f32 %v269_v55, %v7994_v13 }
  0x98   :  { %985 = vmatmul.mubr.f32.gmra.mrb[4].mxu1 %v10957_v6  ;;  %2393 = vmatprep.subr.mxu0 %v7959_v43  ;;  %v7992_v6 = vand.u32 4294901760, %v270_v39 }
  0x99   :  { %992 = vmatprep.mubr.f32.mxu1 %v10958_v14  ;;  %6211 = vmatpush1.bf16.xpose.msra.mxu1 %v7772_v2  ;;  %v6276_v2 = vpack.c.bf16 %v2602_v45, %v2590_v17  ;;  %v8011_v14 = vand.u32 4294901760, %v277_v25  ;;  %v283_v45 = vld [vmem:[%s10320_s1 + $0x90] sm:$0xff]  ;;  %v10964_v17 = vand.u32 4294901760, %v7894_v61 }
  0x9a   :  { %2336 = vmatmul.mubr.f32.gmra.mrb[6].mxu0 %v10923_v54  ;;  %1091 = vmatprep.subr.mxu1 %v10959_v22  ;;  %v10962_v22 = vand.u32 4294901760, %v10928_v49  ;;  %v8018_v27 = vsub.f32 %v270_v39, %v7992_v6  ;;  %v10963_v39 = vand.u32 4294901760, %v7889_v32  ;;  %v8045_v49 = vand.u32 4294901760, %v276_v15 }
  0x9b   :  { %2341 = vmatprep.mubr.f32.mxu0 %v10925_v59 }
  0x9c   :  { %996 = vmatmul.mubr.f32.gmra.mrb[6].mxu1 %v10961_v12  ;;  %v8036_v55 = vsub.f32 %v7889_v32, %v10963_v39  ;;  %v8041_v12 = vsub.f32 %v7894_v61, %v10964_v17  ;;  %10966 = vst [vmem:[#allocation29_spill] sm:$0xff] %v8045_v49  ;;  %v8052_v32 = vsub.f32 %v277_v25, %v8011_v14  ;;  %v8054_v39 = vand.u32 4294901760, %v284_v44 }
  0x9d   :  { %1003 = vmatprep.mubr.f32.mxu1 %v10962_v22  ;;  %v10965_v22 = vand.u32 4294901760, %v10932_v4  ;;  %v10973_v17 = vand.u32 4294901760, %v10937_v26  ;;  %v8088_v26 = vand.u32 4294901760, %v291_v56  ;;  %v10977_v4 = vand.u32 4294901760, %v8018_v27 }
  0x9e   :  { %2343 = vmatmul.mubr.f32.gmra.mrb[8].mxu0 %v10929_v42  ;;  %10969 = vst [vmem:[#allocation38_spill] sm:$0xff] %v8054_v39  ;;  %v10982_v42 = vand.u32 4294901760, %v8036_v55 }
  0x9f   :  { %2348 = vmatprep.mubr.f32.mxu0 %v10930_v34  ;;  %2395 = vmatpush1.xpose.msra.mxu0 %v8005_v24  ;;  %v10968_v34 = vand.u32 4294901760, %v7611_v16  ;;  %v10972_v16 = vand.u32 4294901760, %v8001_v62  ;;  %10975 = vst [vmem:[#allocation48_spill] sm:$0xff] %v8088_v26  ;;  %v2453_v61 = vsub.f32 %v8018_v27, %v10977_v4  ;;  %v298_v4 = vld [vmem:[%s10320_s1 + $0x108] sm:$0xff] }
  0xa0   :  { %1007 = vmatmul.mubr.f32.gmra.mrb[8].mxu1 %v10965_v22  ;;  %6277 = vmatprep.subr.bf16.mxu0 %v6276_v2  ;;  %v8059_v2 = vand.u32 4294901760, %v283_v45  ;;  %v8075_v22 = vsub.f32 %v276_v15, %v8045_v49  ;;  %v10976_v15 = vand.u32 4294901760, %v7920_v53  ;;  %v8136_v48 = vand.u32 4294901760, %v298_v4 }
  0xa1   :  { %1014 = vmatprep.mubr.f32.mxu1 %v10967_v40  ;;  %1095 = vmatpush1.xpose.msra.mxu1 %v10968_v34  ;;  %v10971_v34 = vand.u32 4294901760, %v7999_v3  ;;  %v2607_v40 = vsub.f32 %v8001_v62, %v10972_v16  ;;  %v8086_v16 = vsub.f32 %v284_v44, %v8054_v39 }
  0xa2   :  { %2350 = vmatmul.mubr.f32.gmra.mrb[10].mxu0 %v10935_v21  ;;  %10970 = vst [vmem:[#allocation39_spill] sm:$0xff] %v8059_v2  ;;  %6213 = vmatprep.subr.bf16.mxu1 %v10895_v57  ;;  %v290_v57 = vld [vmem:[%s10320_s1 + $0xc8] sm:$0xff]  ;;  %v8103_v44 = vsub.f32 %v283_v45, %v8059_v2  ;;  %v2454_v45 = vand.u32 4294901760, %v2453_v61  ;;  %10987 = vst [vmem:[#allocation57_spill] sm:$0xff] %v8136_v48  ;;  %v10989_v61 = vand.u32 4294901760, %v10945_v38 }
  0xa3   :  { %2355 = vmatprep.mubr.f32.mxu0 %v10936_v20  ;;  %v2595_v25 = vsub.f32 %v7999_v3, %v10971_v34  ;;  %v10974_v34 = vand.u32 4294901760, %v10938_v0  ;;  %v10978_v0 = vand.u32 4294901760, %v8021_v11  ;;  %v10979_v20 = vand.u32 4294901760, %v7925_v35  ;;  %v8167_v38 = vld [vmem:[%s10321_s2 + $0x88] sm:$0xff] }
  0xa4   :  { %1018 = vmatmul.mubr.f32.gmra.mrb[10].mxu1 %v10973_v17  ;;  %v8093_v17 = vsub.f32 %v7920_v53, %v10976_v15  ;;  %v2608_v15 = vand.u32 4294901760, %v2607_v40  ;;  %v10984_v40 = vand.u32 4294901760, %v10942_v51  ;;  %v297_v51 = vld [vmem:[%s10320_s1 + $0x100] sm:$0xff]  ;;  %10992 = vst [vmem:[#allocation74_spill] sm:$0xff] %v8167_v38  ;;  %v8184_v19 = vsub.f32 %v298_v4, %v8136_v48 }
  0xa5   :  { %1025 = vmatprep.mubr.f32.mxu1 %v10974_v34  ;;  %v2459_v34 = vsub.f32 %v8021_v11, %v10978_v0  ;;  %v8108_v21 = vsub.f32 %v7925_v35, %v10979_v20  ;;  %v2596_v53 = vand.u32 4294901760, %v2595_v25  ;;  %v10981_v0 = vand.u32 4294901760, %v10941_v60 }
  0xa6   :  { %2357 = vmatmul.mubr.f32.gmra.mrb[12].mxu0 %v10939_v47  ;;  %v8111_v47 = vand.u32 4294901760, %v290_v57  ;;  %v2613_v20 = vsub.f32 %v8036_v55, %v10982_v42  ;;  %v10983_v35 = vand.u32 4294901760, %v8041_v12  ;;  %10997 = vst [vmem:[#allocation84_spill] sm:$0xff] %v8184_v19  ;;  %v11004_v1 = vand.u32 4294901760, %v8167_v38 }
  0xa7   :  { %2362 = vmatprep.mubr.f32.mxu0 %v10940_v33  ;;  %v10985_v33 = vand.u32 4294901760, %v8052_v32  ;;  %v2460_v42 = vand.u32 4294901760, %v2459_v34  ;;  %v10990_v34 = vand.u32 4294901760, %v8075_v22 }
  0xa8   :  { %10980 = vst [vmem:[#allocation50_spill] sm:$0xff] %v8111_v47  ;;  %1029 = vmatmul.mubr.f32.gmra.mrb[12].mxu1 %v10981_v0  ;;  %v2625_v25 = vsub.f32 %v8041_v12, %v10983_v35  ;;  %v8132_v0 = vsub.f32 %v291_v56, %v8088_v26  ;;  %v8143_v35 = vsub.f32 %v290_v57, %v8111_v47  ;;  %v2614_v60 = vand.u32 4294901760, %v2613_v20 }
  0xa9   :  { %1036 = vmatprep.mubr.f32.mxu1 %v10984_v40  ;;  %v2468_v59 = vsub.f32 %v8052_v32, %v10985_v33  ;;  %v6278_v33 = vpack.c.bf16 %v2608_v15, %v2596_v53  ;;  %v2474_v54 = vsub.f32 %v8075_v22, %v10990_v34  ;;  %v305_v53 = vld [vmem:[%s10320_s1 + $0x140] sm:$0xff]  ;;  %v8157_v57 = vsub.f32 %v7945_v8, %v7959_v43  ;;  %v8162_v15 = vld [vmem:[%s10321_s2 + $0x30] sm:$0xff] }
  0xaa   :  { %10986 = vst [vmem:[#allocation55_spill] sm:$0xff] %v8132_v0  ;;  %2364 = vmatmul.mubr.f32.gmra.mrb[14].mxu0 %v10943_v63  ;;  %10988 = vst [vmem:[#allocation67_spill] sm:$0xff] %v8143_v35  ;;  %v2626_v63 = vand.u32 4294901760, %v2625_v25  ;;  %v10993_v20 = vand.u32 4294901760, %v10946_v9  ;;  %v8175_v40 = vand.u32 4294901760, %v297_v51  ;;  %v10996_v56 = vand.u32 4294901760, %v8103_v44 }
  0xab   :  { %2369 = vmatprep.mubr.f32.mxu0 %v10944_v46  ;;  %10991 = vst [vmem:[#allocation69_spill] sm:$0xff] %v8162_v15  ;;  %v2469_v25 = vand.u32 4294901760, %v2468_v59  ;;  %v304_v9 = vld [vmem:[%s10320_s1 + $0x138] sm:$0xff]  ;;  %v10998_v8 = vand.u32 4294901760, %v8093_v17  ;;  %v8198_v23 = vand.u32 4294901760, %v305_v53  ;;  %v11001_v59 = vand.u32 4294901760, %v10947_v5 }
  0xac   :  { %1040 = vmatmul.mubr.f32.gmra.mrb[14].mxu1 %v10989_v61  ;;  %v10994_v61 = vand.u32 4294901760, %v8086_v16  ;;  %10995 = vst [vmem:[#allocation75_spill] sm:$0xff] %v8175_v40  ;;  %v8181_v46 = vsub.f32 %v8103_v44, %v10996_v56  ;;  %v10999_v56 = vand.u32 4294901760, %v8108_v21  ;;  %v11006_v43 = vand.u32 4294901760, %v8132_v0 }
  0xad   :  { %1047 = vmatprep.mubr.f32.mxu1 %v10993_v20  ;;  %11000 = vst [vmem:[#allocation85_spill] sm:$0xff] %v8198_v23  ;;  %v11002_v20 = vand.u32 4294901760, %v8162_v15 }
  0xae   :  { %v2483_v34 = vsub.f32 %v8086_v16, %v10994_v61  ;;  %2371 = vmatmul.mubr.f32.gmra.mrb[16].mxu0 %v7679_v18  ;;  %v2619_v18 = vsub.f32 %v8093_v17, %v10998_v8  ;;  %v2631_v4 = vsub.f32 %v8108_v21, %v10999_v56  ;;  %v8214_v56 = vsub.f32 %v8167_v38, %v11004_v1  ;;  %v311_v38 = vld [vmem:[%s10320_s1 + $0x170] sm:$0xff] }
  0xaf   :  { %2455 = vmatprep.mubr.f32.mxu0 %v2454_v45  ;;  %v6280_v45 = vpack.c.bf16 %v2626_v63, %v2614_v60  ;;  %v8209_v8 = vsub.f32 %v8162_v15, %v11002_v20  ;;  %v2498_v5 = vsub.f32 %v8132_v0, %v11006_v43  ;;  %v8221_v63 = vsub.f32 %v297_v51, %v8175_v40 }
  0xb0   :  { %1051 = vmatmul.mubr.f32.gmra.mrb[16].mxu1 %v11001_v59  ;;  %11005 = vst [vmem:[#allocation91_spill] sm:$0xff] %v8214_v56  ;;  %v8223_v60 = vand.u32 4294901760, %v304_v9  ;;  %v8227_v59 = vsub.f32 %v7984_v7, %v8005_v24  ;;  %v2475_v20 = vand.u32 4294901760, %v2474_v54  ;;  %v8230_v61 = vand.u32 4294901760, %v312_v37  ;;  %v11024_v24 = vld [vmem:[#allocation33_spill] sm:$0xff] }
  0xb1   :  { %11003 = vst [vmem:[#allocation90_spill] sm:$0xff] %v8209_v8  ;;  %1151 = vmatprep.mubr.f32.mxu1 %v7163_v52  ;;  %11007 = vst [vmem:[#allocation96_spill] sm:$0xff] %v8221_v63  ;;  %v2484_v43 = vand.u32 4294901760, %v2483_v34  ;;  %v2620_v51 = vand.u32 4294901760, %v2619_v18  ;;  %v2632_v15 = vand.u32 4294901760, %v2631_v4  ;;  %v8236_v56 = vsub.f32 %v305_v53, %v8198_v23  ;;  %v319_v18 = vld [vmem:[%s10320_s1 + $0x1b0] sm:$0xff] }
  0xb2   :  { %11008 = vst [vmem:[#allocation97_spill] sm:$0xff] %v8223_v60  ;;  %2461 = vmatmul.mubr.f32.vlgmr.msra.gmra.mrb[0].mxu0 %v2460_v42  ;;  %11009 = vst [vmem:[#allocation98_spill] sm:$0xff] %v8230_v61  ;;  %v2490_v54 = vand.u32 4294901760, %v8181_v46  ;;  %v11011_v7 = vand.u32 4294901760, %v8143_v35  ;;  %v11012_v1 = vand.u32 4294901760, %v8157_v57  ;;  %v8252_v53 = vld [vmem:[%s10321_s2 + $0xe0] sm:$0xff]  ;;  %v8263_v4 = vsub.f32 %v304_v9, %v8223_v60 }
  0xb3   :  { %6279 = vmatpush1.bf16.xpose.msra.mxu0 %v6278_v33  ;;  %2470 = vmatprep.mubr.f32.mxu0 %v2469_v25  ;;  %11010 = vst [vmem:[#allocation99_spill] sm:$0xff] %v8236_v56  ;;  %11013 = vst [vmem:[#allocation100_spill] sm:$0xff] %v8252_v53  ;;  %v8257_v46 = vld [vmem:[%s10321_s2 + $0x138] sm:$0xff]  ;;  %v2499_v25 = vand.u32 4294901760, %v2498_v5  ;;  %v8272_v8 = vsub.f32 %v312_v37, %v8230_v61  ;;  %v6282_v34 = vpack.c.bf16 %v2632_v15, %v2620_v51  ;;  %v326_v5 = vld [vmem:[%s10320_s1 + $0x1e8] sm:$0x3f] }
  0xb4   :  { %1153 = vmatmul.mubr.f32.vlgmr.msra.gmra.mrb[0].mxu1 %v7181_v58  ;;  %v2504_v42 = vsub.f32 %v8143_v35, %v11011_v7  ;;  %6281 = vmatprep.subr.bf16.mxu0 %v6280_v45  ;;  %v2637_v33 = vsub.f32 %v8157_v57, %v11012_v1  ;;  %11014 = vst [vmem:[#allocation101_spill] sm:$0xff] %v8257_v46  ;;  %11015 = vst [vmem:[#allocation102_spill] sm:$0xff] %v8263_v4  ;;  %v8265_v45 = vand.u32 4294901760, %v311_v38 }
  0xb5   :  { %1158 = vmatprep.mubr.f32.mxu1 %v7227_v29  ;;  %6215 = vmatpush1.bf16.xpose.msra.mxu1 %v10910_v36  ;;  %v11017_v1 = vand.u32 4294901760, %v8184_v19  ;;  %11018 = vst [vmem:[#allocation104_spill] sm:$0xff] %v8272_v8  ;;  %v10601_v36 = vand.u32 4294901760, %v8257_v46 }
  0xb6   :  { %11016 = vst [vmem:[#allocation103_spill] sm:$0xff] %v8265_v45  ;;  %2476 = vmatmul.mubr.f32.gmra.mrb[2].mxu0 %v2475_v20  ;;  %6217 = vmatprep.subr.bf16.mxu1 %v10912_v31  ;;  %v8278_v20 = vand.u32 4294901760, %v319_v18  ;;  %v11020_v31 = vld [vmem:[#allocation26_spill] sm:$0xff]  ;;  %v2638_v37 = vand.u32 4294901760, %v2637_v33  ;;  %v2505_v9 = vand.u32 4294901760, %v2504_v42  ;;  %v8302_v35 = vsub.f32 %v311_v38, %v8265_v45 }
  0xb7   :  { %v2513_v7 = vsub.f32 %v8184_v19, %v11017_v1  ;;  %2485 = vmatprep.mubr.f32.mxu0 %v2484_v43  ;;  %v318_v1 = vld [vmem:[%s10320_s1 + $0x1a8] sm:$0xff]  ;;  %v11021_v43 = vand.u32 4294901760, %v8252_v53  ;;  %v8295_v51 = vsub.f32 %v8257_v46, %v10601_v36  ;;  %v11025_v19 = vand.u32 4294901760, %v8221_v63 }
  0xb8   :  { %11019 = vst [vmem:[#allocation105_spill] sm:$0xff] %v8278_v20  ;;  %1160 = vmatmul.mubr.f32.gmra.mrb[2].mxu1 %v11020_v31  ;;  %11026 = vst [vmem:[#allocation33_spill] sm:$0xff] %v8302_v35  ;;  %v11028_v36 = vand.u32 4294901760, %v8236_v56  ;;  %v11029_v46 = vand.u32 4294901760, %v8227_v59  ;;  %v8315_v38 = vsub.f32 %v319_v18, %v8278_v20  ;;  %v11035_v18 = vand.u32 4294901760, %v8263_v4 }
  0xb9   :  { %v8290_v15 = vsub.f32 %v8252_v53, %v11021_v43  ;;  %11023 = vst [vmem:[#allocation106_spill] sm:$0xff] %v8295_v51  ;;  %1165 = vmatprep.mubr.f32.mxu1 %v11024_v24  ;;  %v2519_v33 = vsub.f32 %v8221_v63, %v11025_v19  ;;  %v2514_v30 = vand.u32 4294901760, %v2513_v7  ;;  %v325_v7 = vld [vmem:[%s10320_s1 + $0x1e0] sm:$0x3f]  ;;  %v11032_v53 = vld [vmem:[#allocation34_spill] sm:$0xff]  ;;  %v11036_v51 = vand.u32 4294901760, %v8272_v8 }
  0xba   :  { %2491 = vmatmul.mubr.f32.gmra.mrb[4].mxu0 %v2490_v54  ;;  %v2528_v42 = vsub.f32 %v8236_v56, %v11028_v36  ;;  %v2643_v19 = vsub.f32 %v8227_v59, %v11029_v46  ;;  %11030 = vst [vmem:[#allocation108_spill] sm:$0xff] %v8315_v38  ;;  %v8317_v54 = vand.u32 4294901760, %v326_v5  ;;  %v11034_v36 = vld [vmem:[#allocation13_spill] sm:$0xff]  ;;  %v2534_v46 = vsub.f32 %v8263_v4, %v11035_v18  ;;  %v11039_v18 = vld [vmem:[#allocation43_spill] sm:$0xff] }
  0xbb   :  { %11022 = vst [vmem:[#allocation26_spill] sm:$0xff] %v8290_v15  ;;  %v8306_v15 = vand.u32 4294901760, %v318_v1  ;;  %2500 = vmatprep.mubr.f32.mxu0 %v2499_v25  ;;  %6283 = vmatpush1.bf16.xpose.msra.mxu0 %v6282_v34  ;;  %v11033_v25 = vld [vmem:[#allocation42_spill] sm:$0xff]  ;;  %v2520_v34 = vand.u32 4294901760, %v2519_v33  ;;  %v2543_v56 = vsub.f32 %v8272_v8, %v11036_v51  ;;  %v8336_v0 = vand.u32 4294901760, %v325_v7  ;;  %v11040_v8 = vld [vmem:[#allocation53_spill] sm:$0xff] }
  0xbc   :  { %11031 = vst [vmem:[#allocation109_spill] sm:$0xff] %v8317_v54  ;;  %1167 = vmatmul.mubr.f32.gmra.mrb[4].mxu1 %v11032_v53  ;;  %2639 = vmatprep.subr.mxu0 %v2638_v37  ;;  %v11037_v37 = vld [vmem:[#allocation17_spill] sm:$0xff]  ;;  %v2529_v33 = vand.u32 4294901760, %v2528_v42  ;;  %v8340_v43 = vsub.f32 %v326_v5, %v8317_v54  ;;  %v6284_v51 = vpack.c.bf16 %v7909_v41, %v7907_v28 }
  0xbd   :  { %11027 = vst [vmem:[#allocation107_spill] sm:$0xff] %v8306_v15  ;;  %1172 = vmatprep.mubr.f32.mxu1 %v11033_v25  ;;  %6219 = vmatpush1.bf16.xpose.msra.mxu1 %v11034_v36  ;;  %v8333_v63 = vsub.f32 %v318_v1, %v8306_v15  ;;  %11038 = vst [vmem:[#allocation34_spill] sm:$0xff] %v8336_v0  ;;  %v2644_v36 = vand.u32 4294901760, %v2643_v19  ;;  %v2535_v1 = vand.u32 4294901760, %v2534_v46  ;;  %v2544_v5 = vand.u32 4294901760, %v2543_v56  ;;  %v11043_v46 = vld [vmem:[#allocation62_spill] sm:$0xff] }
  0xbe   :  { %2506 = vmatmul.mubr.f32.gmra.mrb[6].mxu0 %v2505_v9  ;;  %1231 = vmatprep.subr.mxu1 %v11037_v37  ;;  %v10615_v9 = vand.u32 4294901760, %v8315_v38  ;;  %v11041_v37 = vand.u32 4294901760, %v8302_v35  ;;  %v8351_v19 = vsub.f32 %v325_v7, %v8336_v0  ;;  %v10620_v41 = vand.u32 4294901760, %v8340_v43 }
  0xbf   :  { %2515 = vmatprep.mubr.f32.mxu0 %v2514_v30  ;;  %v11045_v7 = vand.u32 4294901760, %v8333_v63 }
  0xc0   :  { %1174 = vmatmul.mubr.f32.gmra.mrb[6].mxu1 %v11039_v18  ;;  %v2549_v30 = vsub.f32 %v8302_v35, %v11041_v37  ;;  %v2558_v4 = vsub.f32 %v8315_v38, %v10615_v9  ;;  %v11044_v37 = vld [vmem:[#allocation27_spill] sm:$0xff] }
  0xc1   :  { %1179 = vmatprep.mubr.f32.mxu1 %v11040_v8  ;;  %v2564_v56 = vsub.f32 %v8333_v63, %v11045_v7  ;;  %v11047_v38 = vld [vmem:[#allocation63_spill] sm:$0xff]  ;;  %v11049_v7 = vld [vmem:[#allocation72_spill] sm:$0xff] }
  0xc2   :  { %2521 = vmatmul.mubr.f32.gmra.mrb[8].mxu0 %v2520_v34  ;;  %v11042_v34 = vld [vmem:[#allocation56_spill] sm:$0xff]  ;;  %v2550_v42 = vand.u32 4294901760, %v2549_v30  ;;  %v2559_v9 = vand.u32 4294901760, %v2558_v4  ;;  %v11048_v35 = vld [vmem:[#allocation71_spill] sm:$0xff] }
  0xc3   :  { %2530 = vmatprep.mubr.f32.mxu0 %v2529_v33  ;;  %2645 = vmatpush1.xpose.msra.mxu0 %v2644_v36  ;;  %v10621_v33 = vand.u32 4294901760, %v8351_v19  ;;  %v11046_v36 = vld [vmem:[#allocation37_spill] sm:$0xff] }
  0xc4   :  { %1181 = vmatmul.mubr.f32.gmra.mrb[8].mxu1 %v11042_v34  ;;  %6285 = vmatprep.subr.bf16.mxu0 %v6284_v51  ;;  %v2573_v51 = vsub.f32 %v8340_v43, %v10620_v41  ;;  %v11052_v41 = vld [vmem:[#allocation86_spill] sm:$0xff] }
  0xc5   :  { %1186 = vmatprep.mubr.f32.mxu1 %v11043_v46  ;;  %1233 = vmatpush1.xpose.msra.mxu1 %v11044_v37  ;;  %v2579_v30 = vsub.f32 %v8351_v19, %v10621_v33 }
  0xc6   :  { %2536 = vmatmul.mubr.f32.gmra.mrb[10].mxu0 %v2535_v1  ;;  %6221 = vmatprep.subr.bf16.mxu1 %v11046_v36  ;;  %v2565_v1 = vand.u32 4294901760, %v2564_v56  ;;  %v2574_v37 = vand.u32 4294901760, %v2573_v51  ;;  %v11051_v36 = vld [vmem:[#allocation80_spill] sm:$0xff]  ;;  %v11054_v51 = vld [vmem:[#allocation41_spill] sm:$0xff] }
  0xc7   :  { %2545 = vmatprep.mubr.f32.mxu0 %v2544_v5  ;;  %v11050_v5 = vld [vmem:[#allocation79_spill] sm:$0xff]  ;;  %v2580_v4 = vand.u32 4294901760, %v2579_v30  ;;  %v11053_v56 = vld [vmem:[#allocation88_spill] sm:$0xff] }
  0xc8   :  { %1188 = vmatmul.mubr.f32.gmra.mrb[10].mxu1 %v11047_v38 }
  0xc9   :  { %1193 = vmatprep.mubr.f32.mxu1 %v11048_v35 }
  0xca   :  { %2551 = vmatmul.mubr.f32.gmra.mrb[12].mxu0 %v2550_v42  ;;  %v6286_v42 = vpack.c.bf16 %v8001_v62, %v7999_v3 }
  0xcb   :  { %2560 = vmatprep.mubr.f32.mxu0 %v2559_v9  ;;  %v6288_v9 = vpack.c.bf16 %v8041_v12, %v8036_v55 }
  0xcc   :  { %1195 = vmatmul.mubr.f32.gmra.mrb[12].mxu1 %v11049_v7 }
  0xcd   :  { %1200 = vmatprep.mubr.f32.mxu1 %v11050_v5 }
  0xce   :  { %2566 = vmatmul.mubr.f32.gmra.mrb[14].mxu0 %v2565_v1  ;;  %v11055_v1 = vld [vmem:[#allocation52_spill] sm:$0xff] }
  0xcf   :  { %2575 = vmatprep.mubr.f32.mxu0 %v2574_v37  ;;  %v11058_v37 = vld [vmem:[#allocation8_spill] sm:$0xff] }
  0xd0   :  { %1202 = vmatmul.mubr.f32.gmra.mrb[14].mxu1 %v11051_v36 }
  0xd1   :  { %1207 = vmatprep.mubr.f32.mxu1 %v11052_v41 }
  0xd2   :  { %2581 = vmatmul.mubr.f32.gmra.mrb[16].mxu0 %v2580_v4  ;;  %v11059_v4 = vand.u32 4294901760, %v11058_v37 }
  0xd3   :  { %2701 = vmatprep.mubr.f32.mxu0 %v7992_v6 }
  0xd4   :  { %1209 = vmatmul.mubr.f32.gmra.mrb[16].mxu1 %v11053_v56 }
  0xd5   :  { %1289 = vmatprep.mubr.f32.mxu1 %v7163_v52  ;;  %v6290_v52 = vpack.c.bf16 %v8108_v21, %v8093_v17 }
  0xd6   :  { %2703 = vmatmul.mubr.f32.vlgmr.msra.gmra.mrb[0].mxu0 %v7994_v13 }
  0xd7   :  { %6287 = vmatpush1.bf16.xpose.msra.mxu0 %v6286_v42  ;;  %2708 = vmatprep.mubr.f32.mxu0 %v8011_v14  ;;  %v1577_v42 = vsub.f32 %v11058_v37, %v11059_v4  ;;  %v11072_v4 = vld [vmem:[#allocation15_spill] sm:$0xff] }
  0xd8   :  { %1291 = vmatmul.mubr.f32.vlgmr.msra.gmra.mrb[0].mxu1 %v7181_v58  ;;  %6289 = vmatprep.subr.bf16.mxu0 %v6288_v9  ;;  %v11056_v58 = vld [vmem:[#allocation7_spill] sm:$0xff] }
  0xd9   :  { %1296 = vmatprep.mubr.f32.mxu1 %v7227_v29  ;;  %6223 = vmatpush1.bf16.xpose.msra.mxu1 %v11054_v51  ;;  %v11057_v30 = vand.u32 4294901760, %v11056_v58  ;;  %v1578_v51 = vand.u32 4294901760, %v1577_v42 }
  0xda   :  { %2710 = vmatmul.mubr.f32.gmra.mrb[2].mxu0 %v8045_v49  ;;  %6225 = vmatprep.subr.bf16.mxu1 %v11055_v1  ;;  %v11063_v1 = vld [vmem:[#allocation25_spill] sm:$0xff] }
  0xdb   :  { %2715 = vmatprep.mubr.f32.mxu0 %v8054_v39  ;;  %v1565_v29 = vsub.f32 %v11056_v58, %v11057_v30  ;;  %v11068_v30 = vld [vmem:[#allocation10_spill] sm:$0xff] }
  0xdc   :  { %1298 = vmatmul.mubr.f32.gmra.mrb[2].mxu1 %v11020_v31  ;;  %v11061_v31 = vld [vmem:[#allocation14_spill] sm:$0xff] }
  0xdd   :  { %1303 = vmatprep.mubr.f32.mxu1 %v11024_v24  ;;  %v11060_v24 = vld [vmem:[#allocation58_spill] sm:$0xff]  ;;  %v1566_v9 = vand.u32 4294901760, %v1565_v29  ;;  %v11070_v29 = vld [vmem:[#allocation12_spill] sm:$0xff] }
  0xde   :  { %2717 = vmatmul.mubr.f32.gmra.mrb[4].mxu0 %v8059_v2  ;;  %v11071_v37 = vand.u32 4294901760, %v11070_v29 }
  0xdf   :  { %2722 = vmatprep.mubr.f32.mxu0 %v8088_v26  ;;  %6291 = vmatpush1.bf16.xpose.msra.mxu0 %v6290_v52  ;;  %v11146_v26 = vld [vmem:[#allocation74_spill] sm:$0xff] }
  0xe0   :  { %1305 = vmatmul.mubr.f32.gmra.mrb[4].mxu1 %v11032_v53  ;;  %2790 = vmatprep.subr.mxu0 %v8157_v57  ;;  %v6228_v53 = vpack.c.bf16 %v1578_v51, %v1566_v9  ;;  %v11147_v2 = vand.u32 4294901760, %v11146_v26 }
  0xe1   :  { %1310 = vmatprep.mubr.f32.mxu1 %v11033_v25  ;;  %6227 = vmatpush1.bf16.xpose.msra.mxu1 %v11060_v24  ;;  %v11062_v25 = vld [vmem:[#allocation5_spill] sm:$0xff] }
  0xe2   :  { %2724 = vmatmul.mubr.f32.gmra.mrb[6].mxu0 %v8111_v47  ;;  %1369 = vmatprep.subr.mxu1 %v11061_v31  ;;  %v11074_v24 = vld [vmem:[#allocation45_spill] sm:$0xff] }
  0xe3   :  { %2729 = vmatprep.mubr.f32.mxu0 %v8136_v48  ;;  %v11075_v31 = vand.u32 4294901760, %v11074_v24  ;;  %v8581_v48 = vld [vmem:[%s10321_s2 + $0x38] sm:$0xff] }
  0xe4   :  { %1312 = vmatmul.mubr.f32.gmra.mrb[6].mxu1 %v11039_v18 }
  0xe5   :  { %1317 = vmatprep.mubr.f32.mxu1 %v11040_v8  ;;  %v11064_v8 = vld [vmem:[#allocation24_spill] sm:$0xff]  ;;  %v1444_v9 = vsub.f32 %v11074_v24, %v11075_v31 }
  0xe6   :  { %2731 = vmatmul.mubr.f32.gmra.mrb[8].mxu0 %v8175_v40  ;;  %v11065_v18 = vand.u32 4294901760, %v11064_v8 }
  0xe7   :  { %2736 = vmatprep.mubr.f32.mxu0 %v8198_v23  ;;  %2793 = vmatpush1.xpose.msra.mxu0 %v8227_v59  ;;  %v11130_v23 = vld [vmem:[#allocation33_spill] sm:$0xff] }
  0xe8   :  { %1319 = vmatmul.mubr.f32.gmra.mrb[8].mxu1 %v11042_v34  ;;  %6293 = vmatprep.subr.bf16.mxu0 %v11062_v25  ;;  %v1429_v34 = vsub.f32 %v11064_v8, %v11065_v18 }
  0xe9   :  { %1324 = vmatprep.mubr.f32.mxu1 %v11043_v46  ;;  %1371 = vmatpush1.xpose.msra.mxu1 %v11063_v1  ;;  %v11066_v46 = vld [vmem:[#allocation9_spill] sm:$0xff] }
  0xea   :  { %2738 = vmatmul.mubr.f32.gmra.mrb[10].mxu0 %v8223_v60  ;;  %6229 = vmatprep.subr.bf16.mxu1 %v6228_v53  ;;  %v11067_v52 = vand.u32 4294901760, %v11066_v46  ;;  %v1430_v51 = vand.u32 4294901760, %v1429_v34 }
  0xeb   :  { %2743 = vmatprep.mubr.f32.mxu0 %v8230_v61  ;;  %v25_v61 = vld [vmem:[%s10319_s0 + $0x20] sm:$0xff] }
  0xec   :  { %1326 = vmatmul.mubr.f32.gmra.mrb[10].mxu1 %v11047_v38  ;;  %v1571_v58 = vsub.f32 %v11066_v46, %v11067_v52  ;;  %v11069_v38 = vand.u32 4294901760, %v11068_v30  ;;  %v11076_v46 = vld [vmem:[#allocation31_spill] sm:$0xff] }
  0xed   :  { %1331 = vmatprep.mubr.f32.mxu1 %v11048_v35  ;;  %v1436_v52 = vand.u32 4294901760, %v11076_v46  ;;  %v11087_v46 = vld [vmem:[#allocation54_spill] sm:$0xff] }
  0xee   :  { %2745 = vmatmul.mubr.f32.gmra.mrb[12].mxu0 %v8265_v45  ;;  %v1583_v35 = vsub.f32 %v11068_v30, %v11069_v38  ;;  %v1572_v53 = vand.u32 4294901760, %v1571_v58  ;;  %v11077_v30 = vld [vmem:[#allocation46_spill] sm:$0xff] }
  0xef   :  { %2750 = vmatprep.mubr.f32.mxu0 %v8278_v20  ;;  %v11078_v38 = vand.u32 4294901760, %v11077_v30 }
  0xf0   :  { %1333 = vmatmul.mubr.f32.gmra.mrb[12].mxu1 %v11049_v7  ;;  %v1589_v7 = vsub.f32 %v11070_v29, %v11071_v37  ;;  %v1584_v1 = vand.u32 4294901760, %v1583_v35  ;;  %v11081_v37 = vld [vmem:[#allocation16_spill] sm:$0xff] }
  0xf1   :  { %1338 = vmatprep.mubr.f32.mxu1 %v11050_v5  ;;  %v11073_v5 = vand.u32 4294901760, %v11072_v4  ;;  %v1450_v29 = vsub.f32 %v11077_v30, %v11078_v38  ;;  %v11088_v30 = vand.u32 4294901760, %v11087_v46 }
  0xf2   :  { %2752 = vmatmul.mubr.f32.gmra.mrb[14].mxu0 %v8306_v15  ;;  %v1590_v8 = vand.u32 4294901760, %v1589_v7  ;;  %v6230_v35 = vpack.c.bf16 %v1584_v1, %v1572_v53  ;;  %v11082_v7 = vand.u32 4294901760, %v11081_v37  ;;  %v11124_v15 = vld [vmem:[#allocation89_spill] sm:$0xff] }
  0xf3   :  { %v1601_v42 = vsub.f32 %v11072_v4, %v11073_v5  ;;  %2757 = vmatprep.mubr.f32.mxu0 %v8317_v54  ;;  %v11083_v5 = vld [vmem:[#allocation18_spill] sm:$0xff]  ;;  %v1451_v31 = vand.u32 4294901760, %v1450_v29  ;;  %v1474_v38 = vsub.f32 %v11087_v46, %v11088_v30  ;;  %v11125_v20 = vand.u32 4294901760, %v11124_v15 }
  0xf4   :  { %1340 = vmatmul.mubr.f32.gmra.mrb[14].mxu1 %v11051_v36  ;;  %v1445_v36 = vand.u32 4294901760, %v1444_v9  ;;  %v1595_v4 = vsub.f32 %v11081_v37, %v11082_v7  ;;  %v11085_v9 = vld [vmem:[#allocation49_spill] sm:$0xff] }
  0xf5   :  { %1345 = vmatprep.mubr.f32.mxu1 %v11052_v41  ;;  %v1602_v18 = vand.u32 4294901760, %v1601_v42  ;;  %v11079_v41 = vld [vmem:[#allocation47_spill] sm:$0xff]  ;;  %v11084_v42 = vand.u32 4294901760, %v11083_v5  ;;  %v1475_v7 = vand.u32 4294901760, %v1474_v38  ;;  %v11100_v38 = vld [vmem:[#allocation70_spill] sm:$0xff] }
  0xf6   :  { %2759 = vmatmul.mubr.f32.gmra.mrb[16].mxu0 %v8336_v0  ;;  %v11080_v34 = vand.u32 4294901760, %v11079_v41 }
  0xf7   :  { %2850 = vmatprep.mubr.f32.mxu0 %v8018_v27  ;;  %v1607_v24 = vsub.f32 %v11083_v5, %v11084_v42 }
  0xf8   :  { %1347 = vmatmul.mubr.f32.gmra.mrb[16].mxu1 %v11053_v56  ;;  %v1459_v58 = vsub.f32 %v11079_v41, %v11080_v34  ;;  %v6232_v56 = vpack.c.bf16 %v1602_v18, %v1590_v8  ;;  %v1596_v8 = vand.u32 4294901760, %v1595_v4 }
  0xf9   :  { %1431 = vmatprep.mubr.f32.mxu1 %v1430_v51  ;;  %v11086_v51 = vand.u32 4294901760, %v11085_v9  ;;  %v1608_v18 = vand.u32 4294901760, %v1607_v24 }
  0xfa   :  { %2853 = vmatmul.mubr.f32.vlgmr.msra.gmra.mrb[0].mxu0 %v8021_v11  ;;  %v1460_v1 = vand.u32 4294901760, %v1459_v58 }
  0xfb   :  { %6295 = vmatpush1.bf16.xpose.msra.mxu0 %v7904_v50  ;;  %2859 = vmatprep.mubr.f32.mxu0 %v8052_v32  ;;  %v1465_v53 = vsub.f32 %v11085_v9, %v11086_v51  ;;  %v6234_v42 = vpack.c.bf16 %v1608_v18, %v1596_v8  ;;  %v11096_v9 = vld [vmem:[#allocation28_spill] sm:$0xff]  ;;  %v11097_v51 = vld [vmem:[#allocation66_spill] sm:$0xff] }
  0xfc   :  { %1437 = vmatmul.mubr.f32.vlgmr.msra.gmra.mrb[0].mxu1 %v1436_v52  ;;  %6297 = vmatprep.subr.bf16.mxu0 %v7915_v10  ;;  %v11089_v52 = vld [vmem:[#allocation21_spill] sm:$0xff]  ;;  %v11102_v18 = vld [vmem:[#allocation30_spill] sm:$0xff] }
  0xfd   :  { %1446 = vmatprep.mubr.f32.mxu1 %v1445_v36  ;;  %6231 = vmatpush1.bf16.xpose.msra.mxu1 %v6230_v35  ;;  %v11090_v29 = vand.u32 4294901760, %v11089_v52  ;;  %v1466_v34 = vand.u32 4294901760, %v1465_v53  ;;  %v11091_v36 = vld [vmem:[#allocation61_spill] sm:$0xff]  ;;  %v11098_v53 = vand.u32 4294901760, %v11097_v51 }
  0xfe   :  { %2862 = vmatmul.mubr.f32.gmra.mrb[2].mxu0 %v8075_v22  ;;  %6233 = vmatprep.subr.bf16.mxu1 %v6232_v56  ;;  %v11092_v58 = vand.u32 4294901760, %v11091_v36  ;;  %v11093_v35 = vld [vmem:[#allocation65_spill] sm:$0xff]  ;;  %v11095_v56 = vld [vmem:[#allocation55_spill] sm:$0xff] }
  0xff   :  { %v1613_v41 = vsub.f32 %v11089_v52, %v11090_v29  ;;  %2868 = vmatprep.mubr.f32.mxu0 %v8086_v16  ;;  %v11094_v4 = vand.u32 4294901760, %v11093_v35  ;;  %v1495_v46 = vsub.f32 %v11097_v51, %v11098_v53  ;;  %v11101_v52 = vand.u32 4294901760, %v11100_v38 }
 0x100   :  { %1452 = vmatmul.mubr.f32.gmra.mrb[2].mxu1 %v1451_v31  ;;  %v1480_v37 = vsub.f32 %v11091_v36, %v11092_v58  ;;  %v11103_v29 = vand.u32 4294901760, %v11102_v18  ;;  %v11104_v36 = vld [vmem:[#allocation67_spill] sm:$0xff] }
 0x101   :  { %1461 = vmatprep.mubr.f32.mxu1 %v1460_v1  ;;  %v1489_v5 = vsub.f32 %v11093_v35, %v11094_v4  ;;  %v1614_v24 = vand.u32 4294901760, %v1613_v41  ;;  %v11099_v1 = vld [vmem:[#allocation6_spill] sm:$0xff]  ;;  %v1504_v8 = vsub.f32 %v11100_v38, %v11101_v52  ;;  %v1496_v58 = vand.u32 4294901760, %v1495_v46  ;;  %v11115_v46 = vld [vmem:[#allocation81_spill] sm:$0xff] }
 0x102   :  { %2871 = vmatmul.mubr.f32.gmra.mrb[4].mxu0 %v8103_v44  ;;  %v1481_v31 = vand.u32 4294901760, %v1480_v37  ;;  %v1619_v41 = vsub.f32 %v11102_v18, %v11103_v29  ;;  %v11106_v37 = vld [vmem:[#allocation73_spill] sm:$0xff]  ;;  %v11108_v4 = vand.u32 4294901760, %v7907_v28  ;;  %v11111_v38 = vld [vmem:[#allocation78_spill] sm:$0xff]  ;;  %v11113_v29 = vld [vmem:[#allocation96_spill] sm:$0xff]  ;;  %v11116_v33 = vand.u32 4294901760, %v11115_v46 }
 0x103   :  { %2877 = vmatprep.mubr.f32.mxu0 %v11095_v56  ;;  %6299 = vmatpush1.bf16.xpose.msra.mxu0 %v11096_v9  ;;  %v1490_v30 = vand.u32 4294901760, %v1489_v5  ;;  %v11107_v35 = vand.u32 4294901760, %v11106_v37  ;;  %v11109_v5 = vld [vmem:[#allocation19_spill] sm:$0xff]  ;;  %v1505_v53 = vand.u32 4294901760, %v1504_v8  ;;  %v11112_v52 = vand.u32 4294901760, %v11111_v38 }
 0x104   :  { %1467 = vmatmul.mubr.f32.gmra.mrb[4].mxu1 %v1466_v34  ;;  %2947 = vmatprep.subr.mxu0 %v11099_v1  ;;  %v11105_v34 = vld [vmem:[#allocation84_spill] sm:$0xff]  ;;  %v11110_v51 = vand.u32 4294901760, %v11109_v5 }
 0x105   :  { %1476 = vmatprep.mubr.f32.mxu1 %v1475_v7  ;;  %6235 = vmatpush1.bf16.xpose.msra.mxu1 %v6234_v42  ;;  %v1510_v7 = vsub.f32 %v11106_v37, %v11107_v35  ;;  %v1519_v18 = vsub.f32 %v11111_v38, %v11112_v52  ;;  %v1525_v37 = vsub.f32 %v11115_v46, %v11116_v33  ;;  %v11117_v35 = vld [vmem:[#allocation11_spill] sm:$0xff]  ;;  %v26_v33 = vld [vmem:[%s10319_s0 + $0x28] sm:$0xff] }
 0x106   :  { %2880 = vmatmul.mubr.f32.gmra.mrb[6].mxu0 %v11104_v36  ;;  %1615 = vmatprep.subr.mxu1 %v1614_v24  ;;  %v6300_v42 = vpack.c.bf16 %v11110_v51, %v11108_v4  ;;  %v1620_v24 = vand.u32 4294901760, %v1619_v41  ;;  %v11118_v4 = vld [vmem:[#allocation87_spill] sm:$0xff]  ;;  %v22_v41 = vld [vmem:[%s10319_s0 + $0x8] sm:$0xff] }
 0x107   :  { %2886 = vmatprep.mubr.f32.mxu0 %v11105_v34  ;;  %v1511_v28 = vand.u32 4294901760, %v1510_v7  ;;  %v1520_v5 = vand.u32 4294901760, %v1519_v18  ;;  %v5817_v7 = vld [vmem:[%s10319_s0 + $0x128] sm:$0xff]  ;;  %v11121_v38 = vld [vmem:[#allocation91_spill] sm:$0xff]  ;;  %v1526_v18 = vand.u32 4294901760, %v1525_v37  ;;  %v1540_v37 = vsub.f32 %v11124_v15, %v11125_v20 }
 0x108   :  { %1482 = vmatmul.mubr.f32.gmra.mrb[6].mxu1 %v1481_v31  ;;  %v11114_v31 = vld [vmem:[#allocation99_spill] sm:$0xff]  ;;  %v11120_v51 = vld [vmem:[#allocation90_spill] sm:$0xff]  ;;  %v10637_v52 = vand.u32 4294901760, %v11121_v38 }
 0x109   :  { %1491 = vmatprep.mubr.f32.mxu1 %v1490_v30  ;;  %v11119_v30 = vand.u32 4294901760, %v11118_v4  ;;  %v11122_v46 = vld [vmem:[#allocation102_spill] sm:$0xff]  ;;  %v11128_v20 = vld [vmem:[#allocation95_spill] sm:$0xff]  ;;  %v1541_v40 = vand.u32 4294901760, %v1540_v37  ;;  %v11135_v37 = vand.u32 4294901760, %v8036_v55  ;;  %v33_v55 = vld [vmem:[%s10319_s0 + $0x60] sm:$0xff] }
 0x10a   :  { %2889 = vmatmul.mubr.f32.gmra.mrb[8].mxu0 %v11113_v29  ;;  %v3571_v0 = vsub.f32 %v11121_v38, %v10637_v52  ;;  %v5816_v52 = vld [vmem:[%s10319_s0 + $0x120] sm:$0xff]  ;;  %v11129_v15 = vand.u32 4294901760, %v11128_v20  ;;  %v11245_v38 = vld [vmem:[#allocation103_spill] sm:$0xff] }
 0x10b   :  { %2895 = vmatprep.mubr.f32.mxu0 %v11114_v31  ;;  %2949 = vmatpush1.xpose.msra.mxu0 %v11117_v35  ;;  %v1534_v8 = vsub.f32 %v11118_v4, %v11119_v30  ;;  %v21_v4 = vld [vmem:[%s10319_s0] sm:$0xff] }
 0x10c   :  { %1497 = vmatmul.mubr.f32.gmra.mrb[8].mxu1 %v1496_v58  ;;  %6301 = vmatprep.subr.bf16.mxu0 %v6300_v42  ;;  %v5813_v58 = vld [vmem:[%s10319_s0 + $0x108] sm:$0xff]  ;;  %v10636_v42 = vand.u32 4294901760, %v11120_v51  ;;  %v3572_v35 = vand.u32 4294901760, %v3571_v0  ;;  %v8586_v0 = vld [vmem:[%s10321_s2 + $0x90] sm:$0xff] }
 0x10d   :  { %1506 = vmatprep.mubr.f32.mxu1 %v1505_v53  ;;  %1621 = vmatpush1.xpose.msra.mxu1 %v1620_v24  ;;  %v10630_v53 = vmov 0.0|0.0   ;;  %v11123_v24 = vld [vmem:[#allocation104_spill] sm:$0xff]  ;;  %v1535_v54 = vand.u32 4294901760, %v1534_v8  ;;  %v151_v45 = vmax.f32 %v5813_v58, %v5817_v7  ;;  %v5821_v58 = vld [vmem:[%s10319_s0 + $0x148] sm:$0xff] }
 0x10e   :  { %2898 = vmatmul.mubr.f32.gmra.mrb[10].mxu0 %v11122_v46  ;;  %6448 = vmatprep.subr.bf16.mxu1 %v10630_v53  ;;  %v3564_v30 = vsub.f32 %v11120_v51, %v10636_v42  ;;  %v66_v53 = vmax.f32 %v22_v41, %v26_v33  ;;  %v5812_v42 = vld [vmem:[%s10319_s0 + $0x100] sm:$0xff]  ;;  %v1555_v41 = vsub.f32 %v11128_v20, %v11129_v15  ;;  %v30_v33 = vld [vmem:[%s10319_s0 + $0x48] sm:$0xff] }
 0x10f   :  { %2904 = vmatprep.mubr.f32.mxu0 %v11123_v24  ;;  %v138_v20 = vmax.f32 %v5812_v42, %v5816_v52  ;;  %v152_v47 = vmax.f32 %v151_v45, %v5821_v58  ;;  %v34_v52 = vld [vmem:[%s10319_s0 + $0x68] sm:$0xff]  ;;  %v11134_v45 = vand.u32 4294901760, %v8001_v62 }
 0x110   :  { %1512 = vmatmul.mubr.f32.gmra.mrb[10].mxu1 %v1511_v28  ;;  %v11126_v28 = vld [vmem:[#allocation93_spill] sm:$0xff]  ;;  %v3565_v7 = vand.u32 4294901760, %v3564_v30  ;;  %v67_v30 = vmax.f32 %v66_v53, %v30_v33  ;;  %v1556_v42 = vand.u32 4294901760, %v1555_v41  ;;  %v11133_v53 = vand.u32 4294901760, %v7999_v3  ;;  %v8609_v41 = vld [vmem:[%s10321_s2 + $0xf0] sm:$0xff] }
 0x111   :  { %1521 = vmatprep.mubr.f32.mxu1 %v1520_v5  ;;  %v11127_v8 = vand.u32 4294901760, %v11126_v28  ;;  %v11131_v5 = vld [vmem:[#allocation108_spill] sm:$0xff]  ;;  %v8614_v33 = vld [vmem:[%s10321_s2 + $0x148] sm:$0xff] }
 0x112   :  { %2907 = vmatmul.mubr.f32.gmra.mrb[12].mxu0 %v11130_v23  ;;  %v8576_v15 = vpack.c.bf16 %v3572_v35, %v3565_v7  ;;  %v11137_v58 = vld [vmem:[#allocation26_spill] sm:$0xff]  ;;  %v68_v62 = vmax.f32 %v67_v30, %v34_v52 }
 0x113   :  { %v1549_v60 = vsub.f32 %v11126_v28, %v11127_v8  ;;  %2913 = vmatprep.mubr.f32.mxu0 %v11131_v5  ;;  %v29_v28 = vld [vmem:[%s10319_s0 + $0x40] sm:$0xff]  ;;  %v53_v8 = vmax.f32 %v21_v4, %v25_v61  ;;  %v6302_v4 = vpack.c.bf16 %v11134_v45, %v11133_v53  ;;  %v11138_v7 = vld [vmem:[#allocation106_spill] sm:$0xff] }
 0x114   :  { %11132 = vst [vmem:[#allocation42_spill] sm:$0xff] %v8576_v15  ;;  %1527 = vmatmul.mubr.f32.gmra.mrb[12].mxu1 %v1526_v18  ;;  %v5820_v61 = vld [vmem:[%s10319_s0 + $0x140] sm:$0xff]  ;;  %v5825_v18 = vld [vmem:[%s10319_s0 + $0x168] sm:$0xff]  ;;  %v11139_v15 = vand.u32 4294901760, %v11137_v58  ;;  %v11140_v9 = vand.u32 4294901760, %v11138_v7 }
 0x115   :  { %1536 = vmatprep.mubr.f32.mxu1 %v1535_v54  ;;  %v1550_v35 = vand.u32 4294901760, %v1549_v60  ;;  %v11136_v60 = vand.u32 4294901760, %v8041_v12  ;;  %v8624_v53 = vld [vmem:[%s10321_s2 + $0xe8] sm:$0xff]  ;;  %v8629_v45 = vld [vmem:[%s10321_s2 + $0x140] sm:$0xff]  ;;  %v153_v3 = vmax.f32 %v152_v47, %v5825_v18 }
 0x116   :  { %2916 = vmatmul.mubr.f32.gmra.mrb[14].mxu0 %v8333_v63  ;;  %v5824_v12 = vld [vmem:[%s10319_s0 + $0x160] sm:$0xff]  ;;  %v3578_v1 = vsub.f32 %v11137_v58, %v11139_v15  ;;  %v5829_v52 = vld [vmem:[%s10319_s0 + $0x188] sm:$0xff] }
 0x117   :  { %v6304_v54 = vpack.c.bf16 %v11136_v60, %v11135_v37  ;;  %2922 = vmatprep.mubr.f32.mxu0 %v8340_v43  ;;  %v54_v37 = vmax.f32 %v53_v8, %v29_v28  ;;  %v139_v60 = vmax.f32 %v138_v20, %v5820_v61  ;;  %v3585_v28 = vsub.f32 %v11138_v7, %v11140_v9  ;;  %v11144_v61 = vld [vmem:[#allocation69_spill] sm:$0xff] }
 0x118   :  { %1542 = vmatmul.mubr.f32.gmra.mrb[14].mxu1 %v1541_v40  ;;  %v11141_v40 = vand.u32 4294901760, %v8581_v48  ;;  %v11142_v8 = vand.u32 4294901760, %v8586_v0  ;;  %v3579_v18 = vand.u32 4294901760, %v3578_v1  ;;  %v11145_v30 = vand.u32 4294901760, %v11144_v61 }
 0x119   :  { %1551 = vmatprep.mubr.f32.mxu1 %v1550_v35  ;;  %v38_v35 = vld [vmem:[%s10319_s0 + $0x88] sm:$0xff]  ;;  %v11149_v9 = vand.u32 4294901760, %v8609_v41  ;;  %v55_v49 = vmax.f32 %v54_v37, %v33_v55  ;;  %v140_v10 = vmax.f32 %v139_v60, %v5824_v12  ;;  %v11150_v1 = vand.u32 4294901760, %v8614_v33  ;;  %v37_v55 = vld [vmem:[%s10319_s0 + $0x80] sm:$0xff] }
 0x11a   :  { %v8646_v47 = vsub.f32 %v8581_v48, %v11141_v40  ;;  %v8651_v20 = vsub.f32 %v8586_v0, %v11142_v8  ;;  %2925 = vmatmul.mubr.f32.gmra.mrb[16].mxu0 %v8351_v19  ;;  %v3586_v40 = vand.u32 4294901760, %v3585_v28  ;;  %v11143_v8 = vand.u32 4294901760, %v8018_v27  ;;  %v11154_v37 = vld [vmem:[#allocation20_spill] sm:$0xff] }
 0x11b   :  { %v8670_v15 = vpack.c.bf16 %v11147_v2, %v11145_v30  ;;  %v8675_v39 = vsub.f32 %v8609_v41, %v11149_v9  ;;  %v8680_v28 = vsub.f32 %v8614_v33, %v11150_v1  ;;  %v11151_v27 = vand.u32 4294901760, %v8624_v53 }
 0x11c   :  { %3007 = vmatprep.mubr.f32.mxu0 %v11143_v8  ;;  %1557 = vmatmul.mubr.f32.gmra.mrb[16].mxu1 %v1556_v42  ;;  %v11152_v2 = vand.u32 4294901760, %v8629_v45  ;;  %v5828_v42 = vld [vmem:[%s10319_s0 + $0x180] sm:$0xff]  ;;  %v8698_v12 = vpack.c.bf16 %v3586_v40, %v3579_v18  ;;  %v69_v60 = vmax.f32 %v68_v62, %v38_v35  ;;  %v154_v30 = vmax.f32 %v153_v3, %v5829_v52  ;;  %v5833_v18 = vld [vmem:[%s10319_s0 + $0x1a8] sm:$0xff] }
 0x11d   :  { %11148 = vst [vmem:[#allocation13_spill] sm:$0xff] %v8670_v15  ;;  %v8685_v61 = vsub.f32 %v8624_v53, %v11151_v27  ;;  %1677 = vmatprep.mubr.f32.mxu1 %v11154_v37  ;;  %v10658_v9 = vand.u32 4294901760, %v8646_v47  ;;  %v10657_v8 = vand.u32 4294901760, %v8651_v20  ;;  %v11155_v1 = vand.u32 4294901760, %v8021_v11  ;;  %v42_v27 = vld [vmem:[%s10319_s0 + $0xa8] sm:$0xff]  ;;  %v11159_v37 = vld [vmem:[#allocation32_spill] sm:$0xff] }
 0x11e   :  { %v8690_v26 = vsub.f32 %v8629_v45, %v11152_v2  ;;  %11153 = vst [vmem:[#allocation17_spill] sm:$0xff] %v8698_v12  ;;  %v11156_v40 = vand.u32 4294901760, %v8052_v32  ;;  %v56_v3 = vmax.f32 %v55_v49, %v37_v55  ;;  %v141_v62 = vmax.f32 %v140_v10, %v5828_v42  ;;  %v11158_v35 = vld [vmem:[#allocation22_spill] sm:$0xff]  ;;  %v41_v55 = vld [vmem:[%s10319_s0 + $0xa0] sm:$0xff] }
 0x11f   :  { %3011 = vmatmul.mubr.f32.vlgmr.msra.gmra.mrb[0].mxu0 %v11155_v1  ;;  %v8717_v11 = vpack.c.bf16 %v10657_v8, %v10658_v9  ;;  %v10660_v52 = vand.u32 4294901760, %v8675_v39  ;;  %v10659_v2 = vand.u32 4294901760, %v8680_v28  ;;  %v70_v10 = vmax.f32 %v69_v60, %v42_v27  ;;  %v5837_v60 = vld [vmem:[%s10319_s0 + $0x1c8] sm:$0xff] }
 0x120   :  { %6303 = vmatpush1.bf16.xpose.msra.mxu0 %v6302_v4  ;;  %3018 = vmatprep.mubr.f32.mxu0 %v11156_v40  ;;  %v10662_v4 = vand.u32 4294901760, %v8685_v61  ;;  %v10661_v32 = vand.u32 4294901760, %v8690_v26  ;;  %v155_v49 = vmax.f32 %v154_v30, %v5833_v18  ;;  %v11160_v42 = vand.u32 4294901760, %v8075_v22  ;;  %v46_v40 = vld [vmem:[%s10319_s0 + $0xc8] sm:$0xff] }
 0x121   :  { %11157 = vst [vmem:[#allocation43_spill] sm:$0xff] %v8717_v11  ;;  %1679 = vmatmul.mubr.f32.vlgmr.msra.gmra.mrb[0].mxu1 %v11158_v35  ;;  %6305 = vmatprep.subr.bf16.mxu0 %v6304_v54  ;;  %v5832_v54 = vld [vmem:[%s10319_s0 + $0x1a0] sm:$0xff]  ;;  %v11161_v1 = vmov 0.0|0.0   ;;  %v8745_v30 = vpack.c.bf16 %v10659_v2, %v10660_v52  ;;  %v11164_v27 = vand.u32 4294901760, %v8086_v16  ;;  %v11165_v18 = vand.u32 4294901760, %v8093_v17 }
 0x122   :  { %1684 = vmatprep.mubr.f32.mxu1 %v11159_v37  ;;  %6451 = vmatpush3.bf16.xpose.msra.mxu1 %v8670_v15  ;;  %v8751_v22 = vpack.c.bf16 %v10661_v32, %v10662_v4  ;;  %v11166_v35 = vand.u32 4294901760, %v8108_v21  ;;  %v57_v8 = vmax.f32 %v56_v3, %v41_v55  ;;  %v142_v9 = vmax.f32 %v141_v62, %v5832_v54  ;;  %v11168_v2 = vld [vmem:[#allocation36_spill] sm:$0xff]  ;;  %v11171_v11 = vld [vmem:[#allocation101_spill] sm:$0xff] }
 0x123   :  { %3022 = vmatmul.mubr.f32.gmra.mrb[2].mxu0 %v11160_v42  ;;  %6449 = vmatprep.subr.bf16.mxu1 %v11161_v1  ;;  %11162 = vst [vmem:[#allocation53_spill] sm:$0xff] %v8745_v30  ;;  %v11167_v42 = vld [vmem:[#allocation35_spill] sm:$0xff]  ;;  %v11169_v52 = vld [vmem:[#allocation100_spill] sm:$0xff]  ;;  %v11172_v12 = vand.u32 4294901760, %v11171_v11  ;;  %v71_v4 = vmax.f32 %v70_v10, %v46_v40  ;;  %v156_v16 = vmax.f32 %v155_v49, %v5837_v60  ;;  %v11174_v3 = vand.u32 4294901760, %v8103_v44  ;;  %v50_v62 = vld [vmem:[%s10319_s0 + $0xe8] sm:$0xff] }
 0x124   :  { %11163 = vst [vmem:[#allocation56_spill] sm:$0xff] %v8751_v22  ;;  %3029 = vmatprep.mubr.f32.mxu0 %v11164_v27  ;;  %v6306_v37 = vpack.c.bf16 %v11166_v35, %v11165_v18  ;;  %v11170_v30 = vand.u32 4294901760, %v11169_v52  ;;  %v45_v17 = vld [vmem:[%s10319_s0 + $0xc0] sm:$0xff]  ;;  %v11175_v11 = vand.u32 4294901760, %v11095_v56  ;;  %v8791_v44 = vld [vmem:[%s10321_s2 + $0x98] sm:$0xff]  ;;  %v11177_v10 = vand.u32 4294901760, %v8157_v57 }
 0x125   :  { %1686 = vmatmul.mubr.f32.gmra.mrb[2].mxu1 %v11167_v42  ;;  %v5836_v21 = vld [vmem:[%s10319_s0 + $0x1c0] sm:$0xff]  ;;  %v58_v49 = vmax.f32 %v57_v8, %v45_v17  ;;  %v72_v54 = vmax.f32 %v71_v4, %v50_v62  ;;  %v11179_v27 = vand.u32 4294901760, %v11104_v36  ;;  %v10668_v57 = vmov 0.0   ;;  %v11181_v35 = vld [vmem:[#allocation51_spill] sm:$0xff] }
 0x126   :  { %1691 = vmatprep.mubr.f32.mxu1 %v11168_v2  ;;  %v8765_v32 = vpack.c.bf16 %v11172_v12, %v11170_v30  ;;  %v5841_v12 = vld [vmem:[%s10319_s0 + $0x1e8] sm:$0xff]  ;;  %v8786_v52 = vld [vmem:[%s10321_s2 + $0x40] sm:$0xff]  ;;  %v143_v55 = vmax.f32 %v142_v9, %v5836_v21  ;;  %v8810_v9 = vld [vmem:[%s10321_s2 + $0x190] sm:$0x7]  ;;  %v4591_v4 = vand.u32 4294901760, %v8791_v44  ;;  %v11180_v18 = vand.u32 4294901760, %v11105_v34 }
 0x127   :  { %3033 = vmatmul.mubr.f32.gmra.mrb[4].mxu0 %v11174_v3  ;;  %v11176_v2 = vld [vmem:[#allocation40_spill] sm:$0xff]  ;;  %v157_v40 = vmax.f32 %v156_v16, %v5841_v12  ;;  %v4587_v8 = vand.u32 4294901760, %v8786_v52  ;;  %v11182_v42 = vld [vmem:[#allocation59_spill] sm:$0xff]  ;;  %v8819_v16 = vand.u32 4294901760, %v8810_v9  ;;  %v73_v17 = vrot.slane %v72_v54, 4 }
 0x128   :  { %11173 = vst [vmem:[#allocation62_spill] sm:$0xff] %v8765_v32  ;;  %3040 = vmatprep.mubr.f32.mxu0 %v11175_v11  ;;  %6307 = vmatpush1.bf16.xpose.msra.mxu0 %v6306_v37  ;;  %v11178_v56 = vld [vmem:[#allocation44_spill] sm:$0xff]  ;;  %v11184_v3 = vand.u32 4294901760, %v11113_v29  ;;  %v11185_v62 = vand.u32 4294901760, %v11114_v31  ;;  %v11186_v12 = vand.u32 4294901760, %v8227_v59  ;;  %v11189_v31 = vand.u32 4294901760, %v11122_v46 }
 0x129   :  { %1693 = vmatmul.mubr.f32.gmra.mrb[4].mxu1 %v11176_v2  ;;  %3139 = vmatprep.subr.mxu0 %v11177_v10  ;;  %v49_v60 = vld [vmem:[%s10319_s0 + $0xe0] sm:$0xff]  ;;  %11183 = vst [vmem:[#allocation27_spill] sm:$0xff] %v8819_v16  ;;  %v158_v21 = vrot.slane %v157_v40, 4  ;;  %v8827_v34 = vpack.c.bf16 %v4591_v4, %v4587_v8  ;;  %v11190_v59 = vand.u32 4294901760, %v11123_v24  ;;  %v10663_v46 = vlaneseq }
 0x12a   :  { %1698 = vmatprep.mubr.f32.mxu1 %v11178_v56  ;;  %6452 = vmatpush3.bf16.xpose.msra.mxu1 %v8765_v32  ;;  %v5840_v30 = vld [vmem:[%s10319_s0 + $0x1e0] sm:$0xff]  ;;  %v59_v37 = vmax.f32 %v58_v49, %v49_v60  ;;  %v74_v49 = vmax.f32 %v72_v54, %v73_v17  ;;  %v11243_v58 = vand.u32 4294901760, %v8646_v47  ;;  %v11244_v51 = vand.u32 4294901760, %v8651_v20 }
 0x12b   :  { %3044 = vmatmul.mubr.f32.gmra.mrb[6].mxu0 %v11179_v27  ;;  %6450 = vmatprep.subr.mxu1 %v10668_v57  ;;  %v144_v36 = vmax.f32 %v143_v55, %v5840_v30  ;;  %v11187_v11 = vld [vmem:[#allocation60_spill] sm:$0xff]  ;;  %v159_v55 = vmax.f32 %v157_v40, %v158_v21  ;;  %v11193_v40 = vand.u32 4294901760, %v11130_v23  ;;  %v11196_v21 = vld [vmem:[#allocation82_spill] sm:$0xff]  ;;  %v8857_v23 = vshrl.u32 %v10663_v46, 7  ;;  %v11234_v46 = vld [vmem:[#allocation85_spill] sm:$0xff] }
 0x12c   :  { %3051 = vmatprep.mubr.f32.mxu0 %v11180_v18  ;;  %v60_v2 = vrot.slane %v59_v37, 4  ;;  %v11188_v29 = vld [vmem:[#allocation64_spill] sm:$0xff]  ;;  %v75_v18 = vrot.slane %v74_v49, 2  ;;  %v4686_v7 = vsub.f32 %v8646_v47, %v11243_v58  ;;  %v11247_v22 = vand.u32 4294901760, %v8680_v28 }
 0x12d   :  { %1700 = vmatmul.mubr.f32.gmra.mrb[6].mxu1 %v11181_v35  ;;  %v145_v10 = vrot.slane %v144_v36, 4  ;;  %v11192_v27 = vld [vmem:[#allocation76_spill] sm:$0xff]  ;;  %v160_v54 = vrot.slane %v159_v55, 2  ;;  %v11194_v35 = vand.u32 4294901760, %v11131_v5  ;;  %11199 = vst [vmem:[#allocation37_spill] sm:$0xff] %v8857_v23  ;;  %v11200_v5 = vld [vmem:[#allocation83_spill] sm:$0xff] }
 0x12e   :  { %1705 = vmatprep.mubr.f32.mxu1 %v11182_v42  ;;  %v61_v60 = vmax.f32 %v59_v37, %v60_v2  ;;  %v11195_v42 = vld [vmem:[#allocation77_spill] sm:$0xff]  ;;  %v11201_v2 = vld [vmem:[#allocation92_spill] sm:$0xff]  ;;  %vm192_vm0 = vcmp.eq.s32.totalorder %v8857_v23, 0  ;;  %vm199_vm1 = vcmp.eq.s32.totalorder %v8857_v23, 1 }
 0x12f   :  { %3055 = vmatmul.mubr.f32.gmra.mrb[8].mxu0 %v11184_v3  ;;  %v146_v30 = vmax.f32 %v144_v36, %v145_v10  ;;  %v76_v3 = vmax.f32 %v74_v49, %v75_v18  ;;  %v161_v37 = vmax.f32 %v159_v55, %v160_v54  ;;  %v11197_v36 = vand.u32 4294901760, %v8333_v63  ;;  %v8864_v10 = vld [vmem:[%s10320_s1 + $0x68] sm:$0xff] }
 0x130   :  { %3062 = vmatprep.mubr.f32.mxu0 %v11185_v62  ;;  %3143 = vmatpush1.xpose.msra.mxu0 %v11186_v12  ;;  %v62_v17 = vrot.slane %v61_v60, 2  ;;  %v11198_v62 = vand.u32 4294901760, %v8340_v43  ;;  %v11202_v49 = vand.u32 4294901760, %v8351_v19  ;;  %v11203_v55 = vld [vmem:[#allocation94_spill] sm:$0xff]  ;;  %v8882_v19 = vld [vmem:[%s10320_s1 + $0xa0] sm:$0xff]  ;;  %v11235_v43 = vld [vmem:[#allocation11_spill] sm:$0xff] }
 0x131   :  { %1707 = vmatmul.mubr.f32.gmra.mrb[8].mxu1 %v11187_v11  ;;  %6309 = vmatprep.subr.bf16.mxu0 %v11062_v25  ;;  %v11191_v25 = vld [vmem:[#allocation68_spill] sm:$0xff]  ;;  %v147_v24 = vrot.slane %v146_v30, 2  ;;  %v162_v63 = vrot.slane %v161_v37, 1 }
 0x132   :  { %1712 = vmatprep.mubr.f32.mxu1 %v11188_v29  ;;  %6453 = vmatpush3.xpose.msra.mxu1 %v8819_v16  ;;  %v63_v12 = vmax.f32 %v61_v60, %v62_v17  ;;  %v77_v29 = vrot.slane %v76_v3, 1  ;;  %v8887_v60 = vsub.f32 %v8786_v52, %v4587_v8  ;;  %v11209_v52 = vand.u32 4294901760, %v8614_v33  ;;  %v11214_v33 = vld [vmem:[#allocation23_spill] sm:$0xff] }
 0x133   :  { %3066 = vmatmul.mubr.f32.gmra.mrb[10].mxu0 %v11189_v31  ;;  %6353 = vmatprep.subr.bf16.mxu1 %v8827_v34  ;;  %v148_v11 = vmax.f32 %v146_v30, %v147_v24  ;;  %v8875_v31 = vand.u32 4294901760, %v8864_v10  ;;  %v11205_v30 = vand.u32 4294901760, %v8581_v48  ;;  %v8910_v48 = vsel %vm192_vm0, 1.0, %v10668_v57  ;;  %v8929_v17 = vld [vmem:[%s10320_s1 + $0xd8] sm:$0xff] }
 0x134   :  { %3073 = vmatprep.mubr.f32.mxu0 %v11190_v59  ;;  %v64_v59 = vrot.slane %v63_v12, 1  ;;  %v78_v54 = vmax.f32 %v76_v3, %v77_v29  ;;  %11211 = vst [vmem:[#allocation79_spill] sm:$0xff] %v8910_v48  ;;  %v10665_v3 = vand.u32 4294901760, %v8887_v60  ;;  %v11218_v29 = vand.u32 4294901760, %v8624_v53  ;;  %v11223_v53 = vld [vmem:[#allocation48_spill] sm:$0xff] }
 0x135   :  { %1714 = vmatmul.mubr.f32.gmra.mrb[10].mxu1 %v11191_v25  ;;  %11204 = vst [vmem:[#allocation63_spill] sm:$0xff] %v8875_v31  ;;  %v149_v25 = vrot.slane %v148_v11, 1 }
 0x136   :  { %1719 = vmatprep.mubr.f32.mxu1 %v11192_v27  ;;  %v11206_v27 = vand.u32 4294901760, %v8586_v0  ;;  %v8915_v0 = vsel %vm199_vm1, 1.0, %v10668_v57 }
 0x137   :  { %3077 = vmatmul.mubr.f32.gmra.mrb[12].mxu0 %v11193_v40  ;;  %v163_v40 = vmax.f32 %v161_v37, %v162_v63  ;;  %11212 = vst [vmem:[#allocation80_spill] sm:$0xff] %v8915_v0  ;;  %v11219_v63 = vand.u32 4294901760, %v8629_v45  ;;  %v11224_v45 = vld [vmem:[#allocation28_spill] sm:$0xff] }
 0x138   :  { %3084 = vmatprep.mubr.f32.mxu0 %v11194_v35  ;;  %v8893_v18 = vpack.c.bf16 %v11206_v27, %v11205_v30  ;;  %v8899_v35 = vsub.f32 %v8791_v44, %v4591_v4  ;;  %v65_v44 = vmax.f32 %v63_v12, %v64_v59  ;;  %v150_v4 = vmax.f32 %v148_v11, %v149_v25  ;;  %v11222_v59 = vld [vmem:[#allocation39_spill] sm:$0xff] }
 0x139   :  { %1721 = vmatmul.mubr.f32.gmra.mrb[12].mxu1 %v11195_v42  ;;  %v11208_v42 = vand.u32 4294901760, %v8609_v41  ;;  %v8921_v41 = vand.u32 4294901760, %v8882_v19  ;;  %v203_v24 = vmul.f32 %v8915_v0, %v163_v40  ;;  %v4680_v30 = vsub.f32 %v8887_v60, %v10665_v3  ;;  %v11226_v40 = vld [vmem:[#allocation6_spill] sm:$0xff] }
 0x13a   :  { %1726 = vmatprep.mubr.f32.mxu1 %v11196_v21  ;;  %11207 = vst [vmem:[#allocation71_spill] sm:$0xff] %v8893_v18  ;;  %v11215_v21 = vld [vmem:[#allocation29_spill] sm:$0xff]  ;;  %v10664_v37 = vand.u32 4294901760, %v8899_v35  ;;  %v195_v12 = vmul.f32 %v8910_v48, %v65_v44  ;;  %v202_v11 = vmul.f32 %v8915_v0, %v150_v4  ;;  %v11229_v44 = vld [vmem:[#allocation50_spill] sm:$0xff]  ;;  %v261_v4 = vld [vmem:[%s10321_s2 + $0x198] sm:$0x7] }
 0x13b   :  { %3088 = vmatmul.mubr.f32.gmra.mrb[14].mxu0 %v11197_v36  ;;  %v8905_v8 = vpack.c.bf16 %v11209_v52, %v11208_v42  ;;  %11213 = vst [vmem:[#allocation86_spill] sm:$0xff] %v8921_v41  ;;  %v11216_v36 = vld [vmem:[#allocation38_spill] sm:$0xff]  ;;  %v11246_v0 = vand.u32 4294901760, %v8675_v39 }
 0x13c   :  { %3095 = vmatprep.mubr.f32.mxu0 %v11198_v62  ;;  %v8942_v62 = vld [vmem:[%s10321_s2 + $0x1a0] sm:$0x7]  ;;  %v4692_v27 = vsub.f32 %v8899_v35, %v10664_v37  ;;  %v8982_v42 = vadd.f32 %v202_v11, %v195_v12  ;;  %v8989_v52 = vld [vmem:[%s10320_s1 + $0x148] sm:$0xff] }
 0x13d   :  { %1728 = vmatmul.mubr.f32.gmra.mrb[14].mxu1 %v11200_v5  ;;  %11210 = vst [vmem:[#allocation72_spill] sm:$0xff] %v8905_v8  ;;  %v8946_v5 = vand.u32 4294901760, %v8929_v17  ;;  %v8967_v25 = vand.u32 4294901760, %v8942_v62  ;;  %11228 = vst [vmem:[#allocation58_spill] sm:$0xff] %v8989_v52  ;;  %v11230_v12 = vld [vmem:[#allocation57_spill] sm:$0xff]  ;;  %v9003_v11 = vand.u32 4294901760, %v8989_v52 }
 0x13e   :  { %1733 = vmatprep.mubr.f32.mxu1 %v11201_v2  ;;  %v8955_v2 = vld [vmem:[%s10320_s1 + $0x110] sm:$0xff]  ;;  %11227 = vst [vmem:[#allocation8_spill] sm:$0xff] %v8982_v42 }
 0x13f   :  { %3099 = vmatmul.mubr.f32.gmra.mrb[16].mxu0 %v11202_v49  ;;  %11217 = vst [vmem:[#allocation88_spill] sm:$0xff] %v8946_v5  ;;  %v8961_v49 = vpack.c.bf16 %v11219_v63, %v11218_v29  ;;  %11231 = vst [vmem:[#allocation14_spill] sm:$0xff] %v9003_v11  ;;  %v9006_v29 = vand.u32 4294901760, %v8982_v42  ;;  %v9013_v63 = vld [vmem:[%s10320_s1 + $0x180] sm:$0xff]  ;;  %v11239_v3 = vld [vmem:[#allocation98_spill] sm:$0xff] }
 0x140   :  { %3199 = vmatprep.mubr.f32.mxu0 %v7992_v6  ;;  %11232 = vst [vmem:[#allocation5_spill] sm:$0xff] %v9013_v63  ;;  %v9026_v56 = vand.u32 4294901760, %v9013_v63 }
 0x141   :  { %1735 = vmatmul.mubr.f32.gmra.mrb[16].mxu1 %v11203_v55  ;;  %11220 = vst [vmem:[#allocation41_spill] sm:$0xff] %v8961_v49  ;;  %v9030_v37 = vsub.f32 %v8982_v42, %v9006_v29  ;;  %v9054_v42 = vld [vmem:[%s10320_s1 + $0x1f0] sm:$0x3f] }
 0x142   :  { %6148 = vmatprep.mubr.msk.f32.mxu1 %vm6947_vm2, %v10668_v57  ;;  %11236 = vst [vmem:[#allocation25_spill] sm:$0xff] %v9026_v56  ;;  %11242 = vst [vmem:[#allocation10_spill] sm:$0xff] %v9054_v42  ;;  %v9075_v58 = vand.u32 4294901760, %v9054_v42  ;;  %v11252_v42 = vld [vmem:[#allocation109_spill] sm:$0xff] }
 0x143   :  { %3201 = vmatmul.mubr.f32.vlgmr.msra.gmra.mrb[0].mxu0 %v7994_v13 }
 0x144   :  { %6311 = vmatpush1.bf16.xpose.msra.mxu0 %v7904_v50  ;;  %3206 = vmatprep.mubr.f32.mxu0 %v8011_v14  ;;  %v196_v50 = vmul.f32 %v8910_v48, %v78_v54  ;;  %v8979_v54 = vand.u32 4294901760, %v8955_v2  ;;  %v4704_v48 = vsub.f32 %v8675_v39, %v11246_v0  ;;  %11249 = vst [vmem:[#allocation12_spill] sm:$0xff] %v9075_v58  ;;  %v4687_v0 = vand.u32 4294901760, %v4686_v7 }
 0x145   :  { %6149 = vmatmul.mubr.f32.vlgmr.msra.gmra.mrb[18].mxu1 %v8875_v31  ;;  %6313 = vmatprep.subr.bf16.mxu0 %v11214_v33 }
 0x146   :  { %6151 = vmatprep.mubr.msk.f32.mxu1 %vm6947_vm2, %v10668_v57  ;;  %6355 = vmatpush1.bf16.xpose.msra.mxu1 %v8893_v18  ;;  %v8963_v55 = vadd.f32 %v203_v24, %v196_v50  ;;  %11225 = vst [vmem:[#allocation7_spill] sm:$0xff] %v8979_v54  ;;  %v4681_v50 = vand.u32 4294901760, %v4680_v30  ;;  %v4693_v24 = vand.u32 4294901760, %v4692_v27  ;;  %v9015_v30 = vand.u32 4294901760, %v261_v4 }
 0x147   :  { %3208 = vmatmul.mubr.f32.gmra.mrb[2].mxu0 %v11215_v21  ;;  %6357 = vmatprep.subr.bf16.mxu1 %v8905_v8  ;;  %v11251_v8 = vld [vmem:[#allocation107_spill] sm:$0xff] }
 0x148   :  { %3213 = vmatprep.mubr.f32.mxu0 %v11216_v36  ;;  %11221 = vst [vmem:[#allocation52_spill] sm:$0xff] %v8963_v55  ;;  %v8993_v33 = vand.u32 4294901760, %v8963_v55 }
 0x149   :  { %6152 = vmatmul.mubr.f32.gmra.mrb[20].mxu1 %v8921_v41 }
 0x14a   :  { %6154 = vmatprep.mubr.msk.f32.mxu1 %vm6947_vm2, %v10668_v57  ;;  %v9019_v27 = vsub.f32 %v8963_v55, %v8993_v33  ;;  %v11241_v55 = vmov 0.0  }
 0x14b   :  { %3215 = vmatmul.mubr.f32.gmra.mrb[4].mxu0 %v11222_v59 }
 0x14c   :  { %3220 = vmatprep.mubr.f32.mxu0 %v11223_v53  ;;  %6315 = vmatpush1.bf16.xpose.msra.mxu0 %v11224_v45  ;;  %v11233_v45 = vld [vmem:[#allocation75_spill] sm:$0xff] }
 0x14d   :  { %6155 = vmatmul.mubr.f32.gmra.mrb[22].mxu1 %v8946_v5  ;;  %3279 = vmatprep.subr.mxu0 %v11226_v40  ;;  %v6360_v40 = vpack.c.bf16 %v4693_v24, %v4681_v50  ;;  %v9038_v50 = vld [vmem:[%s10320_s1 + $0x1b8] sm:$0xff]  ;;  %v11238_v24 = vld [vmem:[#allocation97_spill] sm:$0xff] }
 0x14e   :  { %6157 = vmatprep.mubr.msk.f32.mxu1 %vm6947_vm2, %v10668_v57  ;;  %6359 = vmatpush1.bf16.xpose.msra.mxu1 %v8961_v49  ;;  %11237 = vst [vmem:[#allocation24_spill] sm:$0xff] %v9038_v50  ;;  %v9046_v23 = vand.u32 4294901760, %v9038_v50  ;;  %v4716_v50 = vsub.f32 %v8680_v28, %v11247_v22  ;;  %v11248_v49 = vld [vmem:[#allocation105_spill] sm:$0xff]  ;;  %v4705_v22 = vand.u32 4294901760, %v4704_v48 }
 0x14f   :  { %3222 = vmatmul.mubr.f32.gmra.mrb[6].mxu0 %v11229_v44  ;;  %4604 = vmatprep.subr.mxu1 %v8967_v25 }
 0x150   :  { %3227 = vmatprep.mubr.f32.mxu0 %v11230_v12  ;;  %11240 = vst [vmem:[#allocation9_spill] sm:$0xff] %v9046_v23  ;;  %v4717_v18 = vand.u32 4294901760, %v4716_v50  ;;  %v11255_v50 = vld [vmem:[#allocation34_spill] sm:$0xff] }
 0x151   :  { %6158 = vmatmul.mubr.f32.gmra.mrb[24].mxu1 %v8979_v54 }
 0x152   :  { %6160 = vmatprep.mubr.msk.f32.mxu1 %vm6947_vm2, %v10668_v57 }
 0x153   :  { %3229 = vmatmul.mubr.f32.gmra.mrb[8].mxu0 %v11233_v45 }
 0x154   :  { %3234 = vmatprep.mubr.f32.mxu0 %v11234_v46  ;;  %3281 = vmatpush1.xpose.msra.mxu0 %v11235_v43  ;;  %v10683_v43 = vand.u32 4294901760, %v9019_v27 }
 0x155   :  { %6161 = vmatmul.mubr.f32.gmra.mrb[26].mxu1 %v9003_v11  ;;  %6316 = vmatprep.subr.bf16.mxu0 %v11161_v1  ;;  %v11253_v11 = vand.u32 4294901760, %v8685_v61 }
 0x156   :  { %6163 = vmatprep.mubr.msk.f32.mxu1 %vm6947_vm2, %v10668_v57  ;;  %4606 = vmatpush1.xpose.msra.mxu1 %v9015_v30  ;;  %v4698_v57 = vsub.f32 %v8651_v20, %v11244_v51 }
 0x157   :  { %3236 = vmatmul.mubr.f32.gmra.mrb[10].mxu0 %v11238_v24  ;;  %6361 = vmatprep.subr.bf16.mxu1 %v6360_v40  ;;  %v4664_v40 = vsub.f32 %v9019_v27, %v10683_v43  ;;  %v11250_v43 = vand.u32 4294901760, %v9030_v37  ;;  %v4710_v7 = vsub.f32 %v8685_v61, %v11253_v11  ;;  %v6370_v11 = vpack.c.bf16 %v8651_v20, %v8646_v47  ;;  %v32_v47 = vld [vmem:[%s10319_s0 + $0x58] sm:$0xff] }
 0x158   :  { %3241 = vmatprep.mubr.f32.mxu0 %v11239_v3 }
 0x159   :  { %6164 = vmatmul.mubr.f32.gmra.mrb[28].mxu1 %v9026_v56  ;;  %v4670_v51 = vsub.f32 %v9030_v37, %v11250_v43  ;;  %v4665_v63 = vand.u32 4294901760, %v4664_v40  ;;  %v4699_v56 = vand.u32 4294901760, %v4698_v57  ;;  %v11254_v57 = vand.u32 4294901760, %v8690_v26 }
 0x15a   :  { %6166 = vmatprep.mubr.msk.f32.mxu1 %vm6947_vm2, %v11241_v55  ;;  %v6364_v40 = vpack.c.bf16 %v4717_v18, %v4705_v22 }
 0x15b   :  { %3243 = vmatmul.mubr.f32.gmra.mrb[12].mxu0 %v11245_v38  ;;  %v4671_v52 = vand.u32 4294901760, %v4670_v51  ;;  %v6362_v43 = vpack.c.bf16 %v4699_v56, %v4687_v0  ;;  %v4722_v48 = vsub.f32 %v8690_v26, %v11254_v57  ;;  %v9099_v51 = vsub.f32 %v261_v4, %v9015_v30  ;;  %v5827_v57 = vld [vmem:[%s10319_s0 + $0x178] sm:$0xff] }
 0x15c   :  { %3248 = vmatprep.mubr.f32.mxu0 %v11248_v49  ;;  %v4711_v56 = vand.u32 4294901760, %v4710_v7  ;;  %v6372_v0 = vpack.c.bf16 %v8680_v28, %v8675_v39  ;;  %v5823_v39 = vld [vmem:[%s10319_s0 + $0x158] sm:$0xff] }
 0x15d   :  { %6167 = vmatmul.mubr.f32.gmra.mrb[30].mxu1 %v9046_v23  ;;  %v9085_v23 = vsub.f32 %v8942_v62, %v8967_v25 }
 0x15e   :  { %6169 = vmatprep.mubr.msk.f32.mxu1 %vm6947_vm2, %v11241_v55 }
 0x15f   :  { %3250 = vmatmul.mubr.f32.gmra.mrb[14].mxu0 %v11251_v8  ;;  %v10705_v62 = vand.u32 4294901760, %v9085_v23 }
 0x160   :  { %3255 = vmatprep.mubr.f32.mxu0 %v11252_v42 }
 0x161   :  { %6170 = vmatmul.mubr.f32.gmra.mrb[32].mxu1 %v9075_v58  ;;  %v4728_v18 = vsub.f32 %v9085_v23, %v10705_v62 }
 0x162   :  { %4666 = vmatprep.mubr.f32.mxu1 %v4665_v63  ;;  %v4723_v63 = vand.u32 4294901760, %v4722_v48 }
 0x163   :  { %3257 = vmatmul.mubr.f32.gmra.mrb[16].mxu0 %v11255_v50  ;;  %v4729_v4 = vand.u32 4294901760, %v4728_v18 }
 0x164   :  { %3337 = vmatprep.mubr.f32.mxu0 %v7992_v6  ;;  %v6366_v6 = vpack.c.bf16 %v4723_v63, %v4711_v56  ;;  %v40_v63 = vld [vmem:[%s10319_s0 + $0x98] sm:$0xff] }
 0x165   :  { %4672 = vmatmul.mubr.f32.vlgmr.msra.gmra.mrb[34].mxu1 %v4671_v52  ;;  %v10704_v52 = vand.u32 4294901760, %v9099_v51 }
 0x166   :  { %6363 = vmatpush1.bf16.xpose.msra.mxu1 %v6362_v43  ;;  %4792 = vmatprep.mubr.f32.mxu1 %v8993_v33 }
 0x167   :  { %3339 = vmatmul.mubr.f32.vlgmr.msra.gmra.mrb[0].mxu0 %v7994_v13  ;;  %6365 = vmatprep.subr.bf16.mxu1 %v6364_v40  ;;  %v4734_v13 = vsub.f32 %v9099_v51, %v10704_v52 }
 0x168   :  { %6318 = vmatpush3.bf16.xpose.msra.mxu0 %v8670_v15  ;;  %3344 = vmatprep.mubr.f32.mxu0 %v8011_v14 }
 0x169   :  { %6319 = vmatprep.subr.bf16.mxu0 %v11161_v1  ;;  %v4735_v14 = vand.u32 4294901760, %v4734_v13 }
 0x16b   :  { %3346 = vmatmul.mubr.f32.gmra.mrb[2].mxu0 %v11215_v21  ;;  %v6368_v21 = vpack.c.bf16 %v8899_v35, %v8887_v60 }
 0x16c   :  { %3351 = vmatprep.mubr.f32.mxu0 %v11216_v36  ;;  %v9126_v36 = vld [vmem:[%s10320_s1 + $0x30] sm:$0xff] }
 0x16d   :  { %11256 = vst [vmem:[#allocation15_spill] sm:$0xff] %v9126_v36  ;;  %v9146_v22 = vand.u32 4294901760, %v9126_v36 }
 0x16e   :  { %6367 = vmatpush1.bf16.xpose.msra.mxu1 %v6366_v6 }
 0x16f   :  { %3353 = vmatmul.mubr.f32.gmra.mrb[4].mxu0 %v11222_v59  ;;  %4730 = vmatprep.subr.mxu1 %v4729_v4  ;;  %v24_v59 = vld [vmem:[%s10319_s0 + $0x18] sm:$0xff]  ;;  %11257 = vst [vmem:[#allocation45_spill] sm:$0xff] %v9146_v22  ;;  %v9162_v20 = vsub.f32 %v9126_v36, %v9146_v22 }
 0x170   :  { %3358 = vmatprep.mubr.f32.mxu0 %v11223_v53  ;;  %6321 = vmatpush3.bf16.xpose.msra.mxu0 %v8765_v32  ;;  %v28_v53 = vld [vmem:[%s10319_s0 + $0x38] sm:$0xff] }
 0x171   :  { %5958 = vmatprep.subr.mxu0 %v11241_v55  ;;  %v92_v43 = vmax.f32 %v24_v59, %v28_v53  ;;  %11258 = vst [vmem:[#allocation31_spill] sm:$0xff] %v9162_v20  ;;  %v10701_v48 = vand.u32 4294901760, %v9162_v20  ;;  %v27_v53 = vld [vmem:[%s10319_s0 + $0x30] sm:$0xff]  ;;  %v11280_v32 = vld [vmem:[#allocation24_spill] sm:$0xff] }
 0x173   :  { %3360 = vmatmul.mubr.f32.gmra.mrb[6].mxu0 %v11229_v44  ;;  %v5815_v44 = vld [vmem:[%s10319_s0 + $0x118] sm:$0xff]  ;;  %v93_v28 = vmax.f32 %v92_v43, %v32_v47  ;;  %v9249_v47 = vsub.f32 %v8810_v9, %v8819_v16  ;;  %v9264_v9 = vld [vmem:[%s10321_s2 + $0x50] sm:$0xff] }
 0x174   :  { %3365 = vmatprep.mubr.f32.mxu0 %v11230_v12  ;;  %v5819_v12 = vld [vmem:[%s10319_s0 + $0x138] sm:$0xff] }
 0x175   :  { %v177_v7 = vmax.f32 %v5815_v44, %v5819_v12  ;;  %v5818_v44 = vld [vmem:[%s10319_s0 + $0x130] sm:$0xff]  ;;  %11263 = vst [vmem:[#allocation49_spill] sm:$0xff] %v9249_v47 }
 0x176   :  { %4736 = vmatpush1.xpose.msra.mxu1 %v4735_v14  ;;  %v23_v14 = vld [vmem:[%s10319_s0 + $0x10] sm:$0xff] }
 0x177   :  { %6369 = vmatprep.subr.bf16.mxu1 %v6368_v21  ;;  %3367 = vmatmul.mubr.f32.gmra.mrb[8].mxu0 %v11233_v45  ;;  %v36_v45 = vld [vmem:[%s10319_s0 + $0x78] sm:$0xff] }
 0x178   :  { %3372 = vmatprep.mubr.f32.mxu0 %v11234_v46  ;;  %5959 = vmatpush3.xpose.msra.mxu0 %v8819_v16  ;;  %v178_v46 = vmax.f32 %v177_v7, %v5823_v39  ;;  %v94_v40 = vmax.f32 %v93_v28, %v36_v45  ;;  %v31_v28 = vld [vmem:[%s10319_s0 + $0x50] sm:$0xff] }
 0x179   :  { %4794 = vmatmul.mubr.f32.vlgmr.msra.gmra.mrb[36].mxu1 %v9006_v29  ;;  %6322 = vmatprep.subr.bf16.mxu0 %v11161_v1  ;;  %v5822_v45 = vld [vmem:[%s10319_s0 + $0x150] sm:$0xff] }
 0x17a   :  { %6371 = vmatpush1.bf16.xpose.msra.mxu1 %v6370_v11  ;;  %4885 = vmatprep.mubr.f32.mxu1 %v9019_v27  ;;  %v179_v56 = vmax.f32 %v178_v46, %v5827_v57  ;;  %v95_v18 = vmax.f32 %v94_v40, %v40_v63  ;;  %v48_v11 = vld [vmem:[%s10319_s0 + $0xd8] sm:$0xff]  ;;  %v79_v46 = vmax.f32 %v23_v14, %v27_v53  ;;  %v9269_v40 = vld [vmem:[%s10321_s2 + $0xa8] sm:$0xff]  ;;  %v11269_v53 = vand.u32 4294901760, %v9019_v27 }
 0x17b   :  { %3374 = vmatmul.mubr.f32.gmra.mrb[10].mxu0 %v11238_v24  ;;  %6373 = vmatprep.subr.bf16.mxu1 %v6372_v0  ;;  %v6374_v24 = vpack.c.bf16 %v8690_v26, %v8685_v61  ;;  %v5831_v61 = vld [vmem:[%s10319_s0 + $0x198] sm:$0xff]  ;;  %v9192_v26 = vsub.f32 %v8929_v17, %v8946_v5 }
 0x17c   :  { %3379 = vmatprep.mubr.f32.mxu0 %v11239_v3  ;;  %v9177_v3 = vsub.f32 %v8864_v10, %v8875_v31  ;;  %v3473_v10 = vsub.f32 %v9162_v20, %v10701_v48  ;;  %v180_v6 = vmax.f32 %v179_v56, %v5831_v61  ;;  %v5835_v17 = vld [vmem:[%s10319_s0 + $0x1b8] sm:$0xff] }
 0x17d   :  { %11261 = vst [vmem:[#allocation16_spill] sm:$0xff] %v9192_v26  ;;  %v10698_v13 = vand.u32 4294901760, %v9192_v26  ;;  %v5839_v0 = vld [vmem:[%s10319_s0 + $0x1d8] sm:$0xff] }
 0x17e   :  { %11259 = vst [vmem:[#allocation46_spill] sm:$0xff] %v9177_v3  ;;  %v181_v59 = vmax.f32 %v180_v6, %v5835_v17  ;;  %v52_v56 = vld [vmem:[%s10319_s0 + $0xf8] sm:$0xff]  ;;  %v11266_v6 = vld [vmem:[#allocation58_spill] sm:$0xff] }
 0x17f   :  { %3381 = vmatmul.mubr.f32.gmra.mrb[12].mxu0 %v11245_v38  ;;  %v9188_v38 = vsub.f32 %v8882_v19, %v8921_v41  ;;  %v9203_v19 = vsub.f32 %v8955_v2, %v8979_v54  ;;  %v9245_v7 = vsub.f32 %v9192_v26, %v10698_v13  ;;  %v9288_v17 = vld [vmem:[%s10321_s2 + $0x48] sm:$0xff]  ;;  %v11268_v14 = vld [vmem:[#allocation71_spill] sm:$0xff] }
 0x180   :  { %3386 = vmatprep.mubr.f32.mxu0 %v11248_v49  ;;  %v10700_v49 = vand.u32 4294901760, %v9177_v3  ;;  %v182_v61 = vmax.f32 %v181_v59, %v5839_v0  ;;  %v10702_v0 = vand.u32 4294901760, %v9269_v40  ;;  %v10707_v27 = vand.u32 4294901760, %v9288_v17  ;;  %v11279_v26 = vld [vmem:[#allocation9_spill] sm:$0xff] }
 0x181   :  { %11260 = vst [vmem:[#allocation47_spill] sm:$0xff] %v9188_v38  ;;  %11262 = vst [vmem:[#allocation18_spill] sm:$0xff] %v9203_v19  ;;  %v10699_v4 = vand.u32 4294901760, %v9188_v38  ;;  %v10697_v12 = vand.u32 4294901760, %v9203_v19  ;;  %v3504_v59 = vand.u32 4294901760, %v9245_v7 }
 0x182   :  { %6375 = vmatpush1.bf16.xpose.msra.mxu1 %v6374_v24  ;;  %v3483_v2 = vsub.f32 %v9177_v3, %v10700_v49  ;;  %v11264_v24 = vld [vmem:[#allocation42_spill] sm:$0xff]  ;;  %v9358_v48 = vsub.f32 %v9288_v17, %v10707_v27 }
 0x183   :  { %3388 = vmatmul.mubr.f32.gmra.mrb[14].mxu0 %v11251_v8  ;;  %4825 = vmatprep.subr.mxu1 %v9085_v23  ;;  %v44_v8 = vld [vmem:[%s10319_s0 + $0xb8] sm:$0xff]  ;;  %v3493_v43 = vsub.f32 %v9188_v38, %v10699_v4  ;;  %v9336_v4 = vsub.f32 %v9269_v40, %v10702_v0  ;;  %v9411_v38 = vsub.f32 %v11280_v32, %v11279_v26 }
 0x184   :  { %3393 = vmatprep.mubr.f32.mxu0 %v11252_v42  ;;  %v3474_v42 = vand.u32 4294901760, %v3473_v10  ;;  %v96_v21 = vmax.f32 %v95_v18, %v44_v8  ;;  %v3484_v39 = vand.u32 4294901760, %v3483_v2  ;;  %v9279_v10 = vsub.f32 %v9203_v19, %v10697_v12  ;;  %v11265_v18 = vld [vmem:[#allocation14_spill] sm:$0xff]  ;;  %v5843_v2 = vld [vmem:[%s10319_s0 + $0x1f8] sm:$0xff] }
 0x185   :  { %v9283_v8 = vsub.f32 %v11266_v6, %v11265_v18  ;;  %v80_v6 = vmax.f32 %v79_v46, %v31_v28  ;;  %v183_v28 = vmax.f32 %v182_v61, %v5843_v2  ;;  %v5826_v46 = vld [vmem:[%s10319_s0 + $0x170] sm:$0xff]  ;;  %11272 = vst [vmem:[#allocation61_spill] sm:$0xff] %v9336_v4  ;;  %v11274_v61 = vld [vmem:[#allocation25_spill] sm:$0xff]  ;;  %v11282_v15 = vand.u32 4294901760, %v9336_v4 }
 0x186   :  { %v97_v63 = vmax.f32 %v96_v21, %v48_v11  ;;  %v3494_v21 = vand.u32 4294901760, %v3493_v43  ;;  %v10703_v11 = vand.u32 4294901760, %v9264_v9  ;;  %v11286_v19 = vand.u32 4294901760, %v9358_v48 }
 0x187   :  { %3395 = vmatmul.mubr.f32.gmra.mrb[16].mxu0 %v11255_v50  ;;  %v5814_v50 = vld [vmem:[%s10319_s0 + $0x110] sm:$0xff]  ;;  %11267 = vst [vmem:[#allocation54_spill] sm:$0xff] %v9283_v8  ;;  %v184_v16 = vrot.slane %v183_v28, 4 }
 0x188   :  { %5960 = vmatprep.mubr.msk.f32.mxu0 %vm6947_vm2, %v11241_v55  ;;  %v164_v57 = vmax.f32 %v5814_v50, %v5818_v44  ;;  %v10706_v50 = vand.u32 4294901760, %v9249_v47  ;;  %v11270_v44 = vld [vmem:[#allocation72_spill] sm:$0xff]  ;;  %v98_v12 = vmax.f32 %v97_v63, %v52_v56  ;;  %v9331_v13 = vsub.f32 %v9264_v9, %v10703_v11  ;;  %v9346_v63 = vld [vmem:[%s10321_s2 + $0x150] sm:$0xff] }
 0x189   :  { %v9341_v56 = vld [vmem:[%s10321_s2 + $0xf8] sm:$0xff]  ;;  %11273 = vst [vmem:[#allocation65_spill] sm:$0xff] %v9346_v63 }
 0x18a   :  { %4828 = vmatpush1.xpose.msra.mxu1 %v9099_v51  ;;  %v165_v43 = vmax.f32 %v164_v57, %v5822_v45  ;;  %v3514_v45 = vand.u32 4294901760, %v9279_v10  ;;  %11271 = vst [vmem:[#allocation21_spill] sm:$0xff] %v9331_v13  ;;  %v11275_v10 = vld [vmem:[#allocation5_spill] sm:$0xff]  ;;  %v3592_v49 = vsub.f32 %v9249_v47, %v10706_v50  ;;  %v10714_v27 = vand.u32 4294901760, %v9341_v56 }
 0x18b   :  { %6377 = vmatprep.subr.bf16.mxu1 %v8827_v34  ;;  %5961 = vmatmul.mubr.f32.vlgmr.msra.gmra.mrb[0].mxu0 %v3474_v42  ;;  %v9293_v42 = vld [vmem:[%s10321_s2 + $0xa0] sm:$0xff]  ;;  %v9350_v2 = vsub.f32 %v11275_v10, %v11274_v61  ;;  %v10715_v57 = vand.u32 4294901760, %v9346_v63  ;;  %v99_v36 = vrot.slane %v98_v12, 4  ;;  %v11281_v3 = vand.u32 4294901760, %v9331_v13 }
 0x18c   :  { %6324 = vmatpush3.bf16.xpose.msra.mxu0 %v11264_v24  ;;  %5963 = vmatprep.mubr.msk.f32.mxu0 %vm6947_vm2, %v11241_v55  ;;  %v35_v24 = vld [vmem:[%s10319_s0 + $0x70] sm:$0xff]  ;;  %v10713_v7 = vand.u32 4294901760, %v9293_v42  ;;  %v166_v62 = vmax.f32 %v165_v43, %v5826_v46  ;;  %v11276_v50 = vld [vmem:[#allocation17_spill] sm:$0xff]  ;;  %v9389_v46 = vsub.f32 %v9341_v56, %v10714_v27  ;;  %v11278_v27 = vand.u32 4294901760, %v9283_v8 }
 0x18d   :  { %4888 = vmatmul.mubr.f32.vlgmr.msra.gmra.mrb[38].mxu1 %v9030_v37  ;;  %6325 = vmatprep.subr.bf16.mxu0 %v11161_v1  ;;  %v81_v52 = vmax.f32 %v80_v6, %v35_v24  ;;  %v11277_v43 = vld [vmem:[#allocation41_spill] sm:$0xff]  ;;  %v9417_v6 = vpack.c.bf16 %v11282_v15, %v11281_v3  ;;  %v100_v13 = vmax.f32 %v98_v12, %v99_v36  ;;  %v43_v3 = vld [vmem:[%s10319_s0 + $0xb0] sm:$0xff]  ;;  %v10739_v36 = vand.u32 4294901760, %v9411_v38 }
 0x18e   :  { %6379 = vmatpush1.bf16.xpose.msra.mxu1 %v11268_v14  ;;  %4970 = vmatprep.mubr.f32.mxu1 %v11269_v53  ;;  %v9321_v53 = vld [vmem:[%s10321_s2 + $0x158] sm:$0xff]  ;;  %v9363_v0 = vsub.f32 %v9293_v42, %v10713_v7  ;;  %v5830_v7 = vld [vmem:[%s10319_s0 + $0x190] sm:$0xff] }
 0x18f   :  { %5964 = vmatmul.mubr.f32.gmra.mrb[2].mxu0 %v3484_v39  ;;  %6381 = vmatprep.subr.bf16.mxu1 %v11270_v44  ;;  %v9316_v39 = vld [vmem:[%s10321_s2 + $0x100] sm:$0xff]  ;;  %v10712_v10 = vand.u32 4294901760, %v9321_v53  ;;  %11283 = vst [vmem:[#allocation55_spill] sm:$0xff] %v9417_v6  ;;  %v167_v15 = vmax.f32 %v166_v62, %v5830_v7  ;;  %v11289_v62 = vand.u32 4294901760, %v9350_v2  ;;  %v11290_v12 = vld [vmem:[#allocation10_spill] sm:$0xff] }
 0x190   :  { %5966 = vmatprep.mubr.msk.f32.mxu0 %vm6947_vm2, %v11241_v55  ;;  %v10711_v11 = vand.u32 4294901760, %v9316_v39  ;;  %v11287_v32 = vand.u32 4294901760, %v9363_v0  ;;  %v9447_v7 = vsub.f32 %v11290_v12, %v9075_v58 }
 0x191   :  { %v9381_v24 = vsub.f32 %v9321_v53, %v10712_v10  ;;  %v39_v10 = vld [vmem:[%s10319_s0 + $0x90] sm:$0xff] }
 0x192   :  { %v9429_v20 = vpack.c.bf16 %v11287_v32, %v11286_v19  ;;  %v82_v4 = vmax.f32 %v81_v52, %v39_v10  ;;  %v3533_v52 = vsub.f32 %v9350_v2, %v11289_v62  ;;  %v47_v32 = vld [vmem:[%s10319_s0 + $0xd0] sm:$0xff] }
 0x193   :  { %5967 = vmatmul.mubr.f32.gmra.mrb[4].mxu0 %v3494_v21  ;;  %v9376_v21 = vsub.f32 %v9316_v39, %v10711_v11  ;;  %v9394_v11 = vsub.f32 %v9346_v63, %v10715_v57  ;;  %v3523_v57 = vsub.f32 %v9283_v8, %v11278_v27  ;;  %v3593_v8 = vand.u32 4294901760, %v3592_v49  ;;  %v5838_v62 = vld [vmem:[%s10319_s0 + $0x1d0] sm:$0xff] }
 0x194   :  { %5969 = vmatprep.mubr.msk.f32.mxu0 %vm6947_vm2, %v11241_v55  ;;  %6327 = vmatpush3.bf16.xpose.msra.mxu0 %v11276_v50  ;;  %v11285_v50 = vand.u32 4294901760, %v8899_v35  ;;  %11288 = vst [vmem:[#allocation66_spill] sm:$0xff] %v9429_v20  ;;  %v185_v63 = vmax.f32 %v183_v28, %v184_v16  ;;  %v10740_v49 = vand.u32 4294901760, %v9381_v24  ;;  %v3534_v12 = vand.u32 4294901760, %v3533_v52  ;;  %v51_v52 = vld [vmem:[%s10319_s0 + $0xf0] sm:$0xff] }
 0x195   :  { %5995 = vmatprep.subr.mxu0 %v11241_v55  ;;  %v5279_v35 = vand.u32 4294901760, %v9376_v21  ;;  %v10737_v19 = vand.u32 4294901760, %v9394_v11  ;;  %v3524_v16 = vand.u32 4294901760, %v3523_v57  ;;  %v83_v57 = vmax.f32 %v82_v4, %v43_v3 }
 0x196   :  { %6383 = vmatpush1.bf16.xpose.msra.mxu1 %v11277_v43  ;;  %v3543_v4 = vsub.f32 %v9411_v38, %v10739_v36  ;;  %v11293_v3 = vand.u32 4294901760, %v9030_v37  ;;  %v5842_v36 = vld [vmem:[%s10319_s0 + $0x1f0] sm:$0xff] }
 0x197   :  { %5970 = vmatmul.mubr.f32.gmra.mrb[6].mxu0 %v3504_v59  ;;  %4910 = vmatprep.subr.mxu1 %v8967_v25  ;;  %v11284_v59 = vand.u32 4294901760, %v8887_v60  ;;  %v5834_v60 = vld [vmem:[%s10319_s0 + $0x1b0] sm:$0xff]  ;;  %v9455_v28 = vpack.c.bf16 %v10740_v49, %v5279_v35  ;;  %v11295_v49 = vld [vmem:[#allocation53_spill] sm:$0xff] }
 0x198   :  { %5972 = vmatprep.mubr.msk.f32.mxu0 %vm6947_vm2, %v11241_v55  ;;  %v168_v10 = vmax.f32 %v167_v15, %v5834_v60  ;;  %v10741_v15 = vand.u32 4294901760, %v9447_v7  ;;  %v84_v60 = vmax.f32 %v83_v57, %v47_v32  ;;  %v3544_v37 = vand.u32 4294901760, %v3543_v4 }
 0x199   :  { %v6384_v27 = vpack.c.bf16 %v11285_v50, %v11284_v59  ;;  %v10738_v50 = vand.u32 4294901760, %v9389_v46  ;;  %11291 = vst [vmem:[#allocation70_spill] sm:$0xff] %v9455_v28  ;;  %v101_v59 = vrot.slane %v100_v13, 2  ;;  %v11297_v4 = vand.u32 4294901760, %v9085_v23 }
 0x19b   :  { %5973 = vmatmul.mubr.f32.gmra.mrb[8].mxu0 %v3514_v45  ;;  %v9461_v45 = vpack.c.bf16 %v10737_v19, %v10738_v50  ;;  %v169_v19 = vmax.f32 %v168_v10, %v5838_v62  ;;  %v11294_v50 = vld [vmem:[#allocation43_spill] sm:$0xff] }
 0x19c   :  { %5975 = vmatprep.mubr.msk.f32.mxu0 %vm6947_vm2, %v11241_v55  ;;  %5996 = vmatpush3.xpose.msra.mxu0 %v3593_v8  ;;  %v186_v8 = vrot.slane %v185_v63, 2 }
 0x19d   :  { %11292 = vst [vmem:[#allocation30_spill] sm:$0xff] %v9461_v45  ;;  %6328 = vmatprep.subr.bf16.mxu0 %v11161_v1 }
 0x19e   :  { %4912 = vmatpush1.xpose.msra.mxu1 %v9015_v30 }
 0x19f   :  { %6385 = vmatprep.subr.bf16.mxu1 %v6384_v27  ;;  %5976 = vmatmul.mubr.f32.gmra.mrb[10].mxu0 %v3524_v16  ;;  %v102_v27 = vmax.f32 %v100_v13, %v101_v59  ;;  %v187_v16 = vmax.f32 %v185_v63, %v186_v8  ;;  %v85_v13 = vmax.f32 %v84_v60, %v51_v52  ;;  %v11299_v52 = vld [vmem:[#allocation80_spill] sm:$0xff] }
 0x1a0   :  { %5978 = vmatprep.mubr.msk.f32.mxu0 %vm6947_vm2, %v11241_v55  ;;  %v170_v63 = vmax.f32 %v169_v19, %v5842_v36 }
 0x1a1   :  { %4974 = vmatmul.mubr.f32.vlgmr.msra.gmra.mrb[40].mxu1 %v11293_v3  ;;  %v103_v57 = vrot.slane %v102_v27, 1  ;;  %v188_v10 = vrot.slane %v187_v16, 1  ;;  %v86_v8 = vrot.slane %v85_v13, 4  ;;  %v11298_v3 = vld [vmem:[#allocation79_spill] sm:$0xff] }
 0x1a2   :  { %6387 = vmatpush1.bf16.xpose.msra.mxu1 %v11294_v50  ;;  %5074 = vmatprep.mubr.f32.mxu1 %v8993_v33  ;;  %v3553_v50 = vsub.f32 %v9447_v7, %v10741_v15  ;;  %v171_v32 = vrot.slane %v170_v63, 4  ;;  %v11301_v15 = vld [vmem:[#allocation90_spill] sm:$0xff] }
 0x1a3   :  { %5979 = vmatmul.mubr.f32.gmra.mrb[12].mxu0 %v3534_v12  ;;  %6389 = vmatprep.subr.bf16.mxu1 %v11295_v49  ;;  %v11296_v49 = vld [vmem:[#allocation56_spill] sm:$0xff]  ;;  %v104_v62 = vmax.f32 %v102_v27, %v103_v57  ;;  %v189_v12 = vmax.f32 %v187_v16, %v188_v10  ;;  %v87_v19 = vmax.f32 %v85_v13, %v86_v8  ;;  %v11303_v16 = vand.u32 4294901760, %v9099_v51  ;;  %v11307_v10 = vld [vmem:[#allocation26_spill] sm:$0xff] }
 0x1a4   :  { %5981 = vmatprep.mubr.msk.f32.mxu0 %vm6947_vm2, %v11241_v55  ;;  %v3554_v59 = vand.u32 4294901760, %v3553_v50  ;;  %v172_v36 = vmax.f32 %v170_v63, %v171_v32  ;;  %v11300_v50 = vld [vmem:[#allocation91_spill] sm:$0xff] }
 0x1a5   :  { %v198_v60 = vmul.f32 %v11298_v3, %v104_v62  ;;  %v88_v23 = vrot.slane %v87_v19, 2 }
 0x1a6   :  { %v173_v27 = vrot.slane %v172_v36, 2 }
 0x1a7   :  { %5982 = vmatmul.mubr.f32.gmra.mrb[14].mxu0 %v3544_v37  ;;  %v205_v37 = vmul.f32 %v11299_v52, %v189_v12  ;;  %v89_v63 = vmax.f32 %v87_v19, %v88_v23  ;;  %v11309_v19 = vand.u32 4294901760, %v9264_v9  ;;  %v11314_v9 = vand.u32 4294901760, %v9316_v39  ;;  %v11318_v39 = vld [vmem:[#allocation65_spill] sm:$0xff] }
 0x1a8   :  { %5984 = vmatprep.mubr.msk.f32.mxu0 %vm6947_vm2, %v11241_v55  ;;  %v174_v57 = vmax.f32 %v172_v36, %v173_v27 }
 0x1a9   :  { %v9511_v13 = vadd.f32 %v205_v37, %v198_v60  ;;  %v90_v8 = vrot.slane %v89_v63, 1  ;;  %v11312_v37 = vand.u32 4294901760, %v9288_v17  ;;  %v264_v17 = vld [vmem:[%s10321_s2 + $0x1b0] sm:$0x7] }
 0x1aa   :  { %6391 = vmatpush1.bf16.xpose.msra.mxu1 %v11296_v49  ;;  %v11302_v49 = vpack.c.bf16 %v11300_v50, %v11301_v15 }
 0x1ab   :  { %5985 = vmatmul.mubr.f32.gmra.mrb[16].mxu0 %v3554_v59  ;;  %5014 = vmatprep.subr.mxu1 %v11297_v4  ;;  %11304 = vst [vmem:[#allocation67_spill] sm:$0xff] %v9511_v13  ;;  %v9521_v51 = vand.u32 4294901760, %v9511_v13 }
 0x1ac   :  { %5997 = vmatprep.mubr.msk.f32.mxu0 %vm6947_vm2, %v11241_v55 }
 0x1ad   :  { %11305 = vst [vmem:[#allocation84_spill] sm:$0xff] %v9521_v51 }
 0x1af   :  { %5998 = vmatmul.mubr.f32.vlgmr.msra.gmra.mrb[0].mxu0 %v9146_v22 }
 0x1b0   :  { %6330 = vmatpush3.bf16.xpose.msra.mxu0 %v11302_v49  ;;  %6000 = vmatprep.mubr.msk.f32.mxu0 %vm6947_vm2, %v11241_v55  ;;  %v11313_v49 = vand.u32 4294901760, %v9293_v42  ;;  %v11317_v42 = vand.u32 4294901760, %v9341_v56 }
 0x1b1   :  { %6331 = vmatprep.subr.bf16.mxu0 %v11161_v1 }
 0x1b2   :  { %5018 = vmatpush1.xpose.msra.mxu1 %v11303_v16  ;;  %v9567_v23 = vpack.c.bf16 %v11313_v49, %v11312_v37  ;;  %v11328_v37 = vld [vmem:[#allocation31_spill] sm:$0xff]  ;;  %v263_v49 = vld [vmem:[%s10321_s2 + $0x1a8] sm:$0x7] }
 0x1b3   :  { %6393 = vmatprep.subr.bf16.mxu1 %v8827_v34  ;;  %6001 = vmatmul.mubr.f32.gmra.mrb[2].mxu0 %v8875_v31  ;;  %v11306_v34 = vld [vmem:[#allocation106_spill] sm:$0xff]  ;;  %v6875_v31 = vld [vmem:[%s10320_s1 + $0x1a0] sm:$0xff] }
 0x1b4   :  { %6003 = vmatprep.mubr.msk.f32.mxu0 %vm6947_vm2, %v11241_v55  ;;  %v11308_v59 = vpack.c.bf16 %v11306_v34, %v11307_v10 }
 0x1b5   :  { %5076 = vmatmul.mubr.f32.vlgmr.msra.gmra.mrb[42].mxu1 %v9006_v29 }
 0x1b6   :  { %6395 = vmatpush1.bf16.xpose.msra.mxu1 %v11268_v14  ;;  %5156 = vmatprep.mubr.f32.mxu1 %v8993_v33  ;;  %v175_v14 = vrot.slane %v174_v57, 1  ;;  %v9533_v33 = vsub.f32 %v9511_v13, %v9521_v51 }
 0x1b7   :  { %6004 = vmatmul.mubr.f32.gmra.mrb[4].mxu0 %v8921_v41  ;;  %6397 = vmatprep.subr.bf16.mxu1 %v11270_v44  ;;  %v91_v44 = vmax.f32 %v89_v63, %v90_v8 }
 0x1b8   :  { %6006 = vmatprep.mubr.msk.f32.mxu0 %vm6947_vm2, %v11241_v55  ;;  %6333 = vmatpush3.bf16.xpose.msra.mxu0 %v11308_v59  ;;  %v176_v32 = vmax.f32 %v174_v57, %v175_v14  ;;  %v10742_v62 = vand.u32 4294901760, %v9533_v33  ;;  %v9602_v57 = vand.u32 4294901760, %v264_v17  ;;  %v11322_v59 = vld [vmem:[#allocation21_spill] sm:$0xff] }
 0x1b9   :  { %6032 = vmatprep.subr.mxu0 %v11241_v55  ;;  %v197_v12 = vmul.f32 %v11298_v3, %v91_v44  ;;  %v11323_v8 = vand.u32 4294901760, %v11322_v59  ;;  %v11324_v44 = vld [vmem:[#allocation61_spill] sm:$0xff]  ;;  %v11333_v3 = vand.u32 4294901760, %v9389_v46 }
 0x1ba   :  { %v204_v4 = vmul.f32 %v11299_v52, %v176_v32  ;;  %11321 = vst [vmem:[#allocation96_spill] sm:$0xff] %v9602_v57  ;;  %v11325_v32 = vand.u32 4294901760, %v11324_v44 }
 0x1bb   :  { %6007 = vmatmul.mubr.f32.gmra.mrb[6].mxu0 %v8946_v5  ;;  %v5256_v14 = vsub.f32 %v11322_v59, %v11323_v8 }
 0x1bc   :  { %6009 = vmatprep.mubr.msk.f32.mxu0 %vm6947_vm2, %v11241_v55  ;;  %v9560_v60 = vadd.f32 %v204_v4, %v197_v12  ;;  %v5268_v12 = vsub.f32 %v11324_v44, %v11325_v32  ;;  %v11326_v4 = vand.u32 4294901760, %v9358_v48 }
 0x1be   :  { %6399 = vmatpush1.bf16.xpose.msra.mxu1 %v11277_v43  ;;  %v5240_v43 = vsub.f32 %v9533_v33, %v10742_v62  ;;  %11311 = vst [vmem:[#allocation73_spill] sm:$0xff] %v9560_v60  ;;  %v9642_v62 = vsub.f32 %v264_v17, %v9602_v57 }
 0x1bf   :  { %6010 = vmatmul.mubr.f32.gmra.mrb[8].mxu0 %v8979_v54  ;;  %5098 = vmatprep.subr.mxu1 %v8967_v25  ;;  %v11310_v25 = vand.u32 4294901760, %v9269_v40  ;;  %v11315_v40 = vand.u32 4294901760, %v9321_v53  ;;  %v11319_v53 = vand.u32 4294901760, %v11318_v39  ;;  %v11338_v54 = vld [vmem:[#allocation18_spill] sm:$0xff] }
 0x1c0   :  { %6012 = vmatprep.mubr.msk.f32.mxu0 %vm6947_vm2, %v11241_v55  ;;  %6033 = vmatpush3.xpose.msra.mxu0 %v9249_v47  ;;  %v5241_v27 = vand.u32 4294901760, %v5240_v43  ;;  %v5262_v43 = vsub.f32 %v9358_v48, %v11326_v4 }
 0x1c1   :  { %6334 = vmatprep.subr.bf16.mxu0 %v11161_v1  ;;  %v9556_v36 = vpack.c.bf16 %v11310_v25, %v11309_v19  ;;  %v9575_v16 = vpack.c.bf16 %v11315_v40, %v11314_v9  ;;  %v9599_v63 = vpack.c.bf16 %v11319_v53, %v11317_v42  ;;  %v11327_v19 = vand.u32 4294901760, %v9363_v0  ;;  %v11330_v53 = vld [vmem:[#allocation13_spill] sm:$0xff] }
 0x1c2   :  { %v5269_v9 = vand.u32 4294901760, %v5268_v12  ;;  %v5280_v40 = vsub.f32 %v9376_v21, %v5279_v35  ;;  %v11329_v42 = vand.u32 4294901760, %v9381_v24  ;;  %v5263_v32 = vand.u32 4294901760, %v5262_v43  ;;  %v11332_v35 = vld [vmem:[#allocation46_spill] sm:$0xff] }
 0x1c3   :  { %6013 = vmatmul.mubr.f32.gmra.mrb[10].mxu0 %v11265_v18  ;;  %11316 = vst [vmem:[#allocation19_spill] sm:$0xff] %v9575_v16  ;;  %11320 = vst [vmem:[#allocation78_spill] sm:$0xff] %v9599_v63  ;;  %v5274_v25 = vsub.f32 %v9363_v0, %v11327_v19  ;;  %v5286_v43 = vsub.f32 %v9389_v46, %v11333_v3  ;;  %v6867_v18 = vld [vmem:[%s10320_s1 + $0xf8] sm:$0xff] }
 0x1c4   :  { %6015 = vmatprep.mubr.msk.f32.mxu0 %vm6947_vm2, %v11241_v55  ;;  %v5292_v39 = vsub.f32 %v9381_v24, %v11329_v42  ;;  %v5281_v19 = vand.u32 4294901760, %v5280_v40  ;;  %v10746_v40 = vand.u32 4294901760, %v9642_v62 }
 0x1c5   :  { %v5275_v12 = vand.u32 4294901760, %v5274_v25  ;;  %v11334_v25 = vand.u32 4294901760, %v9394_v11 }
 0x1c6   :  { %5100 = vmatpush1.xpose.msra.mxu1 %v9015_v30  ;;  %v9581_v30 = vand.u32 4294901760, %v9560_v60  ;;  %v5293_v42 = vand.u32 4294901760, %v5292_v39  ;;  %v11336_v39 = vld [vmem:[#allocation62_spill] sm:$0xff] }
 0x1c7   :  { %6401 = vmatprep.subr.bf16.mxu1 %v9556_v36  ;;  %6016 = vmatmul.mubr.f32.gmra.mrb[12].mxu0 %v11274_v61 }
 0x1c8   :  { %6018 = vmatprep.mubr.msk.f32.mxu0 %vm6947_vm2, %v11241_v55  ;;  %v6412_v17 = vpack.c.bf16 %v5293_v42, %v5281_v19  ;;  %v11337_v19 = vld [vmem:[#allocation16_spill] sm:$0xff]  ;;  %v6861_v42 = vld [vmem:[%s10320_s1 + $0x50] sm:$0xff] }
 0x1c9   :  { %5158 = vmatmul.mubr.f32.vlgmr.msra.gmra.mrb[44].mxu1 %v9006_v29  ;;  %v9593_v29 = vsub.f32 %v9560_v60, %v9581_v30  ;;  %v6418_v60 = vpack.c.bf16 %v9363_v0, %v9358_v48  ;;  %v6420_v48 = vpack.c.bf16 %v9381_v24, %v9376_v21  ;;  %v11343_v0 = vand.u32 4294901760, %v11301_v15  ;;  %v6889_v24 = vld [vmem:[%s10320_s1 + $0x58] sm:$0xff] }
 0x1ca   :  { %6403 = vmatpush1.bf16.xpose.msra.mxu1 %v9567_v23  ;;  %5242 = vmatprep.mubr.f32.mxu1 %v5241_v27  ;;  %v5257_v27 = vand.u32 4294901760, %v5256_v14  ;;  %v9638_v14 = vand.u32 4294901760, %v263_v49  ;;  %v4253_v15 = vmul.f32 %v6889_v24, %v6889_v24 }
 0x1cb   :  { %6019 = vmatmul.mubr.f32.gmra.mrb[14].mxu0 %v11279_v26  ;;  %6405 = vmatprep.subr.bf16.mxu1 %v9575_v16  ;;  %v10744_v56 = vand.u32 4294901760, %v9593_v29 }
 0x1cc   :  { %6021 = vmatprep.mubr.msk.f32.mxu0 %vm6947_vm2, %v11241_v55  ;;  %11331 = vst [vmem:[#allocation99_spill] sm:$0xff] %v9638_v14  ;;  %v6408_v4 = vpack.c.bf16 %v5269_v9, %v5257_v27  ;;  %v5298_v27 = vsub.f32 %v9394_v11, %v11334_v25  ;;  %v11335_v9 = vld [vmem:[#allocation47_spill] sm:$0xff]  ;;  %v9660_v3 = vsub.f32 %v263_v49, %v9638_v14  ;;  %v6862_v25 = vld [vmem:[%s10320_s1 + $0x48] sm:$0xff] }
 0x1cd   :  { %v5246_v8 = vsub.f32 %v9593_v29, %v10744_v56  ;;  %v6410_v56 = vpack.c.bf16 %v5275_v12, %v5263_v32  ;;  %v6859_v12 = vld [vmem:[%s10320_s1 + $0x8] sm:$0xff] }
 0x1ce   :  { %v5299_v32 = vand.u32 4294901760, %v5298_v27  ;;  %v9683_v27 = vmul.f32 %v6862_v25, %v6862_v25  ;;  %v6866_v25 = vld [vmem:[%s10320_s1 + $0xb8] sm:$0xff]  ;;  %v11340_v28 = vand.u32 4294901760, %v9660_v3 }
 0x1cf   :  { %6022 = vmatmul.mubr.f32.gmra.mrb[16].mxu0 %v9075_v58  ;;  %v5247_v52 = vand.u32 4294901760, %v5246_v8  ;;  %v5287_v8 = vand.u32 4294901760, %v5286_v43  ;;  %v9678_v43 = vmul.f32 %v6861_v42, %v6861_v42  ;;  %v6865_v42 = vld [vmem:[%s10320_s1 + $0xc0] sm:$0xff]  ;;  %v9701_v26 = vmul.f32 %v6866_v25, %v6866_v25 }
 0x1d0   :  { %6034 = vmatprep.mubr.msk.f32.mxu0 %vm6947_vm2, %v11241_v55  ;;  %v9696_v58 = vmul.f32 %v6865_v42, %v6865_v42  ;;  %v6868_v42 = vld [vmem:[%s10320_s1 + $0x18] sm:$0xff]  ;;  %v5310_v22 = vsub.f32 %v9660_v3, %v11340_v28  ;;  %v6880_v28 = vld [vmem:[%s10320_s1 + $0x1c8] sm:$0x3f] }
 0x1d1   :  { %v6414_v61 = vpack.c.bf16 %v5299_v32, %v5287_v8  ;;  %v6869_v8 = vld [vmem:[%s10320_s1 + $0xf0] sm:$0xff]  ;;  %v9771_v6 = vmul.f32 %v6880_v28, %v6880_v28  ;;  %v6884_v28 = vld [vmem:[%s10320_s1 + $0x1d8] sm:$0x3f] }
 0x1d2   :  { %6407 = vmatpush1.bf16.xpose.msra.mxu1 %v9599_v63  ;;  %v9716_v32 = vmul.f32 %v6869_v8, %v6869_v8  ;;  %v6873_v8 = vld [vmem:[%s10320_s1 + $0x160] sm:$0xff]  ;;  %v5311_v13 = vand.u32 4294901760, %v5310_v22  ;;  %v6886_v22 = vld [vmem:[%s10320_s1 + $0xa8] sm:$0xff] }
 0x1d3   :  { %6035 = vmatmul.mubr.f32.vlgmr.msra.gmra.mrb[0].mxu0 %v11328_v37  ;;  %5180 = vmatprep.subr.mxu1 %v9602_v57 }
 0x1d4   :  { %6336 = vmatpush3.bf16.xpose.msra.mxu0 %v11330_v53  ;;  %6037 = vmatprep.mubr.msk.f32.mxu0 %vm6947_vm2, %v11241_v55  ;;  %v6876_v53 = vld [vmem:[%s10320_s1 + $0x198] sm:$0xff] }
 0x1d5   :  { %6337 = vmatprep.subr.bf16.mxu0 %v11161_v1 }
 0x1d7   :  { %6038 = vmatmul.mubr.f32.gmra.mrb[2].mxu0 %v11332_v35 }
 0x1d8   :  { %6040 = vmatprep.mubr.msk.f32.mxu0 %vm6947_vm2, %v11241_v55 }
 0x1da   :  { %5182 = vmatpush1.xpose.msra.mxu1 %v9638_v14  ;;  %v9789_v14 = vmul.f32 %v6884_v28, %v6884_v28  ;;  %v6885_v28 = vld [vmem:[%s10320_s1 + $0x88] sm:$0xff] }
 0x1db   :  { %6409 = vmatprep.subr.bf16.mxu1 %v6408_v4  ;;  %6041 = vmatmul.mubr.f32.gmra.mrb[4].mxu0 %v11335_v9  ;;  %v4243_v4 = vmul.f32 %v6859_v12, %v6859_v12  ;;  %v4259_v16 = vmul.f32 %v6885_v28, %v6885_v28 }
 0x1dc   :  { %6043 = vmatprep.mubr.msk.f32.mxu0 %vm6947_vm2, %v11241_v55  ;;  %6339 = vmatpush3.bf16.xpose.msra.mxu0 %v11336_v39  ;;  %v4245_v39 = vmul.f32 %v6868_v42, %v6868_v42 }
 0x1dd   :  { %5248 = vmatmul.mubr.f32.vlgmr.msra.gmra.mrb[46].mxu1 %v5247_v52  ;;  %6069 = vmatprep.subr.mxu0 %v11241_v55  ;;  %v5304_v52 = vsub.f32 %v9642_v62, %v10746_v40 }
 0x1de   :  { %6411 = vmatpush1.bf16.xpose.msra.mxu1 %v6410_v56  ;;  %5368 = vmatprep.mubr.f32.mxu1 %v9521_v51  ;;  %v6860_v56 = vld [vmem:[%s10320_s1 + $0x10] sm:$0xff] }
 0x1df   :  { %6044 = vmatmul.mubr.f32.gmra.mrb[6].mxu0 %v11337_v19  ;;  %6413 = vmatprep.subr.bf16.mxu1 %v6412_v17  ;;  %v4244_v49 = vmul.f32 %v6860_v56, %v6860_v56  ;;  %v6863_v17 = vld [vmem:[%s10320_s1 + $0x80] sm:$0xff]  ;;  %v5305_v5 = vand.u32 4294901760, %v5304_v52  ;;  %v6871_v52 = vld [vmem:[%s10320_s1 + $0x128] sm:$0xff]  ;;  %v6878_v51 = vld [vmem:[%s10320_s1 + $0x70] sm:$0xff] }
 0x1e0   :  { %6046 = vmatprep.mubr.msk.f32.mxu0 %vm6947_vm2, %v11241_v55  ;;  %v9688_v12 = vmul.f32 %v6863_v17, %v6863_v17  ;;  %v6864_v56 = vld [vmem:[%s10320_s1] sm:$0xff]  ;;  %v9726_v17 = vmul.f32 %v6871_v52, %v6871_v52 }
 0x1e1   :  { %v4242_v40 = vmul.f32 %v6864_v56, %v6864_v56  ;;  %v9707_v56 = vmul.f32 %v6867_v18, %v6867_v18  ;;  %v6870_v18 = vld [vmem:[%s10320_s1 + $0x130] sm:$0xff]  ;;  %v6874_v52 = vld [vmem:[%s10320_s1 + $0x20] sm:$0xff] }
 0x1e2   :  { %v9721_v25 = vmul.f32 %v6870_v18, %v6870_v18  ;;  %v9739_v18 = vmul.f32 %v6873_v8, %v6873_v8  ;;  %v4246_v45 = vmul.f32 %v6874_v52, %v6874_v52  ;;  %v9753_v8 = vmul.f32 %v6876_v53, %v6876_v53  ;;  %v11341_v52 = vld [vmem:[#allocation54_spill] sm:$0xff] }
 0x1e3   :  { %6047 = vmatmul.mubr.f32.gmra.mrb[8].mxu0 %v11338_v54  ;;  %v4305_v41 = vadd.f32 %v4243_v4, %v4242_v40  ;;  %v11339_v40 = vld [vmem:[#allocation27_spill] sm:$0xff]  ;;  %v6872_v4 = vld [vmem:[%s10320_s1 + $0x168] sm:$0xff]  ;;  %v4256_v53 = vmul.f32 %v6878_v51, %v6878_v51 }
 0x1e4   :  { %6049 = vmatprep.mubr.msk.f32.mxu0 %vm6947_vm2, %v11241_v55  ;;  %6070 = vmatpush3.xpose.msra.mxu0 %v11339_v40  ;;  %v9734_v42 = vmul.f32 %v6872_v4, %v6872_v4  ;;  %v9748_v4 = vmul.f32 %v6875_v31, %v6875_v31  ;;  %v6882_v51 = vld [vmem:[%s10320_s1 + $0x38] sm:$0xff] }
 0x1e5   :  { %6340 = vmatprep.subr.bf16.mxu0 %v11161_v1  ;;  %v4306_v40 = vadd.f32 %v4305_v41, %v4244_v49  ;;  %v6877_v41 = vld [vmem:[%s10320_s1 + $0x28] sm:$0xff] }
 0x1e6   :  { %6415 = vmatpush1.bf16.xpose.msra.mxu1 %v6414_v61  ;;  %v4247_v49 = vmul.f32 %v6877_v41, %v6877_v41  ;;  %v6879_v61 = vld [vmem:[%s10320_s1 + $0x78] sm:$0xff]  ;;  %v6883_v41 = vld [vmem:[%s10320_s1 + $0x40] sm:$0xff] }
 0x1e7   :  { %6050 = vmatmul.mubr.f32.gmra.mrb[10].mxu0 %v11341_v52  ;;  %5306 = vmatprep.subr.mxu1 %v5305_v5  ;;  %v4307_v31 = vadd.f32 %v4306_v40, %v4245_v39  ;;  %v4257_v20 = vmul.f32 %v6879_v61, %v6879_v61  ;;  %v6881_v5 = vld [vmem:[%s10320_s1 + $0x1c0] sm:$0x3f]  ;;  %v4249_v40 = vmul.f32 %v6882_v51, %v6882_v51 }
 0x1e8   :  { %v9776_v39 = vmul.f32 %v6881_v5, %v6881_v5  ;;  %6052 = vmatprep.mubr.msk.f32.mxu0 %vm6947_vm2, %v11241_v55  ;;  %v4250_v61 = vmul.f32 %v6883_v41, %v6883_v41  ;;  %v11342_v5 = vld [vmem:[#allocation15_spill] sm:$0xff]  ;;  %v6416_v51 = vpack.c.bf16 %v11324_v44, %v11322_v59 }
 0x1e9   :  { %v4248_v57 = vmul.f32 %v11342_v5, %v11342_v5  ;;  %v4308_v63 = vadd.f32 %v4307_v31, %v4246_v45  ;;  %v4321_v52 = vadd.f32 %v4257_v20, %v4256_v53  ;;  %v4263_v20 = vmul.f32 %v6886_v22, %v6886_v22  ;;  %v6887_v44 = vld [vmem:[%s10320_s1 + $0xb0] sm:$0xff]  ;;  %v6891_v53 = vld [vmem:[%s10320_s1 + $0xe8] sm:$0xff]  ;;  %v6894_v22 = vld [vmem:[%s10320_s1 + $0xa0] sm:$0xff] }
 0x1ea   :  { %v4313_v47 = vadd.f32 %v4250_v61, %v4249_v40  ;;  %v11344_v45 = vand.u32 4294901760, %v11300_v50  ;;  %v4271_v40 = vmul.f32 %v6891_v53, %v6891_v53  ;;  %v6893_v61 = vld [vmem:[%s10320_s1 + $0x60] sm:$0xff] }
 0x1eb   :  { %6053 = vmatmul.mubr.f32.gmra.mrb[12].mxu0 %v9350_v2  ;;  %v4309_v41 = vadd.f32 %v4308_v63, %v4247_v49  ;;  %v4322_v5 = vadd.f32 %v4321_v52, %v9688_v12  ;;  %v4264_v12 = vmul.f32 %v6887_v44, %v6887_v44  ;;  %v6888_v52 = vld [vmem:[%s10320_s1 + $0x90] sm:$0xff]  ;;  %v6896_v44 = vld [vmem:[%s10320_s1 + $0xc8] sm:$0xff] }
 0x1ec   :  { %6055 = vmatprep.mubr.msk.f32.mxu0 %vm6947_vm2, %v11241_v55  ;;  %v9813_v63 = vpack.c.bf16 %v11344_v45, %v11343_v0  ;;  %v4314_v59 = vadd.f32 %v4313_v47, %v9683_v27  ;;  %v4260_v31 = vmul.f32 %v6888_v52, %v6888_v52  ;;  %v6890_v27 = vld [vmem:[%s10320_s1 + $0xe0] sm:$0xff]  ;;  %v6895_v45 = vld [vmem:[%s10320_s1 + $0x68] sm:$0xff] }
 0x1ed   :  { %v4310_v49 = vadd.f32 %v4309_v41, %v4248_v57  ;;  %v4323_v21 = vadd.f32 %v4322_v5, %v4259_v16  ;;  %v4329_v50 = vadd.f32 %v4264_v12, %v4263_v20  ;;  %v4270_v57 = vmul.f32 %v6890_v27, %v6890_v27 }
 0x1ee   :  { %5312 = vmatpush1.xpose.msra.mxu1 %v5311_v13  ;;  %v4315_v47 = vadd.f32 %v4314_v59, %v9678_v43  ;;  %v6892_v13 = vld [vmem:[%s10320_s1 + $0x98] sm:$0xff]  ;;  %v4254_v41 = vmul.f32 %v6893_v61, %v6893_v61  ;;  %v4262_v20 = vmul.f32 %v6894_v22, %v6894_v22  ;;  %v4255_v59 = vmul.f32 %v6895_v45, %v6895_v45  ;;  %v6903_v61 = vld [vmem:[%s10320_s1 + $0x120] sm:$0xff] }
 0x1ef   :  { %6417 = vmatprep.subr.bf16.mxu1 %v6416_v51  ;;  %6056 = vmatmul.mubr.f32.gmra.mrb[14].mxu0 %v9411_v38  ;;  %v4261_v16 = vmul.f32 %v6892_v13, %v6892_v13  ;;  %v4324_v43 = vadd.f32 %v4323_v21, %v4260_v31  ;;  %v4330_v51 = vadd.f32 %v4329_v50, %v9701_v26  ;;  %v6897_v21 = vld [vmem:[%s10320_s1 + $0xd0] sm:$0xff]  ;;  %v6899_v50 = vld [vmem:[%s10320_s1 + $0x118] sm:$0xff]  ;;  %v11346_v45 = vand.u32 4294901760, %v11307_v10 }
 0x1f0   :  { %6058 = vmatprep.mubr.msk.f32.mxu0 %vm6947_vm2, %v11241_v55  ;;  %4311 = vadd.xlane.f32.xlu0 %v4310_v49  ;;  %v4316_v28 = vadd.f32 %v4315_v47, %v4253_v15  ;;  %v4337_v5 = vadd.f32 %v4271_v40, %v4270_v57  ;;  %v4267_v12 = vmul.f32 %v6896_v44, %v6896_v44  ;;  %v6900_v57 = vld [vmem:[%s10320_s1 + $0x1d0] sm:$0x3f]  ;;  %v6901_v13 = vld [vmem:[%s10320_s1 + $0xd8] sm:$0xff] }
 0x1f1   :  { %5370 = vmatmul.mubr.f32.vlgmr.msra.gmra.mrb[48].mxu1 %v9581_v30  ;;  %v4325_v0 = vadd.f32 %v4324_v43, %v4261_v16  ;;  %v4331_v49 = vadd.f32 %v4330_v51, %v9696_v58  ;;  %v4268_v24 = vmul.f32 %v6897_v21, %v6897_v21  ;;  %v4277_v27 = vmul.f32 %v6899_v50, %v6899_v50  ;;  %v6910_v50 = vld [vmem:[%s10320_s1 + $0x188] sm:$0xff] }
 0x1f2   :  { %6419 = vmatpush1.bf16.xpose.msra.mxu1 %v6418_v60  ;;  %5461 = vmatprep.mubr.f32.mxu1 %v9533_v33  ;;  %v4317_v26 = vadd.f32 %v4316_v28, %v4254_v41  ;;  %v4338_v52 = vadd.f32 %v4337_v5, %v9716_v32  ;;  %v6898_v60 = vld [vmem:[%s10320_s1 + $0x100] sm:$0xff]  ;;  %v9873_v53 = vmul.f32 %v6900_v57, %v6900_v57  ;;  %v6904_v5 = vld [vmem:[%s10320_s1 + $0x110] sm:$0xff] }
 0x1f3   :  { %6059 = vmatmul.mubr.f32.gmra.mrb[16].mxu0 %v9447_v7  ;;  %6421 = vmatprep.subr.bf16.mxu1 %v6420_v48  ;;  %v4326_v31 = vadd.f32 %v4325_v0, %v4262_v20  ;;  %v4274_v15 = vmul.f32 %v6898_v60, %v6898_v60  ;;  %v4332_v32 = vadd.f32 %v4331_v49, %v4267_v12  ;;  %v11345_v0 = vand.u32 4294901760, %v11328_v37  ;;  %v6907_v37 = vld [vmem:[%s10320_s1 + $0x138] sm:$0xff]  ;;  %v6911_v57 = vld [vmem:[%s10320_s1 + $0x190] sm:$0xff] }
 0x1f4   :  { %v9862_v47 = vpop.f32.mrb[0].mxu1  ;;  %6071 = vmatprep.mubr.msk.f32.mxu0 %vm6947_vm2, %v11241_v55  ;;  %v4318_v58 = vadd.f32 %v4317_v26, %v4255_v59  ;;  %v4339_v48 = vadd.f32 %v4338_v52, %v9707_v56  ;;  %v4269_v16 = vmul.f32 %v6901_v13, %v6901_v13  ;;  %v6902_v56 = vld [vmem:[%s10320_s1 + $0x108] sm:$0xff]  ;;  %v4278_v41 = vmul.f32 %v6903_v61, %v6903_v61  ;;  %v6906_v26 = vld [vmem:[%s10320_s1 + $0x158] sm:$0xff] }
 0x1f5   :  { %v1682_v40 = vpop.f32.mrb[1].mxu1  ;;  %4327 = vadd.xlane.f32.xlu1 %v4326_v31  ;;  %v4275_v43 = vmul.f32 %v6902_v56, %v6902_v56  ;;  %v6422_v28 = vpack.c.bf16 %v9394_v11, %v9389_v46  ;;  %v4333_v51 = vadd.f32 %v4332_v32, %v4268_v24  ;;  %v4276_v22 = vmul.f32 %v6904_v5, %v6904_v5  ;;  %v6905_v11 = vld [vmem:[%s10320_s1 + $0x150] sm:$0xff]  ;;  %v6908_v24 = vld [vmem:[%s10320_s1 + $0x140] sm:$0xff] }
 0x1f6   :  { %4319 = vadd.xlane.f32.xlu0 %v4318_v58  ;;  %v4340_v20 = vadd.f32 %v4339_v48, %v4274_v15  ;;  %v11347_v59 = vand.u32 4294901760, %v11306_v34  ;;  %v4345_v12 = vadd.f32 %v4278_v41, %v4277_v27  ;;  %v4284_v46 = vmul.f32 %v6905_v11, %v6905_v11  ;;  %v6909_v15 = vld [vmem:[%s10320_s1 + $0x170] sm:$0xff]  ;;  %v6914_v5 = vld [vmem:[%s10320_s1 + $0x1e0] sm:$0x3f] }
 0x1f7   :  { %6072 = vmatmul.mubr.f32.vlgmr.msra.gmra.mrb[0].mxu0 %v11345_v0  ;;  %v4285_v49 = vmul.f32 %v6906_v26, %v6906_v26  ;;  %v4334_v34 = vadd.f32 %v4333_v51, %v4269_v16  ;;  %v4281_v31 = vmul.f32 %v6907_v37, %v6907_v37  ;;  %v4282_v60 = vmul.f32 %v6908_v24, %v6908_v24  ;;  %v6915_v0 = vld [vmem:[%s10320_s1 + $0x180] sm:$0xff] }
 0x1f8   :  { %v9895_v44 = vpack.c.bf16 %v11347_v59, %v11346_v45  ;;  %v9903_v52 = vpop.f32.mrb[2].mxu1  ;;  %6342 = vmatpush3.bf16.xpose.msra.mxu0 %v9813_v63  ;;  %6074 = vmatprep.mubr.msk.f32.mxu0 %vm6947_vm2, %v11241_v55  ;;  %v4341_v10 = vadd.f32 %v4340_v20, %v4275_v43  ;;  %v4346_v63 = vadd.f32 %v4345_v12, %v9726_v17  ;;  %v11348_v17 = vand.u32 4294901760, %v11332_v35  ;;  %v6912_v35 = vld [vmem:[%s10320_s1 + $0x148] sm:$0xff] }
 0x1f9   :  { %v1689_v21 = vpop.f32.mrb[3].mxu1  ;;  %6343 = vmatprep.subr.bf16.mxu0 %v11161_v1  ;;  %v4288_v58 = vmul.f32 %v6909_v15, %v6909_v15  ;;  %v4353_v32 = vadd.f32 %v4285_v49, %v4284_v46  ;;  %4335 = vadd.xlane.f32.xlu1 %v4334_v34  ;;  %v4291_v27 = vmul.f32 %v6910_v50, %v6910_v50  ;;  %v4370_v56 = vsel %vm4369_vm3, %v9776_v39, 0.0  ;;  %v6916_v59 = vld [vmem:[%s10320_s1 + $0x1a8] sm:$0xff] }
 0x1fa   :  { %6423 = vmatpush1.bf16.xpose.msra.mxu1 %v6422_v28  ;;  %v4342_v48 = vadd.f32 %v4341_v10, %v4276_v22  ;;  %v4292_v40 = vmul.f32 %v6911_v57, %v6911_v57  ;;  %v4347_v13 = vadd.f32 %v4346_v63, %v9721_v25  ;;  %v4371_v43 = vsel %vm4369_vm3, %v9771_v6, 0.0  ;;  %v6913_v25 = vld [vmem:[%s10320_s1 + $0x178] sm:$0xff]  ;;  %v6919_v63 = vld [vmem:[%s10320_s1 + $0x1f0] sm:$0x3f] }
 0x1fb   :  { %6075 = vmatmul.mubr.f32.gmra.mrb[2].mxu0 %v11348_v17  ;;  %5401 = vmatprep.subr.mxu1 %v9642_v62  ;;  %v4354_v16 = vadd.f32 %v4353_v32, %v9739_v18  ;;  %v4283_v41 = vmul.f32 %v6912_v35, %v6912_v35  ;;  %v4289_v18 = vmul.f32 %v6913_v25, %v6913_v25  ;;  %v4373_v20 = vsel %vm4369_vm3, %v9873_v53, 0.0  ;;  %v6917_v53 = vld [vmem:[%s10320_s1 + $0x1e8] sm:$0x3f]  ;;  %v11353_v25 = vld [vmem:[#allocation19_spill] sm:$0xff] }
 0x1fc   :  { %v9934_v61 = vpop.f32.mrb[4].mxu1  ;;  %6077 = vmatprep.mubr.msk.f32.mxu0 %vm6947_vm2, %v11241_v55  ;;  %4343 = vadd.xlane.f32.xlu0 %v4342_v48  ;;  %v4361_v39 = vadd.f32 %v4292_v40, %v4291_v27  ;;  %v4348_v51 = vadd.f32 %v4347_v13, %v4281_v31  ;;  %v4302_v22 = vmul.f32 %v6914_v5, %v6914_v5  ;;  %v11349_v46 = vand.u32 4294901760, %v11335_v9  ;;  %v6918_v9 = vld [vmem:[%s10320_s1 + $0x1b0] sm:$0xff] }
 0x1fd   :  { %v1696_v28 = vpop.f32.mrb[5].mxu1  ;;  %v4355_v6 = vadd.f32 %v4354_v16, %v9734_v42  ;;  %v4290_v45 = vmul.f32 %v6915_v0, %v6915_v0  ;;  %v4295_v12 = vmul.f32 %v6916_v59, %v6916_v59  ;;  %v4372_v11 = vadd.f32 %v4371_v43, %v4370_v56 }
 0x1fe   :  { %v4362_v42 = vadd.f32 %v4361_v39, %v9753_v8  ;;  %v4349_v26 = vadd.f32 %v4348_v51, %v4282_v60  ;;  %v4303_v34 = vmul.f32 %v6917_v53, %v6917_v53  ;;  %v4375_v10 = vsel %vm4369_vm3, %v9789_v14, 0.0  ;;  %v11354_v39 = vld [vmem:[#allocation49_spill] sm:$0xff] }
 0x1ff   :  { %6078 = vmatmul.mubr.f32.gmra.mrb[4].mxu0 %v11349_v46  ;;  %v4356_v49 = vadd.f32 %v4355_v6, %v4288_v58  ;;  %v4296_v8 = vmul.f32 %v6918_v9, %v6918_v9  ;;  %v4374_v21 = vadd.f32 %v4373_v20, %v4372_v11  ;;  %v4304_v15 = vmul.f32 %v6919_v63, %v6919_v63  ;;  %v6920_v58 = vld [vmem:[%s10320_s1 + $0x1b8] sm:$0xff]  ;;  %v11358_v20 = vld [vmem:[#allocation73_spill] sm:$0xff]  ;;  %v11362_v9 = vld [vmem:[#allocation78_spill] sm:$0xff] }
 0x200   :  { %v9964_v37 = vpop.f32.mrb[6].mxu1  ;;  %6080 = vmatprep.mubr.msk.f32.mxu0 %vm6947_vm2, %v11241_v55  ;;  %6345 = vmatpush3.bf16.xpose.msra.mxu0 %v9895_v44  ;;  %v4363_v31 = vadd.f32 %v4362_v42, %v9748_v4  ;;  %v4350_v60 = vadd.f32 %v4349_v26, %v4283_v41  ;;  %v4377_v44 = vsel %vm4369_vm3, %v4302_v22, 0.0  ;;  %v4297_v4 = vmul.f32 %v6920_v58, %v6920_v58  ;;  %v11367_v58 = vld [vmem:[#allocation55_spill] sm:$0xff] }
 0x201   :  { %v1703_v24 = vpop.f32.mrb[7].mxu1  ;;  %6106 = vmatprep.subr.mxu0 %v11241_v55  ;;  %v4357_v14 = vadd.f32 %v4356_v49, %v4289_v18  ;;  %v4376_v48 = vadd.f32 %v4375_v10, %v4374_v21  ;;  %v11350_v50 = vand.u32 4294901760, %v11337_v19  ;;  %v4379_v57 = vsel %vm4369_vm3, %v4303_v34, 0.0  ;;  %v11364_v21 = vld [vmem:[#allocation96_spill] sm:$0xff] }
 0x202   :  { %5404 = vmatpush1.xpose.msra.mxu1 %v9660_v3  ;;  %v4364_v32 = vadd.f32 %v4363_v31, %v4295_v12  ;;  %4351 = vadd.xlane.f32.xlu1 %v4350_v60  ;;  %v4381_v56 = vsel %vm4369_vm3, %v4304_v15, 0.0  ;;  %v11351_v19 = vand.u32 4294901760, %v9533_v33  ;;  %v11352_v41 = vand.u32 4294901760, %v11338_v54  ;;  %v11356_v33 = vld [vmem:[#allocation8_spill] sm:$0xff]  ;;  %v11360_v12 = vld [vmem:[#allocation54_spill] sm:$0xff] }
 0x203   :  { %6425 = vmatprep.subr.bf16.mxu1 %v9556_v36  ;;  %6081 = vmatmul.mubr.f32.gmra.mrb[6].mxu0 %v11350_v50  ;;  %v4358_v27 = vadd.f32 %v4357_v14, %v4290_v45  ;;  %v4378_v13 = vadd.f32 %v4377_v44, %v4376_v48  ;;  %v11355_v28 = vand.u32 4294901760, %v11354_v39  ;;  %v5739_v5 = vmul.f32 %v11356_v33, %v11356_v33  ;;  %v11357_v54 = vld [vmem:[#allocation52_spill] sm:$0xff]  ;;  %v11359_v45 = vld [vmem:[#allocation67_spill] sm:$0xff]  ;;  %v11370_v50 = vld [vmem:[#allocation66_spill] sm:$0xff] }
 0x204   :  { %v9986_v40 = vpop.f32.mrb[8].mxu1  ;;  %6083 = vmatprep.mubr.msk.f32.mxu0 %vm6947_vm2, %v11241_v55  ;;  %v4365_v17 = vadd.f32 %v4364_v32, %v4296_v8  ;;  %v5740_v22 = vmul.f32 %v11357_v54, %v11357_v54  ;;  %v5741_v0 = vmul.f32 %v11358_v20, %v11358_v20  ;;  %v5742_v59 = vmul.f32 %v11359_v45, %v11359_v45  ;;  %v11366_v44 = vld [vmem:[#allocation99_spill] sm:$0xff]  ;;  %v11385_v45 = vld [vmem:[#allocation25_spill] sm:$0xff] }
 0x205   :  { %5464 = vmatmul.mubr.f32.vlgmr.msra.gmra.mrb[50].mxu1 %v9593_v29  ;;  %v1710_v16 = vpop.f32.mrb[9].mxu1  ;;  %4359 = vadd.xlane.f32.xlu0 %v4358_v27  ;;  %v4380_v35 = vadd.f32 %v4379_v57, %v4378_v13  ;;  %v11361_v42 = vand.u32 4294901760, %v11360_v12  ;;  %v5744_v11 = vsel %vm5743_vm4, %v5739_v5, 0.0  ;;  %v11363_v31 = vand.u32 4294901760, %v9350_v2  ;;  %v11371_v27 = vld [vmem:[#allocation84_spill] sm:$0xff]  ;;  %v11372_v57 = vld [vmem:[#allocation45_spill] sm:$0xff] }
 0x206   :  { %6427 = vmatpush1.bf16.xpose.msra.mxu1 %v9567_v23  ;;  %5546 = vmatprep.mubr.f32.mxu1 %v11351_v19  ;;  %v4366_v43 = vadd.f32 %v4365_v17, %v4297_v4  ;;  %v5745_v46 = vsel %vm5743_vm4, %v5740_v22, 0.0  ;;  %v5747_v26 = vsel %vm5743_vm4, %v5741_v0, 0.0  ;;  %v5749_v10 = vsel %vm5743_vm4, %v5742_v59, 0.0  ;;  %v11373_v17 = vld [vmem:[#allocation70_spill] sm:$0xff]  ;;  %v11374_v13 = vld [vmem:[#allocation13_spill] sm:$0xff]  ;;  %v11375_v16 = vld [vmem:[#allocation63_spill] sm:$0xff] }
 0x207   :  { %6084 = vmatmul.mubr.f32.gmra.mrb[8].mxu0 %v11352_v41  ;;  %6429 = vmatprep.subr.bf16.mxu1 %v11353_v25  ;;  %v4382_v51 = vadd.f32 %v4381_v56, %v4380_v35  ;;  %v5746_v53 = vadd.f32 %v5745_v46, %v5744_v11  ;;  %v11365_v63 = vand.u32 4294901760, %v9411_v38  ;;  %v11368_v4 = vand.u32 4294901760, %v9447_v7  ;;  %v11377_v35 = vld [vmem:[#allocation86_spill] sm:$0xff]  ;;  %v11382_v5 = vld [vmem:[#allocation7_spill] sm:$0xff]  ;;  %v11386_v12 = vld [vmem:[#allocation9_spill] sm:$0xff] }
 0x208   :  { %v9998_v18 = vpop.f32.mrb[10].mxu1  ;;  %6086 = vmatprep.mubr.msk.f32.mxu0 %vm6947_vm2, %v11241_v55  ;;  %6107 = vmatpush3.xpose.msra.mxu0 %v11355_v28  ;;  %v11369_v38 = vand.u32 4294901760, %v9593_v29  ;;  %v11378_v41 = vand.u32 4294901760, %v9642_v62  ;;  %v11381_v62 = vand.u32 4294901760, %v9660_v3  ;;  %v11383_v54 = vld [vmem:[#allocation27_spill] sm:$0xff]  ;;  %v11384_v3 = vld [vmem:[#allocation14_spill] sm:$0xff] }
 0x209   :  { %v1717_v6 = vpop.f32.mrb[11].mxu1  ;;  %6346 = vmatprep.subr.bf16.mxu0 %v11161_v1  ;;  %4367 = vadd.xlane.f32.xlu1 %v4366_v43  ;;  %v5748_v8 = vadd.f32 %v5747_v26, %v5746_v53  ;;  %v11376_v43 = vld [vmem:[#allocation30_spill] sm:$0xff]  ;;  %v11387_v11 = vld [vmem:[#allocation12_spill] sm:$0xff] }
 0x20a   :  { %4383 = vadd.xlane.f32.xlu0 %v4382_v51  ;;  %v11380_v51 = vld [vmem:[#allocation88_spill] sm:$0xff] }
 0x20b   :  { %6087 = vmatmul.mubr.f32.gmra.mrb[10].mxu0 %v11361_v42  ;;  %v5750_v60 = vadd.f32 %v5749_v10, %v5748_v8 }
 0x20c   :  { %v10015_v49 = vpop.f32.mrb[12].mxu1  ;;  %6089 = vmatprep.mubr.msk.f32.mxu0 %vm6947_vm2, %v11241_v55 }
 0x20d   :  { %v1724_v34 = vpop.f32.mrb[13].mxu1  ;;  %5751 = vadd.xlane.f32.xlu1 %v5750_v60 }
 0x20e   :  { %6431 = vmatpush1.bf16.xpose.msra.mxu1 %v11362_v9 }
 0x20f   :  { %6090 = vmatmul.mubr.f32.gmra.mrb[12].mxu0 %v11363_v31  ;;  %5486 = vmatprep.subr.mxu1 %v11364_v21 }
 0x210   :  { %v10023_v24 = vpop.f32.mrb[14].mxu1  ;;  %6092 = vmatprep.mubr.msk.f32.mxu0 %vm6947_vm2, %v11241_v55 }
 0x211   :  { %v1731_v14 = vpop.f32.mrb[15].mxu1 }
 0x213   :  { %6093 = vmatmul.mubr.f32.gmra.mrb[14].mxu0 %v11365_v63 }
 0x214   :  { %v10029_v15 = vpop.f32.mrb[16].mxu1  ;;  %6095 = vmatprep.mubr.msk.f32.mxu0 %vm6947_vm2, %v11241_v55 }
 0x215   :  { %v1738_v2 = vpop.f32.mrb[17].mxu1 }
 0x216   :  { %5488 = vmatpush1.xpose.msra.mxu1 %v11366_v44 }
 0x217   :  { %6433 = vmatprep.subr.bf16.mxu1 %v11367_v58  ;;  %6096 = vmatmul.mubr.f32.gmra.mrb[16].mxu0 %v11368_v4 }
 0x218   :  { %6108 = vmatprep.mubr.msk.f32.mxu0 %vm6947_vm2, %v11241_v55  ;;  %v10039_v32 = vpop.f32.mrb[18].mxu1 }
 0x219   :  { %5550 = vmatmul.mubr.f32.vlgmr.msra.gmra.mrb[52].mxu1 %v11369_v38  ;;  %v6150_v48 = vpop.f32.mrb[19].mxu1 }
 0x21a   :  { %6435 = vmatpush1.bf16.xpose.msra.mxu1 %v11370_v50  ;;  %5650 = vmatprep.mubr.f32.mxu1 %v11371_v27 }
 0x21b   :  { %6109 = vmatmul.mubr.f32.vlgmr.msra.gmra.mrb[0].mxu0 %v11372_v57  ;;  %6437 = vmatprep.subr.bf16.mxu1 %v11373_v17 }
 0x21c   :  { %6348 = vmatpush3.bf16.xpose.msra.mxu0 %v11374_v13  ;;  %6111 = vmatprep.mubr.msk.f32.mxu0 %vm6947_vm2, %v11241_v55  ;;  %v10050_v7 = vpop.f32.mrb[20].mxu1 }
 0x21d   :  { %6349 = vmatprep.subr.bf16.mxu0 %v11161_v1  ;;  %v6153_v29 = vpop.f32.mrb[21].mxu1  ;;  %v11379_v1 = vld [vmem:[#allocation62_spill] sm:$0xff] }
 0x21f   :  { %6112 = vmatmul.mubr.f32.gmra.mrb[2].mxu0 %v11375_v16 }
 0x220   :  { %6114 = vmatprep.mubr.msk.f32.mxu0 %vm6947_vm2, %v11241_v55  ;;  %v10056_v56 = vpop.f32.mrb[22].mxu1 }
 0x221   :  { %v6156_v19 = vpop.f32.mrb[23].mxu1 }
 0x222   :  { %6439 = vmatpush1.bf16.xpose.msra.mxu1 %v11376_v43  ;;  %v11389_v19 = vld [vmem:[#allocation37_spill] sm:$0xff] }
 0x223   :  { %6115 = vmatmul.mubr.f32.gmra.mrb[4].mxu0 %v11377_v35  ;;  %5590 = vmatprep.subr.mxu1 %v11378_v41  ;;  %v4385_v43 = vadd.s32 8, %v11389_v19 }
 0x224   :  { %6117 = vmatprep.mubr.msk.f32.mxu0 %vm6947_vm2, %v11241_v55  ;;  %6351 = vmatpush3.bf16.xpose.msra.mxu0 %v11379_v1  ;;  %v10065_v39 = vpop.f32.mrb[24].mxu1 }
 0x225   :  { %6143 = vmatprep.subr.mxu0 %v11241_v55  ;;  %v6159_v28 = vpop.f32.mrb[25].mxu1 }
 0x227   :  { %6118 = vmatmul.mubr.f32.gmra.mrb[6].mxu0 %v11380_v51  ;;  %v4386_v51 = vadd.s32 16, %v11389_v19 }
 0x228   :  { %6120 = vmatprep.mubr.msk.f32.mxu0 %vm6947_vm2, %v11241_v55  ;;  %v10071_v6 = vpop.f32.mrb[26].mxu1 }
 0x229   :  { %v6162_v33 = vpop.f32.mrb[27].mxu1 }
 0x22a   :  { %5594 = vmatpush1.xpose.msra.mxu1 %v11381_v62 }
 0x22b   :  { %6441 = vmatprep.subr.bf16.mxu1 %v9556_v36  ;;  %6121 = vmatmul.mubr.f32.gmra.mrb[8].mxu0 %v11382_v5 }
 0x22c   :  { %6123 = vmatprep.mubr.msk.f32.mxu0 %vm6947_vm2, %v11241_v55  ;;  %6144 = vmatpush3.xpose.msra.mxu0 %v11383_v54  ;;  %v10080_v22 = vpop.f32.mrb[28].mxu1 }
 0x22d   :  { %5652 = vmatmul.mubr.f32.vlgmr.msra.gmra.mrb[54].mxu1 %v9581_v30  ;;  %v6165_v20 = vpop.f32.mrb[29].mxu1 }
 0x22e   :  { %6443 = vmatpush1.bf16.xpose.msra.mxu1 %v9567_v23  ;;  %5732 = vmatprep.mubr.f32.mxu1 %v11371_v27 }
 0x22f   :  { %6124 = vmatmul.mubr.f32.gmra.mrb[10].mxu0 %v11384_v3  ;;  %6445 = vmatprep.subr.bf16.mxu1 %v11353_v25 }
 0x230   :  { %6126 = vmatprep.mubr.msk.f32.mxu0 %vm6947_vm2, %v11241_v55  ;;  %v10089_v36 = vpop.f32.mrb[30].mxu1 }
 0x231   :  { %v6168_v0 = vpop.f32.mrb[31].mxu1 }
 0x233   :  { %6127 = vmatmul.mubr.f32.gmra.mrb[12].mxu0 %v11385_v45  ;;  %v4387_v45 = vadd.s32 24, %v11389_v19 }
 0x234   :  { %6129 = vmatprep.mubr.msk.f32.mxu0 %vm6947_vm2, %v11241_v55  ;;  %v10094_v59 = vpop.f32.mrb[32].mxu1 }
 0x235   :  { %v6171_v23 = vpop.f32.mrb[33].mxu1 }
 0x236   :  { %6447 = vmatpush1.bf16.xpose.msra.mxu1 %v11362_v9 }
 0x237   :  { %6130 = vmatmul.mubr.f32.gmra.mrb[14].mxu0 %v11386_v12  ;;  %5674 = vmatprep.subr.mxu1 %v11364_v21 }
 0x238   :  { %6132 = vmatprep.mubr.msk.f32.mxu0 %vm6947_vm2, %v11241_v55  ;;  %v4673_v25 = vpop.f32.mrb[34].mxu1 }
 0x239   :  { %v4675_v42 = vpop.f32.mrb[35].mxu1 }
 0x23b   :  { %6133 = vmatmul.mubr.f32.gmra.mrb[16].mxu0 %v11387_v11 }
 0x23c   :  { %6145 = vmatprep.mubr.msk.f32.mxu0 %vm6947_vm2, %v11241_v55 }
 0x23e   :  { %5676 = vmatpush1.xpose.msra.mxu1 %v11366_v44 }
 0x23f   :  { %6146 = vmatmul.mubr.f32.vlgmr.msra.gmra.mrb[0].mxu0 %v11372_v57  ;;  %v11388_v57 = vlaneseq }
 0x241   :  { %5734 = vmatmul.mubr.f32.vlgmr.msra.gmra.mrb[56].mxu1 %v9581_v30  ;;  %v4394_v17 = vand.u32 127, %v11388_v57 }
 0x243   :  { %v10108_v13 = vmul.u32 2, %v4394_v17 }
 0x245   :  { %v10111_v16 = vadd.s32 1, %v10108_v13  ;;  %vm4396_vm5 = vcmp.eq.s32.totalorder %v11389_v19, %v10108_v13  ;;  %vm4397_vm7 = vcmp.eq.s32.totalorder %v4385_v43, %v10108_v13  ;;  %vm4398_vm9 = vcmp.eq.s32.totalorder %v4386_v51, %v10108_v13 }
 0x246   :  { %v10119_v28 = vsel %vm4396_vm5, 1.0, %v11241_v55  ;;  %v10129_v20 = vsel %vm4397_vm7, 1.0, %v11241_v55  ;;  %v10142_v42 = vsel %vm4398_vm9, 1.0, %v11241_v55  ;;  %vm4399_vm12 = vcmp.eq.s32.totalorder %v4387_v45, %v10108_v13 }
 0x247   :  { %vm4490_vm6 = vcmp.eq.s32.totalorder %v11389_v19, %v10111_v16  ;;  %vm4491_vm8 = vcmp.eq.s32.totalorder %v4385_v43, %v10111_v16  ;;  %vm4492_vm10 = vcmp.eq.s32.totalorder %v4386_v51, %v10111_v16  ;;  %vm4493_vm13 = vcmp.eq.s32.totalorder %v4387_v45, %v10111_v16 }
 0x248   :  { %v10125_v62 = vsel %vm4490_vm6, 1.0, %v11241_v55  ;;  %v10132_v3 = vsel %vm4491_vm8, 1.0, %v11241_v55  ;;  %v10145_v11 = vsel %vm4492_vm10, 1.0, %v11241_v55  ;;  %v4391_v45 = vadd.s32 56, %v11389_v19 }
 0x249   :  { %vm4448_vm8 = vcmask 283648   ;;  %vm5758_vm9 = vcmask 279552  }
 0x24a   :  { %vm4403_vm4 = vcmp.eq.s32.totalorder %v4391_v45, %v10108_v13  ;;  %vm4497_vm5 = vcmp.eq.s32.totalorder %v4391_v45, %v10111_v16 }
 0x24c   :  { %v4795_v46 = vpop.f32.mrb[36].mxu1 }
 0x24d   :  { %v4796_v26 = vadd.f32 %v4795_v46, %v4673_v25  ;;  %v4797_v53 = vpop.f32.mrb[37].mxu1  ;;  %v4388_v25 = vadd.s32 32, %v11389_v19 }
 0x24f   :  { %vm4400_vm14 = vcmp.eq.s32.totalorder %v4388_v25, %v10108_v13  ;;  %vm4494_vm15 = vcmp.eq.s32.totalorder %v4388_v25, %v10111_v16 }
 0x260   :  { %v4889_v34 = vpop.f32.mrb[38].mxu1 }
 0x261   :  { %v4890_v10 = vadd.f32 %v4889_v34, %v4796_v26  ;;  %v4891_v9 = vpop.f32.mrb[39].mxu1 }
 0x274   :  { %v4975_v8 = vpop.f32.mrb[40].mxu1 }
 0x275   :  { %v4976_v31 = vadd.f32 %v4975_v8, %v4890_v10  ;;  %v4977_v21 = vpop.f32.mrb[41].mxu1 }
 0x27d   :  { %v4312_v29 = vpop.xlane.xlu0 %4311 }
 0x27e   :  { %v4457_v5 = vmul.f32 %v10119_v28, %v4312_v29  ;;  %v4549_v23 = vmul.f32 %v10125_v62, %v4312_v29 }
 0x280   :  { %v4466_v46 = vsel %vm4432_vm11, %v4457_v5, 0.0  ;;  %v4558_v34 = vsel %vm4432_vm11, %v4549_v23, 0.0 }
 0x282   :  { %v4328_v54 = vpop.xlane.xlu1 %4327 }
 0x283   :  { %v4320_v33 = vpop.xlane.xlu0 %4319  ;;  %v4459_v26 = vmul.f32 %v10142_v42, %v4328_v54  ;;  %v4551_v10 = vmul.f32 %v10145_v11, %v4328_v54 }
 0x284   :  { %v4458_v0 = vmul.f32 %v10129_v20, %v4320_v33  ;;  %v4550_v12 = vmul.f32 %v10132_v3, %v4320_v33 }
 0x286   :  { %v4467_v53 = vsel %vm4432_vm11, %v4458_v0, 0.0  ;;  %v4559_v9 = vsel %vm4432_vm11, %v4550_v12, 0.0  ;;  %v4336_v8 = vpop.xlane.xlu1 %4335 }
 0x287   :  { %v4468_v21 = vadd.f32 %v4467_v53, %v4466_v46 }
 0x288   :  { %v5077_v60 = vpop.f32.mrb[42].mxu1 }
 0x289   :  { %v5078_v14 = vadd.f32 %v5077_v60, %v4976_v31  ;;  %v5079_v63 = vpop.f32.mrb[43].mxu1  ;;  %v4389_v31 = vadd.s32 40, %v11389_v19  ;;  %v10158_v60 = vsel %vm4399_vm12, 1.0, %v11241_v55 }
 0x28a   :  { %v4560_v63 = vadd.f32 %v4559_v9, %v4558_v34  ;;  %v4392_v9 = vadd.s32 64, %v11389_v19 }
 0x28b   :  { %vm4401_vm0 = vcmp.eq.s32.totalorder %v4389_v31, %v10108_v13  ;;  %vm4495_vm1 = vcmp.eq.s32.totalorder %v4389_v31, %v10111_v16 }
 0x28c   :  { %v10182_v33 = vsel %vm4401_vm0, 1.0, %v11241_v55  ;;  %v10187_v0 = vsel %vm4495_vm1, 1.0, %v11241_v55  ;;  %vm4404_vm6 = vcmp.eq.s32.totalorder %v4392_v9, %v10108_v13  ;;  %vm4498_vm7 = vcmp.eq.s32.totalorder %v4392_v9, %v10111_v16 }
 0x28f   :  { %v4352_v51 = vpop.xlane.xlu1 %4351 }
 0x290   :  { %v4462_v46 = vmul.f32 %v10182_v33, %v4352_v51 }
 0x29c   :  { %v5159_v2 = vpop.f32.mrb[44].mxu1 }
 0x29d   :  { %v5160_v58 = vadd.f32 %v5159_v2, %v5078_v14  ;;  %v5161_v4 = vpop.f32.mrb[45].mxu1  ;;  %v4469_v14 = vsel %vm4432_vm11, %v4459_v26, 0.0  ;;  %v4460_v2 = vmul.f32 %v10158_v60, %v4336_v8 }
 0x29e   :  { %v4561_v4 = vsel %vm4432_vm11, %v4551_v10, 0.0 }
 0x29f   :  { %v4471_v57 = vsel %vm4432_vm11, %v4460_v2, 0.0  ;;  %v4562_v17 = vadd.f32 %v4561_v4, %v4560_v63  ;;  %v4475_v2 = vsel %vm4432_vm11, %v4462_v46, 0.0 }
 0x2b0   :  { %v5249_v44 = vpop.f32.mrb[46].mxu1 }
 0x2b1   :  { %v5250_v38 = vadd.f32 %v5249_v44, %v5160_v58  ;;  %v5251_v48 = vpop.f32.mrb[47].mxu1  ;;  %v10164_v58 = vsel %vm4493_vm13, 1.0, %v11241_v55 }
 0x2b2   :  { %v4552_v44 = vmul.f32 %v10164_v58, %v4336_v8  ;;  %v10169_v48 = vsel %vm4400_vm14, 1.0, %v11241_v55 }
 0x2c4   :  { %v5371_v50 = vpop.f32.mrb[48].mxu1 }
 0x2c5   :  { %v5372_v30 = vadd.f32 %v5371_v50, %v5250_v38  ;;  %v5373_v27 = vpop.f32.mrb[49].mxu1  ;;  %v4344_v38 = vpop.xlane.xlu0 %4343  ;;  %v10172_v50 = vsel %vm4494_vm15, 1.0, %v11241_v55 }
 0x2c6   :  { %v4470_v27 = vadd.f32 %v4469_v14, %v4468_v21  ;;  %v4461_v29 = vmul.f32 %v10169_v48, %v4344_v38 }
 0x2c8   :  { %v4472_v23 = vadd.f32 %v4471_v57, %v4470_v27  ;;  %v4473_v25 = vsel %vm4432_vm11, %v4461_v29, 0.0  ;;  %v10211_v27 = vsel %vm4403_vm4, 1.0, %v11241_v55  ;;  %v10217_v57 = vsel %vm4497_vm5, 1.0, %v11241_v55 }
 0x2c9   :  { %v4360_v53 = vpop.xlane.xlu0 %4359 }
 0x2ca   :  { %v4474_v31 = vadd.f32 %v4473_v25, %v4472_v23  ;;  %v10227_v23 = vsel %vm4404_vm6, 1.0, %v11241_v55 }
 0x2cd   :  { %v4384_v45 = vpop.xlane.xlu0 %4383 }
 0x2d8   :  { %v5465_v35 = vpop.f32.mrb[50].mxu1 }
 0x2d9   :  { %v5466_v41 = vadd.f32 %v5465_v35, %v5372_v30  ;;  %v5467_v1 = vpop.f32.mrb[51].mxu1  ;;  %v4390_v30 = vadd.s32 48, %v11389_v19  ;;  %v4563_v35 = vsel %vm4432_vm11, %v4552_v44, 0.0 }
 0x2da   :  { %v4553_v1 = vmul.f32 %v10172_v50, %v4344_v38  ;;  %v4564_v12 = vadd.f32 %v4563_v35, %v4562_v17  ;;  %v4476_v17 = vadd.f32 %v4475_v2, %v4474_v31 }
 0x2db   :  { %vm4402_vm2 = vcmp.eq.s32.totalorder %v4390_v30, %v10108_v13  ;;  %vm4496_vm3 = vcmp.eq.s32.totalorder %v4390_v30, %v10111_v16  ;;  %v4368_v30 = vpop.xlane.xlu1 %4367  ;;  %v10231_v16 = vsel %vm4498_vm7, 1.0, %v11241_v55 }
 0x2dc   :  { %v4565_v26 = vsel %vm4432_vm11, %v4553_v1, 0.0  ;;  %v10197_v34 = vsel %vm4402_vm2, 1.0, %v11241_v55  ;;  %v10200_v10 = vsel %vm4496_vm3, 1.0, %v11241_v55 }
 0x2dd   :  { %v4566_v63 = vadd.f32 %v4565_v26, %v4564_v12  ;;  %v4463_v4 = vmul.f32 %v10197_v34, %v4360_v53  ;;  %v4555_v38 = vmul.f32 %v10200_v10, %v4360_v53  ;;  %v4465_v53 = vmul.f32 %v10227_v23, %v4384_v45 }
 0x2df   :  { %v4477_v1 = vsel %vm4432_vm11, %v4463_v4, 0.0 }
 0x2e0   :  { %v4478_v12 = vadd.f32 %v4477_v1, %v4476_v17 }
 0x2ec   :  { %v5551_v43 = vpop.f32.mrb[52].mxu1 }
 0x2ed   :  { %v10184_v5 = vadd.f32 %v5551_v43, %v5466_v41  ;;  %v5553_v54 = vpop.f32.mrb[53].mxu1  ;;  %v4554_v41 = vmul.f32 %v10187_v0, %v4352_v51  ;;  %v4464_v51 = vmul.f32 %v10211_v27, %v4368_v30 }
 0x2ee   :  { %v4556_v54 = vmul.f32 %v10217_v57, %v4368_v30 }
 0x2ef   :  { %v4567_v44 = vsel %vm4432_vm11, %v4554_v41, 0.0  ;;  %v4479_v41 = vsel %vm4432_vm11, %v4464_v51, 0.0 }
 0x2f0   :  { %v4568_v35 = vadd.f32 %v4567_v44, %v4566_v63  ;;  %v4571_v9 = vsel %vm4432_vm11, %v4556_v54, 0.0  ;;  %v4480_v55 = vadd.f32 %v4479_v41, %v4478_v12 }
 0x2f2   :  { %v4072_v8 = vpop.f32.mrb[2].mxu0 }
 0x2f3   :  { %v6455_v21 = vadd.f32 %v4072_v8, %v9903_v52  ;;  %v6113_v14 = vpop.f32.mrb[3].mxu0  ;;  %v4557_v8 = vmul.f32 %v10231_v16, %v4384_v45 }
 0x2f5   :  { %v10214_v19 = vadd.f32 %v6455_v21, %v10039_v32  ;;  %v4569_v32 = vsel %vm4432_vm11, %v4555_v38, 0.0  ;;  %v4573_v4 = vsel %vm4448_vm8, %v4557_v8, 0.0 }
 0x2f6   :  { %v4078_v52 = vpop.f32.mrb[4].mxu0  ;;  %v4570_v26 = vadd.f32 %v4569_v32, %v4568_v35 }
 0x2f7   :  { %v6457_v29 = vadd.f32 %v4078_v52, %v9934_v61  ;;  %v6116_v43 = vpop.f32.mrb[5].mxu0 }
 0x2f8   :  { %v4572_v63 = vadd.f32 %v4571_v9, %v4570_v26 }
 0x2f9   :  { %v6458_v13 = vadd.f32 %v6457_v29, %v10050_v7 }
 0x2fa   :  { %v4084_v61 = vpop.f32.mrb[6].mxu0  ;;  %v4574_v43 = vadd.f32 %v4573_v4, %v4572_v63 }
 0x2fb   :  { %v6459_v25 = vadd.f32 %v4084_v61, %v9964_v37  ;;  %v6119_v46 = vpop.f32.mrb[7].mxu0  ;;  %v4481_v37 = vsel %vm4448_vm8, %v4465_v53, 0.0 }
 0x2fc   :  { %v4482_v17 = vadd.f32 %v4481_v37, %v4480_v55  ;;  %v4575_v54 = vrot.slane %v4574_v43, 4  ;;  %v4519_v37 = vmul.f32 %v6458_v13, %v10145_v11 }
 0x2fd   :  { %v6460_v7 = vadd.f32 %v6459_v25, %v10056_v56 }
 0x2fe   :  { %v4090_v31 = vpop.f32.mrb[8].mxu0  ;;  %v4483_v1 = vrot.slane %v4482_v17, 4  ;;  %v4576_v25 = vadd.f32 %v4575_v54, %v4574_v43 }
 0x2ff   :  { %v6461_v21 = vadd.f32 %v4090_v31, %v9986_v40  ;;  %v6122_v14 = vpop.f32.mrb[9].mxu0 }
 0x300   :  { %v5653_v2 = vpop.f32.mrb[54].mxu1  ;;  %v4484_v61 = vadd.f32 %v4483_v1, %v4482_v17  ;;  %v4577_v41 = vrot.slane %v4576_v25, 2  ;;  %v4425_v14 = vmul.f32 %v6458_v13, %v10142_v42  ;;  %v4520_v42 = vmul.f32 %v6460_v7, %v10164_v58 }
 0x301   :  { %v5654_v44 = vadd.f32 %v5653_v2, %v10184_v5  ;;  %v6462_v38 = vadd.f32 %v6461_v21, %v10065_v39  ;;  %v5655_v30 = vpop.f32.mrb[55].mxu1  ;;  %v4529_v13 = vsel %vm4432_vm11, %v4519_v37, 0.0 }
 0x302   :  { %v4096_v52 = vpop.f32.mrb[10].mxu0  ;;  %v4485_v46 = vrot.slane %v4484_v61, 2  ;;  %v4578_v31 = vadd.f32 %v4577_v41, %v4576_v25  ;;  %v4531_v58 = vsel %vm4432_vm11, %v4520_v42, 0.0 }
 0x303   :  { %v6463_v56 = vadd.f32 %v4096_v52, %v9998_v18  ;;  %v6125_v29 = vpop.f32.mrb[11].mxu0  ;;  %v4436_v52 = vsel %vm4432_vm11, %v4425_v14, 0.0  ;;  %v4427_v11 = vmul.f32 %v6462_v38, %v10169_v48  ;;  %v4521_v17 = vmul.f32 %v6462_v38, %v10172_v50 }
 0x304   :  { %v4486_v9 = vadd.f32 %v4485_v46, %v4484_v61 }
 0x305   :  { %v6464_v40 = vadd.f32 %v6463_v56, %v10071_v6  ;;  %v4440_v48 = vsel %vm4432_vm11, %v4427_v11, 0.0  ;;  %v4533_v50 = vsel %vm4432_vm11, %v4521_v17, 0.0 }
 0x306   :  { %v4102_v35 = vpop.f32.mrb[12].mxu0 }
 0x307   :  { %v6465_v51 = vadd.f32 %v4102_v35, %v10015_v49  ;;  %v6128_v32 = vpop.f32.mrb[13].mxu0  ;;  %v4428_v29 = vmul.f32 %v6464_v40, %v10182_v33 }
 0x309   :  { %v6466_v45 = vadd.f32 %v6465_v51, %v10080_v22  ;;  %v4424_v22 = vmul.f32 %v10214_v19, %v10129_v20  ;;  %v4487_v20 = vrot.slane %v4486_v9, 1  ;;  %v4442_v33 = vsel %vm4432_vm11, %v4428_v29, 0.0 }
 0x30a   :  { %v4108_v5 = vpop.f32.mrb[14].mxu0 }
 0x30b   :  { %v6467_v39 = vadd.f32 %v4108_v5, %v10023_v24  ;;  %v6131_v12 = vpop.f32.mrb[15].mxu0  ;;  %v4434_v4 = vsel %vm4432_vm11, %v4424_v22, 0.0  ;;  %v4488_v35 = vadd.f32 %v4487_v20, %v4486_v9  ;;  %v4429_v32 = vmul.f32 %v6466_v45, %v10197_v34 }
 0x30c   :  { %v4523_v38 = vmul.f32 %v6466_v45, %v10200_v10  ;;  %v11390_v12 = vld [vmem:[#allocation79_spill] sm:$0xff] }
 0x30d   :  { %v6468_v18 = vadd.f32 %v6467_v39, %v10089_v36  ;;  %v4518_v36 = vmul.f32 %v10214_v19, %v10132_v3  ;;  %v4579_v3 = vrot.slane %v4578_v31, 1  ;;  %v4584_v25 = vmul.f32 %v11390_v12, %v4488_v35 }
 0x30e   :  { %v4114_v26 = vpop.f32.mrb[16].mxu0  ;;  %v4444_v41 = vsel %vm4432_vm11, %v4429_v32, 0.0  ;;  %v4537_v45 = vsel %vm4432_vm11, %v4523_v38, 0.0 }
 0x30f   :  { %v6469_v6 = vadd.f32 %v4114_v26, %v10029_v15  ;;  %v6134_v53 = vpop.f32.mrb[17].mxu0  ;;  %v4527_v19 = vsel %vm4432_vm11, %v4518_v36, 0.0  ;;  %v4580_v51 = vadd.f32 %v4579_v3, %v4578_v31  ;;  %v4430_v61 = vmul.f32 %v6468_v18, %v10211_v27  ;;  %v11391_v26 = vld [vmem:[#allocation80_spill] sm:$0xff] }
 0x311   :  { %v6470_v49 = vadd.f32 %v6469_v6, %v10094_v59  ;;  %v4585_v34 = vmul.f32 %v11391_v26, %v4580_v51  ;;  %v4446_v9 = vsel %vm4432_vm11, %v4430_v61, 0.0 }
 0x312   :  { %v4190_v8 = vpop.f32.mrb[0].mxu0 }
 0x313   :  { %v6454_v24 = vadd.f32 %v4190_v8, %v9862_v47  ;;  %v6147_v55 = vpop.f32.mrb[1].mxu0  ;;  %v4426_v47 = vmul.f32 %v6460_v7, %v10158_v60  ;;  %v4522_v7 = vmul.f32 %v6464_v40, %v10187_v0  ;;  %v4524_v40 = vmul.f32 %v6468_v18, %v10217_v57 }
 0x314   :  { %v5735_v21 = vpop.f32.mrb[56].mxu1  ;;  %v4431_v6 = vmul.f32 %v6470_v49, %v10227_v23  ;;  %v4525_v53 = vmul.f32 %v6470_v49, %v10231_v16  ;;  %v4586_v57 = vadd.f32 %v4585_v34, %v4584_v25  ;;  %v5752_v55 = vpop.xlane.xlu1 %5751 }
 0x315   :  { %v10258_v63 = vadd.f32 %v5735_v21, %v5654_v44  ;;  %v4423_v15 = vmul.f32 %v6454_v24, %v10119_v28  ;;  %v5737_v59 = vpop.f32.mrb[57].mxu1  ;;  %v4517_v2 = vmul.f32 %v6454_v24, %v10125_v62  ;;  %v4438_v56 = vsel %vm4432_vm11, %v4426_v47, 0.0 }
 0x316   :  { %v4535_v0 = vsel %vm4432_vm11, %v4522_v7, 0.0  ;;  %v4539_v22 = vsel %vm4432_vm11, %v4524_v40, 0.0  ;;  %v4449_v18 = vsel %vm4448_vm8, %v4431_v6, 0.0  ;;  %v4541_v36 = vsel %vm4448_vm8, %v4525_v53, 0.0 }
 0x317   :  { %v4433_v30 = vsel %vm4432_vm11, %v4423_v15, 0.0  ;;  %v4526_v28 = vsel %vm4432_vm11, %v4517_v2, 0.0  ;;  %v5754_v15 = vadd.f32 %v5752_v55, %v4586_v57 }
 0x318   :  { %v4435_v44 = vadd.f32 %v4434_v4, %v4433_v30  ;;  %v4528_v62 = vadd.f32 %v4527_v19, %v4526_v28 }
 0x319   :  { %v5755_v37 = vmax.f32 %v5754_v15, 1e-24 }
 0x31a   :  { %v4437_v60 = vadd.f32 %v4436_v52, %v4435_v44  ;;  %v4530_v43 = vadd.f32 %v4529_v13, %v4528_v62 }
 0x31b   :  { %6855 = vrsqrt.f32 %v5755_v37 }
 0x31c   :  { %v4439_v1 = vadd.f32 %v4438_v56, %v4437_v60  ;;  %v4532_v54 = vadd.f32 %v4531_v58, %v4530_v43 }
 0x31e   :  { %v4441_v5 = vadd.f32 %v4440_v48, %v4439_v1  ;;  %v4534_v39 = vadd.f32 %v4533_v50, %v4532_v54 }
 0x320   :  { %v4443_v46 = vadd.f32 %v4442_v33, %v4441_v5  ;;  %v4536_v10 = vadd.f32 %v4535_v0, %v4534_v39  ;;  %v5865_v0 = vld [vmem:[%s10323_s4] ss:$0 sm:$0xff] }
 0x322   :  { %v4445_v27 = vadd.f32 %v4444_v41, %v4443_v46  ;;  %v4538_v8 = vadd.f32 %v4537_v45, %v4536_v10 }
 0x324   :  { %v4447_v31 = vadd.f32 %v4446_v9, %v4445_v27  ;;  %v4540_v24 = vadd.f32 %v4539_v22, %v4538_v8 }
 0x325   :  { %v6856_v62 = vpop.eup %6855 }
 0x326   :  { %v4450_v23 = vadd.f32 %v4449_v18, %v4447_v31  ;;  %v4542_v21 = vadd.f32 %v4541_v36, %v4540_v24 }
 0x328   :  { %v4451_v14 = vrot.slane %v4450_v23, 4  ;;  %v4543_v59 = vrot.slane %v4542_v21, 4 }
 0x32a   :  { %v4452_v16 = vadd.f32 %v4451_v14, %v4450_v23  ;;  %v4544_v49 = vadd.f32 %v4543_v59, %v4542_v21 }
 0x32c   :  { %v4453_v2 = vrot.slane %v4452_v16, 2  ;;  %v4545_v20 = vrot.slane %v4544_v49, 2 }
 0x32e   :  { %v4454_v4 = vadd.f32 %v4453_v2, %v4452_v16  ;;  %v4546_v47 = vadd.f32 %v4545_v20, %v4544_v49 }
 0x330   :  { %v4455_v30 = vrot.slane %v4454_v4, 1  ;;  %v4547_v3 = vrot.slane %v4546_v47, 1 }
 0x332   :  { %v4456_v19 = vadd.f32 %v4455_v30, %v4454_v4  ;;  %v4548_v42 = vadd.f32 %v4547_v3, %v4546_v47 }
 0x334   :  { %v4581_v44 = vmul.f32 %v11390_v12, %v4456_v19  ;;  %v4582_v28 = vmul.f32 %v11391_v26, %v4548_v42  ;;  %v5864_v12 = vld [vmem:[%s10322_s3] ss:$0 sm:$0xff] }
 0x336   :  { %v4583_v52 = vadd.f32 %v4582_v28, %v4581_v44 }
 0x338   :  { %v5753_v11 = vadd.f32 %v10258_v63, %v4583_v52 }
 0x33a   :  { %v5757_v13 = vmul.f32 %v6856_v62, %v5753_v11 }
 0x33c   :  { %v5759_v17 = vsel %vm5758_vm9, %v5757_v13, 0.0 }
 0x33d   :  { %v5760_v60 = vrot.slane %v5759_v17, 4 }
 0x33f   :  { %v5761_v56 = vadd.f32 %v5760_v60, %v5759_v17 }
 0x341   :  { %v5762_v29 = vrot.slane %v5761_v56, 2 }
 0x343   :  { %v5763_v43 = vadd.f32 %v5762_v29, %v5761_v56 }
 0x345   :  { %v5764_v35 = vrot.slane %v5763_v43, 1 }
 0x347   :  { %v5765_v58 = vadd.f32 %v5764_v35, %v5763_v43 }
 0x349   :  { %v5767_v7 = vmul.f32 0.5, %v5765_v58 }
 0x34b   :  { %v5768_v1 = vsub.f32 %v5757_v13, %v5767_v7 }
 0x34d   :  { %v5769_v51 = vmul.f32 %v5768_v1, %v5768_v1 }
 0x34f   :  { %v5770_v48 = vsel %vm5758_vm9, %v5769_v51, 0.0 }
 0x350   :  { %v5771_v32 = vrot.slane %v5770_v48, 4 }
 0x352   :  { %v5772_v54 = vadd.f32 %v5771_v32, %v5770_v48 }
 0x354   :  { %v5773_v50 = vrot.slane %v5772_v54, 2 }
 0x356   :  { %v5774_v63 = vadd.f32 %v5773_v50, %v5772_v54 }
 0x358   :  { %v5775_v38 = vrot.slane %v5774_v63, 1 }
 0x35a   :  { %v5776_v5 = vadd.f32 %v5775_v38, %v5774_v63 }
 0x35c   :  { %v5777_v33 = vmul.f32 0.5, %v5776_v5 }
 0x35e   :  { %v5778_v61 = vadd.f32 1e-05, %v5777_v33 }
 0x360   :  { %6857 = vrsqrt.f32 %v5778_v61 }
 0x36a   :  { %v6858_v39 = vpop.eup %6857 }
 0x36b   :  { %v5780_v25 = vmul.f32 %v6858_v39, %v5768_v1 }
 0x36d   :  { %v5788_v40 = vmul.f32 %v5864_v12, %v5780_v25 }
 0x36f   :  { %v5796_v46 = vadd.f32 %v5865_v0, %v5788_v40 }
 0x371   :  { %5797 = vst.msk [vmem:[#allocation2] sm:$0x3] %vm5758_vm9, %v5796_v46 }
 0x372   :  { %6932 = shalt.err (!%p6929_p4)
}
 0x373   :  { %s6933_s0 = scalar_lea.hbm %s10324_s5, 32 }
 0x374   :  { %p6934_p5 = scmp.ne.s32.totalorder %s10324_s5, %s6933_s0  ;;  %p6937_p6 = scmp.lt.u32.totalorder %s6933_s0, %s10324_s5 }
 0x376   :  { %p6939_p7 = pnand %p6937_p6, %p6934_p5 }
 0x378   :  { %6942 = shalt.err (!%p6939_p7)
}
 0x379   :  { %5807 = dma.vmem_to_hbm [thread:$0]  %s5805_s25, 32, %s10324_s5, [#allocation3]  }
 0x37a   :  { %6943 = dma.done.wait [#allocation3], 32  }
 0x37b   :  { %6944 = vsyncadd [#allocation3], 4294967264 }
 0x37c   :  { %5811 = vsyncpa [#allocation3], 1 }

</bundles_post_ra>
